<compile_context>
chip_gen: v6e
topology: v6e:2x2x1
jax: 0.10.0
libtpu: 0.0.40
codegen_flags: <defaults>
</compile_context>

<pallas_src>
import functools

import numpy as np
import jax
import jax.numpy as jnp
from jax import lax
from jax.experimental import pallas as pl
from jax.experimental.pallas import tpu as pltpu

BN_EPS = 1e-5
CPAD = 128          # conv output channels padded 64 -> 128 for lane-dense stores


# --------------------------------------------------------------------------
# Pallas kernel: out = scale * act(x @ w + bias) + shift   (act = ReLU or id)
# grid = (M tiles, N tiles, K tiles); K last ("arbitrary"), accumulate in o_ref.
# --------------------------------------------------------------------------
def _fused_mm_kernel(x_ref, w_ref, b_ref, a_ref, c_ref, o_ref, *, relu):
    k = pl.program_id(2)

    @pl.when(k == 0)
    def _():
        o_ref[...] = jnp.zeros_like(o_ref)

    o_ref[...] += jnp.dot(x_ref[...], w_ref[...],
                          preferred_element_type=jnp.float32)

    @pl.when(k == pl.num_programs(2) - 1)
    def _():
        y = o_ref[...] + b_ref[...]
        if relu:
            y = jnp.maximum(y, 0.0)
        o_ref[...] = (a_ref[...] * y + c_ref[...]).astype(o_ref.dtype)


def _choose_tk(K, cap=8192):
    """Largest K-tile <= cap that is a multiple of 128 and divides K.

    Falls back to the full K (always layout-legal, may exceed cap) if no such
    divisor exists -- not hit by the shapes used in this model.
    """
    if K <= cap:
        return K
    for t in range(cap - cap % 128, 0, -128):
        if K % t == 0:
            return t
    return K


def fused_matmul(x, w, bias, scale, shift, *, relu, tm=256):
    """y = scale * act(x @ w + bias) + shift via a Pallas TPU kernel.

    x: (M, K)  w: (K, N)  bias/scale/shift: (N,).  Operands fed to the MXU in
    bf16; accumulation and epilogue in f32.
    """
    M, K = x.shape
    Kw, N = w.shape
    assert K == Kw
    tk = _choose_tk(K)
    tn = 128 if (N > 128 and N % 128 == 0) else N

    if M <= tm:
        tm_eff, Mp, xp = M, M, x
    else:
        tm_eff = tm
        Mp = ((M + tm - 1) // tm) * tm
        xp = jnp.pad(x, ((0, Mp - M), (0, 0)))

    xp = xp.astype(jnp.bfloat16)
    w = w.astype(jnp.bfloat16)
    b2 = bias.reshape(1, N).astype(jnp.float32)
    a2 = scale.reshape(1, N).astype(jnp.float32)
    c2 = shift.reshape(1, N).astype(jnp.float32)

    out = pl.pallas_call(
        functools.partial(_fused_mm_kernel, relu=relu),
        out_shape=jax.ShapeDtypeStruct((Mp, N), jnp.float32),
        grid_spec=pltpu.PrefetchScalarGridSpec(
            num_scalar_prefetch=0,
            grid=(Mp // tm_eff, N // tn, K // tk),
            in_specs=[
                pl.BlockSpec((tm_eff, tk), lambda i, j, k: (i, k)),
                pl.BlockSpec((tk, tn), lambda i, j, k: (k, j)),
                pl.BlockSpec((1, tn), lambda i, j, k: (0, j)),
                pl.BlockSpec((1, tn), lambda i, j, k: (0, j)),
                pl.BlockSpec((1, tn), lambda i, j, k: (0, j)),
            ],
            out_specs=pl.BlockSpec((tm_eff, tn), lambda i, j, k: (i, j)),
        ),
        compiler_params=pltpu.CompilerParams(
            dimension_semantics=("parallel", "parallel", "arbitrary")),
    )(xp, w, b2, a2, c2)
    return out if Mp == M else out[:M]


# --------------------------------------------------------------------------
# Plain-JAX glue: im2col, 2x2 max-pool, weight reshaping (layout only)
# --------------------------------------------------------------------------
def im2col(x, kh, kw):
    """x: (N, H, W, C) -> patches (N*Ho*Wo, kh*kw*C), window-major/channel-minor."""
    N, H, W, C = x.shape
    Ho, Wo = H - kh + 1, W - kw + 1
    cols = []
    for i in range(kh):
        for j in range(kw):
            cols.append(x[:, i:i + Ho, j:j + Wo, :])
    patches = jnp.concatenate(cols, axis=-1)          # (N, Ho, Wo, kh*kw*C)
    return patches.reshape(N * Ho * Wo, kh * kw * C), (N, Ho, Wo)


def maxpool2x2(x):
    """x: (N, H, W, C) -> (N, H//2, W//2, C) (matches nn.MaxPool2d(2))."""
    N, H, W, C = x.shape
    Ho, Wo = H // 2, W // 2
    x = x[:, :Ho * 2, :Wo * 2, :]
    x = x.reshape(N, Ho, 2, Wo, 2, C)
    return jnp.max(x, axis=(2, 4))


def conv_weight_as_matrix(w):
    """PyTorch conv weight (Cout, Cin, kh, kw) -> (kh*kw*Cin, Cout) matching im2col."""
    Cout, Cin, kh, kw = w.shape
    return jnp.transpose(w, (2, 3, 1, 0)).reshape(kh * kw * Cin, Cout)


# --------------------------------------------------------------------------
# One-time parameter preparation (run OUTSIDE the jitted forward):
#   * fold eval-mode BN into a per-channel affine,
#   * pre-transpose linear weights to (K, N) and cast weights to bf16,
#   * zero-pad conv output columns 64 -> 128 for lane-dense stores.
# --------------------------------------------------------------------------
def prepare_params(P):
    bn_a = P["bn_gamma"] / jnp.sqrt(P["bn_var"] + BN_EPS)
    bn_c = P["bn_beta"] - bn_a * P["bn_mean"]

    def pad_vec(v):
        return jnp.pad(v, (0, CPAD - v.shape[0])).astype(jnp.float32)

    def pad_cols(mat):
        return jnp.pad(mat, ((0, 0), (0, CPAD - mat.shape[1]))).astype(jnp.bfloat16)

    return {
        "conv1_w": pad_cols(conv_weight_as_matrix(P["conv1_w"])),   # (27, 128)
        "conv1_b": pad_vec(P["conv1_b"]),
        "conv2_w": pad_cols(conv_weight_as_matrix(P["conv2_w"])),   # (576, 128)
        "conv2_b": pad_vec(P["conv2_b"]),
        "bn_a": pad_vec(bn_a),
        "bn_c": pad_vec(bn_c),
        "lin1_w": P["lin1_w"].T.astype(jnp.bfloat16),               # (12544, 256)
        "lin1_b": P["lin1_b"].astype(jnp.float32),
        "lin2_w": P["lin2_w"].T.astype(jnp.bfloat16),               # (256, 128)
        "lin2_b": P["lin2_b"].astype(jnp.float32),
        "out_w": P["out_w"].T.astype(jnp.bfloat16),                 # (128, 13)
        "out_b": P["out_b"].astype(jnp.float32),
    }


# --------------------------------------------------------------------------
# Forward pass of `classificador`
# (Note: the single BatchNorm2d is intentionally applied after BOTH convs --
#  that is what the PyTorch module does.)
# --------------------------------------------------------------------------
def classificador_forward(x_nchw, KP):
    N = x_nchw.shape[0]
    x = jnp.transpose(x_nchw, (0, 2, 3, 1)).astype(jnp.bfloat16)   # NCHW -> NHWC

    # ---- block 1: conv1 -> ReLU -> BN -> pool ----
    patches, (n, ho, wo) = im2col(x, 3, 3)                         # (N*62*62, 27)
    y = fused_matmul(patches, KP["conv1_w"], KP["conv1_b"],
                     KP["bn_a"], KP["bn_c"], relu=True, tm=512)
    y = y.reshape(n, ho, wo, CPAD)[..., :64]                       # drop lane pad
    y = maxpool2x2(y.astype(jnp.bfloat16))                         # (N, 31, 31, 64)

    # ---- block 2: conv2 -> ReLU -> BN -> pool ----
    patches, (n, ho, wo) = im2col(y, 3, 3)                         # (N*29*29, 576)
    y = fused_matmul(patches, KP["conv2_w"], KP["conv2_b"],
                     KP["bn_a"], KP["bn_c"], relu=True, tm=512)
    y = y.reshape(n, ho, wo, CPAD)[..., :64]
    y = maxpool2x2(y.astype(jnp.bfloat16))                         # (N, 14, 14, 64)

    # ---- flatten in NCHW order (torch.nn.Flatten on NCHW tensors) ----
    yf = jnp.transpose(y, (0, 3, 1, 2)).reshape(N, -1)             # (N, 12544)

    one = lambda n_: jnp.ones((n_,), jnp.float32)
    zero = lambda n_: jnp.zeros((n_,), jnp.float32)

    y = fused_matmul(yf, KP["lin1_w"], KP["lin1_b"], one(256), zero(256), relu=True)
    y = fused_matmul(y, KP["lin2_w"], KP["lin2_b"], one(128), zero(128), relu=True)
    y = fused_matmul(y, KP["out_w"], KP["out_b"], one(13), zero(13), relu=False)
    return y                                                        # (N, 13)


# --------------------------------------------------------------------------
# Pure-JAX f32 reference (numerical sanity check)
# --------------------------------------------------------------------------
def reference_forward(x_nchw, P):
    x = jnp.transpose(x_nchw, (0, 2, 3, 1))

    def conv(x, w, b):
        return lax.conv_general_dilated(
            x, jnp.transpose(w, (2, 3, 1, 0)), (1, 1), "VALID",
            dimension_numbers=("NHWC", "HWIO", "NHWC")) + b

    def bn(x):
        a = P["bn_gamma"] / jnp.sqrt(P["bn_var"] + BN_EPS)
        return a * (x - P["bn_mean"]) + P["bn_beta"]

    y = maxpool2x2(bn(jax.nn.relu(conv(x, P["conv1_w"], P["conv1_b"]))))
    y = maxpool2x2(bn(jax.nn.relu(conv(y, P["conv2_w"], P["conv2_b"]))))
    y = jnp.transpose(y, (0, 3, 1, 2)).reshape(x.shape[0], -1)
    y = jax.nn.relu(y @ P["lin1_w"].T + P["lin1_b"])
    y = jax.nn.relu(y @ P["lin2_w"].T + P["lin2_b"])
    return y @ P["out_w"].T + P["out_b"]


# --------------------------------------------------------------------------
# Deterministic parameter construction (synthetic, PyTorch-shaped)
# --------------------------------------------------------------------------
def init_params(key):
    ks = jax.random.split(key, 14)

    def w_init(k, shape, fan_in):
        return jax.random.normal(k, shape, jnp.float32) / np.sqrt(fan_in)

    return {
        "conv1_w": w_init(ks[0], (64, 3, 3, 3), 3 * 3 * 3),
        "conv1_b": 0.1 * jax.random.normal(ks[1], (64,), jnp.float32),
        "conv2_w": w_init(ks[2], (64, 64, 3, 3), 64 * 3 * 3),
        "conv2_b": 0.1 * jax.random.normal(ks[3], (64,), jnp.float32),
        "bn_gamma": 1.0 + 0.1 * jax.random.normal(ks[4], (64,), jnp.float32),
        "bn_beta": 0.1 * jax.random.normal(ks[5], (64,), jnp.float32),
        "bn_mean": 0.1 * jax.random.normal(ks[6], (64,), jnp.float32),
        "bn_var": 0.8 + 0.4 * jax.random.uniform(ks[7], (64,), jnp.float32),
        "lin1_w": w_init(ks[8], (256, 14 * 14 * 64), 14 * 14 * 64),
        "lin1_b": 0.1 * jax.random.normal(ks[9], (256,), jnp.float32),
        "lin2_w": w_init(ks[10], (128, 256), 256),
        "lin2_b": 0.1 * jax.random.normal(ks[11], (128,), jnp.float32),
        "out_w": w_init(ks[12], (13, 128), 128),
        "out_b": 0.1 * jax.random.normal(ks[13], (13,), jnp.float32),
    }


if __name__ == "__main__":
    key = jax.random.PRNGKey(0)
    k_x, k_p = jax.random.split(key)

    # Spatial size must be 64x64 so the flatten hits 14*14*64 = 12544 features.
    x = jax.random.normal(k_x, (2, 3, 64, 64), jnp.float32)   # NCHW, like PyTorch
    params = init_params(k_p)
    kparams = prepare_params(params)        # one-time layout/dtype conversion

    out = jax.jit(classificador_forward)(x, kparams)
    out = jax.block_until_ready(out)
    assert out.shape == (2, 13), out.shape

    ref = jax.block_until_ready(jax.jit(reference_forward)(x, params))
    # Kernel feeds the MXU bf16 operands (f32 accumulation/epilogue); reference
    # is all-f32, so compare with a bf16-appropriate end-to-end tolerance.
    np.testing.assert_allclose(np.asarray(out), np.asarray(ref),
                               rtol=2e-2, atol=2e-2)

    print("KERNEL_OK")
</pallas_src>

<mosaic_0001>
module attributes {stable_mosaic.version = 11 : i64} {
  func.func @_fused_mm_kernel(%arg0: i32, %arg1: i32, %arg2: i32, %arg3: memref<512x27xbf16, #tpu.memory_space<vmem>>, %arg4: memref<27x128xbf16, #tpu.memory_space<vmem>>, %arg5: memref<1x128xf32, #tpu.memory_space<vmem>>, %arg6: memref<1x128xf32, #tpu.memory_space<vmem>>, %arg7: memref<1x128xf32, #tpu.memory_space<vmem>>, %arg8: memref<512x128xf32, #tpu.memory_space<vmem>>) attributes {dimension_semantics = [#tpu.dimension_semantics<parallel>, #tpu.dimension_semantics<parallel>, #tpu.dimension_semantics<arbitrary>], iteration_bounds = array<i64: 16, 1, 1>, scalar_prefetch = 0 : i64, scratch_operands = 0 : i64, tpu.core_type = #tpu.core_type<tc>, window_params = [{transform_indices = @transform_0, window_bounds = array<i64: 512, 27>}, {transform_indices = @transform_1, window_bounds = array<i64: 27, 128>}, {transform_indices = @transform_2, window_bounds = array<i64: 1, 128>}, {transform_indices = @transform_3, window_bounds = array<i64: 1, 128>}, {transform_indices = @transform_4, window_bounds = array<i64: 1, 128>}, {transform_indices = @transform_5, window_bounds = array<i64: 512, 128>}]} {
    %c0_i32 = arith.constant 0 : i32
    %0 = arith.cmpi eq, %arg2, %c0_i32 : i32
    %1 = arith.extui %0 : i1 to i32
    %c0_i32_0 = arith.constant 0 : i32
    %2 = arith.cmpi ne, %1, %c0_i32_0 : i32
    scf.if %2 {
      %cst_10 = arith.constant 0.000000e+00 : f32
      %12 = vector.broadcast %cst_10 : f32 to vector<512x128xf32>
      %c0_11 = arith.constant 0 : index
      %c0_12 = arith.constant 0 : index
      %13 = vector.load %arg8[%c0_11, %c0_12] : memref<512x128xf32, #tpu.memory_space<vmem>>, vector<512x128xf32>
      tpu.vector_store %arg8[%c0_11, %c0_12], %12 {strides = array<i32>} : memref<512x128xf32, #tpu.memory_space<vmem>>, vector<512x128xf32>,
    } else {
    }
    %c0 = arith.constant 0 : index
    %c0_1 = arith.constant 0 : index
    %3 = vector.load %arg8[%c0, %c0_1] : memref<512x128xf32, #tpu.memory_space<vmem>>, vector<512x128xf32>
    %c0_2 = arith.constant 0 : index
    %c0_3 = arith.constant 0 : index
    %4 = vector.load %arg3[%c0_2, %c0_3] : memref<512x27xbf16, #tpu.memory_space<vmem>>, vector<512x27xbf16>
    %c0_4 = arith.constant 0 : index
    %c0_5 = arith.constant 0 : index
    %5 = vector.load %arg4[%c0_4, %c0_5] : memref<27x128xbf16, #tpu.memory_space<vmem>>, vector<27x128xbf16>
    %cst = arith.constant dense<0.000000e+00> : vector<512x128xf32>
    %6 = tpu.matmul %4, %5, %cst {dimension_numbers = #tpu.dot_dimension_numbers<[1], [0], [0], [1], [0, 0, 1, 1], [], []>} : vector<512x27xbf16>, vector<27x128xbf16>, vector<512x128xf32> -> vector<512x128xf32>
    %7 = arith.addf %3, %6 : vector<512x128xf32>
    %c0_6 = arith.constant 0 : index
    %c0_7 = arith.constant 0 : index
    %8 = vector.load %arg8[%c0_6, %c0_7] : memref<512x128xf32, #tpu.memory_space<vmem>>, vector<512x128xf32>
    tpu.vector_store %arg8[%c0_6, %c0_7], %7 {strides = array<i32>} : memref<512x128xf32, #tpu.memory_space<vmem>>, vector<512x128xf32>,
    %c0_i32_8 = arith.constant 0 : i32
    %9 = arith.cmpi eq, %arg2, %c0_i32_8 : i32
    %10 = arith.extui %9 : i1 to i32
    %c0_i32_9 = arith.constant 0 : i32
    %11 = arith.cmpi ne, %10, %c0_i32_9 : i32
    scf.if %11 {
      %c0_10 = arith.constant 0 : index
      %c0_11 = arith.constant 0 : index
      %12 = vector.load %arg8[%c0_10, %c0_11] : memref<512x128xf32, #tpu.memory_space<vmem>>, vector<512x128xf32>
      %c0_12 = arith.constant 0 : index
      %c0_13 = arith.constant 0 : index
      %13 = vector.load %arg5[%c0_12, %c0_13] : memref<1x128xf32, #tpu.memory_space<vmem>>, vector<1x128xf32>
      %14 = vector.broadcast %13 : vector<1x128xf32> to vector<512x128xf32>
      %15 = arith.addf %12, %14 : vector<512x128xf32>
      %cst_14 = arith.constant 0.000000e+00 : f32
      %16 = vector.broadcast %cst_14 : f32 to vector<512x128xf32>
      %17 = arith.maximumf %15, %16 : vector<512x128xf32>
      %c0_15 = arith.constant 0 : index
      %c0_16 = arith.constant 0 : index
      %18 = vector.load %arg6[%c0_15, %c0_16] : memref<1x128xf32, #tpu.memory_space<vmem>>, vector<1x128xf32>
      %19 = vector.broadcast %18 : vector<1x128xf32> to vector<512x128xf32>
      %20 = arith.mulf %19, %17 : vector<512x128xf32>
      %c0_17 = arith.constant 0 : index
      %c0_18 = arith.constant 0 : index
      %21 = vector.load %arg7[%c0_17, %c0_18] : memref<1x128xf32, #tpu.memory_space<vmem>>, vector<1x128xf32>
      %22 = vector.broadcast %21 : vector<1x128xf32> to vector<512x128xf32>
      %23 = arith.addf %20, %22 : vector<512x128xf32>
      %c0_19 = arith.constant 0 : index
      %c0_20 = arith.constant 0 : index
      %24 = vector.load %arg8[%c0_19, %c0_20] : memref<512x128xf32, #tpu.memory_space<vmem>>, vector<512x128xf32>
      tpu.vector_store %arg8[%c0_19, %c0_20], %23 {strides = array<i32>} : memref<512x128xf32, #tpu.memory_space<vmem>>, vector<512x128xf32>,
    } else {
    }
    return
  }
  func.func @transform_0(%arg0: i32, %arg1: i32, %arg2: i32) -> (i32, i32) {
    %c0_i32 = arith.constant 0 : i32
    return %arg0, %arg2 : i32, i32
  }
  func.func @transform_1(%arg0: i32, %arg1: i32, %arg2: i32) -> (i32, i32) {
    %c0_i32 = arith.constant 0 : i32
    return %arg2, %arg1 : i32, i32
  }
  func.func @transform_2(%arg0: i32, %arg1: i32, %arg2: i32) -> (i32, i32) {
    %c0_i32 = arith.constant 0 : i32
    %c0_i32_0 = arith.constant 0 : i32
    return %c0_i32, %arg1 : i32, i32
  }
  func.func @transform_3(%arg0: i32, %arg1: i32, %arg2: i32) -> (i32, i32) {
    %c0_i32 = arith.constant 0 : i32
    %c0_i32_0 = arith.constant 0 : i32
    return %c0_i32, %arg1 : i32, i32
  }
  func.func @transform_4(%arg0: i32, %arg1: i32, %arg2: i32) -> (i32, i32) {
    %c0_i32 = arith.constant 0 : i32
    %c0_i32_0 = arith.constant 0 : i32
    return %c0_i32, %arg1 : i32, i32
  }
  func.func @transform_5(%arg0: i32, %arg1: i32, %arg2: i32) -> (i32, i32) {
    %c0_i32 = arith.constant 0 : i32
    return %arg0, %arg1 : i32, i32
  }
}

module attributes {stable_mosaic.version = 11 : i64} {
  func.func @_fused_mm_kernel(%arg0: i32, %arg1: i32, %arg2: i32, %arg3: memref<512x576xbf16, #tpu.memory_space<vmem>>, %arg4: memref<576x128xbf16, #tpu.memory_space<vmem>>, %arg5: memref<1x128xf32, #tpu.memory_space<vmem>>, %arg6: memref<1x128xf32, #tpu.memory_space<vmem>>, %arg7: memref<1x128xf32, #tpu.memory_space<vmem>>, %arg8: memref<512x128xf32, #tpu.memory_space<vmem>>) attributes {dimension_semantics = [#tpu.dimension_semantics<parallel>, #tpu.dimension_semantics<parallel>, #tpu.dimension_semantics<arbitrary>], iteration_bounds = array<i64: 4, 1, 1>, scalar_prefetch = 0 : i64, scratch_operands = 0 : i64, tpu.core_type = #tpu.core_type<tc>, window_params = [{transform_indices = @transform_0, window_bounds = array<i64: 512, 576>}, {transform_indices = @transform_1, window_bounds = array<i64: 576, 128>}, {transform_indices = @transform_2, window_bounds = array<i64: 1, 128>}, {transform_indices = @transform_3, window_bounds = array<i64: 1, 128>}, {transform_indices = @transform_4, window_bounds = array<i64: 1, 128>}, {transform_indices = @transform_5, window_bounds = array<i64: 512, 128>}]} {
    %c0_i32 = arith.constant 0 : i32
    %0 = arith.cmpi eq, %arg2, %c0_i32 : i32
    %1 = arith.extui %0 : i1 to i32
    %c0_i32_0 = arith.constant 0 : i32
    %2 = arith.cmpi ne, %1, %c0_i32_0 : i32
    scf.if %2 {
      %cst_10 = arith.constant 0.000000e+00 : f32
      %12 = vector.broadcast %cst_10 : f32 to vector<512x128xf32>
      %c0_11 = arith.constant 0 : index
      %c0_12 = arith.constant 0 : index
      %13 = vector.load %arg8[%c0_11, %c0_12] : memref<512x128xf32, #tpu.memory_space<vmem>>, vector<512x128xf32>
      tpu.vector_store %arg8[%c0_11, %c0_12], %12 {strides = array<i32>} : memref<512x128xf32, #tpu.memory_space<vmem>>, vector<512x128xf32>,
    } else {
    }
    %c0 = arith.constant 0 : index
    %c0_1 = arith.constant 0 : index
    %3 = vector.load %arg8[%c0, %c0_1] : memref<512x128xf32, #tpu.memory_space<vmem>>, vector<512x128xf32>
    %c0_2 = arith.constant 0 : index
    %c0_3 = arith.constant 0 : index
    %4 = vector.load %arg3[%c0_2, %c0_3] : memref<512x576xbf16, #tpu.memory_space<vmem>>, vector<512x576xbf16>
    %c0_4 = arith.constant 0 : index
    %c0_5 = arith.constant 0 : index
    %5 = vector.load %arg4[%c0_4, %c0_5] : memref<576x128xbf16, #tpu.memory_space<vmem>>, vector<576x128xbf16>
    %cst = arith.constant dense<0.000000e+00> : vector<512x128xf32>
    %6 = tpu.matmul %4, %5, %cst {dimension_numbers = #tpu.dot_dimension_numbers<[1], [0], [0], [1], [0, 0, 1, 1], [], []>} : vector<512x576xbf16>, vector<576x128xbf16>, vector<512x128xf32> -> vector<512x128xf32>
    %7 = arith.addf %3, %6 : vector<512x128xf32>
    %c0_6 = arith.constant 0 : index
    %c0_7 = arith.constant 0 : index
    %8 = vector.load %arg8[%c0_6, %c0_7] : memref<512x128xf32, #tpu.memory_space<vmem>>, vector<512x128xf32>
    tpu.vector_store %arg8[%c0_6, %c0_7], %7 {strides = array<i32>} : memref<512x128xf32, #tpu.memory_space<vmem>>, vector<512x128xf32>,
    %c0_i32_8 = arith.constant 0 : i32
    %9 = arith.cmpi eq, %arg2, %c0_i32_8 : i32
    %10 = arith.extui %9 : i1 to i32
    %c0_i32_9 = arith.constant 0 : i32
    %11 = arith.cmpi ne, %10, %c0_i32_9 : i32
    scf.if %11 {
      %c0_10 = arith.constant 0 : index
      %c0_11 = arith.constant 0 : index
      %12 = vector.load %arg8[%c0_10, %c0_11] : memref<512x128xf32, #tpu.memory_space<vmem>>, vector<512x128xf32>
      %c0_12 = arith.constant 0 : index
      %c0_13 = arith.constant 0 : index
      %13 = vector.load %arg5[%c0_12, %c0_13] : memref<1x128xf32, #tpu.memory_space<vmem>>, vector<1x128xf32>
      %14 = vector.broadcast %13 : vector<1x128xf32> to vector<512x128xf32>
      %15 = arith.addf %12, %14 : vector<512x128xf32>
      %cst_14 = arith.constant 0.000000e+00 : f32
      %16 = vector.broadcast %cst_14 : f32 to vector<512x128xf32>
      %17 = arith.maximumf %15, %16 : vector<512x128xf32>
      %c0_15 = arith.constant 0 : index
      %c0_16 = arith.constant 0 : index
      %18 = vector.load %arg6[%c0_15, %c0_16] : memref<1x128xf32, #tpu.memory_space<vmem>>, vector<1x128xf32>
      %19 = vector.broadcast %18 : vector<1x128xf32> to vector<512x128xf32>
      %20 = arith.mulf %19, %17 : vector<512x128xf32>
      %c0_17 = arith.constant 0 : index
      %c0_18 = arith.constant 0 : index
      %21 = vector.load %arg7[%c0_17, %c0_18] : memref<1x128xf32, #tpu.memory_space<vmem>>, vector<1x128xf32>
      %22 = vector.broadcast %21 : vector<1x128xf32> to vector<512x128xf32>
      %23 = arith.addf %20, %22 : vector<512x128xf32>
      %c0_19 = arith.constant 0 : index
      %c0_20 = arith.constant 0 : index
      %24 = vector.load %arg8[%c0_19, %c0_20] : memref<512x128xf32, #tpu.memory_space<vmem>>, vector<512x128xf32>
      tpu.vector_store %arg8[%c0_19, %c0_20], %23 {strides = array<i32>} : memref<512x128xf32, #tpu.memory_space<vmem>>, vector<512x128xf32>,
    } else {
    }
    return
  }
  func.func @transform_0(%arg0: i32, %arg1: i32, %arg2: i32) -> (i32, i32) {
    %c0_i32 = arith.constant 0 : i32
    return %arg0, %arg2 : i32, i32
  }
  func.func @transform_1(%arg0: i32, %arg1: i32, %arg2: i32) -> (i32, i32) {
    %c0_i32 = arith.constant 0 : i32
    return %arg2, %arg1 : i32, i32
  }
  func.func @transform_2(%arg0: i32, %arg1: i32, %arg2: i32) -> (i32, i32) {
    %c0_i32 = arith.constant 0 : i32
    %c0_i32_0 = arith.constant 0 : i32
    return %c0_i32, %arg1 : i32, i32
  }
  func.func @transform_3(%arg0: i32, %arg1: i32, %arg2: i32) -> (i32, i32) {
    %c0_i32 = arith.constant 0 : i32
    %c0_i32_0 = arith.constant 0 : i32
    return %c0_i32, %arg1 : i32, i32
  }
  func.func @transform_4(%arg0: i32, %arg1: i32, %arg2: i32) -> (i32, i32) {
    %c0_i32 = arith.constant 0 : i32
    %c0_i32_0 = arith.constant 0 : i32
    return %c0_i32, %arg1 : i32, i32
  }
  func.func @transform_5(%arg0: i32, %arg1: i32, %arg2: i32) -> (i32, i32) {
    %c0_i32 = arith.constant 0 : i32
    return %arg0, %arg1 : i32, i32
  }
}

module attributes {stable_mosaic.version = 11 : i64} {
  func.func @_fused_mm_kernel(%arg0: i32, %arg1: i32, %arg2: i32, %arg3: memref<2x6272xbf16, #tpu.memory_space<vmem>>, %arg4: memref<6272x128xbf16, #tpu.memory_space<vmem>>, %arg5: memref<1x128xf32, #tpu.memory_space<vmem>>, %arg6: memref<1x128xf32, #tpu.memory_space<vmem>>, %arg7: memref<1x128xf32, #tpu.memory_space<vmem>>, %arg8: memref<2x128xf32, #tpu.memory_space<vmem>>) attributes {dimension_semantics = [#tpu.dimension_semantics<parallel>, #tpu.dimension_semantics<parallel>, #tpu.dimension_semantics<arbitrary>], iteration_bounds = array<i64: 1, 2, 2>, scalar_prefetch = 0 : i64, scratch_operands = 0 : i64, tpu.core_type = #tpu.core_type<tc>, window_params = [{transform_indices = @transform_0, window_bounds = array<i64: 2, 6272>}, {transform_indices = @transform_1, window_bounds = array<i64: 6272, 128>}, {transform_indices = @transform_2, window_bounds = array<i64: 1, 128>}, {transform_indices = @transform_3, window_bounds = array<i64: 1, 128>}, {transform_indices = @transform_4, window_bounds = array<i64: 1, 128>}, {transform_indices = @transform_5, window_bounds = array<i64: 2, 128>}]} {
    %c0_i32 = arith.constant 0 : i32
    %0 = arith.cmpi eq, %arg2, %c0_i32 : i32
    %1 = arith.extui %0 : i1 to i32
    %c0_i32_0 = arith.constant 0 : i32
    %2 = arith.cmpi ne, %1, %c0_i32_0 : i32
    scf.if %2 {
      %cst_9 = arith.constant 0.000000e+00 : f32
      %12 = vector.broadcast %cst_9 : f32 to vector<2x128xf32>
      %c0_10 = arith.constant 0 : index
      %c0_11 = arith.constant 0 : index
      %13 = vector.load %arg8[%c0_10, %c0_11] : memref<2x128xf32, #tpu.memory_space<vmem>>, vector<2x128xf32>
      tpu.vector_store %arg8[%c0_10, %c0_11], %12 {strides = array<i32>} : memref<2x128xf32, #tpu.memory_space<vmem>>, vector<2x128xf32>,
    } else {
    }
    %c0 = arith.constant 0 : index
    %c0_1 = arith.constant 0 : index
    %3 = vector.load %arg8[%c0, %c0_1] : memref<2x128xf32, #tpu.memory_space<vmem>>, vector<2x128xf32>
    %c0_2 = arith.constant 0 : index
    %c0_3 = arith.constant 0 : index
    %4 = vector.load %arg3[%c0_2, %c0_3] : memref<2x6272xbf16, #tpu.memory_space<vmem>>, vector<2x6272xbf16>
    %c0_4 = arith.constant 0 : index
    %c0_5 = arith.constant 0 : index
    %5 = vector.load %arg4[%c0_4, %c0_5] : memref<6272x128xbf16, #tpu.memory_space<vmem>>, vector<6272x128xbf16>
    %cst = arith.constant dense<0.000000e+00> : vector<2x128xf32>
    %6 = tpu.matmul %4, %5, %cst {dimension_numbers = #tpu.dot_dimension_numbers<[1], [0], [0], [1], [0, 0, 1, 1], [], []>} : vector<2x6272xbf16>, vector<6272x128xbf16>, vector<2x128xf32> -> vector<2x128xf32>
    %7 = arith.addf %3, %6 : vector<2x128xf32>
    %c0_6 = arith.constant 0 : index
    %c0_7 = arith.constant 0 : index
    %8 = vector.load %arg8[%c0_6, %c0_7] : memref<2x128xf32, #tpu.memory_space<vmem>>, vector<2x128xf32>
    tpu.vector_store %arg8[%c0_6, %c0_7], %7 {strides = array<i32>} : memref<2x128xf32, #tpu.memory_space<vmem>>, vector<2x128xf32>,
    %c1_i32 = arith.constant 1 : i32
    %9 = arith.cmpi eq, %arg2, %c1_i32 : i32
    %10 = arith.extui %9 : i1 to i32
    %c0_i32_8 = arith.constant 0 : i32
    %11 = arith.cmpi ne, %10, %c0_i32_8 : i32
    scf.if %11 {
      %c0_9 = arith.constant 0 : index
      %c0_10 = arith.constant 0 : index
      %12 = vector.load %arg8[%c0_9, %c0_10] : memref<2x128xf32, #tpu.memory_space<vmem>>, vector<2x128xf32>
      %c0_11 = arith.constant 0 : index
      %c0_12 = arith.constant 0 : index
      %13 = vector.load %arg5[%c0_11, %c0_12] : memref<1x128xf32, #tpu.memory_space<vmem>>, vector<1x128xf32>
      %14 = vector.broadcast %13 : vector<1x128xf32> to vector<2x128xf32>
      %15 = arith.addf %12, %14 : vector<2x128xf32>
      %cst_13 = arith.constant 0.000000e+00 : f32
      %16 = vector.broadcast %cst_13 : f32 to vector<2x128xf32>
      %17 = arith.maximumf %15, %16 : vector<2x128xf32>
      %c0_14 = arith.constant 0 : index
      %c0_15 = arith.constant 0 : index
      %18 = vector.load %arg6[%c0_14, %c0_15] : memref<1x128xf32, #tpu.memory_space<vmem>>, vector<1x128xf32>
      %19 = vector.broadcast %18 : vector<1x128xf32> to vector<2x128xf32>
      %20 = arith.mulf %19, %17 : vector<2x128xf32>
      %c0_16 = arith.constant 0 : index
      %c0_17 = arith.constant 0 : index
      %21 = vector.load %arg7[%c0_16, %c0_17] : memref<1x128xf32, #tpu.memory_space<vmem>>, vector<1x128xf32>
      %22 = vector.broadcast %21 : vector<1x128xf32> to vector<2x128xf32>
      %23 = arith.addf %20, %22 : vector<2x128xf32>
      %c0_18 = arith.constant 0 : index
      %c0_19 = arith.constant 0 : index
      %24 = vector.load %arg8[%c0_18, %c0_19] : memref<2x128xf32, #tpu.memory_space<vmem>>, vector<2x128xf32>
      tpu.vector_store %arg8[%c0_18, %c0_19], %23 {strides = array<i32>} : memref<2x128xf32, #tpu.memory_space<vmem>>, vector<2x128xf32>,
    } else {
    }
    return
  }
  func.func @transform_0(%arg0: i32, %arg1: i32, %arg2: i32) -> (i32, i32) {
    %c0_i32 = arith.constant 0 : i32
    return %arg0, %arg2 : i32, i32
  }
  func.func @transform_1(%arg0: i32, %arg1: i32, %arg2: i32) -> (i32, i32) {
    %c0_i32 = arith.constant 0 : i32
    return %arg2, %arg1 : i32, i32
  }
  func.func @transform_2(%arg0: i32, %arg1: i32, %arg2: i32) -> (i32, i32) {
    %c0_i32 = arith.constant 0 : i32
    %c0_i32_0 = arith.constant 0 : i32
    return %c0_i32, %arg1 : i32, i32
  }
  func.func @transform_3(%arg0: i32, %arg1: i32, %arg2: i32) -> (i32, i32) {
    %c0_i32 = arith.constant 0 : i32
    %c0_i32_0 = arith.constant 0 : i32
    return %c0_i32, %arg1 : i32, i32
  }
  func.func @transform_4(%arg0: i32, %arg1: i32, %arg2: i32) -> (i32, i32) {
    %c0_i32 = arith.constant 0 : i32
    %c0_i32_0 = arith.constant 0 : i32
    return %c0_i32, %arg1 : i32, i32
  }
  func.func @transform_5(%arg0: i32, %arg1: i32, %arg2: i32) -> (i32, i32) {
    %c0_i32 = arith.constant 0 : i32
    return %arg0, %arg1 : i32, i32
  }
}

module attributes {stable_mosaic.version = 11 : i64} {
  func.func @_fused_mm_kernel(%arg0: i32, %arg1: i32, %arg2: i32, %arg3: memref<2x256xbf16, #tpu.memory_space<vmem>>, %arg4: memref<256x128xbf16, #tpu.memory_space<vmem>>, %arg5: memref<1x128xf32, #tpu.memory_space<vmem>>, %arg6: memref<1x128xf32, #tpu.memory_space<vmem>>, %arg7: memref<1x128xf32, #tpu.memory_space<vmem>>, %arg8: memref<2x128xf32, #tpu.memory_space<vmem>>) attributes {dimension_semantics = [#tpu.dimension_semantics<parallel>, #tpu.dimension_semantics<parallel>, #tpu.dimension_semantics<arbitrary>], iteration_bounds = array<i64: 1, 1, 1>, scalar_prefetch = 0 : i64, scratch_operands = 0 : i64, tpu.core_type = #tpu.core_type<tc>, window_params = [{transform_indices = @transform_0, window_bounds = array<i64: 2, 256>}, {transform_indices = @transform_1, window_bounds = array<i64: 256, 128>}, {transform_indices = @transform_2, window_bounds = array<i64: 1, 128>}, {transform_indices = @transform_3, window_bounds = array<i64: 1, 128>}, {transform_indices = @transform_4, window_bounds = array<i64: 1, 128>}, {transform_indices = @transform_5, window_bounds = array<i64: 2, 128>}]} {
    %c0_i32 = arith.constant 0 : i32
    %0 = arith.cmpi eq, %arg2, %c0_i32 : i32
    %1 = arith.extui %0 : i1 to i32
    %c0_i32_0 = arith.constant 0 : i32
    %2 = arith.cmpi ne, %1, %c0_i32_0 : i32
    scf.if %2 {
      %cst_10 = arith.constant 0.000000e+00 : f32
      %12 = vector.broadcast %cst_10 : f32 to vector<2x128xf32>
      %c0_11 = arith.constant 0 : index
      %c0_12 = arith.constant 0 : index
      %13 = vector.load %arg8[%c0_11, %c0_12] : memref<2x128xf32, #tpu.memory_space<vmem>>, vector<2x128xf32>
      tpu.vector_store %arg8[%c0_11, %c0_12], %12 {strides = array<i32>} : memref<2x128xf32, #tpu.memory_space<vmem>>, vector<2x128xf32>,
    } else {
    }
    %c0 = arith.constant 0 : index
    %c0_1 = arith.constant 0 : index
    %3 = vector.load %arg8[%c0, %c0_1] : memref<2x128xf32, #tpu.memory_space<vmem>>, vector<2x128xf32>
    %c0_2 = arith.constant 0 : index
    %c0_3 = arith.constant 0 : index
    %4 = vector.load %arg3[%c0_2, %c0_3] : memref<2x256xbf16, #tpu.memory_space<vmem>>, vector<2x256xbf16>
    %c0_4 = arith.constant 0 : index
    %c0_5 = arith.constant 0 : index
    %5 = vector.load %arg4[%c0_4, %c0_5] : memref<256x128xbf16, #tpu.memory_space<vmem>>, vector<256x128xbf16>
    %cst = arith.constant dense<0.000000e+00> : vector<2x128xf32>
    %6 = tpu.matmul %4, %5, %cst {dimension_numbers = #tpu.dot_dimension_numbers<[1], [0], [0], [1], [0, 0, 1, 1], [], []>} : vector<2x256xbf16>, vector<256x128xbf16>, vector<2x128xf32> -> vector<2x128xf32>
    %7 = arith.addf %3, %6 : vector<2x128xf32>
    %c0_6 = arith.constant 0 : index
    %c0_7 = arith.constant 0 : index
    %8 = vector.load %arg8[%c0_6, %c0_7] : memref<2x128xf32, #tpu.memory_space<vmem>>, vector<2x128xf32>
    tpu.vector_store %arg8[%c0_6, %c0_7], %7 {strides = array<i32>} : memref<2x128xf32, #tpu.memory_space<vmem>>, vector<2x128xf32>,
    %c0_i32_8 = arith.constant 0 : i32
    %9 = arith.cmpi eq, %arg2, %c0_i32_8 : i32
    %10 = arith.extui %9 : i1 to i32
    %c0_i32_9 = arith.constant 0 : i32
    %11 = arith.cmpi ne, %10, %c0_i32_9 : i32
    scf.if %11 {
      %c0_10 = arith.constant 0 : index
      %c0_11 = arith.constant 0 : index
      %12 = vector.load %arg8[%c0_10, %c0_11] : memref<2x128xf32, #tpu.memory_space<vmem>>, vector<2x128xf32>
      %c0_12 = arith.constant 0 : index
      %c0_13 = arith.constant 0 : index
      %13 = vector.load %arg5[%c0_12, %c0_13] : memref<1x128xf32, #tpu.memory_space<vmem>>, vector<1x128xf32>
      %14 = vector.broadcast %13 : vector<1x128xf32> to vector<2x128xf32>
      %15 = arith.addf %12, %14 : vector<2x128xf32>
      %cst_14 = arith.constant 0.000000e+00 : f32
      %16 = vector.broadcast %cst_14 : f32 to vector<2x128xf32>
      %17 = arith.maximumf %15, %16 : vector<2x128xf32>
      %c0_15 = arith.constant 0 : index
      %c0_16 = arith.constant 0 : index
      %18 = vector.load %arg6[%c0_15, %c0_16] : memref<1x128xf32, #tpu.memory_space<vmem>>, vector<1x128xf32>
      %19 = vector.broadcast %18 : vector<1x128xf32> to vector<2x128xf32>
      %20 = arith.mulf %19, %17 : vector<2x128xf32>
      %c0_17 = arith.constant 0 : index
      %c0_18 = arith.constant 0 : index
      %21 = vector.load %arg7[%c0_17, %c0_18] : memref<1x128xf32, #tpu.memory_space<vmem>>, vector<1x128xf32>
      %22 = vector.broadcast %21 : vector<1x128xf32> to vector<2x128xf32>
      %23 = arith.addf %20, %22 : vector<2x128xf32>
      %c0_19 = arith.constant 0 : index
      %c0_20 = arith.constant 0 : index
      %24 = vector.load %arg8[%c0_19, %c0_20] : memref<2x128xf32, #tpu.memory_space<vmem>>, vector<2x128xf32>
      tpu.vector_store %arg8[%c0_19, %c0_20], %23 {strides = array<i32>} : memref<2x128xf32, #tpu.memory_space<vmem>>, vector<2x128xf32>,
    } else {
    }
    return
  }
  func.func @transform_0(%arg0: i32, %arg1: i32, %arg2: i32) -> (i32, i32) {
    %c0_i32 = arith.constant 0 : i32
    return %arg0, %arg2 : i32, i32
  }
  func.func @transform_1(%arg0: i32, %arg1: i32, %arg2: i32) -> (i32, i32) {
    %c0_i32 = arith.constant 0 : i32
    return %arg2, %arg1 : i32, i32
  }
  func.func @transform_2(%arg0: i32, %arg1: i32, %arg2: i32) -> (i32, i32) {
    %c0_i32 = arith.constant 0 : i32
    %c0_i32_0 = arith.constant 0 : i32
    return %c0_i32, %arg1 : i32, i32
  }
  func.func @transform_3(%arg0: i32, %arg1: i32, %arg2: i32) -> (i32, i32) {
    %c0_i32 = arith.constant 0 : i32
    %c0_i32_0 = arith.constant 0 : i32
    return %c0_i32, %arg1 : i32, i32
  }
  func.func @transform_4(%arg0: i32, %arg1: i32, %arg2: i32) -> (i32, i32) {
    %c0_i32 = arith.constant 0 : i32
    %c0_i32_0 = arith.constant 0 : i32
    return %c0_i32, %arg1 : i32, i32
  }
  func.func @transform_5(%arg0: i32, %arg1: i32, %arg2: i32) -> (i32, i32) {
    %c0_i32 = arith.constant 0 : i32
    return %arg0, %arg1 : i32, i32
  }
}

module attributes {stable_mosaic.version = 11 : i64} {
  func.func @_fused_mm_kernel(%arg0: i32, %arg1: i32, %arg2: i32, %arg3: memref<2x128xbf16, #tpu.memory_space<vmem>>, %arg4: memref<128x13xbf16, #tpu.memory_space<vmem>>, %arg5: memref<1x13xf32, #tpu.memory_space<vmem>>, %arg6: memref<1x13xf32, #tpu.memory_space<vmem>>, %arg7: memref<1x13xf32, #tpu.memory_space<vmem>>, %arg8: memref<2x13xf32, #tpu.memory_space<vmem>>) attributes {dimension_semantics = [#tpu.dimension_semantics<parallel>, #tpu.dimension_semantics<parallel>, #tpu.dimension_semantics<arbitrary>], iteration_bounds = array<i64: 1, 1, 1>, scalar_prefetch = 0 : i64, scratch_operands = 0 : i64, tpu.core_type = #tpu.core_type<tc>, window_params = [{transform_indices = @transform_0, window_bounds = array<i64: 2, 128>}, {transform_indices = @transform_1, window_bounds = array<i64: 128, 13>}, {transform_indices = @transform_2, window_bounds = array<i64: 1, 13>}, {transform_indices = @transform_3, window_bounds = array<i64: 1, 13>}, {transform_indices = @transform_4, window_bounds = array<i64: 1, 13>}, {transform_indices = @transform_5, window_bounds = array<i64: 2, 13>}]} {
    %c0_i32 = arith.constant 0 : i32
    %0 = arith.cmpi eq, %arg2, %c0_i32 : i32
    %1 = arith.extui %0 : i1 to i32
    %c0_i32_0 = arith.constant 0 : i32
    %2 = arith.cmpi ne, %1, %c0_i32_0 : i32
    scf.if %2 {
      %cst_10 = arith.constant 0.000000e+00 : f32
      %12 = vector.broadcast %cst_10 : f32 to vector<2x13xf32>
      %c0_11 = arith.constant 0 : index
      %c0_12 = arith.constant 0 : index
      %13 = vector.load %arg8[%c0_11, %c0_12] : memref<2x13xf32, #tpu.memory_space<vmem>>, vector<2x13xf32>
      tpu.vector_store %arg8[%c0_11, %c0_12], %12 {strides = array<i32>} : memref<2x13xf32, #tpu.memory_space<vmem>>, vector<2x13xf32>,
    } else {
    }
    %c0 = arith.constant 0 : index
    %c0_1 = arith.constant 0 : index
    %3 = vector.load %arg8[%c0, %c0_1] : memref<2x13xf32, #tpu.memory_space<vmem>>, vector<2x13xf32>
    %c0_2 = arith.constant 0 : index
    %c0_3 = arith.constant 0 : index
    %4 = vector.load %arg3[%c0_2, %c0_3] : memref<2x128xbf16, #tpu.memory_space<vmem>>, vector<2x128xbf16>
    %c0_4 = arith.constant 0 : index
    %c0_5 = arith.constant 0 : index
    %5 = vector.load %arg4[%c0_4, %c0_5] : memref<128x13xbf16, #tpu.memory_space<vmem>>, vector<128x13xbf16>
    %cst = arith.constant dense<0.000000e+00> : vector<2x13xf32>
    %6 = tpu.matmul %4, %5, %cst {dimension_numbers = #tpu.dot_dimension_numbers<[1], [0], [0], [1], [0, 0, 1, 1], [], []>} : vector<2x128xbf16>, vector<128x13xbf16>, vector<2x13xf32> -> vector<2x13xf32>
    %7 = arith.addf %3, %6 : vector<2x13xf32>
    %c0_6 = arith.constant 0 : index
    %c0_7 = arith.constant 0 : index
    %8 = vector.load %arg8[%c0_6, %c0_7] : memref<2x13xf32, #tpu.memory_space<vmem>>, vector<2x13xf32>
    tpu.vector_store %arg8[%c0_6, %c0_7], %7 {strides = array<i32>} : memref<2x13xf32, #tpu.memory_space<vmem>>, vector<2x13xf32>,
    %c0_i32_8 = arith.constant 0 : i32
    %9 = arith.cmpi eq, %arg2, %c0_i32_8 : i32
    %10 = arith.extui %9 : i1 to i32
    %c0_i32_9 = arith.constant 0 : i32
    %11 = arith.cmpi ne, %10, %c0_i32_9 : i32
    scf.if %11 {
      %c0_10 = arith.constant 0 : index
      %c0_11 = arith.constant 0 : index
      %12 = vector.load %arg8[%c0_10, %c0_11] : memref<2x13xf32, #tpu.memory_space<vmem>>, vector<2x13xf32>
      %c0_12 = arith.constant 0 : index
      %c0_13 = arith.constant 0 : index
      %13 = vector.load %arg5[%c0_12, %c0_13] : memref<1x13xf32, #tpu.memory_space<vmem>>, vector<1x13xf32>
      %14 = vector.broadcast %13 : vector<1x13xf32> to vector<2x13xf32>
      %15 = arith.addf %12, %14 : vector<2x13xf32>
      %c0_14 = arith.constant 0 : index
      %c0_15 = arith.constant 0 : index
      %16 = vector.load %arg6[%c0_14, %c0_15] : memref<1x13xf32, #tpu.memory_space<vmem>>, vector<1x13xf32>
      %17 = vector.broadcast %16 : vector<1x13xf32> to vector<2x13xf32>
      %18 = arith.mulf %17, %15 : vector<2x13xf32>
      %c0_16 = arith.constant 0 : index
      %c0_17 = arith.constant 0 : index
      %19 = vector.load %arg7[%c0_16, %c0_17] : memref<1x13xf32, #tpu.memory_space<vmem>>, vector<1x13xf32>
      %20 = vector.broadcast %19 : vector<1x13xf32> to vector<2x13xf32>
      %21 = arith.addf %18, %20 : vector<2x13xf32>
      %c0_18 = arith.constant 0 : index
      %c0_19 = arith.constant 0 : index
      %22 = vector.load %arg8[%c0_18, %c0_19] : memref<2x13xf32, #tpu.memory_space<vmem>>, vector<2x13xf32>
      tpu.vector_store %arg8[%c0_18, %c0_19], %21 {strides = array<i32>} : memref<2x13xf32, #tpu.memory_space<vmem>>, vector<2x13xf32>,
    } else {
    }
    return
  }
  func.func @transform_0(%arg0: i32, %arg1: i32, %arg2: i32) -> (i32, i32) {
    %c0_i32 = arith.constant 0 : i32
    return %arg0, %arg2 : i32, i32
  }
  func.func @transform_1(%arg0: i32, %arg1: i32, %arg2: i32) -> (i32, i32) {
    %c0_i32 = arith.constant 0 : i32
    return %arg2, %arg1 : i32, i32
  }
  func.func @transform_2(%arg0: i32, %arg1: i32, %arg2: i32) -> (i32, i32) {
    %c0_i32 = arith.constant 0 : i32
    %c0_i32_0 = arith.constant 0 : i32
    return %c0_i32, %arg1 : i32, i32
  }
  func.func @transform_3(%arg0: i32, %arg1: i32, %arg2: i32) -> (i32, i32) {
    %c0_i32 = arith.constant 0 : i32
    %c0_i32_0 = arith.constant 0 : i32
    return %c0_i32, %arg1 : i32, i32
  }
  func.func @transform_4(%arg0: i32, %arg1: i32, %arg2: i32) -> (i32, i32) {
    %c0_i32 = arith.constant 0 : i32
    %c0_i32_0 = arith.constant 0 : i32
    return %c0_i32, %arg1 : i32, i32
  }
  func.func @transform_5(%arg0: i32, %arg1: i32, %arg2: i32) -> (i32, i32) {
    %c0_i32 = arith.constant 0 : i32
    return %arg0, %arg1 : i32, i32
  }
}

</mosaic_0001>

<bundles_post_ra>
// kernel: classificador_forward.5
= control target key start
LH: loop header
LB: loop body
LE: loop exit
PB: predicated region body
PF: predicated region fallthrough
CT: control target
= control target key end

     0   :  { %s2082_s18 = smov 0   ;;  %s2084_s19 = smov 0   ;;  %s2482_s0 = inlined_call_operand.vmem [shape: bf16[8192,27], index: 0, kind: input, shape index: {}]   ;;  %s2483_s1 = inlined_call_operand.vmem [shape: bf16[27,128], index: 1, kind: input, shape index: {}]   ;;  %s2484_s2 = inlined_call_operand.vmem [shape: f32[1,128], index: 2, kind: input, shape index: {}]   ;;  %s2485_s3 = inlined_call_operand.vmem [shape: f32[1,128], index: 3, kind: input, shape index: {}]   ;;  %s2486_s4 = inlined_call_operand.vmem [shape: f32[1,128], index: 4, kind: input, shape index: {}]   ;;  %s2487_s5 = inlined_call_operand.vmem [shape: f32[8192,128], index: 5, kind: output, shape index: {}]  }
   0x1   :  { %s2086_s20 = smov 0  }
   0x2 LB: > { %s34_s21 = sadd.s32 1, %s2045_s19  ;;  %p1785_p0 = scmp.ge.s32.totalorder %s2049_s20, 1  ;;  %s2049_s20 = sphi %s2086_s20, %s15_s20   ;;  %s2045_s19 = sphi %s2084_s19, %s2489_s19   ;;  %s2041_s18 = sphi %s2082_s18, %s2488_s18  }
   0x3   : > { %p36_p1 = scmp.ge.s32.totalorder %s34_s21, 16  ;;  %p254_p2 = scmp.lt.s32.totalorder %s2049_s20, 17 }
   0x5   : > { %s2491_s21 = smov (%p36_p1, %s34_s21), 0  ;;  %p255_p3 = pnand %p1785_p0, %p254_p2 }
   0x6   : > { %s1786_s24 = sshll.u32 (!%p255_p3), %s2041_s18, 6 }
   0x7   : > { %258 = sbr.rel (%p255_p3) target bundleno = 290 (0x122), region = 40  ;;  %p306_p4 = scmp.lt.s32.totalorder (!%p255_p3), %s1786_s24, 1023 }
   0xc   : > { %v1993_v0 = vld [vmem:[%s2483_s1 + $0x8] sm:$0x3f]   ;;  %vm810_vm0 = vcmask 1044480   ;;  %vm811_vm1 = vcmask 1045504   ;;  %v2051_v1 = vmov 65535   ;;  %v1994_v5 = vld [vmem:[%s2483_s1] sm:$0xff]  }
   0xd   : > { %v812_v2 = vsel %vm810_vm0, 4294967295, %v2051_v1  ;;  %s2493_s24 = smov (!%p306_p4, %s1786_s24), 1023  ;;  %vm713_vm2 = vcmask 220160   ;;  %v2181_v39 = vld [vmem:[%s2484_s2] ss:$0 sm:$0xff] }
   0xe   : > { %v813_v3 = vsel %vm811_vm1, %v812_v2, 0  ;;  %s1787_s27 = sshll.u32 %s2493_s24, 2  ;;  %v2188_v45 = vld [vmem:[%s2485_s3] ss:$0 sm:$0xff]  ;;  %s1789_s10 = sshll.u32 %s2493_s24, 3 }
   0xf   : > { %v815_v4 = vand.u32 %v1993_v0, %v813_v3  ;;  %s2112_s30 = scalar_lea.vmem %s2482_s0, %s1787_s27  ;;  %v2196_v52 = vld [vmem:[%s2486_s4] ss:$0 sm:$0xff]  ;;  %s2203_s15 = scalar_lea.vmem %s2487_s5, %s1789_s10 }
  0x10   : > { %v1995_v6 = vld [vmem:[%s2112_s30] sm:$0xff]   ;;  %v1997_v8 = vld [vmem:[%s2112_s30 + $0x8] sm:$0xff]   ;;  %v1999_v10 = vld [vmem:[%s2112_s30 + $0x10] sm:$0xff]  }
  0x11   : > { %1895 = vmatprep.subr.bf16.mxu0 %v815_v4  ;;  %1963 = vmatprep.subr.bf16.mxu1 %v815_v4  ;;  %v1996_v7 = vld [vmem:[%s2112_s30 + $0x80] sm:$0xff]   ;;  %v1998_v9 = vld [vmem:[%s2112_s30 + $0x88] sm:$0xff]   ;;  %v2000_v11 = vld [vmem:[%s2112_s30 + $0x90] sm:$0xff]  }
  0x12   : > { %1896 = vmatpush3.bf16.msra.mxu0 %v815_v4  ;;  %1965 = vmatpush3.bf16.msra.mxu1 %v815_v4  ;;  %v2001_v12 = vld [vmem:[%s2112_s30 + $0x18] sm:$0xff]   ;;  %v2003_v14 = vld [vmem:[%s2112_s30 + $0x20] sm:$0xff]   ;;  %v2005_v16 = vld [vmem:[%s2112_s30 + $0x28] sm:$0xff]  }
  0x13   : > { %1897 = vmatprep.subr.bf16.mxu0 %v1994_v5  ;;  %1964 = vmatprep.subr.bf16.mxu1 %v1994_v5  ;;  %v2002_v13 = vld [vmem:[%s2112_s30 + $0x98] sm:$0xff]   ;;  %v2004_v15 = vld [vmem:[%s2112_s30 + $0xa0] sm:$0xff]   ;;  %v2006_v17 = vld [vmem:[%s2112_s30 + $0xa8] sm:$0xff]  }
  0x14   : > { %1899 = vmatprep.mubr.msk.bf16.mxu0 %vm713_vm2, %v1995_v6  ;;  %1931 = vmatprep.mubr.msk.bf16.mxu1 %vm713_vm2, %v1996_v7  ;;  %v2007_v18 = vld [vmem:[%s2112_s30 + $0x30] sm:$0xff]   ;;  %v2009_v20 = vld [vmem:[%s2112_s30 + $0x38] sm:$0xff]   ;;  %v2011_v22 = vld [vmem:[%s2112_s30 + $0x40] sm:$0xff]  }
  0x15   : > { %v2008_v19 = vld [vmem:[%s2112_s30 + $0xb0] sm:$0xff]   ;;  %v2010_v21 = vld [vmem:[%s2112_s30 + $0xb8] sm:$0xff]   ;;  %v2012_v23 = vld [vmem:[%s2112_s30 + $0xc0] sm:$0xff]  }
  0x16   : > { %1898 = vmatpush3.bf16.msra.mxu0 %v1994_v5  ;;  %1966 = vmatpush3.bf16.msra.mxu1 %v1994_v5  ;;  %v2013_v24 = vld [vmem:[%s2112_s30 + $0x48] sm:$0xff]   ;;  %v2015_v26 = vld [vmem:[%s2112_s30 + $0x50] sm:$0xff]   ;;  %v2017_v28 = vld [vmem:[%s2112_s30 + $0x58] sm:$0xff]  }
  0x17   : > { %v2014_v25 = vld [vmem:[%s2112_s30 + $0xc8] sm:$0xff]   ;;  %v2016_v27 = vld [vmem:[%s2112_s30 + $0xd0] sm:$0xff]   ;;  %v2018_v29 = vld [vmem:[%s2112_s30 + $0xd8] sm:$0xff]  }
  0x18   : > { %v2019_v30 = vld [vmem:[%s2112_s30 + $0x60] sm:$0xff]   ;;  %v2021_v32 = vld [vmem:[%s2112_s30 + $0x68] sm:$0xff]   ;;  %v2023_v34 = vld [vmem:[%s2112_s30 + $0x70] sm:$0xff]  }
  0x19   : > { %1900 = vmatmul.mubr.msk.bf16.vlgmr.msra.gmra.mxu0 %vm713_vm2, %v1997_v8  ;;  %1932 = vmatmul.mubr.msk.bf16.vlgmr.msra.gmra.mxu1 %vm713_vm2, %v1998_v9  ;;  %v2020_v31 = vld [vmem:[%s2112_s30 + $0xe0] sm:$0xff]   ;;  %v2022_v33 = vld [vmem:[%s2112_s30 + $0xe8] sm:$0xff]   ;;  %v2024_v35 = vld [vmem:[%s2112_s30 + $0xf0] sm:$0xff]  }
  0x1a   : > { %1903 = vmatprep.mubr.msk.bf16.mxu0 %vm713_vm2, %v1999_v10  ;;  %1935 = vmatprep.mubr.msk.bf16.mxu1 %vm713_vm2, %v2000_v11  ;;  %v2025_v36 = vld [vmem:[%s2112_s30 + $0x78] sm:$0xff]  }
  0x1b   : > { %v2026_v37 = vld [vmem:[%s2112_s30 + $0xf8] sm:$0xff]  }
  0x21   : > { %1904 = vmatmul.mubr.msk.bf16.gmra.mxu0 %vm713_vm2, %v2001_v12  ;;  %1936 = vmatmul.mubr.msk.bf16.gmra.mxu1 %vm713_vm2, %v2002_v13 }
  0x22   : > { %1907 = vmatprep.mubr.msk.bf16.mxu0 %vm713_vm2, %v2003_v14  ;;  %1939 = vmatprep.mubr.msk.bf16.mxu1 %vm713_vm2, %v2004_v15 }
  0x29   : > { %1908 = vmatmul.mubr.msk.bf16.gmra.mxu0 %vm713_vm2, %v2005_v16  ;;  %1940 = vmatmul.mubr.msk.bf16.gmra.mxu1 %vm713_vm2, %v2006_v17 }
  0x2a   : > { %1911 = vmatprep.mubr.msk.bf16.mxu0 %vm713_vm2, %v2007_v18  ;;  %1943 = vmatprep.mubr.msk.bf16.mxu1 %vm713_vm2, %v2008_v19 }
  0x31   : > { %1912 = vmatmul.mubr.msk.bf16.gmra.mxu0 %vm713_vm2, %v2009_v20  ;;  %1944 = vmatmul.mubr.msk.bf16.gmra.mxu1 %vm713_vm2, %v2010_v21 }
  0x32   : > { %1915 = vmatprep.mubr.msk.bf16.mxu0 %vm713_vm2, %v2011_v22  ;;  %1947 = vmatprep.mubr.msk.bf16.mxu1 %vm713_vm2, %v2012_v23 }
  0x39   : > { %1916 = vmatmul.mubr.msk.bf16.gmra.mxu0 %vm713_vm2, %v2013_v24  ;;  %1948 = vmatmul.mubr.msk.bf16.gmra.mxu1 %vm713_vm2, %v2014_v25 }
  0x3a   : > { %1919 = vmatprep.mubr.msk.bf16.mxu0 %vm713_vm2, %v2015_v26  ;;  %1951 = vmatprep.mubr.msk.bf16.mxu1 %vm713_vm2, %v2016_v27 }
  0x41   : > { %1920 = vmatmul.mubr.msk.bf16.gmra.mxu0 %vm713_vm2, %v2017_v28  ;;  %1952 = vmatmul.mubr.msk.bf16.gmra.mxu1 %vm713_vm2, %v2018_v29 }
  0x42   : > { %1923 = vmatprep.mubr.msk.bf16.mxu0 %vm713_vm2, %v2019_v30  ;;  %1955 = vmatprep.mubr.msk.bf16.mxu1 %vm713_vm2, %v2020_v31 }
  0x49   : > { %1924 = vmatmul.mubr.msk.bf16.gmra.mxu0 %vm713_vm2, %v2021_v32  ;;  %1956 = vmatmul.mubr.msk.bf16.gmra.mxu1 %vm713_vm2, %v2022_v33 }
  0x4a   : > { %1927 = vmatprep.mubr.msk.bf16.mxu0 %vm713_vm2, %v2023_v34  ;;  %1959 = vmatprep.mubr.msk.bf16.mxu1 %vm713_vm2, %v2024_v35 }
  0x51   : > { %1928 = vmatmul.mubr.msk.bf16.gmra.mxu0 %vm713_vm2, %v2025_v36  ;;  %1960 = vmatmul.mubr.msk.bf16.gmra.mxu1 %vm713_vm2, %v2026_v37 }
  0xd9   : > { %v1901_v38 = vpop.f32.mrf.mxu0  ;;  %v1933_v40 = vpop.f32.mrf.mxu1 }
  0xda   : > { %v1310_v43 = vadd.f32 %v1901_v38, %v2181_v39  ;;  %v1342_v44 = vadd.f32 %v1933_v40, %v2181_v39 }
  0xdb   : > { %v851_v41 = vpop.f32.mrf.mxu0  ;;  %v979_v42 = vpop.f32.mrf.mxu1 }
  0xdc   : > { %v1374_v48 = vmax.f32 %v1310_v43, 0.0  ;;  %v1406_v49 = vmax.f32 %v1342_v44, 0.0  ;;  %v1308_v50 = vadd.f32 %v2181_v39, %v851_v41  ;;  %v1340_v51 = vadd.f32 %v2181_v39, %v979_v42 }
  0xdd   : > { %v1902_v46 = vpop.f32.mrf.mxu0  ;;  %v1934_v47 = vpop.f32.mrf.mxu1 }
  0xde   : > { %v1445_v55 = vmul.f32 %v2188_v45, %v1374_v48  ;;  %v1477_v56 = vmul.f32 %v2188_v45, %v1406_v49  ;;  %v1372_v57 = vmax.f32 %v1308_v50, 0.0  ;;  %v1404_v58 = vmax.f32 %v1340_v51, 0.0 }
  0xdf   : > { %v854_v53 = vpop.f32.mrf.mxu0  ;;  %v982_v54 = vpop.f32.mrf.mxu1  ;;  %v1311_v59 = vadd.f32 %v1902_v46, %v2181_v39  ;;  %v1343_v60 = vadd.f32 %v1934_v47, %v2181_v39 }
  0xe0   : > { %v1516_v63 = vadd.f32 %v2196_v52, %v1445_v55  ;;  %v1548_v0 = vadd.f32 %v2196_v52, %v1477_v56  ;;  %v1443_v1 = vmul.f32 %v2188_v45, %v1372_v57  ;;  %v1475_v2 = vmul.f32 %v2188_v45, %v1404_v58 }
  0xe1   : > { %v1905_v61 = vpop.f32.mrf.mxu0  ;;  %v1937_v62 = vpop.f32.mrf.mxu1  ;;  %v1375_v3 = vmax.f32 %v1311_v59, 0.0  ;;  %v1407_v4 = vmax.f32 %v1343_v60, 0.0  ;;  %v1309_v5 = vadd.f32 %v2181_v39, %v854_v53  ;;  %v1341_v6 = vadd.f32 %v2181_v39, %v982_v54 }
  0xe2   : > { %1580 = vst [vmem:[%s2203_s15 + $0x10] sm:$0xff] %v1516_v63  ;;  %1612 = vst [vmem:[%s2203_s15 + $0x110] sm:$0xff] %v1548_v0  ;;  %v1514_v9 = vadd.f32 %v2196_v52, %v1443_v1  ;;  %v1546_v10 = vadd.f32 %v2196_v52, %v1475_v2  ;;  %v1314_v17 = vadd.f32 %v1905_v61, %v2181_v39 }
  0xe3   : > { %v867_v7 = vpop.f32.mrf.mxu0  ;;  %v995_v8 = vpop.f32.mrf.mxu1  ;;  %v1446_v11 = vmul.f32 %v2188_v45, %v1375_v3  ;;  %v1478_v12 = vmul.f32 %v2188_v45, %v1407_v4  ;;  %v1373_v13 = vmax.f32 %v1309_v5, 0.0  ;;  %v1405_v14 = vmax.f32 %v1341_v6, 0.0 }
  0xe4   : > { %1578 = vst [vmem:[%s2203_s15] sm:$0xff] %v1514_v9  ;;  %1610 = vst [vmem:[%s2203_s15 + $0x100] sm:$0xff] %v1546_v10  ;;  %v1346_v18 = vadd.f32 %v1937_v62, %v2181_v39  ;;  %v1378_v25 = vmax.f32 %v1314_v17, 0.0  ;;  %v1312_v27 = vadd.f32 %v2181_v39, %v867_v7  ;;  %v1344_v28 = vadd.f32 %v2181_v39, %v995_v8 }
  0xe5   : > { %v1906_v15 = vpop.f32.mrf.mxu0  ;;  %v1938_v16 = vpop.f32.mrf.mxu1  ;;  %v1517_v19 = vadd.f32 %v2196_v52, %v1446_v11  ;;  %v1549_v20 = vadd.f32 %v2196_v52, %v1478_v12  ;;  %v1444_v21 = vmul.f32 %v2188_v45, %v1373_v13  ;;  %v1476_v22 = vmul.f32 %v2188_v45, %v1405_v14 }
  0xe6   : > { %v1410_v26 = vmax.f32 %v1346_v18, 0.0  ;;  %v1449_v33 = vmul.f32 %v2188_v45, %v1378_v25  ;;  %v1376_v35 = vmax.f32 %v1312_v27, 0.0  ;;  %v1408_v36 = vmax.f32 %v1344_v28, 0.0 }
  0xe7   : > { %v870_v23 = vpop.f32.mrf.mxu0  ;;  %v998_v24 = vpop.f32.mrf.mxu1  ;;  %1581 = vst [vmem:[%s2203_s15 + $0x18] sm:$0xff] %v1517_v19  ;;  %1613 = vst [vmem:[%s2203_s15 + $0x118] sm:$0xff] %v1549_v20  ;;  %v1515_v29 = vadd.f32 %v2196_v52, %v1444_v21  ;;  %v1547_v30 = vadd.f32 %v2196_v52, %v1476_v22  ;;  %v1315_v37 = vadd.f32 %v1906_v15, %v2181_v39 }
  0xe8   : > { %v1481_v34 = vmul.f32 %v2188_v45, %v1410_v26  ;;  %v1347_v38 = vadd.f32 %v1938_v16, %v2181_v39  ;;  %v1520_v42 = vadd.f32 %v2196_v52, %v1449_v33  ;;  %v1447_v44 = vmul.f32 %v2188_v45, %v1376_v35 }
  0xe9   : > { %v1909_v31 = vpop.f32.mrf.mxu0  ;;  %v1941_v32 = vpop.f32.mrf.mxu1  ;;  %1579 = vst [vmem:[%s2203_s15 + $0x8] sm:$0xff] %v1515_v29  ;;  %1611 = vst [vmem:[%s2203_s15 + $0x108] sm:$0xff] %v1547_v30  ;;  %v1479_v46 = vmul.f32 %v2188_v45, %v1408_v36  ;;  %v1379_v47 = vmax.f32 %v1315_v37, 0.0  ;;  %v1313_v49 = vadd.f32 %v2181_v39, %v870_v23  ;;  %v1345_v50 = vadd.f32 %v2181_v39, %v998_v24 }
  0xea   : > { %v1552_v43 = vadd.f32 %v2196_v52, %v1481_v34  ;;  %v1411_v48 = vmax.f32 %v1347_v38, 0.0  ;;  %1584 = vst [vmem:[%s2203_s15 + $0x30] sm:$0xff] %v1520_v42  ;;  %v1518_v54 = vadd.f32 %v2196_v52, %v1447_v44  ;;  %v1318_v62 = vadd.f32 %v1909_v31, %v2181_v39 }
  0xeb   : > { %v883_v40 = vpop.f32.mrf.mxu0  ;;  %v1011_v41 = vpop.f32.mrf.mxu1  ;;  %v1550_v55 = vadd.f32 %v2196_v52, %v1479_v46  ;;  %v1450_v56 = vmul.f32 %v2188_v45, %v1379_v47  ;;  %v1377_v58 = vmax.f32 %v1313_v49, 0.0  ;;  %v1409_v59 = vmax.f32 %v1345_v50, 0.0 }
  0xec   : > { %1616 = vst [vmem:[%s2203_s15 + $0x130] sm:$0xff] %v1552_v43  ;;  %v1482_v57 = vmul.f32 %v2188_v45, %v1411_v48  ;;  %1582 = vst [vmem:[%s2203_s15 + $0x20] sm:$0xff] %v1518_v54  ;;  %v1350_v63 = vadd.f32 %v1941_v32, %v2181_v39  ;;  %v1382_v6 = vmax.f32 %v1318_v62, 0.0  ;;  %v1316_v8 = vadd.f32 %v2181_v39, %v883_v40 }
  0xed   : > { %v1910_v51 = vpop.f32.mrf.mxu0  ;;  %v1942_v53 = vpop.f32.mrf.mxu1  ;;  %1614 = vst [vmem:[%s2203_s15 + $0x120] sm:$0xff] %v1550_v55  ;;  %v1521_v0 = vadd.f32 %v2196_v52, %v1450_v56  ;;  %v1448_v2 = vmul.f32 %v2188_v45, %v1377_v58  ;;  %v1480_v3 = vmul.f32 %v2188_v45, %v1409_v59  ;;  %v1348_v9 = vadd.f32 %v2181_v39, %v1011_v41 }
  0xee   : > { %v1553_v1 = vadd.f32 %v2196_v52, %v1482_v57  ;;  %v1414_v7 = vmax.f32 %v1350_v63, 0.0  ;;  %v1453_v14 = vmul.f32 %v2188_v45, %v1382_v6  ;;  %v1380_v16 = vmax.f32 %v1316_v8, 0.0 }
  0xef   : > { %v886_v60 = vpop.f32.mrf.mxu0  ;;  %v1014_v61 = vpop.f32.mrf.mxu1  ;;  %1585 = vst [vmem:[%s2203_s15 + $0x38] sm:$0xff] %v1521_v0  ;;  %v1519_v10 = vadd.f32 %v2196_v52, %v1448_v2  ;;  %v1551_v11 = vadd.f32 %v2196_v52, %v1480_v3  ;;  %v1412_v17 = vmax.f32 %v1348_v9, 0.0  ;;  %v1319_v18 = vadd.f32 %v1910_v51, %v2181_v39 }
  0xf0   : > { %1617 = vst [vmem:[%s2203_s15 + $0x138] sm:$0xff] %v1553_v1  ;;  %v1485_v15 = vmul.f32 %v2188_v45, %v1414_v7  ;;  %v1351_v19 = vadd.f32 %v1942_v53, %v2181_v39  ;;  %v1524_v22 = vadd.f32 %v2196_v52, %v1453_v14  ;;  %v1451_v24 = vmul.f32 %v2188_v45, %v1380_v16 }
  0xf1   : > { %v1913_v4 = vpop.f32.mrf.mxu0  ;;  %v1945_v5 = vpop.f32.mrf.mxu1  ;;  %1583 = vst [vmem:[%s2203_s15 + $0x28] sm:$0xff] %v1519_v10  ;;  %1615 = vst [vmem:[%s2203_s15 + $0x128] sm:$0xff] %v1551_v11  ;;  %v1483_v25 = vmul.f32 %v2188_v45, %v1412_v17  ;;  %v1383_v26 = vmax.f32 %v1319_v18, 0.0  ;;  %v1317_v28 = vadd.f32 %v2181_v39, %v886_v60  ;;  %v1349_v29 = vadd.f32 %v2181_v39, %v1014_v61 }
  0xf2   : > { %v1556_v23 = vadd.f32 %v2196_v52, %v1485_v15  ;;  %v1415_v27 = vmax.f32 %v1351_v19, 0.0  ;;  %1588 = vst [vmem:[%s2203_s15 + $0x50] sm:$0xff] %v1524_v22  ;;  %v1522_v32 = vadd.f32 %v2196_v52, %v1451_v24  ;;  %v1322_v41 = vadd.f32 %v1913_v4, %v2181_v39 }
  0xf3   : > { %v899_v12 = vpop.f32.mrf.mxu0  ;;  %v1027_v13 = vpop.f32.mrf.mxu1  ;;  %v1554_v33 = vadd.f32 %v2196_v52, %v1483_v25  ;;  %v1454_v34 = vmul.f32 %v2188_v45, %v1383_v26  ;;  %v1381_v36 = vmax.f32 %v1317_v28, 0.0  ;;  %v1413_v37 = vmax.f32 %v1349_v29, 0.0 }
  0xf4   : > { %1620 = vst [vmem:[%s2203_s15 + $0x150] sm:$0xff] %v1556_v23  ;;  %v1486_v35 = vmul.f32 %v2188_v45, %v1415_v27  ;;  %1586 = vst [vmem:[%s2203_s15 + $0x40] sm:$0xff] %v1522_v32  ;;  %v1354_v42 = vadd.f32 %v1945_v5, %v2181_v39  ;;  %v1386_v50 = vmax.f32 %v1322_v41, 0.0  ;;  %v1320_v53 = vadd.f32 %v2181_v39, %v899_v12 }
  0xf5   : > { %v1914_v20 = vpop.f32.mrf.mxu0  ;;  %v1946_v21 = vpop.f32.mrf.mxu1  ;;  %1618 = vst [vmem:[%s2203_s15 + $0x140] sm:$0xff] %v1554_v33  ;;  %v1525_v43 = vadd.f32 %v2196_v52, %v1454_v34  ;;  %v1452_v46 = vmul.f32 %v2188_v45, %v1381_v36  ;;  %v1484_v47 = vmul.f32 %v2188_v45, %v1413_v37  ;;  %v1352_v54 = vadd.f32 %v2181_v39, %v1027_v13 }
  0xf6   : > { %v1557_v44 = vadd.f32 %v2196_v52, %v1486_v35  ;;  %v1418_v51 = vmax.f32 %v1354_v42, 0.0  ;;  %v1457_v59 = vmul.f32 %v2188_v45, %v1386_v50  ;;  %v1384_v61 = vmax.f32 %v1320_v53, 0.0 }
  0xf7   : > { %v902_v30 = vpop.f32.mrf.mxu0  ;;  %v1030_v31 = vpop.f32.mrf.mxu1  ;;  %1589 = vst [vmem:[%s2203_s15 + $0x58] sm:$0xff] %v1525_v43  ;;  %v1523_v55 = vadd.f32 %v2196_v52, %v1452_v46  ;;  %v1555_v56 = vadd.f32 %v2196_v52, %v1484_v47  ;;  %v1416_v62 = vmax.f32 %v1352_v54, 0.0  ;;  %v1323_v63 = vadd.f32 %v1914_v20, %v2181_v39 }
  0xf8   : > { %1621 = vst [vmem:[%s2203_s15 + $0x158] sm:$0xff] %v1557_v44  ;;  %v1489_v60 = vmul.f32 %v2188_v45, %v1418_v51  ;;  %v1355_v0 = vadd.f32 %v1946_v21, %v2181_v39  ;;  %v1528_v3 = vadd.f32 %v2196_v52, %v1457_v59  ;;  %v1455_v5 = vmul.f32 %v2188_v45, %v1384_v61 }
  0xf9   : > { %v1917_v38 = vpop.f32.mrf.mxu0  ;;  %v1949_v40 = vpop.f32.mrf.mxu1  ;;  %1587 = vst [vmem:[%s2203_s15 + $0x48] sm:$0xff] %v1523_v55  ;;  %1619 = vst [vmem:[%s2203_s15 + $0x148] sm:$0xff] %v1555_v56  ;;  %v1487_v6 = vmul.f32 %v2188_v45, %v1416_v62  ;;  %v1387_v7 = vmax.f32 %v1323_v63, 0.0  ;;  %v1321_v9 = vadd.f32 %v2181_v39, %v902_v30  ;;  %v1353_v10 = vadd.f32 %v2181_v39, %v1030_v31 }
  0xfa   : > { %v1560_v4 = vadd.f32 %v2196_v52, %v1489_v60  ;;  %v1419_v8 = vmax.f32 %v1355_v0, 0.0  ;;  %1592 = vst [vmem:[%s2203_s15 + $0x70] sm:$0xff] %v1528_v3  ;;  %v1526_v13 = vadd.f32 %v2196_v52, %v1455_v5  ;;  %v1326_v21 = vadd.f32 %v1917_v38, %v2181_v39 }
  0xfb   : > { %v915_v48 = vpop.f32.mrf.mxu0  ;;  %v1043_v49 = vpop.f32.mrf.mxu1  ;;  %v1558_v14 = vadd.f32 %v2196_v52, %v1487_v6  ;;  %v1458_v15 = vmul.f32 %v2188_v45, %v1387_v7  ;;  %v1385_v17 = vmax.f32 %v1321_v9, 0.0  ;;  %v1417_v18 = vmax.f32 %v1353_v10, 0.0 }
  0xfc   : > { %1624 = vst [vmem:[%s2203_s15 + $0x170] sm:$0xff] %v1560_v4  ;;  %v1490_v16 = vmul.f32 %v2188_v45, %v1419_v8  ;;  %1590 = vst [vmem:[%s2203_s15 + $0x60] sm:$0xff] %v1526_v13  ;;  %v1358_v22 = vadd.f32 %v1949_v40, %v2181_v39  ;;  %v1390_v29 = vmax.f32 %v1326_v21, 0.0  ;;  %v1324_v31 = vadd.f32 %v2181_v39, %v915_v48 }
  0xfd   : > { %v1918_v57 = vpop.f32.mrf.mxu0  ;;  %v1950_v58 = vpop.f32.mrf.mxu1  ;;  %1622 = vst [vmem:[%s2203_s15 + $0x160] sm:$0xff] %v1558_v14  ;;  %v1529_v23 = vadd.f32 %v2196_v52, %v1458_v15  ;;  %v1456_v25 = vmul.f32 %v2188_v45, %v1385_v17  ;;  %v1488_v26 = vmul.f32 %v2188_v45, %v1417_v18  ;;  %v1356_v32 = vadd.f32 %v2181_v39, %v1043_v49 }
  0xfe   : > { %v1561_v24 = vadd.f32 %v2196_v52, %v1490_v16  ;;  %v1422_v30 = vmax.f32 %v1358_v22, 0.0  ;;  %v1461_v37 = vmul.f32 %v2188_v45, %v1390_v29  ;;  %v1388_v40 = vmax.f32 %v1324_v31, 0.0 }
  0xff   : > { %v918_v1 = vpop.f32.mrf.mxu0  ;;  %v1046_v2 = vpop.f32.mrf.mxu1  ;;  %1593 = vst [vmem:[%s2203_s15 + $0x78] sm:$0xff] %v1529_v23  ;;  %v1527_v33 = vadd.f32 %v2196_v52, %v1456_v25  ;;  %v1559_v34 = vadd.f32 %v2196_v52, %v1488_v26  ;;  %v1420_v41 = vmax.f32 %v1356_v32, 0.0  ;;  %v1327_v42 = vadd.f32 %v1918_v57, %v2181_v39 }
 0x100   : > { %1625 = vst [vmem:[%s2203_s15 + $0x178] sm:$0xff] %v1561_v24  ;;  %v1493_v38 = vmul.f32 %v2188_v45, %v1422_v30  ;;  %v1359_v43 = vadd.f32 %v1950_v58, %v2181_v39  ;;  %v1532_v47 = vadd.f32 %v2196_v52, %v1461_v37  ;;  %v1459_v49 = vmul.f32 %v2188_v45, %v1388_v40 }
 0x101   : > { %v1921_v11 = vpop.f32.mrf.mxu0  ;;  %v1953_v12 = vpop.f32.mrf.mxu1  ;;  %1591 = vst [vmem:[%s2203_s15 + $0x68] sm:$0xff] %v1527_v33  ;;  %1623 = vst [vmem:[%s2203_s15 + $0x168] sm:$0xff] %v1559_v34  ;;  %v1491_v50 = vmul.f32 %v2188_v45, %v1420_v41  ;;  %v1391_v51 = vmax.f32 %v1327_v42, 0.0  ;;  %v1325_v54 = vadd.f32 %v2181_v39, %v918_v1  ;;  %v1357_v55 = vadd.f32 %v2181_v39, %v1046_v2 }
 0x102   : > { %v1564_v48 = vadd.f32 %v2196_v52, %v1493_v38  ;;  %v1423_v53 = vmax.f32 %v1359_v43, 0.0  ;;  %1596 = vst [vmem:[%s2203_s15 + $0x90] sm:$0xff] %v1532_v47  ;;  %v1530_v56 = vadd.f32 %v2196_v52, %v1459_v49  ;;  %v1330_v0 = vadd.f32 %v1921_v11, %v2181_v39 }
 0x103   : > { %v931_v19 = vpop.f32.mrf.mxu0  ;;  %v1059_v20 = vpop.f32.mrf.mxu1  ;;  %v1562_v57 = vadd.f32 %v2196_v52, %v1491_v50  ;;  %v1462_v60 = vmul.f32 %v2188_v45, %v1391_v51  ;;  %v1389_v62 = vmax.f32 %v1325_v54, 0.0  ;;  %v1421_v63 = vmax.f32 %v1357_v55, 0.0 }
 0x104   : > { %1628 = vst [vmem:[%s2203_s15 + $0x190] sm:$0xff] %v1564_v48  ;;  %v1494_v61 = vmul.f32 %v2188_v45, %v1423_v53  ;;  %1594 = vst [vmem:[%s2203_s15 + $0x80] sm:$0xff] %v1530_v56  ;;  %v1362_v1 = vadd.f32 %v1953_v12, %v2181_v39  ;;  %v1394_v6 = vmax.f32 %v1330_v0, 0.0  ;;  %v1328_v8 = vadd.f32 %v2181_v39, %v931_v19 }
 0x105   : > { %v2323_v27 = vpop.f32.mrf.mxu0  ;;  %v2325_v28 = vpop.f32.mrf.mxu1  ;;  %1626 = vst [vmem:[%s2203_s15 + $0x180] sm:$0xff] %v1562_v57  ;;  %v1533_v2 = vadd.f32 %v2196_v52, %v1462_v60  ;;  %v1460_v4 = vmul.f32 %v2188_v45, %v1389_v62  ;;  %v1492_v5 = vmul.f32 %v2188_v45, %v1421_v63  ;;  %v1360_v9 = vadd.f32 %v2181_v39, %v1059_v20 }
 0x106   : > { %v1565_v3 = vadd.f32 %v2196_v52, %v1494_v61  ;;  %v1426_v7 = vmax.f32 %v1362_v1, 0.0  ;;  %v1465_v14 = vmul.f32 %v2188_v45, %v1394_v6  ;;  %v1392_v16 = vmax.f32 %v1328_v8, 0.0 }
 0x107   : > { %v2333_v35 = vpop.f32.mrf.mxu0  ;;  %v2335_v36 = vpop.f32.mrf.mxu1  ;;  %1597 = vst [vmem:[%s2203_s15 + $0x98] sm:$0xff] %v1533_v2  ;;  %v1531_v12 = vadd.f32 %v2196_v52, %v1460_v4  ;;  %v1563_v13 = vadd.f32 %v2196_v52, %v1492_v5  ;;  %v1424_v17 = vmax.f32 %v1360_v9, 0.0  ;;  %v1331_v18 = vadd.f32 %v2323_v27, %v2181_v39 }
 0x108   : > { %1629 = vst [vmem:[%s2203_s15 + $0x198] sm:$0xff] %v1565_v3  ;;  %v1497_v15 = vmul.f32 %v2188_v45, %v1426_v7  ;;  %v1363_v19 = vadd.f32 %v2325_v28, %v2181_v39  ;;  %v1536_v20 = vadd.f32 %v2196_v52, %v1465_v14  ;;  %v1463_v22 = vmul.f32 %v2188_v45, %v1392_v16 }
 0x109   : > { %v2343_v44 = vpop.f32.mrf.mxu0  ;;  %v2345_v46 = vpop.f32.mrf.mxu1  ;;  %1595 = vst [vmem:[%s2203_s15 + $0x88] sm:$0xff] %v1531_v12  ;;  %1627 = vst [vmem:[%s2203_s15 + $0x188] sm:$0xff] %v1563_v13  ;;  %v1495_v23 = vmul.f32 %v2188_v45, %v1424_v17  ;;  %v1395_v26 = vmax.f32 %v1331_v18, 0.0  ;;  %v1329_v27 = vadd.f32 %v2181_v39, %v2333_v35  ;;  %v1361_v28 = vadd.f32 %v2181_v39, %v2335_v36 }
 0x10a   : > { %v1568_v21 = vadd.f32 %v2196_v52, %v1497_v15  ;;  %v1427_v29 = vmax.f32 %v1363_v19, 0.0  ;;  %1600 = vst [vmem:[%s2203_s15 + $0xb0] sm:$0xff] %v1536_v20  ;;  %v1534_v30 = vadd.f32 %v2196_v52, %v1463_v22  ;;  %v1334_v35 = vadd.f32 %v2343_v44, %v2181_v39 }
 0x10b   : > { %v947_v58 = vpop.f32.mrf.mxu0  ;;  %v1075_v59 = vpop.f32.mrf.mxu1  ;;  %v1566_v31 = vadd.f32 %v2196_v52, %v1495_v23  ;;  %v1466_v32 = vmul.f32 %v2188_v45, %v1395_v26  ;;  %v1393_v34 = vmax.f32 %v1329_v27, 0.0  ;;  %v1425_v37 = vmax.f32 %v1361_v28, 0.0 }
 0x10c   : > { %1632 = vst [vmem:[%s2203_s15 + $0x1b0] sm:$0xff] %v1568_v21  ;;  %v1498_v33 = vmul.f32 %v2188_v45, %v1427_v29  ;;  %1598 = vst [vmem:[%s2203_s15 + $0xa0] sm:$0xff] %v1534_v30  ;;  %v1366_v36 = vadd.f32 %v2345_v46, %v2181_v39  ;;  %v1398_v48 = vmax.f32 %v1334_v35, 0.0  ;;  %v1332_v50 = vadd.f32 %v2181_v39, %v947_v58 }
 0x10d   : > { %v1926_v10 = vpop.f32.mrf.mxu0  ;;  %v1958_v11 = vpop.f32.mrf.mxu1  ;;  %1630 = vst [vmem:[%s2203_s15 + $0x1a0] sm:$0xff] %v1566_v31  ;;  %v1537_v41 = vadd.f32 %v2196_v52, %v1466_v32  ;;  %v1464_v43 = vmul.f32 %v2188_v45, %v1393_v34  ;;  %v1496_v47 = vmul.f32 %v2188_v45, %v1425_v37  ;;  %v1364_v44 = vadd.f32 %v2181_v39, %v1075_v59 }
 0x10e   : > { %v1569_v42 = vadd.f32 %v2196_v52, %v1498_v33  ;;  %v1430_v49 = vmax.f32 %v1366_v36, 0.0  ;;  %v1469_v53 = vmul.f32 %v2188_v45, %v1398_v48  ;;  %v1396_v55 = vmax.f32 %v1332_v50, 0.0 }
 0x10f   : > { %v950_v24 = vpop.f32.mrf.mxu0  ;;  %v1078_v25 = vpop.f32.mrf.mxu1  ;;  %1601 = vst [vmem:[%s2203_s15 + $0xb8] sm:$0xff] %v1537_v41  ;;  %v1535_v46 = vadd.f32 %v2196_v52, %v1464_v43  ;;  %v1567_v51 = vadd.f32 %v2196_v52, %v1496_v47  ;;  %v1428_v56 = vmax.f32 %v1364_v44, 0.0  ;;  %v1335_v58 = vadd.f32 %v1926_v10, %v2181_v39 }
 0x110   : > { %1633 = vst [vmem:[%s2203_s15 + $0x1b8] sm:$0xff] %v1569_v42  ;;  %v1501_v54 = vmul.f32 %v2188_v45, %v1430_v49  ;;  %v1367_v59 = vadd.f32 %v1958_v11, %v2181_v39  ;;  %v1540_v61 = vadd.f32 %v2196_v52, %v1469_v53  ;;  %v1467_v63 = vmul.f32 %v2188_v45, %v1396_v55 }
 0x111   : > { %v1929_v38 = vpop.f32.mrf.mxu0  ;;  %v1961_v40 = vpop.f32.mrf.mxu1  ;;  %1599 = vst [vmem:[%s2203_s15 + $0xa8] sm:$0xff] %v1535_v46  ;;  %1631 = vst [vmem:[%s2203_s15 + $0x1a8] sm:$0xff] %v1567_v51  ;;  %v1499_v0 = vmul.f32 %v2188_v45, %v1428_v56  ;;  %v1399_v1 = vmax.f32 %v1335_v58, 0.0  ;;  %v1333_v3 = vadd.f32 %v2181_v39, %v950_v24  ;;  %v1365_v4 = vadd.f32 %v2181_v39, %v1078_v25 }
 0x112   : > { %v1572_v62 = vadd.f32 %v2196_v52, %v1501_v54  ;;  %v1431_v2 = vmax.f32 %v1367_v59, 0.0  ;;  %1604 = vst [vmem:[%s2203_s15 + $0xd0] sm:$0xff] %v1540_v61  ;;  %v1538_v5 = vadd.f32 %v2196_v52, %v1467_v63  ;;  %v1338_v13 = vadd.f32 %v1929_v38, %v2181_v39 }
 0x113   : > { %v963_v57 = vpop.f32.mrf.mxu0  ;;  %v1091_v60 = vpop.f32.mrf.mxu1  ;;  %v1570_v6 = vadd.f32 %v2196_v52, %v1499_v0  ;;  %v1470_v9 = vmul.f32 %v2188_v45, %v1399_v1  ;;  %v1397_v11 = vmax.f32 %v1333_v3, 0.0  ;;  %v1429_v12 = vmax.f32 %v1365_v4, 0.0 }
 0x114   : > { %1636 = vst [vmem:[%s2203_s15 + $0x1d0] sm:$0xff] %v1572_v62  ;;  %v1502_v10 = vmul.f32 %v2188_v45, %v1431_v2  ;;  %1602 = vst [vmem:[%s2203_s15 + $0xc0] sm:$0xff] %v1538_v5  ;;  %v1370_v14 = vadd.f32 %v1961_v40, %v2181_v39  ;;  %v1402_v19 = vmax.f32 %v1338_v13, 0.0  ;;  %v1336_v21 = vadd.f32 %v2181_v39, %v963_v57 }
 0x115   : > { %v1930_v7 = vpop.f32.mrf.mxu0  ;;  %v1962_v8 = vpop.f32.mrf.mxu1  ;;  %1634 = vst [vmem:[%s2203_s15 + $0x1c0] sm:$0xff] %v1570_v6  ;;  %v1541_v15 = vadd.f32 %v2196_v52, %v1470_v9  ;;  %v1468_v17 = vmul.f32 %v2188_v45, %v1397_v11  ;;  %v1500_v18 = vmul.f32 %v2188_v45, %v1429_v12  ;;  %v1368_v22 = vadd.f32 %v2181_v39, %v1091_v60 }
 0x116   : > { %v1573_v16 = vadd.f32 %v2196_v52, %v1502_v10  ;;  %v1434_v20 = vmax.f32 %v1370_v14, 0.0  ;;  %v1473_v29 = vmul.f32 %v2188_v45, %v1402_v19  ;;  %v1400_v28 = vmax.f32 %v1336_v21, 0.0 }
 0x117   : > { %v966_v23 = vpop.f32.mrf.mxu0  ;;  %v1094_v24 = vpop.f32.mrf.mxu1  ;;  %1605 = vst [vmem:[%s2203_s15 + $0xd8] sm:$0xff] %v1541_v15  ;;  %v1539_v25 = vadd.f32 %v2196_v52, %v1468_v17  ;;  %v1571_v26 = vadd.f32 %v2196_v52, %v1500_v18  ;;  %v1432_v30 = vmax.f32 %v1368_v22, 0.0  ;;  %v1339_v31 = vadd.f32 %v1930_v7, %v2181_v39 }
 0x118   : > { %1637 = vst [vmem:[%s2203_s15 + $0x1d8] sm:$0xff] %v1573_v16  ;;  %v1505_v27 = vmul.f32 %v2188_v45, %v1434_v20  ;;  %v1371_v32 = vadd.f32 %v1962_v8, %v2181_v39  ;;  %v1544_v33 = vadd.f32 %v2196_v52, %v1473_v29  ;;  %v1471_v37 = vmul.f32 %v2188_v45, %v1400_v28 }
 0x119   : > { %1603 = vst [vmem:[%s2203_s15 + $0xc8] sm:$0xff] %v1539_v25  ;;  %1635 = vst [vmem:[%s2203_s15 + $0x1c8] sm:$0xff] %v1571_v26  ;;  %v1503_v35 = vmul.f32 %v2188_v45, %v1432_v30  ;;  %v1403_v36 = vmax.f32 %v1339_v31, 0.0  ;;  %v1337_v40 = vadd.f32 %v2181_v39, %v966_v23  ;;  %v1369_v41 = vadd.f32 %v2181_v39, %v1094_v24 }
 0x11a   : > { %v1576_v34 = vadd.f32 %v2196_v52, %v1505_v27  ;;  %v1435_v38 = vmax.f32 %v1371_v32, 0.0  ;;  %1608 = vst [vmem:[%s2203_s15 + $0xf0] sm:$0xff] %v1544_v33  ;;  %v1542_v42 = vadd.f32 %v2196_v52, %v1471_v37 }
 0x11b   : > { %v1574_v43 = vadd.f32 %v2196_v52, %v1503_v35  ;;  %v1474_v47 = vmul.f32 %v2188_v45, %v1403_v36  ;;  %v1401_v49 = vmax.f32 %v1337_v40, 0.0  ;;  %v1433_v50 = vmax.f32 %v1369_v41, 0.0 }
 0x11c   : > { %1640 = vst [vmem:[%s2203_s15 + $0x1f0] sm:$0xff] %v1576_v34  ;;  %v1506_v48 = vmul.f32 %v2188_v45, %v1435_v38  ;;  %1606 = vst [vmem:[%s2203_s15 + $0xe0] sm:$0xff] %v1542_v42 }
 0x11d   : > { %1638 = vst [vmem:[%s2203_s15 + $0x1e0] sm:$0xff] %v1574_v43  ;;  %v1545_v44 = vadd.f32 %v2196_v52, %v1474_v47  ;;  %v1472_v46 = vmul.f32 %v2188_v45, %v1401_v49  ;;  %v1504_v51 = vmul.f32 %v2188_v45, %v1433_v50 }
 0x11e   : > { %v1577_v39 = vadd.f32 %v2196_v52, %v1506_v48 }
 0x11f   : > { %1609 = vst [vmem:[%s2203_s15 + $0xf8] sm:$0xff] %v1545_v44  ;;  %v1543_v53 = vadd.f32 %v2196_v52, %v1472_v46  ;;  %v1575_v54 = vadd.f32 %v2196_v52, %v1504_v51 }
 0x120   : > { %1641 = vst [vmem:[%s2203_s15 + $0x1f8] sm:$0xff] %v1577_v39 }
 0x121   : > { %1607 = vst [vmem:[%s2203_s15 + $0xe8] sm:$0xff] %v1543_v53  ;;  %1639 = vst [vmem:[%s2203_s15 + $0x1e8] sm:$0xff] %v1575_v54 }
 0x122 PF: > { %s15_s20 = sadd.s32 1, %s2049_s20   ;;  %s2488_s18 = smov %s2045_s19 }
 0x123   : > { %p12_p5 = scmp.ge.s32.totalorder %s15_s20, 18   ;;  %s2489_s19 = smov %s2491_s21 }
 0x125   :  { %14 = sbr.rel (!%p12_p5) target bundleno = 2 (0x2), region = 90 }

// kernel: classificador_forward.6
= control target key start
LH: loop header
LB: loop body
LE: loop exit
PB: predicated region body
PF: predicated region fallthrough
CT: control target
= control target key end

     0   :  { %s4131_s18 = smov 0   ;;  %s4133_s19 = smov 0   ;;  %s5172_s0 = inlined_call_operand.vmem [shape: bf16[2048,576], index: 0, kind: input, shape index: {}]   ;;  %s5173_s1 = inlined_call_operand.vmem [shape: bf16[576,128], index: 1, kind: input, shape index: {}]   ;;  %s5174_s2 = inlined_call_operand.vmem [shape: f32[1,128], index: 2, kind: input, shape index: {}]   ;;  %s5175_s3 = inlined_call_operand.vmem [shape: f32[1,128], index: 3, kind: input, shape index: {}]   ;;  %s5176_s4 = inlined_call_operand.vmem [shape: f32[1,128], index: 4, kind: input, shape index: {}]   ;;  %s5177_s5 = inlined_call_operand.vmem [shape: f32[2048,128], index: 5, kind: output, shape index: {}]  }
   0x1   :  { %s4135_s20 = smov 0  }
   0x2 LB: > { %s34_s21 = sadd.s32 1, %s4094_s19  ;;  %p3408_p0 = scmp.ge.s32.totalorder %s4098_s20, 1  ;;  %s4098_s20 = sphi %s4135_s20, %s15_s20   ;;  %s4094_s19 = sphi %s4133_s19, %s5217_s19   ;;  %s4090_s18 = sphi %s4131_s18, %s5216_s18  }
   0x3   : > { %p36_p1 = scmp.ge.s32.totalorder %s34_s21, 4  ;;  %p257_p2 = scmp.lt.s32.totalorder %s4098_s20, 5 }
   0x5   : > { %s5219_s21 = smov (%p36_p1, %s34_s21), 0  ;;  %p258_p3 = pnand %p3408_p0, %p257_p2 }
   0x7   : > { %261 = sbr.rel (%p258_p3) target bundleno = 599 (0x257), region = 40 }
   0xc   : > { %v3813_v0 = vld [vmem:[%s5173_s1 + $0x38] sm:$0xff]   ;;  %v4100_v1 = vmov 0   ;;  %s3409_s24 = sshll.u32 %s4090_s18, 6  ;;  %v3814_v2 = vld [vmem:[%s5173_s1 + $0x30] sm:$0xff]   ;;  %v3815_v3 = vld [vmem:[%s5173_s1 + $0x28] sm:$0xff]   ;;  %vm1762_vm0 = vcmask 523264  }
   0xd   : > { %1859 = vmatprep.subr.bf16.mxu0 %v4100_v1  ;;  %3754 = vmatprep.subr.bf16.mxu1 %v4100_v1  ;;  %p312_p4 = scmp.lt.s32.totalorder %s3409_s24, 255  ;;  %v3816_v4 = vld [vmem:[%s5173_s1 + $0x20] sm:$0xff]   ;;  %v3817_v5 = vld [vmem:[%s5173_s1 + $0x18] sm:$0xff]   ;;  %v3818_v7 = vld [vmem:[%s5173_s1 + $0x10] sm:$0xff]  }
   0xe   : > { %1860 = vmatpush1.bf16.msra.mxu0 %v3813_v0  ;;  %3770 = vmatpush1.bf16.msra.mxu1 %v3813_v0  ;;  %v3819_v9 = vld [vmem:[%s5173_s1 + $0x8] sm:$0xff]   ;;  %v3820_v10 = vld [vmem:[%s5173_s1] sm:$0xff]   ;;  %v3821_v11 = vld [vmem:[%s5173_s1 + $0x78] sm:$0xff]  }
   0xf   : > { %1861 = vmatprep.subr.bf16.mxu0 %v4100_v1  ;;  %3755 = vmatprep.subr.bf16.mxu1 %v4100_v1  ;;  %s5221_s24 = smov (!%p312_p4, %s3409_s24), 255  ;;  %v3822_v12 = vld [vmem:[%s5173_s1 + $0x70] sm:$0xff]   ;;  %v3823_v13 = vld [vmem:[%s5173_s1 + $0x68] sm:$0xff]   ;;  %v3824_v14 = vld [vmem:[%s5173_s1 + $0x60] sm:$0xff]  }
  0x10   : > { %s3786_s6 = smul.u32 20, %s5221_s24  ;;  %v3825_v15 = vld [vmem:[%s5173_s1 + $0x58] sm:$0xff]   ;;  %v3826_v16 = vld [vmem:[%s5173_s1 + $0x50] sm:$0xff]   ;;  %v3827_v17 = vld [vmem:[%s5173_s1 + $0x48] sm:$0xff]   ;;  %s3412_s17 = sshll.u32 %s5221_s24, 3 }
  0x11   : > { %v3828_v18 = vld [vmem:[%s5173_s1 + $0x40] sm:$0xff]   ;;  %v3835_v19 = vld [vmem:[%s5173_s1 + $0x118] sm:$0xff]   ;;  %v3884_v25 = vld [vmem:[%s5173_s1 + $0x110] sm:$0xff]   ;;  %s4762_s25 = scalar_lea.vmem %s5177_s5, %s3412_s17 }
  0x12   : > { %1862 = vmatpush1.bf16.msra.mxu0 %v3814_v2  ;;  %3771 = vmatpush1.bf16.msra.mxu1 %v3814_v2  ;;  %s4178_s11 = scalar_lea.vmem %s5172_s0, %s3786_s6  ;;  %v3836_v22 = vld [vmem:[%s5173_s1 + $0xb8] sm:$0xff]   ;;  %v3837_v26 = vld [vmem:[%s5173_s1 + $0xb0] sm:$0xff]   ;;  %v3844_v29 = vld [vmem:[%s5173_s1 + $0xa8] sm:$0xff]  }
  0x13   : > { %1863 = vmatprep.subr.bf16.mxu0 %v4100_v1  ;;  %3756 = vmatprep.subr.bf16.mxu1 %v4100_v1  ;;  %v3831_v6 = vld [vmem:[%s4178_s11 + $0x4] ss:$20 sps:$4 sm:$0xff]   ;;  %v3829_v20 = vld [vmem:[%s4178_s11] ss:$20 sps:$4 sm:$0xff]   ;;  %v3842_v27 = vld [vmem:[%s4178_s11 + $0x28] ss:$20 sps:$4 sm:$0xff]  }
  0x14   : > { %v3834_v8 = vld [vmem:[%s4178_s11 + $0x3c4] ss:$20 sps:$4 sm:$0xff]   ;;  %1891 = vmatprep.mubr.bf16.mxu0 %v3831_v6  ;;  %v3832_v21 = vld [vmem:[%s4178_s11 + $0x3c0] ss:$20 sps:$4 sm:$0xff]   ;;  %v3843_v28 = vld [vmem:[%s4178_s11 + $0x3e8] ss:$20 sps:$4 sm:$0xff]  }
  0x15   : > { %2083 = vmatprep.mubr.bf16.mxu1 %v3834_v8  ;;  %v3838_v23 = vld [vmem:[%s4178_s11 + $0x2c] ss:$20 sps:$4 sm:$0xff]   ;;  %v3846_v31 = vld [vmem:[%s4178_s11 + $0x54] ss:$20 sps:$4 sm:$0xff]   ;;  %v3850_v34 = vld [vmem:[%s4178_s11 + $0x50] ss:$20 sps:$4 sm:$0xff]  }
  0x16   : > { %1864 = vmatpush1.bf16.msra.mxu0 %v3815_v3  ;;  %3772 = vmatpush1.bf16.msra.mxu1 %v3815_v3  ;;  %v3840_v24 = vld [vmem:[%s4178_s11 + $0x3ec] ss:$20 sps:$4 sm:$0xff]   ;;  %v3848_v32 = vld [vmem:[%s4178_s11 + $0x414] ss:$20 sps:$4 sm:$0xff]   ;;  %v3851_v35 = vld [vmem:[%s4178_s11 + $0x410] ss:$20 sps:$4 sm:$0xff]  }
  0x17   : > { %1865 = vmatprep.subr.bf16.mxu0 %v4100_v1  ;;  %3757 = vmatprep.subr.bf16.mxu1 %v4100_v1  ;;  %v3925_v30 = vld [vmem:[%s5173_s1 + $0x108] sm:$0xff]   ;;  %v3845_v33 = vld [vmem:[%s5173_s1 + $0xa0] sm:$0xff]   ;;  %v3852_v36 = vld [vmem:[%s5173_s1 + $0x98] sm:$0xff]  }
  0x18   : > { %v3854_v37 = vld [vmem:[%s4178_s11 + $0x7c] ss:$20 sps:$4 sm:$0xff]   ;;  %v3858_v40 = vld [vmem:[%s4178_s11 + $0x78] ss:$20 sps:$4 sm:$0xff]   ;;  %v3962_v44 = vld [vmem:[%s5173_s1 + $0x100] sm:$0xff]  }
  0x19   : > { %v3856_v38 = vld [vmem:[%s4178_s11 + $0x43c] ss:$20 sps:$4 sm:$0xff]   ;;  %v3859_v41 = vld [vmem:[%s4178_s11 + $0x438] ss:$20 sps:$4 sm:$0xff]   ;;  %v3861_v46 = vld [vmem:[%s5173_s1 + $0x80] sm:$0xff]  }
  0x1a   : > { %1866 = vmatpush1.bf16.msra.mxu0 %v3816_v4  ;;  %3773 = vmatpush1.bf16.msra.mxu1 %v3816_v4  ;;  %v3853_v39 = vld [vmem:[%s5173_s1 + $0x90] sm:$0xff]   ;;  %v3860_v42 = vld [vmem:[%s5173_s1 + $0x88] sm:$0xff]   ;;  %v3862_v43 = vld [vmem:[%s4178_s11 + $0xa4] ss:$20 sps:$4 sm:$0xff]  }
  0x1b   : > { %1867 = vmatprep.subr.bf16.mxu0 %v4100_v1  ;;  %3758 = vmatprep.subr.bf16.mxu1 %v4100_v1  ;;  %v3864_v45 = vld [vmem:[%s4178_s11 + $0x464] ss:$20 sps:$4 sm:$0xff]   ;;  %v3866_v47 = vld [vmem:[%s4178_s11 + $0xa0] ss:$20 sps:$4 sm:$0xff]   ;;  %v3874_v53 = vld [vmem:[%s4178_s11 + $0xc8] ss:$20 sps:$4 sm:$0xff]  }
  0x1c   : > { %v3867_v48 = vld [vmem:[%s4178_s11 + $0x460] ss:$20 sps:$4 sm:$0xff]   ;;  %v3868_v49 = vld [vmem:[%s5173_s1 + $0xf8] sm:$0xff]   ;;  %v3876_v55 = vld [vmem:[%s5173_s1 + $0xe8] sm:$0xff]  }
  0x1d   : > { %v3870_v50 = vld [vmem:[%s4178_s11 + $0xcc] ss:$20 sps:$4 sm:$0xff]   ;;  %v3869_v52 = vld [vmem:[%s5173_s1 + $0xf0] sm:$0xff]   ;;  %v3875_v54 = vld [vmem:[%s4178_s11 + $0x488] ss:$20 sps:$4 sm:$0xff]  }
  0x1e   : > { %1868 = vmatpush1.bf16.msra.mxu0 %v3817_v5  ;;  %3774 = vmatpush1.bf16.msra.mxu1 %v3817_v5  ;;  %v3872_v51 = vld [vmem:[%s4178_s11 + $0x48c] ss:$20 sps:$4 sm:$0xff]   ;;  %v3878_v56 = vld [vmem:[%s4178_s11 + $0xf4] ss:$20 sps:$4 sm:$0xff]   ;;  %v3882_v59 = vld [vmem:[%s4178_s11 + $0xf0] ss:$20 sps:$4 sm:$0xff]  }
  0x1f   : > { %1869 = vmatprep.subr.bf16.mxu0 %v4100_v1  ;;  %3759 = vmatprep.subr.bf16.mxu1 %v4100_v1  ;;  %v3880_v57 = vld [vmem:[%s4178_s11 + $0x4b4] ss:$20 sps:$4 sm:$0xff]   ;;  %v3877_v58 = vld [vmem:[%s5173_s1 + $0xe0] sm:$0xff]   ;;  %v3885_v61 = vld [vmem:[%s5173_s1 + $0xd8] sm:$0xff]  }
  0x20   : > { %v3883_v60 = vld [vmem:[%s4178_s11 + $0x4b0] ss:$20 sps:$4 sm:$0xff]   ;;  %v3891_v2 = vld [vmem:[%s4178_s11 + $0x118] ss:$20 sps:$4 sm:$0xff]   ;;  %v3897_v8 = vld [vmem:[%s4178_s11 + $0x8] ss:$20 sps:$4 sm:$0xff]  }
  0x21   : > { %v3887_v62 = vld [vmem:[%s4178_s11 + $0x11c] ss:$20 sps:$4 sm:$0xff]   ;;  %v3892_v3 = vld [vmem:[%s4178_s11 + $0x4d8] ss:$20 sps:$4 sm:$0xff]  }
  0x22   : > { %1870 = vmatpush1.bf16.msra.mxu0 %v3818_v7  ;;  %3775 = vmatpush1.bf16.msra.mxu1 %v3818_v7  ;;  %v3889_v63 = vld [vmem:[%s4178_s11 + $0x4dc] ss:$20 sps:$4 sm:$0xff]   ;;  %v3893_v4 = vld [vmem:[%s5173_s1 + $0xc8] sm:$0xff]   ;;  %v3895_v5 = vld [vmem:[%s4178_s11 + $0x144] ss:$20 sps:$4 sm:$0xff]  }
  0x23   : > { %1871 = vmatprep.subr.bf16.mxu0 %v4100_v1  ;;  %3760 = vmatprep.subr.bf16.mxu1 %v4100_v1  ;;  %v3886_v0 = vld [vmem:[%s5173_s1 + $0xd0] sm:$0xff]   ;;  %v3899_v6 = vld [vmem:[%s4178_s11 + $0xc] ss:$20 sps:$4 sm:$0xff]  }
  0x24   : > { %v3894_v7 = vld [vmem:[%s5173_s1 + $0xc0] sm:$0xff]  }
  0x26   : > { %1872 = vmatpush1.bf16.msra.mxu0 %v3819_v9  ;;  %3776 = vmatpush1.bf16.msra.mxu1 %v3819_v9  ;;  %v3900_v9 = vld [vmem:[%s4178_s11 + $0x140] ss:$20 sps:$4 sm:$0xff]  }
  0x27   : > { %1873 = vmatprep.subr.bf16.mxu0 %v4100_v1  ;;  %3761 = vmatprep.subr.bf16.mxu1 %v4100_v1 }
  0x2a   : > { %1874 = vmatpush1.bf16.msra.mxu0 %v3820_v10  ;;  %3777 = vmatpush1.bf16.msra.mxu1 %v3820_v10  ;;  %v3901_v10 = vld [vmem:[%s4178_s11 + $0x16c] ss:$20 sps:$4 sm:$0xff]  }
  0x2b   : > { %1875 = vmatprep.subr.bf16.mxu0 %v4100_v1  ;;  %3762 = vmatprep.subr.bf16.mxu1 %v4100_v1 }
  0x2e   : > { %1876 = vmatpush2.bf16.msra.mxu0 %v3821_v11  ;;  %3778 = vmatpush2.bf16.msra.mxu1 %v3821_v11  ;;  %v3903_v11 = vld [vmem:[%s4178_s11 + $0x34] ss:$20 sps:$4 sm:$0xff]  }
  0x2f   : > { %1877 = vmatprep.subr.bf16.mxu0 %v4100_v1  ;;  %3763 = vmatprep.subr.bf16.mxu1 %v4100_v1 }
  0x32   : > { %1878 = vmatpush2.bf16.msra.mxu0 %v3822_v12  ;;  %3779 = vmatpush2.bf16.msra.mxu1 %v3822_v12  ;;  %v3905_v12 = vld [vmem:[%s4178_s11 + $0x168] ss:$20 sps:$4 sm:$0xff]  }
  0x33   : > { %1879 = vmatprep.subr.bf16.mxu0 %v4100_v1  ;;  %3764 = vmatprep.subr.bf16.mxu1 %v4100_v1 }
  0x36   : > { %1880 = vmatpush2.bf16.msra.mxu0 %v3823_v13  ;;  %3780 = vmatpush2.bf16.msra.mxu1 %v3823_v13  ;;  %v3906_v13 = vld [vmem:[%s4178_s11 + $0x30] ss:$20 sps:$4 sm:$0xff]  }
  0x37   : > { %1881 = vmatprep.subr.bf16.mxu0 %v4100_v1  ;;  %3765 = vmatprep.subr.bf16.mxu1 %v4100_v1 }
  0x3a   : > { %1882 = vmatpush2.bf16.msra.mxu0 %v3824_v14  ;;  %3781 = vmatpush2.bf16.msra.mxu1 %v3824_v14  ;;  %v3907_v14 = vld [vmem:[%s4178_s11 + $0x194] ss:$20 sps:$4 sm:$0xff]  }
  0x3b   : > { %1883 = vmatprep.subr.bf16.mxu0 %v4100_v1  ;;  %3766 = vmatprep.subr.bf16.mxu1 %v4100_v1 }
  0x3e   : > { %1884 = vmatpush2.bf16.msra.mxu0 %v3825_v15  ;;  %3782 = vmatpush2.bf16.msra.mxu1 %v3825_v15  ;;  %v3911_v15 = vld [vmem:[%s4178_s11 + $0x190] ss:$20 sps:$4 sm:$0xff]  }
  0x3f   : > { %1885 = vmatprep.subr.bf16.mxu0 %v4100_v1  ;;  %3767 = vmatprep.subr.bf16.mxu1 %v4100_v1 }
  0x42   : > { %1886 = vmatpush2.bf16.msra.mxu0 %v3826_v16  ;;  %3783 = vmatpush2.bf16.msra.mxu1 %v3826_v16  ;;  %v3912_v16 = vld [vmem:[%s4178_s11 + $0x58] ss:$20 sps:$4 sm:$0xff]  }
  0x43   : > { %1887 = vmatprep.subr.bf16.mxu0 %v4100_v1  ;;  %3768 = vmatprep.subr.bf16.mxu1 %v4100_v1 }
  0x46   : > { %1888 = vmatpush2.bf16.msra.mxu0 %v3827_v17  ;;  %3784 = vmatpush2.bf16.msra.mxu1 %v3827_v17  ;;  %v3913_v17 = vld [vmem:[%s4178_s11 + $0x1bc] ss:$20 sps:$4 sm:$0xff]  }
  0x47   : > { %1889 = vmatprep.subr.bf16.mxu0 %v4100_v1  ;;  %3769 = vmatprep.subr.bf16.mxu1 %v4100_v1 }
  0x4a   : > { %1890 = vmatpush2.bf16.msra.mxu0 %v3828_v18  ;;  %3785 = vmatpush2.bf16.msra.mxu1 %v3828_v18  ;;  %v3915_v18 = vld [vmem:[%s4178_s11 + $0x84] ss:$20 sps:$4 sm:$0xff]  }
  0x4b   : > { %2148 = vmatprep.subr.bf16.mxu1 %v4100_v1  ;;  %3682 = vmatprep.subr.bf16.mxu0 %v3835_v19 }
  0x4d   : > { %1892 = vmatmul.mubr.bf16.vlgmr.msra.gmra.mxu0 %v3829_v20  ;;  %2084 = vmatmul.mubr.bf16.vlgmr.msra.gmra.mxu1 %v3832_v21  ;;  %v3918_v20 = vld [vmem:[%s4178_s11 + $0x80] ss:$20 sps:$4 sm:$0xff]   ;;  %v3919_v21 = vld [vmem:[%s4178_s11 + $0x1e4] ss:$20 sps:$4 sm:$0xff]  }
  0x4e   : > { %2149 = vmatpush1.bf16.msra.mxu1 %v3836_v22  ;;  %3683 = vmatpush3.bf16.msra.mxu0 %v3835_v19  ;;  %v3917_v19 = vld [vmem:[%s4178_s11 + $0x1b8] ss:$20 sps:$4 sm:$0xff]  }
  0x4f   : > { %2150 = vmatprep.subr.bf16.mxu1 %v4100_v1  ;;  %1899 = vmatprep.mubr.bf16.mxu0 %v3838_v23  ;;  %v3921_v22 = vld [vmem:[%s4178_s11 + $0xac] ss:$20 sps:$4 sm:$0xff]  }
  0x50   : > { %2091 = vmatprep.mubr.bf16.mxu1 %v3840_v24  ;;  %3684 = vmatprep.subr.bf16.mxu0 %v3884_v25  ;;  %v3923_v23 = vld [vmem:[%s4178_s11 + $0x1e0] ss:$20 sps:$4 sm:$0xff]   ;;  %v3924_v24 = vld [vmem:[%s4178_s11 + $0xa8] ss:$20 sps:$4 sm:$0xff]  }
  0x52   : > { %2151 = vmatpush1.bf16.msra.mxu1 %v3837_v26  ;;  %3685 = vmatpush3.bf16.msra.mxu0 %v3884_v25  ;;  %v3926_v25 = vld [vmem:[%s4178_s11 + $0x20c] ss:$20 sps:$4 sm:$0xff]   ;;  %v3928_v26 = vld [vmem:[%s4178_s11 + $0xd4] ss:$20 sps:$4 sm:$0xff]  }
  0x53   : > { %2152 = vmatprep.subr.bf16.mxu1 %v4100_v1  ;;  %3686 = vmatprep.subr.bf16.mxu0 %v3925_v30 }
  0x55   : > { %1900 = vmatmul.mubr.bf16.gmra.mxu0 %v3842_v27  ;;  %2092 = vmatmul.mubr.bf16.gmra.mxu1 %v3843_v28  ;;  %v3930_v27 = vld [vmem:[%s4178_s11 + $0x208] ss:$20 sps:$4 sm:$0xff]   ;;  %v3931_v28 = vld [vmem:[%s4178_s11 + $0xd0] ss:$20 sps:$4 sm:$0xff]  }
  0x56   : > { %2153 = vmatpush1.bf16.msra.mxu1 %v3844_v29  ;;  %1907 = vmatprep.mubr.bf16.mxu0 %v3846_v31  ;;  %v3932_v29 = vld [vmem:[%s4178_s11 + $0x234] ss:$20 sps:$4 sm:$0xff]   ;;  %v3936_v31 = vld [vmem:[%s4178_s11 + $0x230] ss:$20 sps:$4 sm:$0xff]  }
  0x57   : > { %2154 = vmatprep.subr.bf16.mxu1 %v4100_v1  ;;  %2099 = vmatprep.mubr.bf16.mxu1 %v3848_v32  ;;  %v3937_v32 = vld [vmem:[%s4178_s11 + $0xf8] ss:$20 sps:$4 sm:$0xff]  }
  0x58   : > { %3687 = vmatpush3.bf16.msra.mxu0 %v3925_v30  ;;  %v3934_v30 = vld [vmem:[%s4178_s11 + $0xfc] ss:$20 sps:$4 sm:$0xff]  }
  0x59   : > { %3688 = vmatprep.subr.bf16.mxu0 %v3962_v44 }
  0x5a   : > { %2155 = vmatpush1.bf16.msra.mxu1 %v3845_v33  ;;  %v3938_v33 = vld [vmem:[%s4178_s11 + $0x25c] ss:$20 sps:$4 sm:$0xff]  }
  0x5b   : > { %2156 = vmatprep.subr.bf16.mxu1 %v4100_v1 }
  0x5c   : > { %3689 = vmatpush3.bf16.msra.mxu0 %v3962_v44  ;;  %v3955_v44 = vld [vmem:[%s4178_s11 + $0x170] ss:$20 sps:$4 sm:$0xff]  }
  0x5d   : > { %1908 = vmatmul.mubr.bf16.gmra.mxu0 %v3850_v34  ;;  %2100 = vmatmul.mubr.bf16.gmra.mxu1 %v3851_v35  ;;  %v3940_v34 = vld [vmem:[%s4178_s11 + $0x124] ss:$20 sps:$4 sm:$0xff]  }
  0x5e   : > { %2157 = vmatpush1.bf16.msra.mxu1 %v3852_v36  ;;  %1915 = vmatprep.mubr.bf16.mxu0 %v3854_v37  ;;  %v3942_v35 = vld [vmem:[%s4178_s11 + $0x258] ss:$20 sps:$4 sm:$0xff]   ;;  %v3943_v36 = vld [vmem:[%s4178_s11 + $0x120] ss:$20 sps:$4 sm:$0xff]  }
  0x5f   : > { %2158 = vmatprep.subr.bf16.mxu1 %v4100_v1  ;;  %2107 = vmatprep.mubr.bf16.mxu1 %v3856_v38  ;;  %v3944_v37 = vld [vmem:[%s4178_s11 + $0x284] ss:$20 sps:$4 sm:$0xff]   ;;  %v3946_v38 = vld [vmem:[%s4178_s11 + $0x14c] ss:$20 sps:$4 sm:$0xff]  }
  0x62   : > { %2159 = vmatpush1.bf16.msra.mxu1 %v3853_v39  ;;  %v3948_v39 = vld [vmem:[%s4178_s11 + $0x280] ss:$20 sps:$4 sm:$0xff]  }
  0x63   : > { %2160 = vmatprep.subr.bf16.mxu1 %v4100_v1 }
  0x65   : > { %1916 = vmatmul.mubr.bf16.gmra.mxu0 %v3858_v40  ;;  %2108 = vmatmul.mubr.bf16.gmra.mxu1 %v3859_v41  ;;  %v3949_v40 = vld [vmem:[%s4178_s11 + $0x148] ss:$20 sps:$4 sm:$0xff]   ;;  %v3950_v41 = vld [vmem:[%s4178_s11 + $0x2ac] ss:$20 sps:$4 sm:$0xff]  }
  0x66   : > { %2161 = vmatpush1.bf16.msra.mxu1 %v3860_v42  ;;  %1923 = vmatprep.mubr.bf16.mxu0 %v3862_v43  ;;  %v3952_v42 = vld [vmem:[%s4178_s11 + $0x174] ss:$20 sps:$4 sm:$0xff]  }
  0x67   : > { %2162 = vmatprep.subr.bf16.mxu1 %v4100_v1  ;;  %2115 = vmatprep.mubr.bf16.mxu1 %v3864_v45  ;;  %v3954_v43 = vld [vmem:[%s4178_s11 + $0x2a8] ss:$20 sps:$4 sm:$0xff]  }
  0x68   : > { %v3956_v45 = vld [vmem:[%s4178_s11 + $0x2d4] ss:$20 sps:$4 sm:$0xff]  }
  0x6a   : > { %2163 = vmatpush1.bf16.msra.mxu1 %v3861_v46  ;;  %v3958_v46 = vld [vmem:[%s4178_s11 + $0x19c] ss:$20 sps:$4 sm:$0xff]  }
  0x6b   : > { %2164 = vmatprep.subr.bf16.mxu1 %v4100_v1 }
  0x6d   : > { %1924 = vmatmul.mubr.bf16.gmra.mxu0 %v3866_v47  ;;  %2116 = vmatmul.mubr.bf16.gmra.mxu1 %v3867_v48  ;;  %v3960_v47 = vld [vmem:[%s4178_s11 + $0x2d0] ss:$20 sps:$4 sm:$0xff]   ;;  %v3961_v48 = vld [vmem:[%s4178_s11 + $0x198] ss:$20 sps:$4 sm:$0xff]  }
  0x6e   : > { %2165 = vmatpush2.bf16.msra.mxu1 %v3868_v49  ;;  %1931 = vmatprep.mubr.bf16.mxu0 %v3870_v50  ;;  %v3963_v49 = vld [vmem:[%s4178_s11 + $0x2fc] ss:$20 sps:$4 sm:$0xff]   ;;  %v3965_v50 = vld [vmem:[%s4178_s11 + $0x1c4] ss:$20 sps:$4 sm:$0xff]  }
  0x6f   : > { %2166 = vmatprep.subr.bf16.mxu1 %v4100_v1  ;;  %2123 = vmatprep.mubr.bf16.mxu1 %v3872_v51  ;;  %v3967_v51 = vld [vmem:[%s4178_s11 + $0x2f8] ss:$20 sps:$4 sm:$0xff]  }
  0x72   : > { %2167 = vmatpush2.bf16.msra.mxu1 %v3869_v52  ;;  %v3968_v52 = vld [vmem:[%s4178_s11 + $0x1c0] ss:$20 sps:$4 sm:$0xff]  }
  0x73   : > { %2168 = vmatprep.subr.bf16.mxu1 %v4100_v1 }
  0x75   : > { %1932 = vmatmul.mubr.bf16.gmra.mxu0 %v3874_v53  ;;  %2124 = vmatmul.mubr.bf16.gmra.mxu1 %v3875_v54  ;;  %v3969_v53 = vld [vmem:[%s4178_s11 + $0x324] ss:$20 sps:$4 sm:$0xff]   ;;  %v3971_v54 = vld [vmem:[%s4178_s11 + $0x1ec] ss:$20 sps:$4 sm:$0xff]  }
  0x76   : > { %2169 = vmatpush2.bf16.msra.mxu1 %v3876_v55  ;;  %1939 = vmatprep.mubr.bf16.mxu0 %v3878_v56  ;;  %v3973_v55 = vld [vmem:[%s4178_s11 + $0x320] ss:$20 sps:$4 sm:$0xff]   ;;  %v3974_v56 = vld [vmem:[%s4178_s11 + $0x1e8] ss:$20 sps:$4 sm:$0xff]  }
  0x77   : > { %2170 = vmatprep.subr.bf16.mxu1 %v4100_v1  ;;  %2131 = vmatprep.mubr.bf16.mxu1 %v3880_v57  ;;  %v3975_v57 = vld [vmem:[%s4178_s11 + $0x34c] ss:$20 sps:$4 sm:$0xff]  }
  0x7a   : > { %2171 = vmatpush2.bf16.msra.mxu1 %v3877_v58  ;;  %v3977_v58 = vld [vmem:[%s4178_s11 + $0x214] ss:$20 sps:$4 sm:$0xff]  }
  0x7b   : > { %2172 = vmatprep.subr.bf16.mxu1 %v4100_v1 }
  0x7d   : > { %1940 = vmatmul.mubr.bf16.gmra.mxu0 %v3882_v59  ;;  %2132 = vmatmul.mubr.bf16.gmra.mxu1 %v3883_v60  ;;  %v3979_v59 = vld [vmem:[%s4178_s11 + $0x348] ss:$20 sps:$4 sm:$0xff]   ;;  %v3980_v60 = vld [vmem:[%s4178_s11 + $0x210] ss:$20 sps:$4 sm:$0xff]  }
  0x7e   : > { %2173 = vmatpush2.bf16.msra.mxu1 %v3885_v61  ;;  %1947 = vmatprep.mubr.bf16.mxu0 %v3887_v62  ;;  %v3981_v61 = vld [vmem:[%s4178_s11 + $0x374] ss:$20 sps:$4 sm:$0xff]   ;;  %v3983_v62 = vld [vmem:[%s4178_s11 + $0x23c] ss:$20 sps:$4 sm:$0xff]  }
  0x7f   : > { %2174 = vmatprep.subr.bf16.mxu1 %v4100_v1  ;;  %2139 = vmatprep.mubr.bf16.mxu1 %v3889_v63  ;;  %v3985_v63 = vld [vmem:[%s4178_s11 + $0x370] ss:$20 sps:$4 sm:$0xff]  }
  0x82   : > { %2175 = vmatpush2.bf16.msra.mxu1 %v3886_v0  ;;  %v3986_v0 = vld [vmem:[%s4178_s11 + $0x238] ss:$20 sps:$4 sm:$0xff]  }
  0x83   : > { %2176 = vmatprep.subr.bf16.mxu1 %v4100_v1 }
  0x85   : > { %1948 = vmatmul.mubr.bf16.gmra.mxu0 %v3891_v2  ;;  %2140 = vmatmul.mubr.bf16.gmra.mxu1 %v3892_v3  ;;  %v3987_v2 = vld [vmem:[%s4178_s11 + $0x39c] ss:$20 sps:$4 sm:$0xff]   ;;  %v3989_v3 = vld [vmem:[%s4178_s11 + $0x264] ss:$20 sps:$4 sm:$0xff]  }
  0x86   : > { %2177 = vmatpush2.bf16.msra.mxu1 %v3893_v4  ;;  %1955 = vmatprep.mubr.bf16.mxu0 %v3895_v5  ;;  %v3991_v4 = vld [vmem:[%s4178_s11 + $0x398] ss:$20 sps:$4 sm:$0xff]   ;;  %v3992_v5 = vld [vmem:[%s4178_s11 + $0x260] ss:$20 sps:$4 sm:$0xff]  }
  0x87   : > { %2178 = vmatprep.subr.bf16.mxu1 %v4100_v1  ;;  %2180 = vmatprep.mubr.bf16.mxu1 %v3899_v6  ;;  %v3909_v1 = vld [vmem:[%s4178_s11 + $0x5c] ss:$20 sps:$4 sm:$0xff]   ;;  %v3993_v6 = vld [vmem:[%s4178_s11 + $0x28c] ss:$20 sps:$4 sm:$0xff]  }
  0x8a   : > { %2179 = vmatpush2.bf16.msra.mxu1 %v3894_v7  ;;  %v3995_v7 = vld [vmem:[%s4178_s11 + $0x10] ss:$20 sps:$4 sm:$0xff]  }
  0x8d   : > { %1956 = vmatmul.mubr.bf16.gmra.mxu0 %v3900_v9  ;;  %2181 = vmatmul.mubr.bf16.vlgmr.msra.gmra.mxu1 %v3897_v8  ;;  %v3996_v8 = vld [vmem:[%s4178_s11 + $0x288] ss:$20 sps:$4 sm:$0xff]   ;;  %v3997_v9 = vld [vmem:[%s4178_s11 + $0x38] ss:$20 sps:$4 sm:$0xff]  }
  0x8e   : > { %1963 = vmatprep.mubr.bf16.mxu0 %v3901_v10  ;;  %2188 = vmatprep.mubr.bf16.mxu1 %v3903_v11  ;;  %v3998_v10 = vld [vmem:[%s4178_s11 + $0x2b4] ss:$20 sps:$4 sm:$0xff]  }
  0x8f   : > { %v4000_v11 = vld [vmem:[%s4178_s11 + $0x60] ss:$20 sps:$4 sm:$0xff]  }
  0x95   : > { %1964 = vmatmul.mubr.bf16.gmra.mxu0 %v3905_v12  ;;  %2189 = vmatmul.mubr.bf16.gmra.mxu1 %v3906_v13 }
  0x96   : > { %1971 = vmatprep.mubr.bf16.mxu0 %v3907_v14  ;;  %2196 = vmatprep.mubr.bf16.mxu1 %v3909_v1 }
  0x9d   : > { %1972 = vmatmul.mubr.bf16.gmra.mxu0 %v3911_v15  ;;  %2197 = vmatmul.mubr.bf16.gmra.mxu1 %v3912_v16 }
  0x9e   : > { %1979 = vmatprep.mubr.bf16.mxu0 %v3913_v17  ;;  %2204 = vmatprep.mubr.bf16.mxu1 %v3915_v18  ;;  %v4001_v17 = vld [vmem:[%s4178_s11 + $0x2b0] ss:$20 sps:$4 sm:$0xff]   ;;  %v4002_v18 = vld [vmem:[%s4178_s11 + $0x88] ss:$20 sps:$4 sm:$0xff]  }
  0xa5   : > { %1980 = vmatmul.mubr.bf16.gmra.mxu0 %v3917_v19  ;;  %2205 = vmatmul.mubr.bf16.gmra.mxu1 %v3918_v20  ;;  %v4003_v19 = vld [vmem:[%s4178_s11 + $0x2dc] ss:$20 sps:$4 sm:$0xff]  }
  0xa6   : > { %1987 = vmatprep.mubr.bf16.mxu0 %v3919_v21  ;;  %2212 = vmatprep.mubr.bf16.mxu1 %v3921_v22  ;;  %v4005_v20 = vld [vmem:[%s4178_s11 + $0xb0] ss:$20 sps:$4 sm:$0xff]  }
  0xad   : > { %1988 = vmatmul.mubr.bf16.gmra.mxu0 %v3923_v23  ;;  %2213 = vmatmul.mubr.bf16.gmra.mxu1 %v3924_v24 }
  0xae   : > { %1995 = vmatprep.mubr.bf16.mxu0 %v3926_v25  ;;  %2220 = vmatprep.mubr.bf16.mxu1 %v3928_v26 }
  0xb5   : > { %1996 = vmatmul.mubr.bf16.gmra.mxu0 %v3930_v27  ;;  %2221 = vmatmul.mubr.bf16.gmra.mxu1 %v3931_v28 }
  0xb6   : > { %2003 = vmatprep.mubr.bf16.mxu0 %v3932_v29  ;;  %2228 = vmatprep.mubr.bf16.mxu1 %v3934_v30  ;;  %v4006_v29 = vld [vmem:[%s4178_s11 + $0x2d8] ss:$20 sps:$4 sm:$0xff]  }
  0xb7   : > { %v4007_v30 = vld [vmem:[%s4178_s11 + $0xd8] ss:$20 sps:$4 sm:$0xff]  }
  0xbd   : > { %2004 = vmatmul.mubr.bf16.gmra.mxu0 %v3936_v31  ;;  %2229 = vmatmul.mubr.bf16.gmra.mxu1 %v3937_v32  ;;  %v4008_v31 = vld [vmem:[%s4178_s11 + $0x304] ss:$20 sps:$4 sm:$0xff]   ;;  %v4010_v32 = vld [vmem:[%s4178_s11 + $0x100] ss:$20 sps:$4 sm:$0xff]  }
  0xbe   : > { %2011 = vmatprep.mubr.bf16.mxu0 %v3938_v33  ;;  %2236 = vmatprep.mubr.bf16.mxu1 %v3940_v34 }
  0xc5   : > { %2012 = vmatmul.mubr.bf16.gmra.mxu0 %v3942_v35  ;;  %2237 = vmatmul.mubr.bf16.gmra.mxu1 %v3943_v36 }
  0xc6   : > { %2019 = vmatprep.mubr.bf16.mxu0 %v3944_v37  ;;  %2244 = vmatprep.mubr.bf16.mxu1 %v3946_v38 }
  0xcd   : > { %2020 = vmatmul.mubr.bf16.gmra.mxu0 %v3948_v39  ;;  %2245 = vmatmul.mubr.bf16.gmra.mxu1 %v3949_v40 }
  0xce   : > { %2027 = vmatprep.mubr.bf16.mxu0 %v3950_v41  ;;  %2252 = vmatprep.mubr.bf16.mxu1 %v3952_v42  ;;  %v4011_v41 = vld [vmem:[%s4178_s11 + $0x300] ss:$20 sps:$4 sm:$0xff]   ;;  %v4012_v42 = vld [vmem:[%s4178_s11 + $0x128] ss:$20 sps:$4 sm:$0xff]  }
  0xd5   : > { %2028 = vmatmul.mubr.bf16.gmra.mxu0 %v3954_v43  ;;  %2253 = vmatmul.mubr.bf16.gmra.mxu1 %v3955_v44  ;;  %v4015_v43 = vld [vmem:[%s4178_s11 + $0x32c] ss:$20 sps:$4 sm:$0xff]   ;;  %v4016_v44 = vld [vmem:[%s4178_s11 + $0x150] ss:$20 sps:$4 sm:$0xff]  }
  0xd6   : > { %2035 = vmatprep.mubr.bf16.mxu0 %v3956_v45  ;;  %2260 = vmatprep.mubr.bf16.mxu1 %v3958_v46 }
  0xdd   : > { %2036 = vmatmul.mubr.bf16.gmra.mxu0 %v3960_v47  ;;  %2261 = vmatmul.mubr.bf16.gmra.mxu1 %v3961_v48 }
  0xde   : > { %2043 = vmatprep.mubr.bf16.mxu0 %v3963_v49  ;;  %2268 = vmatprep.mubr.bf16.mxu1 %v3965_v50 }
  0xe5   : > { %2044 = vmatmul.mubr.bf16.gmra.mxu0 %v3967_v51  ;;  %2269 = vmatmul.mubr.bf16.gmra.mxu1 %v3968_v52 }
  0xe6   : > { %2051 = vmatprep.mubr.bf16.mxu0 %v3969_v53  ;;  %2276 = vmatprep.mubr.bf16.mxu1 %v3971_v54  ;;  %v4013_v53 = vld [vmem:[%s4178_s11 + $0x328] ss:$20 sps:$4 sm:$0xff]   ;;  %v4017_v54 = vld [vmem:[%s4178_s11 + $0x178] ss:$20 sps:$4 sm:$0xff]  }
  0xed   : > { %2052 = vmatmul.mubr.bf16.gmra.mxu0 %v3973_v55  ;;  %2277 = vmatmul.mubr.bf16.gmra.mxu1 %v3974_v56  ;;  %v4020_v55 = vld [vmem:[%s4178_s11 + $0x354] ss:$20 sps:$4 sm:$0xff]  }
  0xee   : > { %2059 = vmatprep.mubr.bf16.mxu0 %v3975_v57  ;;  %2284 = vmatprep.mubr.bf16.mxu1 %v3977_v58  ;;  %v4021_v56 = vld [vmem:[%s4178_s11 + $0x1a0] ss:$20 sps:$4 sm:$0xff]  }
  0xf5   : > { %2060 = vmatmul.mubr.bf16.gmra.mxu0 %v3979_v59  ;;  %2285 = vmatmul.mubr.bf16.gmra.mxu1 %v3980_v60 }
  0xf6   : > { %2067 = vmatprep.mubr.bf16.mxu0 %v3981_v61  ;;  %2292 = vmatprep.mubr.bf16.mxu1 %v3983_v62 }
  0xfd   : > { %2068 = vmatmul.mubr.bf16.gmra.mxu0 %v3985_v63  ;;  %2293 = vmatmul.mubr.bf16.gmra.mxu1 %v3986_v0 }
  0xfe   : > { %2075 = vmatprep.mubr.bf16.mxu0 %v3987_v2  ;;  %2300 = vmatprep.mubr.bf16.mxu1 %v3989_v3  ;;  %v4018_v2 = vld [vmem:[%s4178_s11 + $0x350] ss:$20 sps:$4 sm:$0xff]   ;;  %v4022_v3 = vld [vmem:[%s4178_s11 + $0x1c8] ss:$20 sps:$4 sm:$0xff]  }
 0x105   : > { %2076 = vmatmul.mubr.bf16.gmra.mxu0 %v3991_v4  ;;  %2301 = vmatmul.mubr.bf16.gmra.mxu1 %v3992_v5  ;;  %v4025_v4 = vld [vmem:[%s4178_s11 + $0x37c] ss:$20 sps:$4 sm:$0xff]  }
 0x106   : > { %2308 = vmatprep.mubr.bf16.mxu1 %v3993_v6  ;;  %3690 = vmatprep.mubr.msk.bf16.mxu0 %vm1762_vm0, %v3995_v7  ;;  %v4026_v5 = vld [vmem:[%s4178_s11 + $0x1f0] ss:$20 sps:$4 sm:$0xff]  }
 0x10d   : > { %v4416_v12 = vpop.f32.mrf.mxu0  ;;  %v4418_v13 = vpop.f32.mrf.mxu1  ;;  %2309 = vmatmul.mubr.bf16.gmra.mxu1 %v3996_v8  ;;  %3691 = vmatmul.mubr.msk.bf16.vlgmr.msra.gmra.mxu0 %vm1762_vm0, %v3997_v9 }
 0x10e   : > { %5178 = vst [vmem:[#allocation2_spill] sm:$0xff] %v4418_v13  ;;  %2316 = vmatprep.mubr.bf16.mxu1 %v3998_v10  ;;  %3694 = vmatprep.mubr.msk.bf16.mxu0 %vm1762_vm0, %v4000_v11 }
 0x10f   : > { %v1895_v14 = vpop.f32.mrf.mxu0  ;;  %v2087_v1 = vpop.f32.mrf.mxu1 }
 0x111   : > { %v4422_v15 = vpop.f32.mrf.mxu0  ;;  %v4424_v16 = vpop.f32.mrf.mxu1 }
 0x112   : > { %5179 = vst [vmem:[#allocation3_spill] sm:$0xff] %v4424_v16 }
 0x113   : > { %v1898_v21 = vpop.f32.mrf.mxu0  ;;  %v2090_v22 = vpop.f32.mrf.mxu1 }
 0x115   : > { %v4430_v23 = vpop.f32.mrf.mxu0  ;;  %v4432_v24 = vpop.f32.mrf.mxu1  ;;  %2317 = vmatmul.mubr.bf16.gmra.mxu1 %v4001_v17  ;;  %3695 = vmatmul.mubr.msk.bf16.gmra.mxu0 %vm1762_vm0, %v4002_v18  ;;  %v4023_v17 = vld [vmem:[%s4178_s11 + $0x378] ss:$20 sps:$4 sm:$0xff]  }
 0x116   : > { %5180 = vst [vmem:[#allocation4_spill] sm:$0xff] %v4432_v24  ;;  %2324 = vmatprep.mubr.bf16.mxu1 %v4003_v19  ;;  %3698 = vmatprep.mubr.msk.bf16.mxu0 %vm1762_vm0, %v4005_v20  ;;  %v4027_v18 = vld [vmem:[%s4178_s11 + $0x218] ss:$20 sps:$4 sm:$0xff]   ;;  %v4031_v20 = vld [vmem:[%s4178_s11 + $0x240] ss:$20 sps:$4 sm:$0xff]  }
 0x117   : > { %v1903_v25 = vpop.f32.mrf.mxu0  ;;  %v2095_v26 = vpop.f32.mrf.mxu1  ;;  %v4030_v19 = vld [vmem:[%s4178_s11 + $0x3a4] ss:$20 sps:$4 sm:$0xff]  }
 0x119   : > { %v4436_v27 = vpop.f32.mrf.mxu0  ;;  %v4438_v28 = vpop.f32.mrf.mxu1 }
 0x11a   : > { %5181 = vst [vmem:[#allocation5_spill] sm:$0xff] %v4438_v28 }
 0x11b   : > { %v1906_v33 = vpop.f32.mrf.mxu0  ;;  %v2098_v34 = vpop.f32.mrf.mxu1 }
 0x11c   : > { %v4028_v33 = vld [vmem:[%s4178_s11 + $0x3a0] ss:$20 sps:$4 sm:$0xff]   ;;  %v4032_v34 = vld [vmem:[%s4178_s11 + $0x268] ss:$20 sps:$4 sm:$0xff]  }
 0x11d   : > { %v4444_v35 = vpop.f32.mrf.mxu0  ;;  %v4446_v36 = vpop.f32.mrf.mxu1  ;;  %2325 = vmatmul.mubr.bf16.gmra.mxu1 %v4006_v29  ;;  %3699 = vmatmul.mubr.msk.bf16.gmra.mxu0 %vm1762_vm0, %v4007_v30 }
 0x11e   : > { %5182 = vst [vmem:[#allocation6_spill] sm:$0xff] %v4446_v36  ;;  %2332 = vmatprep.mubr.bf16.mxu1 %v4008_v31  ;;  %3702 = vmatprep.mubr.msk.bf16.mxu0 %vm1762_vm0, %v4010_v32 }
 0x11f   : > { %v1911_v37 = vpop.f32.mrf.mxu0  ;;  %v2103_v38 = vpop.f32.mrf.mxu1 }
 0x120   : > { %v4035_v37 = vld [vmem:[%s4178_s11 + $0x3cc] ss:$20 sps:$4 sm:$0xff]   ;;  %v4036_v38 = vld [vmem:[%s4178_s11 + $0x290] ss:$20 sps:$4 sm:$0xff]  }
 0x121   : > { %v4450_v39 = vpop.f32.mrf.mxu0  ;;  %v4452_v40 = vpop.f32.mrf.mxu1 }
 0x122   : > { %5183 = vst [vmem:[#allocation7_spill] sm:$0xff] %v4452_v40 }
 0x123   : > { %v1914_v45 = vpop.f32.mrf.mxu0  ;;  %v2106_v46 = vpop.f32.mrf.mxu1 }
 0x125   : > { %v4458_v47 = vpop.f32.mrf.mxu0  ;;  %v4460_v48 = vpop.f32.mrf.mxu1  ;;  %2333 = vmatmul.mubr.bf16.gmra.mxu1 %v4011_v41  ;;  %3703 = vmatmul.mubr.msk.bf16.gmra.mxu0 %vm1762_vm0, %v4012_v42 }
 0x126   : > { %5184 = vst [vmem:[#allocation8_spill] sm:$0xff] %v4460_v48  ;;  %2340 = vmatprep.mubr.bf16.mxu1 %v4015_v43  ;;  %3706 = vmatprep.mubr.msk.bf16.mxu0 %vm1762_vm0, %v4016_v44 }
 0x127   : > { %v1919_v49 = vpop.f32.mrf.mxu0  ;;  %v2111_v50 = vpop.f32.mrf.mxu1 }
 0x129   : > { %v4464_v51 = vpop.f32.mrf.mxu0  ;;  %v4466_v52 = vpop.f32.mrf.mxu1 }
 0x12a   : > { %5185 = vst [vmem:[#allocation9_spill] sm:$0xff] %v4466_v52 }
 0x12b   : > { %v1922_v57 = vpop.f32.mrf.mxu0  ;;  %v2114_v58 = vpop.f32.mrf.mxu1 }
 0x12d   : > { %v4472_v59 = vpop.f32.mrf.mxu0  ;;  %v4474_v60 = vpop.f32.mrf.mxu1  ;;  %2341 = vmatmul.mubr.bf16.gmra.mxu1 %v4013_v53  ;;  %3707 = vmatmul.mubr.msk.bf16.gmra.mxu0 %vm1762_vm0, %v4017_v54  ;;  %v4033_v53 = vld [vmem:[%s4178_s11 + $0x3c8] ss:$20 sps:$4 sm:$0xff]   ;;  %v4037_v54 = vld [vmem:[%s4178_s11 + $0x2b8] ss:$20 sps:$4 sm:$0xff]  }
 0x12e   : > { %5186 = vst [vmem:[#allocation10_spill] sm:$0xff] %v4474_v60  ;;  %2348 = vmatprep.mubr.bf16.mxu1 %v4020_v55  ;;  %3710 = vmatprep.mubr.msk.bf16.mxu0 %vm1762_vm0, %v4021_v56  ;;  %v4040_v55 = vld [vmem:[%s4178_s11 + $0x3f4] ss:$20 sps:$4 sm:$0xff]  }
 0x12f   : > { %v1927_v61 = vpop.f32.mrf.mxu0  ;;  %v2119_v62 = vpop.f32.mrf.mxu1  ;;  %v4041_v56 = vld [vmem:[%s4178_s11 + $0x2e0] ss:$20 sps:$4 sm:$0xff]  }
 0x131   : > { %v4478_v63 = vpop.f32.mrf.mxu0  ;;  %v4480_v0 = vpop.f32.mrf.mxu1 }
 0x132   : > { %5187 = vst [vmem:[#allocation11_spill] sm:$0xff] %v4480_v0 }
 0x133   : > { %v1930_v6 = vpop.f32.mrf.mxu0  ;;  %v2122_v7 = vpop.f32.mrf.mxu1 }
 0x134   : > { %v4038_v7 = vld [vmem:[%s4178_s11 + $0x3f0] ss:$20 sps:$4 sm:$0xff]  }
 0x135   : > { %v4486_v8 = vpop.f32.mrf.mxu0  ;;  %v4488_v9 = vpop.f32.mrf.mxu1  ;;  %2349 = vmatmul.mubr.bf16.gmra.mxu1 %v4018_v2  ;;  %3711 = vmatmul.mubr.msk.bf16.gmra.mxu0 %vm1762_vm0, %v4022_v3 }
 0x136   : > { %5188 = vst [vmem:[#allocation12_spill] sm:$0xff] %v4488_v9  ;;  %2356 = vmatprep.mubr.bf16.mxu1 %v4025_v4  ;;  %3714 = vmatprep.mubr.msk.bf16.mxu0 %vm1762_vm0, %v4026_v5 }
 0x137   : > { %v1935_v10 = vpop.f32.mrf.mxu0  ;;  %v2127_v11 = vpop.f32.mrf.mxu1 }
 0x138   : > { %v4042_v10 = vld [vmem:[%s4178_s11 + $0x308] ss:$20 sps:$4 sm:$0xff]  }
 0x139   : > { %v4492_v14 = vpop.f32.mrf.mxu0  ;;  %v4494_v1 = vpop.f32.mrf.mxu1 }
 0x13a   : > { %5189 = vst [vmem:[#allocation13_spill] sm:$0xff] %v4494_v1 }
 0x13b   : > { %v1938_v21 = vpop.f32.mrf.mxu0  ;;  %v2130_v22 = vpop.f32.mrf.mxu1 }
 0x13d   : > { %v4500_v25 = vpop.f32.mrf.mxu0  ;;  %v4502_v26 = vpop.f32.mrf.mxu1  ;;  %2357 = vmatmul.mubr.bf16.gmra.mxu1 %v4023_v17  ;;  %3715 = vmatmul.mubr.msk.bf16.gmra.mxu0 %vm1762_vm0, %v4027_v18  ;;  %v4045_v17 = vld [vmem:[%s4178_s11 + $0x41c] ss:$20 sps:$4 sm:$0xff]  }
 0x13e   : > { %5190 = vst [vmem:[#allocation14_spill] sm:$0xff] %v4502_v26  ;;  %2364 = vmatprep.mubr.bf16.mxu1 %v4030_v19  ;;  %3718 = vmatprep.mubr.msk.bf16.mxu0 %vm1762_vm0, %v4031_v20  ;;  %v4046_v18 = vld [vmem:[%s4178_s11 + $0x330] ss:$20 sps:$4 sm:$0xff]  }
 0x13f   : > { %v1943_v29 = vpop.f32.mrf.mxu0  ;;  %v2135_v30 = vpop.f32.mrf.mxu1 }
 0x141   : > { %v4506_v31 = vpop.f32.mrf.mxu0  ;;  %v4508_v32 = vpop.f32.mrf.mxu1 }
 0x142   : > { %5191 = vst [vmem:[#allocation15_spill] sm:$0xff] %v4508_v32 }
 0x143   : > { %v1946_v41 = vpop.f32.mrf.mxu0  ;;  %v2138_v42 = vpop.f32.mrf.mxu1 }
 0x144   : > { %v4050_v41 = vld [vmem:[%s4178_s11 + $0x444] ss:$20 sps:$4 sm:$0xff]   ;;  %v4051_v42 = vld [vmem:[%s4178_s11 + $0x380] ss:$20 sps:$4 sm:$0xff]  }
 0x145   : > { %v4514_v43 = vpop.f32.mrf.mxu0  ;;  %v4516_v44 = vpop.f32.mrf.mxu1  ;;  %2365 = vmatmul.mubr.bf16.gmra.mxu1 %v4028_v33  ;;  %3719 = vmatmul.mubr.msk.bf16.gmra.mxu0 %vm1762_vm0, %v4032_v34  ;;  %v4043_v34 = vld [vmem:[%s4178_s11 + $0x418] ss:$20 sps:$4 sm:$0xff]  }
 0x146   : > { %5192 = vst [vmem:[#allocation16_spill] sm:$0xff] %v4516_v44  ;;  %2372 = vmatprep.mubr.bf16.mxu1 %v4035_v37  ;;  %3722 = vmatprep.mubr.msk.bf16.mxu0 %vm1762_vm0, %v4036_v38  ;;  %v4047_v37 = vld [vmem:[%s4178_s11 + $0x358] ss:$20 sps:$4 sm:$0xff]  }
 0x147   : > { %v1951_v45 = vpop.f32.mrf.mxu0  ;;  %v2143_v46 = vpop.f32.mrf.mxu1 }
 0x149   : > { %v4520_v49 = vpop.f32.mrf.mxu0  ;;  %v4522_v50 = vpop.f32.mrf.mxu1 }
 0x14a   : > { %5193 = vst [vmem:[#allocation17_spill] sm:$0xff] %v4522_v50 }
 0x14b   : > { %v1954_v57 = vpop.f32.mrf.mxu0  ;;  %v2146_v58 = vpop.f32.mrf.mxu1 }
 0x14c   : > { %v4048_v58 = vld [vmem:[%s4178_s11 + $0x440] ss:$20 sps:$4 sm:$0xff]  }
 0x14d   : > { %v4528_v61 = vpop.f32.mrf.mxu0  ;;  %v2182_v62 = vpop.f32.mrf.mxu1  ;;  %2373 = vmatmul.mubr.bf16.gmra.mxu1 %v4033_v53  ;;  %3723 = vmatmul.mubr.msk.bf16.gmra.mxu0 %vm1762_vm0, %v4037_v54 }
 0x14e   : > { %v4532_v2 = vadd.f32 %v2182_v62, %v4416_v12  ;;  %2380 = vmatprep.mubr.bf16.mxu1 %v4040_v55  ;;  %3726 = vmatprep.mubr.msk.bf16.mxu0 %vm1762_vm0, %v4041_v56  ;;  %v4052_v62 = vld [vmem:[%s4178_s11 + $0x3a8] ss:$20 sps:$4 sm:$0xff]  }
 0x14f   : > { %v1959_v3 = vpop.f32.mrf.mxu0  ;;  %v2184_v4 = vpop.f32.mrf.mxu1 }
 0x150   : > { %v4055_v4 = vld [vmem:[%s4178_s11 + $0x46c] ss:$20 sps:$4 sm:$0xff]  }
 0x151   : > { %v4535_v5 = vpop.f32.mrf.mxu0  ;;  %v2185_v6 = vpop.f32.mrf.mxu1 }
 0x152   : > { %v4540_v11 = vadd.f32 %v2185_v6, %v4422_v15  ;;  %v4056_v6 = vld [vmem:[%s4178_s11 + $0x3d0] ss:$20 sps:$4 sm:$0xff]  }
 0x153   : > { %v1962_v19 = vpop.f32.mrf.mxu0  ;;  %v2187_v12 = vpop.f32.mrf.mxu1 }
 0x155   : > { %v4544_v20 = vpop.f32.mrf.mxu0  ;;  %v2190_v21 = vpop.f32.mrf.mxu1  ;;  %2381 = vmatmul.mubr.bf16.gmra.mxu1 %v4038_v7  ;;  %3727 = vmatmul.mubr.msk.bf16.gmra.mxu0 %vm1762_vm0, %v4042_v10 }
 0x156   : > { %v4548_v22 = vadd.f32 %v2190_v21, %v4430_v23  ;;  %2388 = vmatprep.mubr.bf16.mxu1 %v4045_v17  ;;  %3730 = vmatprep.mubr.msk.bf16.mxu0 %vm1762_vm0, %v4046_v18 }
 0x157   : > { %v1967_v15 = vpop.f32.mrf.mxu0  ;;  %v2192_v29 = vpop.f32.mrf.mxu1 }
 0x158   : > { %v4053_v15 = vld [vmem:[%s4178_s11 + $0x468] ss:$20 sps:$4 sm:$0xff]   ;;  %v4057_v29 = vld [vmem:[%s4178_s11 + $0x3f8] ss:$20 sps:$4 sm:$0xff]  }
 0x159   : > { %v4551_v30 = vpop.f32.mrf.mxu0  ;;  %v2193_v33 = vpop.f32.mrf.mxu1 }
 0x15a   : > { %v4556_v38 = vadd.f32 %v2193_v33, %v4436_v27 }
 0x15b   : > { %v1970_v45 = vpop.f32.mrf.mxu0  ;;  %v2195_v23 = vpop.f32.mrf.mxu1 }
 0x15d   : > { %v4560_v46 = vpop.f32.mrf.mxu0  ;;  %v2198_v53 = vpop.f32.mrf.mxu1  ;;  %2389 = vmatmul.mubr.bf16.gmra.mxu1 %v4043_v34  ;;  %3731 = vmatmul.mubr.msk.bf16.gmra.mxu0 %vm1762_vm0, %v4047_v37  ;;  %v4060_v34 = vld [vmem:[%s4178_s11 + $0x494] ss:$20 sps:$4 sm:$0xff]  }
 0x15e   : > { %v4564_v54 = vadd.f32 %v2198_v53, %v4444_v35  ;;  %2396 = vmatprep.mubr.bf16.mxu1 %v4050_v41  ;;  %3734 = vmatprep.mubr.msk.bf16.mxu0 %vm1762_vm0, %v4051_v42  ;;  %v4061_v37 = vld [vmem:[%s4178_s11 + $0x420] ss:$20 sps:$4 sm:$0xff]  }
 0x15f   : > { %v1975_v27 = vpop.f32.mrf.mxu0  ;;  %v2200_v55 = vpop.f32.mrf.mxu1 }
 0x161   : > { %v4567_v56 = vpop.f32.mrf.mxu0  ;;  %v2201_v57 = vpop.f32.mrf.mxu1 }
 0x162   : > { %v4572_v3 = vadd.f32 %v2201_v57, %v4450_v39  ;;  %v4058_v57 = vld [vmem:[%s4178_s11 + $0x490] ss:$20 sps:$4 sm:$0xff]  }
 0x163   : > { %v1978_v7 = vpop.f32.mrf.mxu0  ;;  %v2203_v35 = vpop.f32.mrf.mxu1 }
 0x165   : > { %v4576_v10 = vpop.f32.mrf.mxu0  ;;  %v2206_v17 = vpop.f32.mrf.mxu1  ;;  %2397 = vmatmul.mubr.bf16.gmra.mxu1 %v4048_v58  ;;  %3735 = vmatmul.mubr.msk.bf16.gmra.mxu0 %vm1762_vm0, %v4052_v62  ;;  %v4062_v58 = vld [vmem:[%s4178_s11 + $0x448] ss:$20 sps:$4 sm:$0xff]  }
 0x166   : > { %v4580_v18 = vadd.f32 %v2206_v17, %v4458_v47  ;;  %2404 = vmatprep.mubr.bf16.mxu1 %v4055_v4  ;;  %3738 = vmatprep.mubr.msk.bf16.mxu0 %vm1762_vm0, %v4056_v6  ;;  %v4065_v4 = vld [vmem:[%s4178_s11 + $0x4bc] ss:$20 sps:$4 sm:$0xff]  }
 0x167   : > { %v1983_v39 = vpop.f32.mrf.mxu0  ;;  %v2208_v19 = vpop.f32.mrf.mxu1  ;;  %v4066_v6 = vld [vmem:[%s4178_s11 + $0x470] ss:$20 sps:$4 sm:$0xff]  }
 0x169   : > { %v4583_v12 = vpop.f32.mrf.mxu0  ;;  %v2209_v21 = vpop.f32.mrf.mxu1 }
 0x16a   : > { %v4588_v33 = vadd.f32 %v2209_v21, %v4464_v51 }
 0x16b   : > { %v1986_v41 = vpop.f32.mrf.mxu0  ;;  %v2211_v47 = vpop.f32.mrf.mxu1 }
 0x16c   : > { %v4070_v41 = vld [vmem:[%s4178_s11 + $0x4e4] ss:$20 sps:$4 sm:$0xff]   ;;  %v4071_v47 = vld [vmem:[%s4178_s11 + $0x4c0] ss:$20 sps:$4 sm:$0xff]  }
 0x16d   : > { %v4592_v42 = vpop.f32.mrf.mxu0  ;;  %v2214_v45 = vpop.f32.mrf.mxu1  ;;  %2405 = vmatmul.mubr.bf16.gmra.mxu1 %v4053_v15  ;;  %3739 = vmatmul.mubr.msk.bf16.gmra.mxu0 %vm1762_vm0, %v4057_v29  ;;  %v4063_v29 = vld [vmem:[%s4178_s11 + $0x4b8] ss:$20 sps:$4 sm:$0xff]  }
 0x16e   : > { %v4596_v23 = vadd.f32 %v2214_v45, %v4472_v59  ;;  %2412 = vmatprep.mubr.bf16.mxu1 %v4060_v34  ;;  %3742 = vmatprep.mubr.msk.bf16.mxu0 %vm1762_vm0, %v4061_v37  ;;  %v4067_v34 = vld [vmem:[%s4178_s11 + $0x498] ss:$20 sps:$4 sm:$0xff]  }
 0x16f   : > { %v1991_v51 = vpop.f32.mrf.mxu0  ;;  %v2216_v53 = vpop.f32.mrf.mxu1 }
 0x171   : > { %v4599_v27 = vpop.f32.mrf.mxu0  ;;  %v2217_v55 = vpop.f32.mrf.mxu1 }
 0x172   : > { %v4604_v62 = vadd.f32 %v2217_v55, %v4478_v63 }
 0x173   : > { %v1994_v7 = vpop.f32.mrf.mxu0  ;;  %v2219_v59 = vpop.f32.mrf.mxu1 }
 0x174   : > { %v4072_v7 = vld [vmem:[%s4178_s11 + $0x4e8] ss:$20 sps:$4 sm:$0xff]  }
 0x175   : > { %v4608_v35 = vpop.f32.mrf.mxu0  ;;  %v2222_v17 = vpop.f32.mrf.mxu1  ;;  %2413 = vmatmul.mubr.bf16.gmra.mxu1 %v4058_v57  ;;  %3743 = vmatmul.mubr.msk.bf16.gmra.mxu0 %vm1762_vm0, %v4062_v58 }
 0x176   : > { %v4612_v39 = vadd.f32 %v2222_v17, %v4486_v8  ;;  %2420 = vmatprep.mubr.bf16.mxu1 %v4065_v4  ;;  %3746 = vmatprep.mubr.msk.bf16.mxu0 %vm1762_vm0, %v4066_v6  ;;  %v4068_v6 = vld [vmem:[%s4178_s11 + $0x4e0] ss:$20 sps:$4 sm:$0xff]  }
 0x177   : > { %v1999_v63 = vpop.f32.mrf.mxu0  ;;  %v2224_v19 = vpop.f32.mrf.mxu1 }
 0x179   : > { %v4615_v21 = vpop.f32.mrf.mxu0  ;;  %v2225_v15 = vpop.f32.mrf.mxu1 }
 0x17a   : > { %v4620_v37 = vadd.f32 %v2225_v15, %v4492_v14 }
 0x17b   : > { %v2002_v45 = vpop.f32.mrf.mxu0  ;;  %v2227_v8 = vpop.f32.mrf.mxu1 }
 0x17d   : > { %v4624_v51 = vpop.f32.mrf.mxu0  ;;  %v2230_v53 = vpop.f32.mrf.mxu1  ;;  %2421 = vmatmul.mubr.bf16.gmra.mxu1 %v4063_v29  ;;  %3747 = vmatmul.mubr.msk.bf16.gmra.mxu0 %vm1762_vm0, %v4067_v34 }
 0x17e   : > { %v4628_v55 = vadd.f32 %v2230_v53, %v4500_v25  ;;  %2428 = vmatprep.mubr.bf16.mxu1 %v4070_v41  ;;  %3750 = vmatprep.mubr.msk.bf16.mxu0 %vm1762_vm0, %v4071_v47 }
 0x17f   : > { %v2007_v14 = vpop.f32.mrf.mxu0  ;;  %v2232_v57 = vpop.f32.mrf.mxu1 }
 0x181   : > { %v4631_v58 = vpop.f32.mrf.mxu0  ;;  %v2233_v4 = vpop.f32.mrf.mxu1 }
 0x182   : > { %v4636_v59 = vadd.f32 %v2233_v4, %v4506_v31 }
 0x183   : > { %v2010_v17 = vpop.f32.mrf.mxu0  ;;  %v2235_v63 = vpop.f32.mrf.mxu1 }
 0x185   : > { %v4638_v19 = vpop.f32.mrf.mxu0  ;;  %v2238_v15 = vpop.f32.mrf.mxu1  ;;  %2429 = vmatmul.mubr.bf16.gmra.mxu1 %v4068_v6  ;;  %3751 = vmatmul.mubr.msk.bf16.gmra.mxu0 %vm1762_vm0, %v4072_v7 }
 0x186   : > { %v4642_v25 = vadd.f32 %v2238_v15, %v4514_v43 }
 0x187   : > { %v2015_v29 = vpop.f32.mrf.mxu0  ;;  %v2240_v34 = vpop.f32.mrf.mxu1 }
 0x189   : > { %v4644_v41 = vpop.f32.mrf.mxu0  ;;  %v2241_v47 = vpop.f32.mrf.mxu1 }
 0x18a   : > { %v4647_v45 = vadd.f32 %v2241_v47, %v4520_v49 }
 0x18b   : > { %v2018_v31 = vpop.f32.mrf.mxu0  ;;  %v2243_v8 = vpop.f32.mrf.mxu1 }
 0x18d   : > { %v4649_v53 = vpop.f32.mrf.mxu0  ;;  %v2246_v14 = vpop.f32.mrf.mxu1 }
 0x18e   : > { %v4652_v57 = vadd.f32 %v2246_v14, %v4528_v61 }
 0x18f   : > { %v2023_v4 = vpop.f32.mrf.mxu0  ;;  %v2248_v6 = vpop.f32.mrf.mxu1 }
 0x191   : > { %v4654_v43 = vpop.f32.mrf.mxu0  ;;  %v2249_v7 = vpop.f32.mrf.mxu1 }
 0x192   : > { %v4657_v17 = vadd.f32 %v2249_v7, %v4535_v5 }
 0x193   : > { %v2026_v63 = vpop.f32.mrf.mxu0  ;;  %v2251_v15 = vpop.f32.mrf.mxu1 }
 0x195   : > { %v4659_v49 = vpop.f32.mrf.mxu0  ;;  %v2254_v29 = vpop.f32.mrf.mxu1 }
 0x196   : > { %v4662_v34 = vadd.f32 %v2254_v29, %v4544_v20 }
 0x197   : > { %v2031_v47 = vpop.f32.mrf.mxu0  ;;  %v2256_v31 = vpop.f32.mrf.mxu1 }
 0x199   : > { %v4664_v61 = vpop.f32.mrf.mxu0  ;;  %v2257_v8 = vpop.f32.mrf.mxu1 }
 0x19a   : > { %v4667_v14 = vadd.f32 %v2257_v8, %v4551_v30 }
 0x19b   : > { %v2034_v4 = vpop.f32.mrf.mxu0  ;;  %v2259_v6 = vpop.f32.mrf.mxu1 }
 0x19d   : > { %v4669_v5 = vpop.f32.mrf.mxu0  ;;  %v2262_v7 = vpop.f32.mrf.mxu1 }
 0x19e   : > { %v4672_v63 = vadd.f32 %v2262_v7, %v4560_v46 }
 0x19f   : > { %v2039_v15 = vpop.f32.mrf.mxu0  ;;  %v2264_v50 = vpop.f32.mrf.mxu1 }
 0x1a1   : > { %v4674_v20 = vpop.f32.mrf.mxu0  ;;  %v2265_v29 = vpop.f32.mrf.mxu1 }
 0x1a2   : > { %v4677_v47 = vadd.f32 %v2265_v29, %v4567_v56 }
 0x1a3   : > { %v2042_v31 = vpop.f32.mrf.mxu0  ;;  %v2267_v32 = vpop.f32.mrf.mxu1 }
 0x1a5   : > { %v4679_v30 = vpop.f32.mrf.mxu0  ;;  %v2270_v8 = vpop.f32.mrf.mxu1 }
 0x1a6   : > { %v4682_v4 = vadd.f32 %v2270_v8, %v4576_v10 }
 0x1a7   : > { %v2047_v6 = vpop.f32.mrf.mxu0  ;;  %v2272_v44 = vpop.f32.mrf.mxu1 }
 0x1a9   : > { %v4684_v46 = vpop.f32.mrf.mxu0  ;;  %v2273_v7 = vpop.f32.mrf.mxu1 }
 0x1aa   : > { %v4687_v50 = vadd.f32 %v2273_v7, %v4583_v12 }
 0x1ab   : > { %v2050_v15 = vpop.f32.mrf.mxu0  ;;  %v2275_v26 = vpop.f32.mrf.mxu1 }
 0x1ad   : > { %v4689_v56 = vpop.f32.mrf.mxu0  ;;  %v2278_v29 = vpop.f32.mrf.mxu1 }
 0x1ae   : > { %v4692_v32 = vadd.f32 %v2278_v29, %v4592_v42 }
 0x1af   : > { %v2055_v31 = vpop.f32.mrf.mxu0  ;;  %v2280_v0 = vpop.f32.mrf.mxu1 }
 0x1b1   : > { %v4694_v10 = vpop.f32.mrf.mxu0  ;;  %v2281_v8 = vpop.f32.mrf.mxu1 }
 0x1b2   : > { %v4697_v44 = vadd.f32 %v2281_v8, %v4599_v27 }
 0x1b3   : > { %v2058_v6 = vpop.f32.mrf.mxu0  ;;  %v2283_v1 = vpop.f32.mrf.mxu1 }
 0x1b5   : > { %v4699_v12 = vpop.f32.mrf.mxu0  ;;  %v2286_v7 = vpop.f32.mrf.mxu1 }
 0x1b6   : > { %v4702_v26 = vadd.f32 %v2286_v7, %v4608_v35 }
 0x1b7   : > { %v2063_v15 = vpop.f32.mrf.mxu0  ;;  %v2288_v60 = vpop.f32.mrf.mxu1 }
 0x1b9   : > { %v4704_v42 = vpop.f32.mrf.mxu0  ;;  %v2289_v29 = vpop.f32.mrf.mxu1 }
 0x1ba   : > { %v4707_v0 = vadd.f32 %v2289_v29, %v4615_v21 }
 0x1bb   : > { %v2066_v31 = vpop.f32.mrf.mxu0  ;;  %v2291_v9 = vpop.f32.mrf.mxu1 }
 0x1bd   : > { %v4709_v27 = vpop.f32.mrf.mxu0  ;;  %v2294_v8 = vpop.f32.mrf.mxu1 }
 0x1be   : > { %5194 = vst [vmem:[#allocation18_spill] sm:$0xff] %v4709_v27  ;;  %v4712_v1 = vadd.f32 %v2294_v8, %v4624_v51 }
 0x1bf   : > { %v2071_v6 = vpop.f32.mrf.mxu0  ;;  %v2296_v40 = vpop.f32.mrf.mxu1 }
 0x1c1   : > { %v4714_v35 = vpop.f32.mrf.mxu0  ;;  %v2297_v7 = vpop.f32.mrf.mxu1 }
 0x1c2   : > { %5195 = vst [vmem:[#allocation19_spill] sm:$0xff] %v4714_v35  ;;  %v4717_v60 = vadd.f32 %v2297_v7, %v4631_v58  ;;  %v4734_v7 = vld [vmem:[%s5174_s2] ss:$0 sm:$0xff] }
 0x1c3   : > { %v2074_v15 = vpop.f32.mrf.mxu0  ;;  %v2299_v52 = vpop.f32.mrf.mxu1 }
 0x1c5   : > { %v4719_v21 = vpop.f32.mrf.mxu0  ;;  %v4721_v29 = vpop.f32.mrf.mxu1 }
 0x1c7   : > { %v2079_v9 = vpop.f32.mrf.mxu0  ;;  %v2304_v31 = vpop.f32.mrf.mxu1 }
 0x1c9   : > { %v4723_v36 = vpop.f32.mrf.mxu0  ;;  %v4725_v51 = vpop.f32.mrf.mxu1 }
 0x1ca   : > { %5196 = vst [vmem:[#allocation20_spill] sm:$0xff] %v4723_v36 }
 0x1cb   : > { %v2082_v8 = vpop.f32.mrf.mxu0  ;;  %v2307_v40 = vpop.f32.mrf.mxu1 }
 0x1cd   : > { %v2310_v6 = vpop.f32.mrf.mxu1  ;;  %v3692_v48 = vpop.f32.mrf.mxu0 }
 0x1ce   : > { %v4728_v58 = vadd.f32 %v2310_v6, %v4649_v53  ;;  %v2480_v52 = vadd.f32 %v3692_v48, %v4548_v22  ;;  %v4745_v48 = vld [vmem:[%s5175_s3] ss:$0 sm:$0xff] }
 0x1cf   : > { %v2312_v15 = vpop.f32.mrf.mxu1  ;;  %v2471_v9 = vpop.f32.mrf.mxu0 }
 0x1d0   : > { %v2472_v31 = vadd.f32 %v2471_v9, %v4532_v2  ;;  %v2930_v40 = vadd.f32 %v4734_v7, %v2480_v52 }
 0x1d1   : > { %v2313_v16 = vpop.f32.mrf.mxu1  ;;  %v3693_v8 = vpop.f32.mrf.mxu0 }
 0x1d2   : > { %v4739_v28 = vadd.f32 %v2313_v16, %v4654_v43  ;;  %v2483_v53 = vadd.f32 %v3693_v8, %v4556_v38  ;;  %v2994_v15 = vmax.f32 %v2930_v40, 0.0  ;;  %v2928_v2 = vadd.f32 %v4734_v7, %v2472_v31  ;;  %v4753_v16 = vld [vmem:[%s5176_s4] ss:$0 sm:$0xff] }
 0x1d3   : > { %v2315_v22 = vpop.f32.mrf.mxu1  ;;  %v2474_v6 = vpop.f32.mrf.mxu0 }
 0x1d4   : > { %v2475_v9 = vadd.f32 %v2474_v6, %v4540_v11  ;;  %v3065_v52 = vmul.f32 %v4745_v48, %v2994_v15  ;;  %v2992_v8 = vmax.f32 %v2928_v2, 0.0  ;;  %v2931_v22 = vadd.f32 %v4734_v7, %v2483_v53 }
 0x1d5   : > { %v4755_v43 = vpop.f32.mrf.mxu1  ;;  %v3696_v38 = vpop.f32.mrf.mxu0 }
 0x1d6   : > { %v2496_v11 = vadd.f32 %v3696_v38, %v4580_v18  ;;  %v3136_v6 = vadd.f32 %v4753_v16, %v3065_v52  ;;  %v3063_v13 = vmul.f32 %v4745_v48, %v2992_v8  ;;  %v2995_v24 = vmax.f32 %v2931_v22, 0.0 }
 0x1d7   : > { %v2320_v31 = vpop.f32.mrf.mxu1  ;;  %v2487_v40 = vpop.f32.mrf.mxu0  ;;  %v2929_v15 = vadd.f32 %v4734_v7, %v2475_v9 }
 0x1d8   : > { %v2488_v53 = vadd.f32 %v2487_v40, %v4564_v54  ;;  %3200 = vst [vmem:[%s4762_s25 + $0x10] sm:$0xff] %v3136_v6  ;;  %v3134_v36 = vadd.f32 %v4753_v16, %v3063_v13  ;;  %v3066_v18 = vmul.f32 %v4745_v48, %v2995_v24  ;;  %v2934_v31 = vadd.f32 %v4734_v7, %v2496_v11 }
 0x1d9   : > { %v4769_v2 = vpop.f32.mrf.mxu1  ;;  %v3697_v35 = vpop.f32.mrf.mxu0  ;;  %v2993_v38 = vmax.f32 %v2929_v15, 0.0 }
 0x1da   : > { %v2499_v52 = vadd.f32 %v3697_v35, %v4588_v33  ;;  %3198 = vst [vmem:[%s4762_s25] sm:$0xff] %v3134_v36  ;;  %v3137_v54 = vadd.f32 %v4753_v16, %v3066_v18  ;;  %v2998_v6 = vmax.f32 %v2934_v31, 0.0  ;;  %v2932_v13 = vadd.f32 %v4734_v7, %v2488_v53 }
 0x1db   : > { %v2323_v8 = vpop.f32.mrf.mxu1  ;;  %v2490_v22 = vpop.f32.mrf.mxu0  ;;  %v3064_v9 = vmul.f32 %v4745_v48, %v2993_v38 }
 0x1dc   : > { %v2491_v40 = vadd.f32 %v2490_v22, %v4572_v3  ;;  %3201 = vst [vmem:[%s4762_s25 + $0x18] sm:$0xff] %v3137_v54  ;;  %v3069_v36 = vmul.f32 %v4745_v48, %v2998_v6  ;;  %v2996_v35 = vmax.f32 %v2932_v13, 0.0  ;;  %v2935_v15 = vadd.f32 %v4734_v7, %v2499_v52 }
 0x1dd   : > { %v4781_v27 = vpop.f32.mrf.mxu1  ;;  %v3700_v24 = vpop.f32.mrf.mxu0  ;;  %v3135_v11 = vadd.f32 %v4753_v16, %v3064_v9 }
 0x1de   : > { %v2512_v33 = vadd.f32 %v3700_v24, %v4612_v39  ;;  %v2933_v3 = vadd.f32 %v4734_v7, %v2491_v40  ;;  %v3140_v31 = vadd.f32 %v4753_v16, %v3069_v36  ;;  %v3067_v8 = vmul.f32 %v4745_v48, %v2996_v35 }
 0x1df   : > { %v2328_v18 = vpop.f32.mrf.mxu1  ;;  %v2503_v38 = vpop.f32.mrf.mxu0  ;;  %3199 = vst [vmem:[%s4762_s25 + $0x8] sm:$0xff] %v3135_v11  ;;  %v2999_v22 = vmax.f32 %v2935_v15, 0.0 }
 0x1e0   : > { %v2504_v53 = vadd.f32 %v2503_v38, %v4596_v23  ;;  %v2997_v9 = vmax.f32 %v2933_v3, 0.0  ;;  %v2938_v6 = vadd.f32 %v4734_v7, %v2512_v33  ;;  %3204 = vst [vmem:[%s4762_s25 + $0x30] sm:$0xff] %v3140_v31  ;;  %v3138_v52 = vadd.f32 %v4753_v16, %v3067_v8 }
 0x1e1   : > { %v4793_v39 = vpop.f32.mrf.mxu1  ;;  %v3701_v54 = vpop.f32.mrf.mxu0  ;;  %v3070_v40 = vmul.f32 %v4745_v48, %v2999_v22 }
 0x1e2   : > { %v2515_v23 = vadd.f32 %v3701_v54, %v4620_v37  ;;  %v3068_v11 = vmul.f32 %v4745_v48, %v2997_v9  ;;  %v3002_v36 = vmax.f32 %v2938_v6, 0.0  ;;  %v2936_v35 = vadd.f32 %v4734_v7, %v2504_v53  ;;  %3202 = vst [vmem:[%s4762_s25 + $0x20] sm:$0xff] %v3138_v52 }
 0x1e3   : > { %v2331_v13 = vpop.f32.mrf.mxu1  ;;  %v2506_v24 = vpop.f32.mrf.mxu0  ;;  %v3141_v33 = vadd.f32 %v4753_v16, %v3070_v40 }
 0x1e4   : > { %v2507_v15 = vadd.f32 %v2506_v24, %v4604_v62  ;;  %v3139_v3 = vadd.f32 %v4753_v16, %v3068_v11  ;;  %v3073_v37 = vmul.f32 %v4745_v48, %v3002_v36  ;;  %v3000_v31 = vmax.f32 %v2936_v35, 0.0 }
 0x1e5   : > { %v4805_v18 = vpop.f32.mrf.mxu1  ;;  %v3704_v38 = vpop.f32.mrf.mxu0  ;;  %3205 = vst [vmem:[%s4762_s25 + $0x38] sm:$0xff] %v3141_v33  ;;  %v2939_v8 = vadd.f32 %v4734_v7, %v2515_v23 }
 0x1e6   : > { %v2528_v22 = vadd.f32 %v3704_v38, %v4642_v25  ;;  %3203 = vst [vmem:[%s4762_s25 + $0x28] sm:$0xff] %v3139_v3  ;;  %v3144_v62 = vadd.f32 %v4753_v16, %v3073_v37  ;;  %v3071_v9 = vmul.f32 %v4745_v48, %v3000_v31  ;;  %v2937_v6 = vadd.f32 %v4734_v7, %v2507_v15 }
 0x1e7   : > { %v2336_v53 = vpop.f32.mrf.mxu1  ;;  %v2519_v54 = vpop.f32.mrf.mxu0  ;;  %v3003_v40 = vmax.f32 %v2939_v8, 0.0 }
 0x1e8   : > { %v2520_v52 = vadd.f32 %v2519_v54, %v4628_v55  ;;  %3208 = vst [vmem:[%s4762_s25 + $0x50] sm:$0xff] %v3144_v62  ;;  %v3142_v23 = vadd.f32 %v4753_v16, %v3071_v9  ;;  %v3001_v25 = vmax.f32 %v2937_v6, 0.0  ;;  %v2942_v36 = vadd.f32 %v4734_v7, %v2528_v22 }
 0x1e9   : > { %v4817_v13 = vpop.f32.mrf.mxu1  ;;  %v3705_v24 = vpop.f32.mrf.mxu0  ;;  %v3074_v11 = vmul.f32 %v4745_v48, %v3003_v40 }
 0x1ea   : > { %v2531_v35 = vadd.f32 %v3705_v24, %v4647_v45  ;;  %3206 = vst [vmem:[%s4762_s25 + $0x40] sm:$0xff] %v3142_v23  ;;  %v3072_v55 = vmul.f32 %v4745_v48, %v3001_v25  ;;  %v2940_v15 = vadd.f32 %v4734_v7, %v2520_v52  ;;  %v3006_v31 = vmax.f32 %v2942_v36, 0.0 }
 0x1eb   : > { %v2339_v33 = vpop.f32.mrf.mxu1  ;;  %v2522_v38 = vpop.f32.mrf.mxu0  ;;  %v3145_v37 = vadd.f32 %v4753_v16, %v3074_v11 }
 0x1ec   : > { %v2523_v3 = vadd.f32 %v2522_v38, %v4636_v59  ;;  %v3143_v22 = vadd.f32 %v4753_v16, %v3072_v55  ;;  %v3004_v54 = vmax.f32 %v2940_v15, 0.0  ;;  %v3077_v45 = vmul.f32 %v4745_v48, %v3006_v31 }
 0x1ed   : > { %v4829_v8 = vpop.f32.mrf.mxu1  ;;  %v3708_v53 = vpop.f32.mrf.mxu0  ;;  %3209 = vst [vmem:[%s4762_s25 + $0x58] sm:$0xff] %v3145_v37  ;;  %v2943_v62 = vadd.f32 %v4734_v7, %v2531_v35 }
 0x1ee   : > { %v2544_v9 = vadd.f32 %v3708_v53, %v4662_v34  ;;  %3207 = vst [vmem:[%s4762_s25 + $0x48] sm:$0xff] %v3143_v22  ;;  %v3075_v59 = vmul.f32 %v4745_v48, %v3004_v54  ;;  %v2941_v40 = vadd.f32 %v4734_v7, %v2523_v3  ;;  %v3148_v23 = vadd.f32 %v4753_v16, %v3077_v45 }
 0x1ef   : > { %v2344_v6 = vpop.f32.mrf.mxu1  ;;  %v2535_v52 = vpop.f32.mrf.mxu0  ;;  %v3007_v25 = vmax.f32 %v2943_v62, 0.0 }
 0x1f0   : > { %v2536_v24 = vadd.f32 %v2535_v52, %v4652_v57  ;;  %v3146_v35 = vadd.f32 %v4753_v16, %v3075_v59  ;;  %v3005_v33 = vmax.f32 %v2941_v40, 0.0  ;;  %3212 = vst [vmem:[%s4762_s25 + $0x70] sm:$0xff] %v3148_v23  ;;  %v2946_v38 = vadd.f32 %v4734_v7, %v2544_v9 }
 0x1f1   : > { %v4841_v11 = vpop.f32.mrf.mxu1  ;;  %v3709_v36 = vpop.f32.mrf.mxu0  ;;  %v3078_v34 = vmul.f32 %v4745_v48, %v3007_v25 }
 0x1f2   : > { %v2547_v55 = vadd.f32 %v3709_v36, %v4667_v14  ;;  %3210 = vst [vmem:[%s4762_s25 + $0x60] sm:$0xff] %v3146_v35  ;;  %v3076_v57 = vmul.f32 %v4745_v48, %v3005_v33  ;;  %v2944_v37 = vadd.f32 %v4734_v7, %v2536_v24  ;;  %v3010_v22 = vmax.f32 %v2946_v38, 0.0 }
 0x1f3   : > { %v2347_v15 = vpop.f32.mrf.mxu1  ;;  %v2538_v3 = vpop.f32.mrf.mxu0  ;;  %v3149_v53 = vadd.f32 %v4753_v16, %v3078_v34 }
 0x1f4   : > { %v2539_v31 = vadd.f32 %v2538_v3, %v4657_v17  ;;  %v3147_v62 = vadd.f32 %v4753_v16, %v3076_v57  ;;  %v3008_v9 = vmax.f32 %v2944_v37, 0.0  ;;  %v3081_v14 = vmul.f32 %v4745_v48, %v3010_v22 }
 0x1f5   : > { %v4853_v54 = vpop.f32.mrf.mxu1  ;;  %v3712_v45 = vpop.f32.mrf.mxu0  ;;  %3213 = vst [vmem:[%s4762_s25 + $0x78] sm:$0xff] %v3149_v53  ;;  %v2947_v6 = vadd.f32 %v4734_v7, %v2547_v55 }
 0x1f6   : > { %v2560_v52 = vadd.f32 %v3712_v45, %v4682_v4  ;;  %3211 = vst [vmem:[%s4762_s25 + $0x68] sm:$0xff] %v3147_v62  ;;  %v3079_v17 = vmul.f32 %v4745_v48, %v3008_v9  ;;  %v2945_v24 = vadd.f32 %v4734_v7, %v2539_v31  ;;  %v3152_v25 = vadd.f32 %v4753_v16, %v3081_v14 }
 0x1f7   : > { %v2352_v59 = vpop.f32.mrf.mxu1  ;;  %v2551_v40 = vpop.f32.mrf.mxu0  ;;  %v3011_v36 = vmax.f32 %v2947_v6, 0.0 }
 0x1f8   : > { %v2552_v23 = vadd.f32 %v2551_v40, %v4672_v63  ;;  %v3150_v34 = vadd.f32 %v4753_v16, %v3079_v17  ;;  %v3009_v38 = vmax.f32 %v2945_v24, 0.0  ;;  %3216 = vst [vmem:[%s4762_s25 + $0x90] sm:$0xff] %v3152_v25  ;;  %v2950_v55 = vadd.f32 %v4734_v7, %v2560_v52 }
 0x1f9   : > { %v4865_v35 = vpop.f32.mrf.mxu1  ;;  %v3713_v33 = vpop.f32.mrf.mxu0  ;;  %v3082_v4 = vmul.f32 %v4745_v48, %v3011_v36 }
 0x1fa   : > { %v2563_v15 = vadd.f32 %v3713_v33, %v4687_v50  ;;  %3214 = vst [vmem:[%s4762_s25 + $0x80] sm:$0xff] %v3150_v34  ;;  %v3080_v63 = vmul.f32 %v4745_v48, %v3009_v38  ;;  %v2948_v37 = vadd.f32 %v4734_v7, %v2552_v23  ;;  %v3014_v22 = vmax.f32 %v2950_v55, 0.0 }
 0x1fb   : > { %v2355_v3 = vpop.f32.mrf.mxu1  ;;  %v2554_v57 = vpop.f32.mrf.mxu0  ;;  %v3153_v53 = vadd.f32 %v4753_v16, %v3082_v4 }
 0x1fc   : > { %v2555_v31 = vadd.f32 %v2554_v57, %v4677_v47  ;;  %v3151_v9 = vadd.f32 %v4753_v16, %v3080_v63  ;;  %v3012_v14 = vmax.f32 %v2948_v37, 0.0  ;;  %v3085_v50 = vmul.f32 %v4745_v48, %v3014_v22 }
 0x1fd   : > { %v4877_v45 = vpop.f32.mrf.mxu1  ;;  %v3716_v62 = vpop.f32.mrf.mxu0  ;;  %3217 = vst [vmem:[%s4762_s25 + $0x98] sm:$0xff] %v3153_v53  ;;  %v2951_v6 = vadd.f32 %v4734_v7, %v2563_v15  ;;  %v2303_v37 = vadd.f32 %v4721_v29, %v4638_v19 }
 0x1fe   : > { %v2576_v52 = vadd.f32 %v3716_v62, %v4702_v26  ;;  %3215 = vst [vmem:[%s4762_s25 + $0x88] sm:$0xff] %v3151_v9  ;;  %v3083_v47 = vmul.f32 %v4745_v48, %v3012_v14  ;;  %v2949_v17 = vadd.f32 %v4734_v7, %v2555_v31  ;;  %v3156_v23 = vadd.f32 %v4753_v16, %v3085_v50 }
 0x1ff   : > { %v2360_v59 = vpop.f32.mrf.mxu1  ;;  %v2567_v40 = vpop.f32.mrf.mxu0  ;;  %v3015_v25 = vmax.f32 %v2951_v6, 0.0 }
 0x200   : > { %v2568_v24 = vadd.f32 %v2567_v40, %v4692_v32  ;;  %v3154_v34 = vadd.f32 %v4753_v16, %v3083_v47  ;;  %v3013_v38 = vmax.f32 %v2949_v17, 0.0  ;;  %3220 = vst [vmem:[%s4762_s25 + $0xb0] sm:$0xff] %v3156_v23  ;;  %v2954_v4 = vadd.f32 %v4734_v7, %v2576_v52 }
 0x201   : > { %v4889_v36 = vpop.f32.mrf.mxu1  ;;  %v3717_v33 = vpop.f32.mrf.mxu0  ;;  %v3086_v26 = vmul.f32 %v4745_v48, %v3015_v25  ;;  %v2306_v40 = vadd.f32 %v4725_v51, %v4644_v41 }
 0x202   : > { %v2579_v55 = vadd.f32 %v3717_v33, %v4707_v0  ;;  %3218 = vst [vmem:[%s4762_s25 + $0xa0] sm:$0xff] %v3154_v34  ;;  %v3084_v32 = vmul.f32 %v4745_v48, %v3013_v38  ;;  %v2952_v57 = vadd.f32 %v4734_v7, %v2568_v24  ;;  %v3018_v53 = vmax.f32 %v2954_v4, 0.0 }
 0x203   : > { %v2363_v15 = vpop.f32.mrf.mxu1  ;;  %v2570_v3 = vpop.f32.mrf.mxu0  ;;  %v3157_v31 = vadd.f32 %v4753_v16, %v3086_v26 }
 0x204   : > { %v2571_v63 = vadd.f32 %v2570_v3, %v4697_v44  ;;  %v3155_v0 = vadd.f32 %v4753_v16, %v3084_v32  ;;  %v3016_v9 = vmax.f32 %v2952_v57, 0.0  ;;  %v3089_v14 = vmul.f32 %v4745_v48, %v3018_v53 }
 0x205   : > { %v4903_v22 = vpop.f32.mrf.mxu1  ;;  %v3720_v62 = vpop.f32.mrf.mxu0  ;;  %3221 = vst [vmem:[%s4762_s25 + $0xb8] sm:$0xff] %v3157_v31  ;;  %v2955_v50 = vadd.f32 %v4734_v7, %v2579_v55  ;;  %v2319_v15 = vadd.f32 %v4755_v43, %v4659_v49 }
 0x206   : > { %v2592_v6 = vadd.f32 %v3720_v62, %v2303_v37  ;;  %3219 = vst [vmem:[%s4762_s25 + $0xa8] sm:$0xff] %v3155_v0  ;;  %v3087_v19 = vmul.f32 %v4745_v48, %v3016_v9  ;;  %v2953_v29 = vadd.f32 %v4734_v7, %v2571_v63  ;;  %v3160_v47 = vadd.f32 %v4753_v16, %v3089_v14 }
 0x207   : > { %v2368_v44 = vpop.f32.mrf.mxu1  ;;  %v2583_v52 = vpop.f32.mrf.mxu0  ;;  %v3019_v17 = vmax.f32 %v2955_v50, 0.0  ;;  %v2322_v50 = vadd.f32 %v4769_v2, %v4664_v61 }
 0x208   : > { %v2584_v59 = vadd.f32 %v2583_v52, %v4712_v1  ;;  %v3158_v25 = vadd.f32 %v4753_v16, %v3087_v19  ;;  %v3017_v33 = vmax.f32 %v2953_v29, 0.0  ;;  %3224 = vst [vmem:[%s4762_s25 + $0xd0] sm:$0xff] %v3160_v47  ;;  %v2958_v38 = vadd.f32 %v4734_v7, %v2592_v6 }
 0x209   : > { %v4916_v24 = vpop.f32.mrf.mxu1  ;;  %v3721_v23 = vpop.f32.mrf.mxu0  ;;  %v3090_v34 = vmul.f32 %v4745_v48, %v3019_v17 }
 0x20a   : > { %v2595_v26 = vadd.f32 %v3721_v23, %v2306_v40  ;;  %3222 = vst [vmem:[%s4762_s25 + $0xc0] sm:$0xff] %v3158_v25  ;;  %v3088_v41 = vmul.f32 %v4745_v48, %v3017_v33  ;;  %v2956_v51 = vadd.f32 %v4734_v7, %v2584_v59  ;;  %v3022_v32 = vmax.f32 %v2958_v38, 0.0 }
 0x20b   : > { %v2371_v1 = vpop.f32.mrf.mxu1  ;;  %v2586_v4 = vpop.f32.mrf.mxu0  ;;  %v3161_v3 = vadd.f32 %v4753_v16, %v3090_v34  ;;  %v2335_v33 = vadd.f32 %v4805_v18, %v4679_v30 }
 0x20c   : > { %v2587_v55 = vadd.f32 %v2586_v4, %v4717_v60  ;;  %v3159_v37 = vadd.f32 %v4753_v16, %v3088_v41  ;;  %v3020_v31 = vmax.f32 %v2956_v51, 0.0  ;;  %v3093_v53 = vmul.f32 %v4745_v48, %v3022_v32 }
 0x20d   : > { %v4929_v57 = vpop.f32.mrf.mxu1  ;;  %v3724_v63 = vpop.f32.mrf.mxu0  ;;  %3225 = vst [vmem:[%s4762_s25 + $0xd8] sm:$0xff] %v3161_v3  ;;  %v2959_v62 = vadd.f32 %v4734_v7, %v2595_v26  ;;  %v2327_v4 = vadd.f32 %v4781_v27, %v4669_v5  ;;  %v2338_v5 = vadd.f32 %v4817_v13, %v4684_v46 }
 0x20e   : > { %v2608_v0 = vadd.f32 %v3724_v63, %v2319_v15  ;;  %3223 = vst [vmem:[%s4762_s25 + $0xc8] sm:$0xff] %v3159_v37  ;;  %v3091_v49 = vmul.f32 %v4745_v48, %v3020_v31  ;;  %v2957_v43 = vadd.f32 %v4734_v7, %v2587_v55  ;;  %v3164_v6 = vadd.f32 %v4753_v16, %v3093_v53 }
 0x20f   : > { %v2376_v60 = vpop.f32.mrf.mxu1  ;;  %v2599_v9 = vpop.f32.mrf.mxu0  ;;  %v3023_v44 = vmax.f32 %v2959_v62, 0.0  ;;  %v2330_v62 = vadd.f32 %v4793_v39, %v4674_v20  ;;  %v2351_v20 = vadd.f32 %v4853_v54, %v4699_v12 }
 0x210   : > { %v2600_v14 = vadd.f32 %v2599_v9, %v4728_v58  ;;  %v3162_v29 = vadd.f32 %v4753_v16, %v3091_v49  ;;  %v3021_v59 = vmax.f32 %v2957_v43, 0.0  ;;  %3228 = vst [vmem:[%s4762_s25 + $0xf0] sm:$0xff] %v3164_v6  ;;  %v2962_v47 = vadd.f32 %v4734_v7, %v2608_v0 }
 0x211   : > { %v4942_v52 = vpop.f32.mrf.mxu1  ;;  %v3725_v19 = vpop.f32.mrf.mxu0  ;;  %v3094_v40 = vmul.f32 %v4745_v48, %v3023_v44 }
 0x212   : > { %v2611_v17 = vadd.f32 %v3725_v19, %v2322_v50  ;;  %3226 = vst [vmem:[%s4762_s25 + $0xe0] sm:$0xff] %v3162_v29  ;;  %v3092_v61 = vmul.f32 %v4745_v48, %v3021_v59  ;;  %v2960_v2 = vadd.f32 %v4734_v7, %v2600_v14  ;;  %v3026_v38 = vmax.f32 %v2962_v47, 0.0 }
 0x213   : > { %v2379_v58 = vpop.f32.mrf.mxu1  ;;  %v2602_v23 = vpop.f32.mrf.mxu0  ;;  %v3165_v34 = vadd.f32 %v4753_v16, %v3094_v40  ;;  %v2343_v59 = vadd.f32 %v4829_v8, %v4689_v56  ;;  %v2354_v56 = vadd.f32 %v4865_v35, %v4704_v42 }
 0x214   : > { %v2603_v25 = vadd.f32 %v2602_v23, %v4739_v28  ;;  %v3163_v41 = vadd.f32 %v4753_v16, %v3092_v61  ;;  %v3024_v51 = vmax.f32 %v2960_v2, 0.0  ;;  %v3097_v55 = vmul.f32 %v4745_v48, %v3026_v38 }
 0x215   : > { %v4955_v26 = vpop.f32.mrf.mxu1  ;;  %v3728_v1 = vpop.f32.mrf.mxu0  ;;  %3229 = vst [vmem:[%s4762_s25 + $0xf8] sm:$0xff] %v3165_v34  ;;  %v2963_v28 = vadd.f32 %v4734_v7, %v2611_v17 }
 0x216   : > { %v2624_v15 = vadd.f32 %v3728_v1, %v2335_v33  ;;  %3227 = vst [vmem:[%s4762_s25 + $0xe8] sm:$0xff] %v3163_v41  ;;  %v3095_v3 = vmul.f32 %v4745_v48, %v3024_v51  ;;  %v2961_v32 = vadd.f32 %v4734_v7, %v2603_v25  ;;  %v3168_v27 = vadd.f32 %v4753_v16, %v3097_v55 }
 0x217   : > { %v2384_v30 = vpop.f32.mrf.mxu1  ;;  %v2615_v18 = vpop.f32.mrf.mxu0  ;;  %v3027_v37 = vmax.f32 %v2963_v28, 0.0  ;;  %v2346_v1 = vadd.f32 %v4841_v11, %v4694_v10  ;;  %v2367_v10 = vadd.f32 %v4903_v22, %v4719_v21 }
 0x218   : > { %v2616_v63 = vadd.f32 %v2615_v18, %v2327_v4  ;;  %v3166_v0 = vadd.f32 %v4753_v16, %v3095_v3  ;;  %v3025_v60 = vmax.f32 %v2961_v32, 0.0  ;;  %3232 = vst [vmem:[%s4762_s25 + $0x110] sm:$0xff] %v3168_v27  ;;  %v2966_v49 = vadd.f32 %v4734_v7, %v2624_v15 }
 0x219   : > { %v4969_v31 = vpop.f32.mrf.mxu1  ;;  %v3729_v53 = vpop.f32.mrf.mxu0  ;;  %v3098_v9 = vmul.f32 %v4745_v48, %v3027_v37 }
 0x21a   : > { %v2627_v43 = vadd.f32 %v3729_v53, %v2338_v5  ;;  %3230 = vst [vmem:[%s4762_s25 + $0x100] sm:$0xff] %v3166_v0  ;;  %v3096_v14 = vmul.f32 %v4745_v48, %v3025_v60  ;;  %v2964_v50 = vadd.f32 %v4734_v7, %v2616_v63  ;;  %v3030_v44 = vmax.f32 %v2966_v49, 0.0  ;;  %v5197_v5 = vld [vmem:[#allocation18_spill] sm:$0xff] }
 0x21b   : > { %v2387_v46 = vpop.f32.mrf.mxu1  ;;  %v2618_v13 = vpop.f32.mrf.mxu0  ;;  %v3169_v39 = vadd.f32 %v4753_v16, %v3098_v9  ;;  %v2359_v27 = vadd.f32 %v4877_v45, %v5197_v5  ;;  %v5198_v45 = vld [vmem:[#allocation20_spill] sm:$0xff] }
 0x21c   : > { %v2619_v6 = vadd.f32 %v2618_v13, %v2330_v62  ;;  %v3167_v40 = vadd.f32 %v4753_v16, %v3096_v14  ;;  %v3028_v47 = vmax.f32 %v2964_v50, 0.0  ;;  %v3101_v17 = vmul.f32 %v4745_v48, %v3030_v44 }
 0x21d   : > { %v4983_v19 = vpop.f32.mrf.mxu1  ;;  %v3732_v29 = vpop.f32.mrf.mxu0  ;;  %3233 = vst [vmem:[%s4762_s25 + $0x118] sm:$0xff] %v3169_v39  ;;  %v2967_v58 = vadd.f32 %v4734_v7, %v2627_v43  ;;  %v2370_v46 = vadd.f32 %v4916_v24, %v5198_v45 }
 0x21e   : > { %v2640_v23 = vadd.f32 %v3732_v29, %v2351_v20  ;;  %3231 = vst [vmem:[%s4762_s25 + $0x108] sm:$0xff] %v3167_v40  ;;  %v3099_v61 = vmul.f32 %v4745_v48, %v3028_v47  ;;  %v2965_v2 = vadd.f32 %v4734_v7, %v2619_v6  ;;  %v3172_v8 = vadd.f32 %v4753_v16, %v3101_v17  ;;  %v5199_v20 = vld [vmem:[#allocation19_spill] sm:$0xff] }
 0x21f   : > { %v2392_v12 = vpop.f32.mrf.mxu1  ;;  %v2631_v54 = vpop.f32.mrf.mxu0  ;;  %v3031_v33 = vmax.f32 %v2967_v58, 0.0  ;;  %v2362_v39 = vadd.f32 %v4889_v36, %v5199_v20  ;;  %v5200_v36 = vld [vmem:[#allocation4_spill] sm:$0xff] }
 0x220   : > { %v2632_v25 = vadd.f32 %v2631_v54, %v2343_v59  ;;  %v3170_v4 = vadd.f32 %v4753_v16, %v3099_v61  ;;  %v3029_v41 = vmax.f32 %v2965_v2, 0.0  ;;  %3236 = vst [vmem:[%s4762_s25 + $0x130] sm:$0xff] %v3172_v8  ;;  %v2970_v55 = vadd.f32 %v4734_v7, %v2640_v23  ;;  %v5201_v8 = vld [vmem:[#allocation2_spill] sm:$0xff] }
 0x221   : > { %v4997_v34 = vpop.f32.mrf.mxu1  ;;  %v3733_v38 = vpop.f32.mrf.mxu0  ;;  %v3102_v51 = vmul.f32 %v4745_v48, %v3031_v33  ;;  %v2383_v54 = vadd.f32 %v4955_v26, %v5200_v36  ;;  %v2375_v33 = vadd.f32 %v4929_v57, %v5201_v8  ;;  %v5202_v57 = vld [vmem:[#allocation5_spill] sm:$0xff] }
 0x222   : > { %v2643_v28 = vadd.f32 %v3733_v38, %v2354_v56  ;;  %3234 = vst [vmem:[%s4762_s25 + $0x120] sm:$0xff] %v3170_v4  ;;  %v3100_v15 = vmul.f32 %v4745_v48, %v3029_v41  ;;  %v2968_v30 = vadd.f32 %v4734_v7, %v2632_v25  ;;  %v3034_v3 = vmax.f32 %v2970_v55, 0.0 }
 0x223   : > { %v2395_v42 = vpop.f32.mrf.mxu1  ;;  %v2634_v35 = vpop.f32.mrf.mxu0  ;;  %v3173_v11 = vadd.f32 %v4753_v16, %v3102_v51 }
 0x224   : > { %v2635_v18 = vadd.f32 %v2634_v35, %v2346_v1  ;;  %v3171_v37 = vadd.f32 %v4753_v16, %v3100_v15  ;;  %v3032_v53 = vmax.f32 %v2968_v30, 0.0  ;;  %v3105_v62 = vmul.f32 %v4745_v48, %v3034_v3  ;;  %v5203_v3 = vld [vmem:[#allocation3_spill] sm:$0xff] }
 0x225   : > { %v5011_v32 = vpop.f32.mrf.mxu1  ;;  %v3736_v63 = vpop.f32.mrf.mxu0  ;;  %3237 = vst [vmem:[%s4762_s25 + $0x138] sm:$0xff] %v3173_v11  ;;  %v2971_v0 = vadd.f32 %v4734_v7, %v2643_v28  ;;  %v2386_v15 = vadd.f32 %v4969_v31, %v5202_v57  ;;  %v5209_v57 = vld [vmem:[#allocation10_spill] sm:$0xff] }
 0x226   : > { %v2656_v60 = vadd.f32 %v3736_v63, %v2367_v10  ;;  %3235 = vst [vmem:[%s4762_s25 + $0x128] sm:$0xff] %v3171_v37  ;;  %v3103_v9 = vmul.f32 %v4745_v48, %v3032_v53  ;;  %v2969_v49 = vadd.f32 %v4734_v7, %v2635_v18  ;;  %v3176_v13 = vadd.f32 %v4753_v16, %v3105_v62 }
 0x227   : > { %v2400_v21 = vpop.f32.mrf.mxu1  ;;  %v2647_v22 = vpop.f32.mrf.mxu0  ;;  %v3035_v14 = vmax.f32 %v2971_v0, 0.0  ;;  %v2378_v63 = vadd.f32 %v4942_v52, %v5203_v3  ;;  %v5204_v52 = vld [vmem:[#allocation8_spill] sm:$0xff] }
 0x228   : > { %v2648_v43 = vadd.f32 %v2647_v22, %v2359_v27  ;;  %v3174_v44 = vadd.f32 %v4753_v16, %v3103_v9  ;;  %v3033_v29 = vmax.f32 %v2969_v49, 0.0  ;;  %3240 = vst [vmem:[%s4762_s25 + $0x150] sm:$0xff] %v3176_v13  ;;  %v2974_v40 = vadd.f32 %v4734_v7, %v2656_v60  ;;  %v5205_v13 = vld [vmem:[#allocation6_spill] sm:$0xff] }
 0x229   : > { %v5025_v50 = vpop.f32.mrf.mxu1  ;;  %v3737_v6 = vpop.f32.mrf.mxu0  ;;  %v3106_v59 = vmul.f32 %v4745_v48, %v3035_v14  ;;  %v2399_v9 = vadd.f32 %v5011_v32, %v5204_v52  ;;  %v2391_v14 = vadd.f32 %v4983_v19, %v5205_v13  ;;  %v5206_v19 = vld [vmem:[#allocation9_spill] sm:$0xff]  ;;  %v5211_v52 = vld [vmem:[#allocation11_spill] sm:$0xff] }
 0x22a   : > { %v2659_v47 = vadd.f32 %v3737_v6, %v2370_v46  ;;  %3238 = vst [vmem:[%s4762_s25 + $0x140] sm:$0xff] %v3174_v44  ;;  %v3104_v58 = vmul.f32 %v4745_v48, %v3033_v29  ;;  %v2972_v23 = vadd.f32 %v4734_v7, %v2648_v43  ;;  %v3038_v2 = vmax.f32 %v2974_v40, 0.0 }
 0x22b   : > { %v2403_v24 = vpop.f32.mrf.mxu1  ;;  %v2650_v17 = vpop.f32.mrf.mxu0  ;;  %v3177_v61 = vadd.f32 %v4753_v16, %v3106_v59 }
 0x22c   : > { %v2651_v12 = vadd.f32 %v2650_v17, %v2362_v39  ;;  %v3175_v38 = vadd.f32 %v4753_v16, %v3104_v58  ;;  %v3036_v1 = vmax.f32 %v2972_v23, 0.0  ;;  %v3109_v4 = vmul.f32 %v4745_v48, %v3038_v2 }
 0x22d   : > { %v5039_v25 = vpop.f32.mrf.mxu1  ;;  %v3740_v56 = vpop.f32.mrf.mxu0  ;;  %3241 = vst [vmem:[%s4762_s25 + $0x158] sm:$0xff] %v3177_v61  ;;  %v2975_v41 = vadd.f32 %v4734_v7, %v2659_v47  ;;  %v2402_v17 = vadd.f32 %v5025_v50, %v5206_v19 }
 0x22e   : > { %v2672_v51 = vadd.f32 %v3740_v56, %v2383_v54  ;;  %3239 = vst [vmem:[%s4762_s25 + $0x148] sm:$0xff] %v3175_v38  ;;  %v3107_v28 = vmul.f32 %v4745_v48, %v3036_v1  ;;  %v2973_v42 = vadd.f32 %v4734_v7, %v2651_v12  ;;  %v3180_v30 = vadd.f32 %v4753_v16, %v3109_v4  ;;  %v5207_v54 = vld [vmem:[#allocation7_spill] sm:$0xff] }
 0x22f   : > { %v2408_v26 = vpop.f32.mrf.mxu1  ;;  %v2663_v55 = vpop.f32.mrf.mxu0  ;;  %v3039_v18 = vmax.f32 %v2975_v41, 0.0  ;;  %v2394_v61 = vadd.f32 %v4997_v34, %v5207_v54 }
 0x230   : > { %v2664_v35 = vadd.f32 %v2663_v55, %v2375_v33  ;;  %v3178_v5 = vadd.f32 %v4753_v16, %v3107_v28  ;;  %v3037_v27 = vmax.f32 %v2973_v42, 0.0  ;;  %3244 = vst [vmem:[%s4762_s25 + $0x170] sm:$0xff] %v3180_v30  ;;  %v2978_v53 = vadd.f32 %v4734_v7, %v2672_v51  ;;  %v5208_v26 = vld [vmem:[#allocation12_spill] sm:$0xff] }
 0x231   : > { %v5053_v10 = vpop.f32.mrf.mxu1  ;;  %v3741_v11 = vpop.f32.mrf.mxu0  ;;  %v3110_v37 = vmul.f32 %v4745_v48, %v3039_v18 }
 0x232   : > { %v2675_v62 = vadd.f32 %v3741_v11, %v2386_v15  ;;  %3242 = vst [vmem:[%s4762_s25 + $0x160] sm:$0xff] %v3178_v5  ;;  %v3108_v60 = vmul.f32 %v4745_v48, %v3037_v27  ;;  %v2976_v21 = vadd.f32 %v4734_v7, %v2664_v35  ;;  %v3042_v43 = vmax.f32 %v2978_v53, 0.0 }
 0x233   : > { %v2411_v31 = vpop.f32.mrf.mxu1  ;;  %v2666_v0 = vpop.f32.mrf.mxu0  ;;  %v3181_v49 = vadd.f32 %v4753_v16, %v3110_v37  ;;  %v2407_v15 = vadd.f32 %v5039_v25, %v5209_v57  ;;  %v5105_v25 = vld [vmem:[%s5175_s3] ss:$0 sm:$0xff] }
 0x234   : > { %v2667_v22 = vadd.f32 %v2666_v0, %v2378_v63  ;;  %v3179_v6 = vadd.f32 %v4753_v16, %v3108_v60  ;;  %v3040_v20 = vmax.f32 %v2976_v21, 0.0  ;;  %v3113_v39 = vmul.f32 %v4745_v48, %v3042_v43  ;;  %v5210_v31 = vld [vmem:[#allocation13_spill] sm:$0xff] }
 0x235   : > { %v2414_v45 = vpop.f32.mrf.mxu1  ;;  %v3744_v46 = vpop.f32.mrf.mxu0  ;;  %3245 = vst [vmem:[%s4762_s25 + $0x178] sm:$0xff] %v3181_v49  ;;  %v2979_v44 = vadd.f32 %v4734_v7, %v2675_v62  ;;  %v5116_v49 = vld [vmem:[%s5176_s4] ss:$0 sm:$0xff] }
 0x236   : > { %v2688_v29 = vadd.f32 %v3744_v46, %v2399_v9  ;;  %3243 = vst [vmem:[%s4762_s25 + $0x168] sm:$0xff] %v3179_v6  ;;  %v3111_v40 = vmul.f32 %v4745_v48, %v3040_v20  ;;  %v2977_v47 = vadd.f32 %v4734_v7, %v2667_v22  ;;  %v3184_v58 = vadd.f32 %v4753_v16, %v3113_v39 }
 0x237   : > { %v2416_v59 = vpop.f32.mrf.mxu1  ;;  %v2679_v32 = vpop.f32.mrf.mxu0  ;;  %v3043_v23 = vmax.f32 %v2979_v44, 0.0  ;;  %v2415_v55 = vadd.f32 %v2414_v45, %v5208_v26  ;;  %v2410_v9 = vadd.f32 %v5053_v10, %v5211_v52 }
 0x238   : > { %v2680_v24 = vadd.f32 %v2679_v32, %v2391_v14  ;;  %v3182_v2 = vadd.f32 %v4753_v16, %v3111_v40  ;;  %v3041_v56 = vmax.f32 %v2977_v47, 0.0  ;;  %3248 = vst [vmem:[%s4762_s25 + $0x190] sm:$0xff] %v3184_v58  ;;  %v2982_v33 = vadd.f32 %v4734_v7, %v2688_v29  ;;  %v5212_v29 = vld [vmem:[#allocation14_spill] sm:$0xff] }
 0x239   : > { %v2417_v12 = vpop.f32.mrf.mxu1  ;;  %v3745_v36 = vpop.f32.mrf.mxu0  ;;  %v3114_v8 = vmul.f32 %v4745_v48, %v3043_v23 }
 0x23a   : > { %v2691_v38 = vadd.f32 %v3745_v36, %v2402_v17  ;;  %3246 = vst [vmem:[%s4762_s25 + $0x180] sm:$0xff] %v3182_v2  ;;  %v3112_v4 = vmul.f32 %v4745_v48, %v3041_v56  ;;  %v2980_v41 = vadd.f32 %v4734_v7, %v2680_v24  ;;  %v3046_v28 = vmax.f32 %v2982_v33, 0.0  ;;  %v5098_v7 = vld [vmem:[%s5174_s2] ss:$0 sm:$0xff]  ;;  %v5213_v17 = vld [vmem:[#allocation16_spill] sm:$0xff] }
 0x23b   : > { %v2419_v1 = vpop.f32.mrf.mxu1  ;;  %v2682_v50 = vpop.f32.mrf.mxu0  ;;  %v3185_v34 = vadd.f32 %v4753_v16, %v3114_v8  ;;  %v2418_v0 = vadd.f32 %v2417_v12, %v5210_v31 }
 0x23c   : > { %v2683_v51 = vadd.f32 %v2682_v50, %v2394_v61  ;;  %v3183_v30 = vadd.f32 %v4753_v16, %v3112_v4  ;;  %v3044_v18 = vmax.f32 %v2980_v41, 0.0  ;;  %v3117_v11 = vmul.f32 %v4745_v48, %v3046_v28 }
 0x23d   : > { %v2422_v42 = vpop.f32.mrf.mxu1  ;;  %v3748_v35 = vpop.f32.mrf.mxu0  ;;  %3249 = vst [vmem:[%s4762_s25 + $0x198] sm:$0xff] %v3185_v34  ;;  %v2983_v3 = vadd.f32 %v5098_v7, %v2691_v38  ;;  %v5214_v38 = vld [vmem:[#allocation15_spill] sm:$0xff] }
 0x23e   : > { %v2704_v63 = vadd.f32 %v3748_v35, %v2415_v55  ;;  %3247 = vst [vmem:[%s4762_s25 + $0x188] sm:$0xff] %v3183_v30  ;;  %v3115_v37 = vmul.f32 %v5105_v25, %v3044_v18  ;;  %v2981_v48 = vadd.f32 %v5098_v7, %v2683_v51  ;;  %v3188_v62 = vadd.f32 %v4753_v16, %v3117_v11  ;;  %v5215_v55 = vld [vmem:[#allocation17_spill] sm:$0xff] }
 0x23f   : > { %v2424_v5 = vpop.f32.mrf.mxu1  ;;  %v2695_v27 = vpop.f32.mrf.mxu0  ;;  %v3047_v60 = vmax.f32 %v2983_v3, 0.0  ;;  %v2423_v59 = vadd.f32 %v2422_v42, %v5212_v29 }
 0x240   : > { %v2696_v53 = vadd.f32 %v2695_v27, %v2407_v15  ;;  %v3186_v43 = vadd.f32 %v5116_v49, %v3115_v37  ;;  %v3045_v45 = vmax.f32 %v2981_v48, 0.0  ;;  %3252 = vst [vmem:[%s4762_s25 + $0x1b0] sm:$0xff] %v3188_v62  ;;  %v2986_v16 = vadd.f32 %v5098_v7, %v2704_v63 }
 0x241   : > { %v2425_v21 = vpop.f32.mrf.mxu1  ;;  %v3749_v22 = vpop.f32.mrf.mxu0  ;;  %v3118_v46 = vmul.f32 %v5105_v25, %v3047_v60 }
 0x242   : > { %v2707_v13 = vadd.f32 %v3749_v22, %v2418_v0  ;;  %3250 = vst [vmem:[%s4762_s25 + $0x1a0] sm:$0xff] %v3186_v43  ;;  %v3116_v10 = vmul.f32 %v5105_v25, %v3045_v45  ;;  %v2984_v20 = vadd.f32 %v5098_v7, %v2696_v53  ;;  %v3050_v32 = vmax.f32 %v2986_v16, 0.0 }
 0x243   : > { %v2427_v14 = vpop.f32.mrf.mxu1  ;;  %v2698_v6 = vpop.f32.mrf.mxu0  ;;  %v3189_v44 = vadd.f32 %v5116_v49, %v3118_v46  ;;  %v2426_v1 = vadd.f32 %v2425_v21, %v5214_v38 }
 0x244   : > { %v2699_v39 = vadd.f32 %v2698_v6, %v2410_v9  ;;  %v3187_v24 = vadd.f32 %v5116_v49, %v3116_v10  ;;  %v3048_v19 = vmax.f32 %v2984_v20, 0.0  ;;  %v3121_v23 = vmul.f32 %v5105_v25, %v3050_v32 }
 0x245   : > { %v2430_v40 = vpop.f32.mrf.mxu1  ;;  %v3752_v47 = vpop.f32.mrf.mxu0  ;;  %3253 = vst [vmem:[%s4762_s25 + $0x1b8] sm:$0xff] %v3189_v44  ;;  %v2987_v12 = vadd.f32 %v5098_v7, %v2707_v13 }
 0x246   : > { %v2431_v58 = vadd.f32 %v2430_v40, %v5213_v17  ;;  %3251 = vst [vmem:[%s4762_s25 + $0x1a8] sm:$0xff] %v3187_v24  ;;  %v3119_v61 = vmul.f32 %v5105_v25, %v3048_v19  ;;  %v2985_v2 = vadd.f32 %v5098_v7, %v2699_v39  ;;  %v3192_v33 = vadd.f32 %v5116_v49, %v3121_v23 }
 0x247   : > { %v2432_v36 = vpop.f32.mrf.mxu1  ;;  %v2711_v54 = vpop.f32.mrf.mxu0  ;;  %v3051_v50 = vmax.f32 %v2987_v12, 0.0 }
 0x248   : > { %v2720_v56 = vadd.f32 %v3752_v47, %v2431_v58  ;;  %v2712_v8 = vadd.f32 %v2711_v54, %v2423_v59  ;;  %v3190_v51 = vadd.f32 %v5116_v49, %v3119_v61  ;;  %v3049_v34 = vmax.f32 %v2985_v2, 0.0  ;;  %3256 = vst [vmem:[%s4762_s25 + $0x1d0] sm:$0xff] %v3192_v33 }
 0x249   : > { %v2433_v4 = vpop.f32.mrf.mxu1  ;;  %v3753_v41 = vpop.f32.mrf.mxu0  ;;  %v3122_v26 = vmul.f32 %v5105_v25, %v3051_v50 }
 0x24a   : > { %v2434_v28 = vadd.f32 %v2433_v4, %v5215_v55  ;;  %3254 = vst [vmem:[%s4762_s25 + $0x1c0] sm:$0xff] %v3190_v51  ;;  %v3120_v57 = vmul.f32 %v5105_v25, %v3049_v34  ;;  %v2990_v15 = vadd.f32 %v5098_v7, %v2720_v56  ;;  %v2988_v30 = vadd.f32 %v5098_v7, %v2712_v8 }
 0x24b   : > { %v2435_v42 = vpop.f32.mrf.mxu1  ;;  %v2714_v35 = vpop.f32.mrf.mxu0  ;;  %v3193_v11 = vadd.f32 %v5116_v49, %v3122_v26 }
 0x24c   : > { %v2715_v18 = vadd.f32 %v2714_v35, %v2426_v1  ;;  %v2723_v3 = vadd.f32 %v3753_v41, %v2434_v28  ;;  %v3191_v63 = vadd.f32 %v5116_v49, %v3120_v57  ;;  %v3054_v5 = vmax.f32 %v2990_v15, 0.0 }
 0x24d   : > { %v3052_v27 = vmax.f32 %v2988_v30, 0.0  ;;  %3257 = vst [vmem:[%s4762_s25 + $0x1d8] sm:$0xff] %v3193_v11 }
 0x24e   : > { %3255 = vst [vmem:[%s4762_s25 + $0x1c8] sm:$0xff] %v3191_v63  ;;  %v3125_v37 = vmul.f32 %v5105_v25, %v3054_v5  ;;  %v2989_v53 = vadd.f32 %v5098_v7, %v2715_v18  ;;  %v2991_v62 = vadd.f32 %v5098_v7, %v2723_v3 }
 0x24f   : > { %v3123_v48 = vmul.f32 %v5105_v25, %v3052_v27 }
 0x250   : > { %v3196_v31 = vadd.f32 %v5116_v49, %v3125_v37  ;;  %v3053_v60 = vmax.f32 %v2989_v53, 0.0  ;;  %v3055_v21 = vmax.f32 %v2991_v62, 0.0 }
 0x251   : > { %v3194_v0 = vadd.f32 %v5116_v49, %v3123_v48 }
 0x252   : > { %3260 = vst [vmem:[%s4762_s25 + $0x1f0] sm:$0xff] %v3196_v31  ;;  %v3124_v22 = vmul.f32 %v5105_v25, %v3053_v60  ;;  %v3126_v52 = vmul.f32 %v5105_v25, %v3055_v21 }
 0x253   : > { %3258 = vst [vmem:[%s4762_s25 + $0x1e0] sm:$0xff] %v3194_v0 }
 0x254   : > { %v3195_v9 = vadd.f32 %v5116_v49, %v3124_v22  ;;  %v3197_v43 = vadd.f32 %v5116_v49, %v3126_v52 }
 0x256   : > { %3259 = vst [vmem:[%s4762_s25 + $0x1e8] sm:$0xff] %v3195_v9  ;;  %3261 = vst [vmem:[%s4762_s25 + $0x1f8] sm:$0xff] %v3197_v43 }
 0x257 PF: > { %s15_s20 = sadd.s32 1, %s4098_s20   ;;  %s5216_s18 = smov %s4094_s19 }
 0x258   : > { %p12_p5 = scmp.ge.s32.totalorder %s15_s20, 6   ;;  %s5217_s19 = smov %s5219_s21 }
 0x25a   :  { %14 = sbr.rel (!%p12_p5) target bundleno = 2 (0x2), region = 90 }

// kernel: classificador_forward.8
= control target key start
LH: loop header
LB: loop body
LE: loop exit
PB: predicated region body
PF: predicated region fallthrough
CT: control target
= control target key end

     0   :  { %v317_v6 = vmov 1966171168   ;;  %v72_v8 = vlaneseq  ;;  %v318_v26 = vmov 0.0   ;;  %s424_s1 = inlined_call_operand.vmem [shape: bf16[256,128], index: 1, kind: input, shape index: {}]   ;;  %s425_s0 = inlined_call_operand.vmem [shape: bf16[2,256], index: 0, kind: input, shape index: {}]   ;;  %s426_s5 = inlined_call_operand.vmem [shape: f32[2,128], index: 5, kind: output, shape index: {}]   ;;  %s427_s2 = inlined_call_operand.vmem [shape: f32[1,128], index: 2, kind: input, shape index: {}]   ;;  %s428_s3 = inlined_call_operand.vmem [shape: f32[1,128], index: 3, kind: input, shape index: {}]   ;;  %s429_s4 = inlined_call_operand.vmem [shape: f32[1,128], index: 4, kind: input, shape index: {}]  }
   0x1   :  { %v301_v0 = vld [vmem:[%s424_s1 + $0x78] sm:$0xff]   ;;  %v303_v2 = vld [vmem:[%s424_s1 + $0x70] sm:$0xff]   ;;  %v305_v4 = vld [vmem:[%s424_s1 + $0x68] sm:$0xff]   ;;  %v70_v7 = vunpack.c.l.s4 %v317_v6  ;;  %25 = vst [vmem:[%s426_s5] sm:$0x3] %v318_v26 }
   0x2   :  { %v302_v1 = vld [vmem:[%s424_s1 + $0x38] sm:$0xff]   ;;  %277 = vmatprep.subr.bf16.mxu0 %v301_v0  ;;  %v304_v3 = vld [vmem:[%s424_s1 + $0x30] sm:$0xff]   ;;  %v306_v5 = vld [vmem:[%s424_s1 + $0x28] sm:$0xff]   ;;  %v73_v12 = vshrl.u32 %v72_v8, 7 }
   0x3   :  { %278 = vmatpush3.bf16.msra.mxu0 %v302_v1  ;;  %v307_v9 = vld [vmem:[%s424_s1 + $0x60] sm:$0xff]   ;;  %v71_v11 = vunpack.c.0.s8 %v70_v7  ;;  %v309_v13 = vld [vmem:[%s424_s1 + $0x58] sm:$0xff]   ;;  %v311_v16 = vld [vmem:[%s424_s1 + $0x50] sm:$0xff]  }
   0x4   :  { %279 = vmatprep.subr.bf16.mxu0 %v303_v2  ;;  %v308_v10 = vld [vmem:[%s424_s1 + $0x20] sm:$0xff]   ;;  %v310_v14 = vld [vmem:[%s424_s1 + $0x18] sm:$0xff]   ;;  %v312_v19 = vld [vmem:[%s424_s1 + $0x10] sm:$0xff]  }
   0x5   :  { %v74_v15 = vsub.s32 %v71_v11, %v73_v12  ;;  %v257_v17 = vld.sshfl [vmem:[%s425_s0] sm:$0x11 pattern:$0x75316420]  ;;  %v313_v21 = vld [vmem:[%s424_s1 + $0x48] sm:$0xff]  }
   0x6   :  { %v68_v18 = vcombine.high %v257_v17, %v257_v17  ;;  %v314_v22 = vld [vmem:[%s424_s1 + $0x8] sm:$0xff]   ;;  %v315_v23 = vld [vmem:[%s424_s1 + $0x40] sm:$0xff]  }
   0x7   :  { %280 = vmatpush3.bf16.msra.mxu0 %v304_v3  ;;  %v316_v24 = vld [vmem:[%s424_s1] sm:$0xff]   ;;  %v75_v25 = vrot.slane %v257_v17, %v74_v15 }
   0x8   :  { %281 = vmatprep.subr.bf16.mxu0 %v305_v4  ;;  %v82_v20 = vrot.slane %v68_v18, %v74_v15  ;;  %v26_v28 = vld [vmem:[%s426_s5] sm:$0x3] }
   0x9   :  { %v274_v34 = vld [vmem:[%s427_s2] ss:$0 sm:$0xff] }
   0xa   :  { %213 = vmatprep.mubr.bf16.mxu0 %v82_v20  ;;  %v275_v37 = vld [vmem:[%s428_s3] ss:$0 sm:$0xff] }
   0xb   :  { %282 = vmatpush3.bf16.msra.mxu0 %v306_v5  ;;  %v276_v39 = vld [vmem:[%s429_s4] ss:$0 sm:$0xff] }
   0xc   :  { %283 = vmatprep.subr.bf16.mxu0 %v307_v9 }
   0xf   :  { %284 = vmatpush3.bf16.msra.mxu0 %v308_v10 }
  0x10   :  { %285 = vmatprep.subr.bf16.mxu0 %v309_v13 }
  0x13   :  { %286 = vmatpush3.bf16.msra.mxu0 %v310_v14 }
  0x14   :  { %287 = vmatprep.subr.bf16.mxu0 %v311_v16 }
  0x17   :  { %288 = vmatpush3.bf16.msra.mxu0 %v312_v19 }
  0x18   :  { %289 = vmatprep.subr.bf16.mxu0 %v313_v21 }
  0x1b   :  { %290 = vmatpush3.bf16.msra.mxu0 %v314_v22 }
  0x1c   :  { %291 = vmatprep.subr.bf16.mxu0 %v315_v23 }
  0x1f   :  { %292 = vmatpush3.bf16.msra.mxu0 %v316_v24 }
  0x22   :  { %214 = vmatmul.mubr.bf16.vlgmr.msra.gmra.mxu0 %v75_v25 }
  0xe2   :  { %v293_v27 = vpop.f32.mrf.mxu0 }
  0xe4   :  { %v294_v29 = vpop.f32.mrf.mxu0 }
  0xe5   :  { %v295_v30 = vadd.f32 %v294_v29, %v293_v27 }
  0xe6   :  { %v296_v31 = vpop.f32.mrf.mxu0 }
  0xe7   :  { %v221_v32 = vadd.f32 %v295_v30, %v26_v28 }
  0xe8   :  { %v297_v33 = vpop.f32.mrf.mxu0 }
  0xe9   :  { %222 = vst [vmem:[%s426_s5] sm:$0x3] %v221_v32 }
  0xf0   :  { %v226_v35 = vld [vmem:[%s426_s5] sm:$0x3] }
  0xf1   :  { %v234_v36 = vadd.f32 %v274_v34, %v226_v35 }
  0xf3   :  { %v235_v38 = vmax.f32 %v234_v36, 0.0 }
  0xf5   :  { %v243_v40 = vmul.f32 %v275_v37, %v235_v38 }
  0xf7   :  { %v251_v41 = vadd.f32 %v276_v39, %v243_v40 }
  0xf9   :  { %252 = vst [vmem:[%s426_s5] sm:$0x3] %v251_v41 }

// kernel: classificador_forward.9
= control target key start
LH: loop header
LB: loop body
LE: loop exit
PB: predicated region body
PF: predicated region fallthrough
CT: control target
= control target key end

     0   :  { %v253_v1 = vmov 0.0   ;;  %vm254_vm0 = vmmov 0   ;;  %vm26_vm1 = vcmask 99328   ;;  %s328_s0 = inlined_call_operand.vmem [shape: bf16[2,128], index: 0, kind: input, shape index: {}]   ;;  %s329_s1 = inlined_call_operand.vmem [shape: bf16[128,13], index: 1, kind: input, shape index: {}]   ;;  %s330_s2 = inlined_call_operand.vmem [shape: f32[1,13], index: 2, kind: input, shape index: {}]   ;;  %s331_s3 = inlined_call_operand.vmem [shape: f32[1,13], index: 3, kind: input, shape index: {}]   ;;  %s332_s4 = inlined_call_operand.vmem [shape: f32[1,13], index: 4, kind: input, shape index: {}]   ;;  %s333_s5 = inlined_call_operand.hbm [shape: f32[2,13], index: 5, kind: output, shape index: {}]  }
   0x1   :  { %v223_v0 = vld [vmem:[%s329_s1 + $0x38] sm:$0xff]   ;;  %200 = vmatprep.subr.bf16.mxu0 %v253_v1  ;;  %v224_v2 = vld [vmem:[%s329_s1 + $0x30] sm:$0xff]   ;;  %216 = vmatprep.mubr.msk.bf16.mxu0 %vm254_vm0, %v253_v1  ;;  %27 = vst.msk [vmem:[#allocation2] sm:$0x3] %vm26_vm1, %v253_v1  ;;  %v225_v3 = vld [vmem:[%s329_s1 + $0x28] sm:$0xff]  }
   0x2   :  { %201 = vmatpush3.bf16.msra.mxu0 %v223_v0 }
   0x3   :  { %202 = vmatprep.subr.bf16.mxu0 %v253_v1 }
   0x6   :  { %203 = vmatpush3.bf16.msra.mxu0 %v224_v2 }
   0x7   :  { %204 = vmatprep.subr.bf16.mxu0 %v253_v1 }
   0x8   :  { %10 = vsyncpa [#allocation3], 0  ;;  %v226_v4 = vld [vmem:[%s329_s1 + $0x20] sm:$0xff]   ;;  %v227_v5 = vld [vmem:[%s329_s1 + $0x18] sm:$0xff]   ;;  %s255_s15 = smov [#allocation2]  }
   0x9   :  { %v228_v6 = vld [vmem:[%s329_s1 + $0x10] sm:$0xff]   ;;  %v229_v7 = vld [vmem:[%s329_s1 + $0x8] sm:$0xff]   ;;  %v230_v8 = vld [vmem:[%s329_s1] sm:$0xff]   ;;  %s172_s16 = sshll.u32 %s255_s15, 4  ;;  %s173_s16 = int_to_ptr.vmem [resolvable:$true] %s172_s16 }
   0xa   :  { %205 = vmatpush3.bf16.msra.mxu0 %v225_v3  ;;  %v29_v9 = vld [vmem:[%s328_s0] sm:$0x1]  ;;  %s231_s17 = scalar_lea.vmem %s173_s16, 32  ;;  %p236_p1 = scmp.lt.s32.totalorder %s173_s16, %s173_s16 }
   0xb   :  { %206 = vmatprep.subr.bf16.mxu0 %v253_v1  ;;  %v28_v10 = vld [vmem:[#allocation2] sm:$0x3]  ;;  %p232_p0 = scmp.ne.s32.totalorder %s173_s16, %s231_s17  ;;  %p237_p2 = scmp.lt.s32.totalorder %s231_s17, %s231_s17 }
   0xc   :  { %v188_v16 = vld [vmem:[%s330_s2] ss:$0 sm:$0xff] }
   0xd   :  { %v189_v18 = vld [vmem:[%s331_s3] ss:$0 sm:$0xff]  ;;  %p238_p3 = por %p237_p2, %p236_p1 }
   0xe   :  { %207 = vmatpush3.bf16.msra.mxu0 %v226_v4  ;;  %v190_v20 = vld [vmem:[%s332_s4] ss:$0 sm:$0xff] }
   0xf   :  { %208 = vmatprep.subr.bf16.mxu0 %v253_v1  ;;  %p239_p4 = pnand %p238_p3, %p232_p0 }
  0x12   :  { %209 = vmatpush3.bf16.msra.mxu0 %v227_v5 }
  0x13   :  { %210 = vmatprep.subr.bf16.mxu0 %v253_v1 }
  0x16   :  { %211 = vmatpush3.bf16.msra.mxu0 %v228_v6 }
  0x17   :  { %212 = vmatprep.subr.bf16.mxu0 %v253_v1 }
  0x1a   :  { %213 = vmatpush3.bf16.msra.mxu0 %v229_v7 }
  0x1b   :  { %214 = vmatprep.subr.bf16.mxu0 %v253_v1 }
  0x1e   :  { %215 = vmatpush3.bf16.msra.mxu0 %v230_v8 }
  0x21   :  { %217 = vmatmul.mubr.bf16.vlgmr.msra.gmra.mxu0 %v29_v9 }
  0xe1   :  { %v128_v11 = vpop.f32.mrf.mxu0 }
  0xe2   :  { %v134_v12 = vadd.f32 %v128_v11, %v28_v10 }
  0xe3   :  { %v218_v13 = vpop.f32.mrf.mxu0 }
  0xe4   :  { %136 = vst.msk [vmem:[#allocation2] sm:$0x3] %vm26_vm1, %v134_v12 }
  0xe5   :  { %v131_v14 = vpop.f32.mrf.mxu0 }
  0xe7   :  { %v219_v15 = vpop.f32.mrf.mxu0 }
  0xeb   :  { %v140_v17 = vld [vmem:[#allocation2] sm:$0x3] }
  0xec   :  { %v148_v19 = vadd.f32 %v188_v16, %v140_v17 }
  0xee   :  { %v156_v21 = vmul.f32 %v189_v18, %v148_v19 }
  0xf0   :  { %v164_v22 = vadd.f32 %v190_v20, %v156_v21 }
  0xf2   :  { %165 = vst.msk [vmem:[#allocation2] sm:$0x3] %vm26_vm1, %v164_v22 }
  0xf3   :  { %242 = shalt.err (!%p239_p4)
}
  0xf4   :  { %175 = dma.vmem_to_hbm [thread:$0]  %s173_s16, 32, %s333_s5, [#allocation3]  }
  0xf5   :  { %251 = dma.done.wait [#allocation3], 32  }
  0xf6   :  { %252 = vsyncadd [#allocation3], 4294967264 }
  0xf7   :  { %179 = vsyncpa [#allocation3], 1 }

// kernel: classificador_forward.7
= control target key start
LH: loop header
LB: loop body
LE: loop exit
PB: predicated region body
PF: predicated region fallthrough
CT: control target
= control target key end

     0   :  { %s12878_s18 = smov 0   ;;  %s12880_s19 = smov 0   ;;  %s15069_s0 = inlined_call_operand.vmem [shape: bf16[2,12544], index: 0, kind: input, shape index: {}]   ;;  %s15070_s1 = inlined_call_operand.vmem [shape: bf16[12544,256], index: 1, kind: input, shape index: {}]   ;;  %s15071_s2 = inlined_call_operand.vmem [shape: f32[1,256], index: 2, kind: input, shape index: {}]   ;;  %s15072_s3 = inlined_call_operand.vmem [shape: f32[1,256], index: 3, kind: input, shape index: {}]   ;;  %s15073_s4 = inlined_call_operand.vmem [shape: f32[1,256], index: 4, kind: input, shape index: {}]   ;;  %s15074_s5 = inlined_call_operand.vmem [shape: f32[2,256], index: 5, kind: output, shape index: {}]  }
   0x1   :  { %s12882_s20 = smov 0   ;;  %s12884_s21 = smov 0  }
   0x2   :  { %s12886_s22 = smov 0   ;;  %s12888_s23 = smov 0  }
   0x3   :  { %s12890_s24 = smov 0  }
   0x4 LB: > { %s27_s25 = sadd.s32 1, %s12834_s22  ;;  %s30_s26 = sadd.s32 1, %s12838_s23  ;;  %s12842_s24 = sphi %s12890_s24, %s15_s24   ;;  %s12838_s23 = sphi %s12888_s23, %s15080_s23   ;;  %s12834_s22 = sphi %s12886_s22, %s15079_s22   ;;  %s12830_s21 = sphi %s12884_s21, %s15078_s21   ;;  %s12826_s20 = sphi %s12882_s20, %s15077_s20   ;;  %s12822_s19 = sphi %s12880_s19, %s15076_s19   ;;  %s12818_s18 = sphi %s12878_s18, %s15075_s18  }
   0x5   : > { %p28_p0 = scmp.ge.s32.totalorder %s27_s25, 2  ;;  %p78_p1 = scmp.ne.s32.totalorder %s12822_s19, %s12818_s18 }
   0x6   : > { %p79_p2 = scmp.eq.s32.totalorder %s12842_s24, 0  ;;  %s71_s30 = sadd.s32 1, %s12822_s19 }
   0x7   : > { %s15082_s25 = smov (%p28_p0, %s27_s25), 0  ;;  %s15084_s26 = smov (!%p28_p0, %s30_s26), %s12838_s23 }
   0x8   : > { %p80_p3 = por %p79_p2, %p78_p1  ;;  %p32_p4 = scmp.ge.s32.totalorder %s15084_s26, 2 }
   0x9   : > { %s66_s27 = ssub.s32 %s12834_s22, %s15082_s25  ;;  %p11365_p6 = scmp.ge.s32.totalorder %s12842_s24, 4 }
   0xa   : > { %s15086_s26 = smov (%p32_p4, %s15084_s26), 0 }
   0xb   : > { %s67_s28 = ssub.s32 %s12838_s23, %s15086_s26  ;;  %210 = sbr.rel (%p11365_p6) target bundleno = 545 (0x221), region = 16 }
   0xc   : > { %s68_s29 = sor.u32 %s67_s28, %s66_s27 }
   0xd   : > { %p69_p5 = scmp.eq.s32.totalorder %s68_s29, 0 }
   0xf   : > { %s12929_s6 = scalar_select %p69_p5, %s12822_s19, %s71_s30  }
  0x10   : > { %225 = sbr.rel (!%p80_p3) target bundleno = 545 (0x221), region = 24  ;;  %s227_s7 = sand.u32 (%p80_p3), 1, %s12822_s19  }
  0x11   : > { %s11770_s8 = smul.u32 (%p80_p3), 1568, %s12834_s22 }
  0x12   : > { %s12328_s9 = smul.u32 (%p80_p3), 3136, %s227_s7 }
  0x13   : > { %s232_s10 = sadd.s32 (%p80_p3), %s12838_s23, %s11770_s8 }
  0x14   : > { %s11367_s11 = sshll.u32 (%p80_p3), %s232_s10, 2  ;;  %s12943_s15 = scalar_lea.vmem (%p80_p3), [#allocation2], %s12328_s9 }
  0x15   : > { %s12938_s14 = scalar_lea.vmem %s15070_s1, %s11367_s11 }
  0x16   : > { %v251_v0 = vld [vmem:[%s12938_s14] sm:$0xf]  ;;  %v253_v1 = vld [vmem:[%s12938_s14 + $0x8] sm:$0xf]  ;;  %v255_v2 = vld [vmem:[%s12938_s14 + $0x10] sm:$0xf] }
  0x17   : > { %252 = vst [vmem:[%s12943_s15] sm:$0xf] %v251_v0  ;;  %254 = vst [vmem:[%s12943_s15 + $0x4] sm:$0xf] %v253_v1  ;;  %v257_v3 = vld [vmem:[%s12938_s14 + $0x18] sm:$0xf] }
  0x18   : > { %256 = vst [vmem:[%s12943_s15 + $0x8] sm:$0xf] %v255_v2  ;;  %v259_v4 = vld [vmem:[%s12938_s14 + $0x20] sm:$0xf]  ;;  %v261_v5 = vld [vmem:[%s12938_s14 + $0x28] sm:$0xf] }
  0x19   : > { %258 = vst [vmem:[%s12943_s15 + $0xc] sm:$0xf] %v257_v3  ;;  %260 = vst [vmem:[%s12943_s15 + $0x10] sm:$0xf] %v259_v4  ;;  %v263_v6 = vld [vmem:[%s12938_s14 + $0x30] sm:$0xf] }
  0x1a   : > { %262 = vst [vmem:[%s12943_s15 + $0x14] sm:$0xf] %v261_v5  ;;  %v265_v7 = vld [vmem:[%s12938_s14 + $0x38] sm:$0xf]  ;;  %v267_v8 = vld [vmem:[%s12938_s14 + $0x40] sm:$0xf] }
  0x1b   : > { %264 = vst [vmem:[%s12943_s15 + $0x18] sm:$0xf] %v263_v6  ;;  %266 = vst [vmem:[%s12943_s15 + $0x1c] sm:$0xf] %v265_v7  ;;  %v269_v9 = vld [vmem:[%s12938_s14 + $0x48] sm:$0xf] }
  0x1c   : > { %268 = vst [vmem:[%s12943_s15 + $0x20] sm:$0xf] %v267_v8  ;;  %v271_v10 = vld [vmem:[%s12938_s14 + $0x50] sm:$0xf]  ;;  %v273_v11 = vld [vmem:[%s12938_s14 + $0x58] sm:$0xf] }
  0x1d   : > { %270 = vst [vmem:[%s12943_s15 + $0x24] sm:$0xf] %v269_v9  ;;  %272 = vst [vmem:[%s12943_s15 + $0x28] sm:$0xf] %v271_v10  ;;  %v275_v12 = vld [vmem:[%s12938_s14 + $0x60] sm:$0xf] }
  0x1e   : > { %274 = vst [vmem:[%s12943_s15 + $0x2c] sm:$0xf] %v273_v11  ;;  %v277_v13 = vld [vmem:[%s12938_s14 + $0x68] sm:$0xf]  ;;  %v279_v14 = vld [vmem:[%s12938_s14 + $0x70] sm:$0xf] }
  0x1f   : > { %276 = vst [vmem:[%s12943_s15 + $0x30] sm:$0xf] %v275_v12  ;;  %278 = vst [vmem:[%s12943_s15 + $0x34] sm:$0xf] %v277_v13  ;;  %v281_v15 = vld [vmem:[%s12938_s14 + $0x78] sm:$0xf] }
  0x20   : > { %280 = vst [vmem:[%s12943_s15 + $0x38] sm:$0xf] %v279_v14  ;;  %v283_v16 = vld [vmem:[%s12938_s14 + $0x80] sm:$0xf]  ;;  %v285_v17 = vld [vmem:[%s12938_s14 + $0x88] sm:$0xf] }
  0x21   : > { %282 = vst [vmem:[%s12943_s15 + $0x3c] sm:$0xf] %v281_v15  ;;  %284 = vst [vmem:[%s12943_s15 + $0x40] sm:$0xf] %v283_v16  ;;  %v287_v18 = vld [vmem:[%s12938_s14 + $0x90] sm:$0xf] }
  0x22   : > { %286 = vst [vmem:[%s12943_s15 + $0x44] sm:$0xf] %v285_v17  ;;  %v289_v19 = vld [vmem:[%s12938_s14 + $0x98] sm:$0xf]  ;;  %v291_v20 = vld [vmem:[%s12938_s14 + $0xa0] sm:$0xf] }
  0x23   : > { %288 = vst [vmem:[%s12943_s15 + $0x48] sm:$0xf] %v287_v18  ;;  %290 = vst [vmem:[%s12943_s15 + $0x4c] sm:$0xf] %v289_v19  ;;  %v293_v21 = vld [vmem:[%s12938_s14 + $0xa8] sm:$0xf] }
  0x24   : > { %292 = vst [vmem:[%s12943_s15 + $0x50] sm:$0xf] %v291_v20  ;;  %v295_v22 = vld [vmem:[%s12938_s14 + $0xb0] sm:$0xf]  ;;  %v297_v23 = vld [vmem:[%s12938_s14 + $0xb8] sm:$0xf] }
  0x25   : > { %294 = vst [vmem:[%s12943_s15 + $0x54] sm:$0xf] %v293_v21  ;;  %296 = vst [vmem:[%s12943_s15 + $0x58] sm:$0xf] %v295_v22  ;;  %v299_v24 = vld [vmem:[%s12938_s14 + $0xc0] sm:$0xf] }
  0x26   : > { %298 = vst [vmem:[%s12943_s15 + $0x5c] sm:$0xf] %v297_v23  ;;  %v301_v25 = vld [vmem:[%s12938_s14 + $0xc8] sm:$0xf]  ;;  %v303_v26 = vld [vmem:[%s12938_s14 + $0xd0] sm:$0xf] }
  0x27   : > { %300 = vst [vmem:[%s12943_s15 + $0x60] sm:$0xf] %v299_v24  ;;  %302 = vst [vmem:[%s12943_s15 + $0x64] sm:$0xf] %v301_v25  ;;  %v305_v27 = vld [vmem:[%s12938_s14 + $0xd8] sm:$0xf] }
  0x28   : > { %304 = vst [vmem:[%s12943_s15 + $0x68] sm:$0xf] %v303_v26  ;;  %v307_v28 = vld [vmem:[%s12938_s14 + $0xe0] sm:$0xf]  ;;  %v309_v29 = vld [vmem:[%s12938_s14 + $0xe8] sm:$0xf] }
  0x29   : > { %306 = vst [vmem:[%s12943_s15 + $0x6c] sm:$0xf] %v305_v27  ;;  %308 = vst [vmem:[%s12943_s15 + $0x70] sm:$0xf] %v307_v28  ;;  %v311_v30 = vld [vmem:[%s12938_s14 + $0xf0] sm:$0xf] }
  0x2a   : > { %310 = vst [vmem:[%s12943_s15 + $0x74] sm:$0xf] %v309_v29  ;;  %v313_v31 = vld [vmem:[%s12938_s14 + $0xf8] sm:$0xf]  ;;  %v315_v32 = vld [vmem:[%s12938_s14 + $0x100] sm:$0xf] }
  0x2b   : > { %312 = vst [vmem:[%s12943_s15 + $0x78] sm:$0xf] %v311_v30  ;;  %314 = vst [vmem:[%s12943_s15 + $0x7c] sm:$0xf] %v313_v31  ;;  %v317_v33 = vld [vmem:[%s12938_s14 + $0x108] sm:$0xf] }
  0x2c   : > { %316 = vst [vmem:[%s12943_s15 + $0x80] sm:$0xf] %v315_v32  ;;  %v319_v34 = vld [vmem:[%s12938_s14 + $0x110] sm:$0xf]  ;;  %v321_v35 = vld [vmem:[%s12938_s14 + $0x118] sm:$0xf] }
  0x2d   : > { %318 = vst [vmem:[%s12943_s15 + $0x84] sm:$0xf] %v317_v33  ;;  %320 = vst [vmem:[%s12943_s15 + $0x88] sm:$0xf] %v319_v34  ;;  %v323_v36 = vld [vmem:[%s12938_s14 + $0x120] sm:$0xf] }
  0x2e   : > { %322 = vst [vmem:[%s12943_s15 + $0x8c] sm:$0xf] %v321_v35  ;;  %v325_v37 = vld [vmem:[%s12938_s14 + $0x128] sm:$0xf]  ;;  %v327_v38 = vld [vmem:[%s12938_s14 + $0x130] sm:$0xf] }
  0x2f   : > { %324 = vst [vmem:[%s12943_s15 + $0x90] sm:$0xf] %v323_v36  ;;  %326 = vst [vmem:[%s12943_s15 + $0x94] sm:$0xf] %v325_v37  ;;  %v329_v39 = vld [vmem:[%s12938_s14 + $0x138] sm:$0xf] }
  0x30   : > { %328 = vst [vmem:[%s12943_s15 + $0x98] sm:$0xf] %v327_v38  ;;  %v331_v40 = vld [vmem:[%s12938_s14 + $0x140] sm:$0xf]  ;;  %v333_v41 = vld [vmem:[%s12938_s14 + $0x148] sm:$0xf] }
  0x31   : > { %330 = vst [vmem:[%s12943_s15 + $0x9c] sm:$0xf] %v329_v39  ;;  %332 = vst [vmem:[%s12943_s15 + $0xa0] sm:$0xf] %v331_v40  ;;  %v335_v42 = vld [vmem:[%s12938_s14 + $0x150] sm:$0xf] }
  0x32   : > { %334 = vst [vmem:[%s12943_s15 + $0xa4] sm:$0xf] %v333_v41  ;;  %v337_v43 = vld [vmem:[%s12938_s14 + $0x158] sm:$0xf]  ;;  %v339_v44 = vld [vmem:[%s12938_s14 + $0x160] sm:$0xf] }
  0x33   : > { %336 = vst [vmem:[%s12943_s15 + $0xa8] sm:$0xf] %v335_v42  ;;  %338 = vst [vmem:[%s12943_s15 + $0xac] sm:$0xf] %v337_v43  ;;  %v341_v45 = vld [vmem:[%s12938_s14 + $0x168] sm:$0xf] }
  0x34   : > { %340 = vst [vmem:[%s12943_s15 + $0xb0] sm:$0xf] %v339_v44  ;;  %v343_v46 = vld [vmem:[%s12938_s14 + $0x170] sm:$0xf]  ;;  %v345_v47 = vld [vmem:[%s12938_s14 + $0x178] sm:$0xf] }
  0x35   : > { %342 = vst [vmem:[%s12943_s15 + $0xb4] sm:$0xf] %v341_v45  ;;  %344 = vst [vmem:[%s12943_s15 + $0xb8] sm:$0xf] %v343_v46  ;;  %v347_v48 = vld [vmem:[%s12938_s14 + $0x180] sm:$0xf] }
  0x36   : > { %346 = vst [vmem:[%s12943_s15 + $0xbc] sm:$0xf] %v345_v47  ;;  %v349_v49 = vld [vmem:[%s12938_s14 + $0x188] sm:$0xf]  ;;  %v351_v50 = vld [vmem:[%s12938_s14 + $0x190] sm:$0xf] }
  0x37   : > { %348 = vst [vmem:[%s12943_s15 + $0xc0] sm:$0xf] %v347_v48  ;;  %350 = vst [vmem:[%s12943_s15 + $0xc4] sm:$0xf] %v349_v49  ;;  %v353_v51 = vld [vmem:[%s12938_s14 + $0x198] sm:$0xf] }
  0x38   : > { %352 = vst [vmem:[%s12943_s15 + $0xc8] sm:$0xf] %v351_v50  ;;  %v355_v52 = vld [vmem:[%s12938_s14 + $0x1a0] sm:$0xf]  ;;  %v357_v53 = vld [vmem:[%s12938_s14 + $0x1a8] sm:$0xf] }
  0x39   : > { %354 = vst [vmem:[%s12943_s15 + $0xcc] sm:$0xf] %v353_v51  ;;  %356 = vst [vmem:[%s12943_s15 + $0xd0] sm:$0xf] %v355_v52  ;;  %v359_v54 = vld [vmem:[%s12938_s14 + $0x1b0] sm:$0xf] }
  0x3a   : > { %358 = vst [vmem:[%s12943_s15 + $0xd4] sm:$0xf] %v357_v53  ;;  %v361_v55 = vld [vmem:[%s12938_s14 + $0x1b8] sm:$0xf]  ;;  %v363_v56 = vld [vmem:[%s12938_s14 + $0x1c0] sm:$0xf] }
  0x3b   : > { %360 = vst [vmem:[%s12943_s15 + $0xd8] sm:$0xf] %v359_v54  ;;  %362 = vst [vmem:[%s12943_s15 + $0xdc] sm:$0xf] %v361_v55  ;;  %v365_v57 = vld [vmem:[%s12938_s14 + $0x1c8] sm:$0xf] }
  0x3c   : > { %364 = vst [vmem:[%s12943_s15 + $0xe0] sm:$0xf] %v363_v56  ;;  %v367_v58 = vld [vmem:[%s12938_s14 + $0x1d0] sm:$0xf]  ;;  %v369_v59 = vld [vmem:[%s12938_s14 + $0x1d8] sm:$0xf] }
  0x3d   : > { %366 = vst [vmem:[%s12943_s15 + $0xe4] sm:$0xf] %v365_v57  ;;  %368 = vst [vmem:[%s12943_s15 + $0xe8] sm:$0xf] %v367_v58  ;;  %v371_v60 = vld [vmem:[%s12938_s14 + $0x1e0] sm:$0xf] }
  0x3e   : > { %370 = vst [vmem:[%s12943_s15 + $0xec] sm:$0xf] %v369_v59  ;;  %v373_v61 = vld [vmem:[%s12938_s14 + $0x1e8] sm:$0xf]  ;;  %v375_v62 = vld [vmem:[%s12938_s14 + $0x1f0] sm:$0xf] }
  0x3f   : > { %372 = vst [vmem:[%s12943_s15 + $0xf0] sm:$0xf] %v371_v60  ;;  %374 = vst [vmem:[%s12943_s15 + $0xf4] sm:$0xf] %v373_v61  ;;  %v377_v63 = vld [vmem:[%s12938_s14 + $0x1f8] sm:$0xf] }
  0x40   : > { %376 = vst [vmem:[%s12943_s15 + $0xf8] sm:$0xf] %v375_v62  ;;  %v379_v0 = vld [vmem:[%s12938_s14 + $0x200] sm:$0xf]  ;;  %v381_v1 = vld [vmem:[%s12938_s14 + $0x208] sm:$0xf] }
  0x41   : > { %378 = vst [vmem:[%s12943_s15 + $0xfc] sm:$0xf] %v377_v63  ;;  %380 = vst [vmem:[%s12943_s15 + $0x100] sm:$0xf] %v379_v0  ;;  %v383_v2 = vld [vmem:[%s12938_s14 + $0x210] sm:$0xf] }
  0x42   : > { %382 = vst [vmem:[%s12943_s15 + $0x104] sm:$0xf] %v381_v1  ;;  %v385_v3 = vld [vmem:[%s12938_s14 + $0x218] sm:$0xf]  ;;  %v387_v4 = vld [vmem:[%s12938_s14 + $0x220] sm:$0xf] }
  0x43   : > { %384 = vst [vmem:[%s12943_s15 + $0x108] sm:$0xf] %v383_v2  ;;  %386 = vst [vmem:[%s12943_s15 + $0x10c] sm:$0xf] %v385_v3  ;;  %v389_v5 = vld [vmem:[%s12938_s14 + $0x228] sm:$0xf] }
  0x44   : > { %388 = vst [vmem:[%s12943_s15 + $0x110] sm:$0xf] %v387_v4  ;;  %v391_v6 = vld [vmem:[%s12938_s14 + $0x230] sm:$0xf]  ;;  %v393_v7 = vld [vmem:[%s12938_s14 + $0x238] sm:$0xf] }
  0x45   : > { %390 = vst [vmem:[%s12943_s15 + $0x114] sm:$0xf] %v389_v5  ;;  %392 = vst [vmem:[%s12943_s15 + $0x118] sm:$0xf] %v391_v6  ;;  %v395_v8 = vld [vmem:[%s12938_s14 + $0x240] sm:$0xf] }
  0x46   : > { %394 = vst [vmem:[%s12943_s15 + $0x11c] sm:$0xf] %v393_v7  ;;  %v397_v9 = vld [vmem:[%s12938_s14 + $0x248] sm:$0xf]  ;;  %v399_v10 = vld [vmem:[%s12938_s14 + $0x250] sm:$0xf] }
  0x47   : > { %396 = vst [vmem:[%s12943_s15 + $0x120] sm:$0xf] %v395_v8  ;;  %398 = vst [vmem:[%s12943_s15 + $0x124] sm:$0xf] %v397_v9  ;;  %v401_v11 = vld [vmem:[%s12938_s14 + $0x258] sm:$0xf] }
  0x48   : > { %400 = vst [vmem:[%s12943_s15 + $0x128] sm:$0xf] %v399_v10  ;;  %v403_v12 = vld [vmem:[%s12938_s14 + $0x260] sm:$0xf]  ;;  %v405_v13 = vld [vmem:[%s12938_s14 + $0x268] sm:$0xf] }
  0x49   : > { %402 = vst [vmem:[%s12943_s15 + $0x12c] sm:$0xf] %v401_v11  ;;  %404 = vst [vmem:[%s12943_s15 + $0x130] sm:$0xf] %v403_v12  ;;  %v407_v14 = vld [vmem:[%s12938_s14 + $0x270] sm:$0xf] }
  0x4a   : > { %406 = vst [vmem:[%s12943_s15 + $0x134] sm:$0xf] %v405_v13  ;;  %v409_v15 = vld [vmem:[%s12938_s14 + $0x278] sm:$0xf]  ;;  %v411_v16 = vld [vmem:[%s12938_s14 + $0x280] sm:$0xf] }
  0x4b   : > { %408 = vst [vmem:[%s12943_s15 + $0x138] sm:$0xf] %v407_v14  ;;  %410 = vst [vmem:[%s12943_s15 + $0x13c] sm:$0xf] %v409_v15  ;;  %v413_v17 = vld [vmem:[%s12938_s14 + $0x288] sm:$0xf] }
  0x4c   : > { %412 = vst [vmem:[%s12943_s15 + $0x140] sm:$0xf] %v411_v16  ;;  %v415_v18 = vld [vmem:[%s12938_s14 + $0x290] sm:$0xf]  ;;  %v417_v19 = vld [vmem:[%s12938_s14 + $0x298] sm:$0xf] }
  0x4d   : > { %414 = vst [vmem:[%s12943_s15 + $0x144] sm:$0xf] %v413_v17  ;;  %416 = vst [vmem:[%s12943_s15 + $0x148] sm:$0xf] %v415_v18  ;;  %v419_v20 = vld [vmem:[%s12938_s14 + $0x2a0] sm:$0xf] }
  0x4e   : > { %418 = vst [vmem:[%s12943_s15 + $0x14c] sm:$0xf] %v417_v19  ;;  %v421_v21 = vld [vmem:[%s12938_s14 + $0x2a8] sm:$0xf]  ;;  %v423_v22 = vld [vmem:[%s12938_s14 + $0x2b0] sm:$0xf] }
  0x4f   : > { %420 = vst [vmem:[%s12943_s15 + $0x150] sm:$0xf] %v419_v20  ;;  %422 = vst [vmem:[%s12943_s15 + $0x154] sm:$0xf] %v421_v21  ;;  %v425_v23 = vld [vmem:[%s12938_s14 + $0x2b8] sm:$0xf] }
  0x50   : > { %424 = vst [vmem:[%s12943_s15 + $0x158] sm:$0xf] %v423_v22  ;;  %v427_v24 = vld [vmem:[%s12938_s14 + $0x2c0] sm:$0xf]  ;;  %v429_v25 = vld [vmem:[%s12938_s14 + $0x2c8] sm:$0xf] }
  0x51   : > { %426 = vst [vmem:[%s12943_s15 + $0x15c] sm:$0xf] %v425_v23  ;;  %428 = vst [vmem:[%s12943_s15 + $0x160] sm:$0xf] %v427_v24  ;;  %v431_v26 = vld [vmem:[%s12938_s14 + $0x2d0] sm:$0xf] }
  0x52   : > { %430 = vst [vmem:[%s12943_s15 + $0x164] sm:$0xf] %v429_v25  ;;  %v433_v27 = vld [vmem:[%s12938_s14 + $0x2d8] sm:$0xf]  ;;  %v435_v28 = vld [vmem:[%s12938_s14 + $0x2e0] sm:$0xf] }
  0x53   : > { %432 = vst [vmem:[%s12943_s15 + $0x168] sm:$0xf] %v431_v26  ;;  %434 = vst [vmem:[%s12943_s15 + $0x16c] sm:$0xf] %v433_v27  ;;  %v437_v29 = vld [vmem:[%s12938_s14 + $0x2e8] sm:$0xf] }
  0x54   : > { %436 = vst [vmem:[%s12943_s15 + $0x170] sm:$0xf] %v435_v28  ;;  %v439_v30 = vld [vmem:[%s12938_s14 + $0x2f0] sm:$0xf]  ;;  %v441_v31 = vld [vmem:[%s12938_s14 + $0x2f8] sm:$0xf] }
  0x55   : > { %438 = vst [vmem:[%s12943_s15 + $0x174] sm:$0xf] %v437_v29  ;;  %440 = vst [vmem:[%s12943_s15 + $0x178] sm:$0xf] %v439_v30  ;;  %v443_v32 = vld [vmem:[%s12938_s14 + $0x300] sm:$0xf] }
  0x56   : > { %442 = vst [vmem:[%s12943_s15 + $0x17c] sm:$0xf] %v441_v31  ;;  %v445_v33 = vld [vmem:[%s12938_s14 + $0x308] sm:$0xf]  ;;  %v447_v34 = vld [vmem:[%s12938_s14 + $0x310] sm:$0xf] }
  0x57   : > { %444 = vst [vmem:[%s12943_s15 + $0x180] sm:$0xf] %v443_v32  ;;  %446 = vst [vmem:[%s12943_s15 + $0x184] sm:$0xf] %v445_v33  ;;  %v449_v35 = vld [vmem:[%s12938_s14 + $0x318] sm:$0xf] }
  0x58   : > { %448 = vst [vmem:[%s12943_s15 + $0x188] sm:$0xf] %v447_v34  ;;  %v451_v36 = vld [vmem:[%s12938_s14 + $0x320] sm:$0xf]  ;;  %v453_v37 = vld [vmem:[%s12938_s14 + $0x328] sm:$0xf] }
  0x59   : > { %450 = vst [vmem:[%s12943_s15 + $0x18c] sm:$0xf] %v449_v35  ;;  %452 = vst [vmem:[%s12943_s15 + $0x190] sm:$0xf] %v451_v36  ;;  %v455_v38 = vld [vmem:[%s12938_s14 + $0x330] sm:$0xf] }
  0x5a   : > { %454 = vst [vmem:[%s12943_s15 + $0x194] sm:$0xf] %v453_v37  ;;  %v457_v39 = vld [vmem:[%s12938_s14 + $0x338] sm:$0xf]  ;;  %v459_v40 = vld [vmem:[%s12938_s14 + $0x340] sm:$0xf] }
  0x5b   : > { %456 = vst [vmem:[%s12943_s15 + $0x198] sm:$0xf] %v455_v38  ;;  %458 = vst [vmem:[%s12943_s15 + $0x19c] sm:$0xf] %v457_v39  ;;  %v461_v41 = vld [vmem:[%s12938_s14 + $0x348] sm:$0xf] }
  0x5c   : > { %460 = vst [vmem:[%s12943_s15 + $0x1a0] sm:$0xf] %v459_v40  ;;  %v463_v42 = vld [vmem:[%s12938_s14 + $0x350] sm:$0xf]  ;;  %v465_v43 = vld [vmem:[%s12938_s14 + $0x358] sm:$0xf] }
  0x5d   : > { %462 = vst [vmem:[%s12943_s15 + $0x1a4] sm:$0xf] %v461_v41  ;;  %464 = vst [vmem:[%s12943_s15 + $0x1a8] sm:$0xf] %v463_v42  ;;  %v467_v44 = vld [vmem:[%s12938_s14 + $0x360] sm:$0xf] }
  0x5e   : > { %466 = vst [vmem:[%s12943_s15 + $0x1ac] sm:$0xf] %v465_v43  ;;  %v469_v45 = vld [vmem:[%s12938_s14 + $0x368] sm:$0xf]  ;;  %v471_v46 = vld [vmem:[%s12938_s14 + $0x370] sm:$0xf] }
  0x5f   : > { %468 = vst [vmem:[%s12943_s15 + $0x1b0] sm:$0xf] %v467_v44  ;;  %470 = vst [vmem:[%s12943_s15 + $0x1b4] sm:$0xf] %v469_v45  ;;  %v473_v47 = vld [vmem:[%s12938_s14 + $0x378] sm:$0xf] }
  0x60   : > { %472 = vst [vmem:[%s12943_s15 + $0x1b8] sm:$0xf] %v471_v46  ;;  %v475_v48 = vld [vmem:[%s12938_s14 + $0x380] sm:$0xf]  ;;  %v477_v49 = vld [vmem:[%s12938_s14 + $0x388] sm:$0xf] }
  0x61   : > { %474 = vst [vmem:[%s12943_s15 + $0x1bc] sm:$0xf] %v473_v47  ;;  %476 = vst [vmem:[%s12943_s15 + $0x1c0] sm:$0xf] %v475_v48  ;;  %v479_v50 = vld [vmem:[%s12938_s14 + $0x390] sm:$0xf] }
  0x62   : > { %478 = vst [vmem:[%s12943_s15 + $0x1c4] sm:$0xf] %v477_v49  ;;  %v481_v51 = vld [vmem:[%s12938_s14 + $0x398] sm:$0xf]  ;;  %v483_v52 = vld [vmem:[%s12938_s14 + $0x3a0] sm:$0xf] }
  0x63   : > { %480 = vst [vmem:[%s12943_s15 + $0x1c8] sm:$0xf] %v479_v50  ;;  %482 = vst [vmem:[%s12943_s15 + $0x1cc] sm:$0xf] %v481_v51  ;;  %v485_v53 = vld [vmem:[%s12938_s14 + $0x3a8] sm:$0xf] }
  0x64   : > { %484 = vst [vmem:[%s12943_s15 + $0x1d0] sm:$0xf] %v483_v52  ;;  %v487_v54 = vld [vmem:[%s12938_s14 + $0x3b0] sm:$0xf]  ;;  %v489_v55 = vld [vmem:[%s12938_s14 + $0x3b8] sm:$0xf] }
  0x65   : > { %486 = vst [vmem:[%s12943_s15 + $0x1d4] sm:$0xf] %v485_v53  ;;  %488 = vst [vmem:[%s12943_s15 + $0x1d8] sm:$0xf] %v487_v54  ;;  %v491_v56 = vld [vmem:[%s12938_s14 + $0x3c0] sm:$0xf] }
  0x66   : > { %490 = vst [vmem:[%s12943_s15 + $0x1dc] sm:$0xf] %v489_v55  ;;  %v493_v57 = vld [vmem:[%s12938_s14 + $0x3c8] sm:$0xf]  ;;  %v495_v58 = vld [vmem:[%s12938_s14 + $0x3d0] sm:$0xf] }
  0x67   : > { %492 = vst [vmem:[%s12943_s15 + $0x1e0] sm:$0xf] %v491_v56  ;;  %494 = vst [vmem:[%s12943_s15 + $0x1e4] sm:$0xf] %v493_v57  ;;  %v497_v59 = vld [vmem:[%s12938_s14 + $0x3d8] sm:$0xf] }
  0x68   : > { %496 = vst [vmem:[%s12943_s15 + $0x1e8] sm:$0xf] %v495_v58  ;;  %v499_v60 = vld [vmem:[%s12938_s14 + $0x3e0] sm:$0xf]  ;;  %v501_v61 = vld [vmem:[%s12938_s14 + $0x3e8] sm:$0xf] }
  0x69   : > { %498 = vst [vmem:[%s12943_s15 + $0x1ec] sm:$0xf] %v497_v59  ;;  %500 = vst [vmem:[%s12943_s15 + $0x1f0] sm:$0xf] %v499_v60  ;;  %v503_v62 = vld [vmem:[%s12938_s14 + $0x3f0] sm:$0xf] }
  0x6a   : > { %502 = vst [vmem:[%s12943_s15 + $0x1f4] sm:$0xf] %v501_v61  ;;  %v505_v63 = vld [vmem:[%s12938_s14 + $0x3f8] sm:$0xf]  ;;  %v507_v0 = vld [vmem:[%s12938_s14 + $0x400] sm:$0xf] }
  0x6b   : > { %504 = vst [vmem:[%s12943_s15 + $0x1f8] sm:$0xf] %v503_v62  ;;  %506 = vst [vmem:[%s12943_s15 + $0x1fc] sm:$0xf] %v505_v63  ;;  %v509_v1 = vld [vmem:[%s12938_s14 + $0x408] sm:$0xf] }
  0x6c   : > { %508 = vst [vmem:[%s12943_s15 + $0x200] sm:$0xf] %v507_v0  ;;  %v511_v2 = vld [vmem:[%s12938_s14 + $0x410] sm:$0xf]  ;;  %v513_v3 = vld [vmem:[%s12938_s14 + $0x418] sm:$0xf] }
  0x6d   : > { %510 = vst [vmem:[%s12943_s15 + $0x204] sm:$0xf] %v509_v1  ;;  %512 = vst [vmem:[%s12943_s15 + $0x208] sm:$0xf] %v511_v2  ;;  %v515_v4 = vld [vmem:[%s12938_s14 + $0x420] sm:$0xf] }
  0x6e   : > { %514 = vst [vmem:[%s12943_s15 + $0x20c] sm:$0xf] %v513_v3  ;;  %v517_v5 = vld [vmem:[%s12938_s14 + $0x428] sm:$0xf]  ;;  %v519_v6 = vld [vmem:[%s12938_s14 + $0x430] sm:$0xf] }
  0x6f   : > { %516 = vst [vmem:[%s12943_s15 + $0x210] sm:$0xf] %v515_v4  ;;  %518 = vst [vmem:[%s12943_s15 + $0x214] sm:$0xf] %v517_v5  ;;  %v521_v7 = vld [vmem:[%s12938_s14 + $0x438] sm:$0xf] }
  0x70   : > { %520 = vst [vmem:[%s12943_s15 + $0x218] sm:$0xf] %v519_v6  ;;  %v523_v8 = vld [vmem:[%s12938_s14 + $0x440] sm:$0xf]  ;;  %v525_v9 = vld [vmem:[%s12938_s14 + $0x448] sm:$0xf] }
  0x71   : > { %522 = vst [vmem:[%s12943_s15 + $0x21c] sm:$0xf] %v521_v7  ;;  %524 = vst [vmem:[%s12943_s15 + $0x220] sm:$0xf] %v523_v8  ;;  %v527_v10 = vld [vmem:[%s12938_s14 + $0x450] sm:$0xf] }
  0x72   : > { %526 = vst [vmem:[%s12943_s15 + $0x224] sm:$0xf] %v525_v9  ;;  %v529_v11 = vld [vmem:[%s12938_s14 + $0x458] sm:$0xf]  ;;  %v531_v12 = vld [vmem:[%s12938_s14 + $0x460] sm:$0xf] }
  0x73   : > { %528 = vst [vmem:[%s12943_s15 + $0x228] sm:$0xf] %v527_v10  ;;  %530 = vst [vmem:[%s12943_s15 + $0x22c] sm:$0xf] %v529_v11  ;;  %v533_v13 = vld [vmem:[%s12938_s14 + $0x468] sm:$0xf] }
  0x74   : > { %532 = vst [vmem:[%s12943_s15 + $0x230] sm:$0xf] %v531_v12  ;;  %v535_v14 = vld [vmem:[%s12938_s14 + $0x470] sm:$0xf]  ;;  %v537_v15 = vld [vmem:[%s12938_s14 + $0x478] sm:$0xf] }
  0x75   : > { %534 = vst [vmem:[%s12943_s15 + $0x234] sm:$0xf] %v533_v13  ;;  %536 = vst [vmem:[%s12943_s15 + $0x238] sm:$0xf] %v535_v14  ;;  %v539_v16 = vld [vmem:[%s12938_s14 + $0x480] sm:$0xf] }
  0x76   : > { %538 = vst [vmem:[%s12943_s15 + $0x23c] sm:$0xf] %v537_v15  ;;  %v541_v17 = vld [vmem:[%s12938_s14 + $0x488] sm:$0xf]  ;;  %v543_v18 = vld [vmem:[%s12938_s14 + $0x490] sm:$0xf] }
  0x77   : > { %540 = vst [vmem:[%s12943_s15 + $0x240] sm:$0xf] %v539_v16  ;;  %542 = vst [vmem:[%s12943_s15 + $0x244] sm:$0xf] %v541_v17  ;;  %v545_v19 = vld [vmem:[%s12938_s14 + $0x498] sm:$0xf] }
  0x78   : > { %544 = vst [vmem:[%s12943_s15 + $0x248] sm:$0xf] %v543_v18  ;;  %v547_v20 = vld [vmem:[%s12938_s14 + $0x4a0] sm:$0xf]  ;;  %v549_v21 = vld [vmem:[%s12938_s14 + $0x4a8] sm:$0xf] }
  0x79   : > { %546 = vst [vmem:[%s12943_s15 + $0x24c] sm:$0xf] %v545_v19  ;;  %548 = vst [vmem:[%s12943_s15 + $0x250] sm:$0xf] %v547_v20  ;;  %v551_v22 = vld [vmem:[%s12938_s14 + $0x4b0] sm:$0xf] }
  0x7a   : > { %550 = vst [vmem:[%s12943_s15 + $0x254] sm:$0xf] %v549_v21  ;;  %v553_v23 = vld [vmem:[%s12938_s14 + $0x4b8] sm:$0xf]  ;;  %v555_v24 = vld [vmem:[%s12938_s14 + $0x4c0] sm:$0xf] }
  0x7b   : > { %552 = vst [vmem:[%s12943_s15 + $0x258] sm:$0xf] %v551_v22  ;;  %554 = vst [vmem:[%s12943_s15 + $0x25c] sm:$0xf] %v553_v23  ;;  %v557_v25 = vld [vmem:[%s12938_s14 + $0x4c8] sm:$0xf] }
  0x7c   : > { %556 = vst [vmem:[%s12943_s15 + $0x260] sm:$0xf] %v555_v24  ;;  %v559_v26 = vld [vmem:[%s12938_s14 + $0x4d0] sm:$0xf]  ;;  %v561_v27 = vld [vmem:[%s12938_s14 + $0x4d8] sm:$0xf] }
  0x7d   : > { %558 = vst [vmem:[%s12943_s15 + $0x264] sm:$0xf] %v557_v25  ;;  %560 = vst [vmem:[%s12943_s15 + $0x268] sm:$0xf] %v559_v26  ;;  %v563_v28 = vld [vmem:[%s12938_s14 + $0x4e0] sm:$0xf] }
  0x7e   : > { %562 = vst [vmem:[%s12943_s15 + $0x26c] sm:$0xf] %v561_v27  ;;  %v565_v29 = vld [vmem:[%s12938_s14 + $0x4e8] sm:$0xf]  ;;  %v567_v30 = vld [vmem:[%s12938_s14 + $0x4f0] sm:$0xf] }
  0x7f   : > { %564 = vst [vmem:[%s12943_s15 + $0x270] sm:$0xf] %v563_v28  ;;  %566 = vst [vmem:[%s12943_s15 + $0x274] sm:$0xf] %v565_v29  ;;  %v569_v31 = vld [vmem:[%s12938_s14 + $0x4f8] sm:$0xf] }
  0x80   : > { %568 = vst [vmem:[%s12943_s15 + $0x278] sm:$0xf] %v567_v30  ;;  %v571_v32 = vld [vmem:[%s12938_s14 + $0x500] sm:$0xf]  ;;  %v573_v33 = vld [vmem:[%s12938_s14 + $0x508] sm:$0xf] }
  0x81   : > { %570 = vst [vmem:[%s12943_s15 + $0x27c] sm:$0xf] %v569_v31  ;;  %572 = vst [vmem:[%s12943_s15 + $0x280] sm:$0xf] %v571_v32  ;;  %v575_v34 = vld [vmem:[%s12938_s14 + $0x510] sm:$0xf] }
  0x82   : > { %574 = vst [vmem:[%s12943_s15 + $0x284] sm:$0xf] %v573_v33  ;;  %v577_v35 = vld [vmem:[%s12938_s14 + $0x518] sm:$0xf]  ;;  %v579_v36 = vld [vmem:[%s12938_s14 + $0x520] sm:$0xf] }
  0x83   : > { %576 = vst [vmem:[%s12943_s15 + $0x288] sm:$0xf] %v575_v34  ;;  %578 = vst [vmem:[%s12943_s15 + $0x28c] sm:$0xf] %v577_v35  ;;  %v581_v37 = vld [vmem:[%s12938_s14 + $0x528] sm:$0xf] }
  0x84   : > { %580 = vst [vmem:[%s12943_s15 + $0x290] sm:$0xf] %v579_v36  ;;  %v583_v38 = vld [vmem:[%s12938_s14 + $0x530] sm:$0xf]  ;;  %v585_v39 = vld [vmem:[%s12938_s14 + $0x538] sm:$0xf] }
  0x85   : > { %582 = vst [vmem:[%s12943_s15 + $0x294] sm:$0xf] %v581_v37  ;;  %584 = vst [vmem:[%s12943_s15 + $0x298] sm:$0xf] %v583_v38  ;;  %v587_v40 = vld [vmem:[%s12938_s14 + $0x540] sm:$0xf] }
  0x86   : > { %586 = vst [vmem:[%s12943_s15 + $0x29c] sm:$0xf] %v585_v39  ;;  %v589_v41 = vld [vmem:[%s12938_s14 + $0x548] sm:$0xf]  ;;  %v591_v42 = vld [vmem:[%s12938_s14 + $0x550] sm:$0xf] }
  0x87   : > { %588 = vst [vmem:[%s12943_s15 + $0x2a0] sm:$0xf] %v587_v40  ;;  %590 = vst [vmem:[%s12943_s15 + $0x2a4] sm:$0xf] %v589_v41  ;;  %v593_v43 = vld [vmem:[%s12938_s14 + $0x558] sm:$0xf] }
  0x88   : > { %592 = vst [vmem:[%s12943_s15 + $0x2a8] sm:$0xf] %v591_v42  ;;  %v595_v44 = vld [vmem:[%s12938_s14 + $0x560] sm:$0xf]  ;;  %v597_v45 = vld [vmem:[%s12938_s14 + $0x568] sm:$0xf] }
  0x89   : > { %594 = vst [vmem:[%s12943_s15 + $0x2ac] sm:$0xf] %v593_v43  ;;  %596 = vst [vmem:[%s12943_s15 + $0x2b0] sm:$0xf] %v595_v44  ;;  %v599_v46 = vld [vmem:[%s12938_s14 + $0x570] sm:$0xf] }
  0x8a   : > { %598 = vst [vmem:[%s12943_s15 + $0x2b4] sm:$0xf] %v597_v45  ;;  %v601_v47 = vld [vmem:[%s12938_s14 + $0x578] sm:$0xf]  ;;  %v603_v48 = vld [vmem:[%s12938_s14 + $0x580] sm:$0xf] }
  0x8b   : > { %600 = vst [vmem:[%s12943_s15 + $0x2b8] sm:$0xf] %v599_v46  ;;  %602 = vst [vmem:[%s12943_s15 + $0x2bc] sm:$0xf] %v601_v47  ;;  %v605_v49 = vld [vmem:[%s12938_s14 + $0x588] sm:$0xf] }
  0x8c   : > { %604 = vst [vmem:[%s12943_s15 + $0x2c0] sm:$0xf] %v603_v48  ;;  %v607_v50 = vld [vmem:[%s12938_s14 + $0x590] sm:$0xf]  ;;  %v609_v51 = vld [vmem:[%s12938_s14 + $0x598] sm:$0xf] }
  0x8d   : > { %606 = vst [vmem:[%s12943_s15 + $0x2c4] sm:$0xf] %v605_v49  ;;  %608 = vst [vmem:[%s12943_s15 + $0x2c8] sm:$0xf] %v607_v50  ;;  %v611_v52 = vld [vmem:[%s12938_s14 + $0x5a0] sm:$0xf] }
  0x8e   : > { %610 = vst [vmem:[%s12943_s15 + $0x2cc] sm:$0xf] %v609_v51  ;;  %v613_v53 = vld [vmem:[%s12938_s14 + $0x5a8] sm:$0xf]  ;;  %v615_v54 = vld [vmem:[%s12938_s14 + $0x5b0] sm:$0xf] }
  0x8f   : > { %612 = vst [vmem:[%s12943_s15 + $0x2d0] sm:$0xf] %v611_v52  ;;  %614 = vst [vmem:[%s12943_s15 + $0x2d4] sm:$0xf] %v613_v53  ;;  %v617_v55 = vld [vmem:[%s12938_s14 + $0x5b8] sm:$0xf] }
  0x90   : > { %616 = vst [vmem:[%s12943_s15 + $0x2d8] sm:$0xf] %v615_v54  ;;  %v619_v56 = vld [vmem:[%s12938_s14 + $0x5c0] sm:$0xf]  ;;  %v621_v57 = vld [vmem:[%s12938_s14 + $0x5c8] sm:$0xf] }
  0x91   : > { %618 = vst [vmem:[%s12943_s15 + $0x2dc] sm:$0xf] %v617_v55  ;;  %620 = vst [vmem:[%s12943_s15 + $0x2e0] sm:$0xf] %v619_v56  ;;  %v623_v58 = vld [vmem:[%s12938_s14 + $0x5d0] sm:$0xf] }
  0x92   : > { %622 = vst [vmem:[%s12943_s15 + $0x2e4] sm:$0xf] %v621_v57  ;;  %v625_v59 = vld [vmem:[%s12938_s14 + $0x5d8] sm:$0xf]  ;;  %v627_v60 = vld [vmem:[%s12938_s14 + $0x5e0] sm:$0xf] }
  0x93   : > { %624 = vst [vmem:[%s12943_s15 + $0x2e8] sm:$0xf] %v623_v58  ;;  %626 = vst [vmem:[%s12943_s15 + $0x2ec] sm:$0xf] %v625_v59  ;;  %v629_v61 = vld [vmem:[%s12938_s14 + $0x5e8] sm:$0xf] }
  0x94   : > { %628 = vst [vmem:[%s12943_s15 + $0x2f0] sm:$0xf] %v627_v60  ;;  %v631_v62 = vld [vmem:[%s12938_s14 + $0x5f0] sm:$0xf]  ;;  %v633_v63 = vld [vmem:[%s12938_s14 + $0x5f8] sm:$0xf] }
  0x95   : > { %630 = vst [vmem:[%s12943_s15 + $0x2f4] sm:$0xf] %v629_v61  ;;  %632 = vst [vmem:[%s12943_s15 + $0x2f8] sm:$0xf] %v631_v62  ;;  %v635_v0 = vld [vmem:[%s12938_s14 + $0x600] sm:$0xf] }
  0x96   : > { %634 = vst [vmem:[%s12943_s15 + $0x2fc] sm:$0xf] %v633_v63  ;;  %v637_v1 = vld [vmem:[%s12938_s14 + $0x608] sm:$0xf]  ;;  %v639_v2 = vld [vmem:[%s12938_s14 + $0x610] sm:$0xf] }
  0x97   : > { %636 = vst [vmem:[%s12943_s15 + $0x300] sm:$0xf] %v635_v0  ;;  %638 = vst [vmem:[%s12943_s15 + $0x304] sm:$0xf] %v637_v1  ;;  %v641_v3 = vld [vmem:[%s12938_s14 + $0x618] sm:$0xf] }
  0x98   : > { %640 = vst [vmem:[%s12943_s15 + $0x308] sm:$0xf] %v639_v2  ;;  %v643_v4 = vld [vmem:[%s12938_s14 + $0x620] sm:$0xf]  ;;  %v645_v5 = vld [vmem:[%s12938_s14 + $0x628] sm:$0xf] }
  0x99   : > { %642 = vst [vmem:[%s12943_s15 + $0x30c] sm:$0xf] %v641_v3  ;;  %644 = vst [vmem:[%s12943_s15 + $0x310] sm:$0xf] %v643_v4  ;;  %v647_v6 = vld [vmem:[%s12938_s14 + $0x630] sm:$0xf] }
  0x9a   : > { %646 = vst [vmem:[%s12943_s15 + $0x314] sm:$0xf] %v645_v5  ;;  %v649_v7 = vld [vmem:[%s12938_s14 + $0x638] sm:$0xf]  ;;  %v651_v8 = vld [vmem:[%s12938_s14 + $0x640] sm:$0xf] }
  0x9b   : > { %648 = vst [vmem:[%s12943_s15 + $0x318] sm:$0xf] %v647_v6  ;;  %650 = vst [vmem:[%s12943_s15 + $0x31c] sm:$0xf] %v649_v7  ;;  %v653_v9 = vld [vmem:[%s12938_s14 + $0x648] sm:$0xf] }
  0x9c   : > { %652 = vst [vmem:[%s12943_s15 + $0x320] sm:$0xf] %v651_v8  ;;  %v655_v10 = vld [vmem:[%s12938_s14 + $0x650] sm:$0xf]  ;;  %v657_v11 = vld [vmem:[%s12938_s14 + $0x658] sm:$0xf] }
  0x9d   : > { %654 = vst [vmem:[%s12943_s15 + $0x324] sm:$0xf] %v653_v9  ;;  %656 = vst [vmem:[%s12943_s15 + $0x328] sm:$0xf] %v655_v10  ;;  %v659_v12 = vld [vmem:[%s12938_s14 + $0x660] sm:$0xf] }
  0x9e   : > { %658 = vst [vmem:[%s12943_s15 + $0x32c] sm:$0xf] %v657_v11  ;;  %v661_v13 = vld [vmem:[%s12938_s14 + $0x668] sm:$0xf]  ;;  %v663_v14 = vld [vmem:[%s12938_s14 + $0x670] sm:$0xf] }
  0x9f   : > { %660 = vst [vmem:[%s12943_s15 + $0x330] sm:$0xf] %v659_v12  ;;  %662 = vst [vmem:[%s12943_s15 + $0x334] sm:$0xf] %v661_v13  ;;  %v665_v15 = vld [vmem:[%s12938_s14 + $0x678] sm:$0xf] }
  0xa0   : > { %664 = vst [vmem:[%s12943_s15 + $0x338] sm:$0xf] %v663_v14  ;;  %v667_v16 = vld [vmem:[%s12938_s14 + $0x680] sm:$0xf]  ;;  %v669_v17 = vld [vmem:[%s12938_s14 + $0x688] sm:$0xf] }
  0xa1   : > { %666 = vst [vmem:[%s12943_s15 + $0x33c] sm:$0xf] %v665_v15  ;;  %668 = vst [vmem:[%s12943_s15 + $0x340] sm:$0xf] %v667_v16  ;;  %v671_v18 = vld [vmem:[%s12938_s14 + $0x690] sm:$0xf] }
  0xa2   : > { %670 = vst [vmem:[%s12943_s15 + $0x344] sm:$0xf] %v669_v17  ;;  %v673_v19 = vld [vmem:[%s12938_s14 + $0x698] sm:$0xf]  ;;  %v675_v20 = vld [vmem:[%s12938_s14 + $0x6a0] sm:$0xf] }
  0xa3   : > { %672 = vst [vmem:[%s12943_s15 + $0x348] sm:$0xf] %v671_v18  ;;  %674 = vst [vmem:[%s12943_s15 + $0x34c] sm:$0xf] %v673_v19  ;;  %v677_v21 = vld [vmem:[%s12938_s14 + $0x6a8] sm:$0xf] }
  0xa4   : > { %676 = vst [vmem:[%s12943_s15 + $0x350] sm:$0xf] %v675_v20  ;;  %v679_v22 = vld [vmem:[%s12938_s14 + $0x6b0] sm:$0xf]  ;;  %v681_v23 = vld [vmem:[%s12938_s14 + $0x6b8] sm:$0xf] }
  0xa5   : > { %678 = vst [vmem:[%s12943_s15 + $0x354] sm:$0xf] %v677_v21  ;;  %680 = vst [vmem:[%s12943_s15 + $0x358] sm:$0xf] %v679_v22  ;;  %v683_v24 = vld [vmem:[%s12938_s14 + $0x6c0] sm:$0xf] }
  0xa6   : > { %682 = vst [vmem:[%s12943_s15 + $0x35c] sm:$0xf] %v681_v23  ;;  %v685_v25 = vld [vmem:[%s12938_s14 + $0x6c8] sm:$0xf]  ;;  %v687_v26 = vld [vmem:[%s12938_s14 + $0x6d0] sm:$0xf] }
  0xa7   : > { %684 = vst [vmem:[%s12943_s15 + $0x360] sm:$0xf] %v683_v24  ;;  %686 = vst [vmem:[%s12943_s15 + $0x364] sm:$0xf] %v685_v25  ;;  %v689_v27 = vld [vmem:[%s12938_s14 + $0x6d8] sm:$0xf] }
  0xa8   : > { %688 = vst [vmem:[%s12943_s15 + $0x368] sm:$0xf] %v687_v26  ;;  %v691_v28 = vld [vmem:[%s12938_s14 + $0x6e0] sm:$0xf]  ;;  %v693_v29 = vld [vmem:[%s12938_s14 + $0x6e8] sm:$0xf] }
  0xa9   : > { %690 = vst [vmem:[%s12943_s15 + $0x36c] sm:$0xf] %v689_v27  ;;  %692 = vst [vmem:[%s12943_s15 + $0x370] sm:$0xf] %v691_v28  ;;  %v695_v30 = vld [vmem:[%s12938_s14 + $0x6f0] sm:$0xf] }
  0xaa   : > { %694 = vst [vmem:[%s12943_s15 + $0x374] sm:$0xf] %v693_v29  ;;  %v697_v31 = vld [vmem:[%s12938_s14 + $0x6f8] sm:$0xf]  ;;  %v699_v32 = vld [vmem:[%s12938_s14 + $0x700] sm:$0xf] }
  0xab   : > { %696 = vst [vmem:[%s12943_s15 + $0x378] sm:$0xf] %v695_v30  ;;  %698 = vst [vmem:[%s12943_s15 + $0x37c] sm:$0xf] %v697_v31  ;;  %v701_v33 = vld [vmem:[%s12938_s14 + $0x708] sm:$0xf] }
  0xac   : > { %700 = vst [vmem:[%s12943_s15 + $0x380] sm:$0xf] %v699_v32  ;;  %v703_v34 = vld [vmem:[%s12938_s14 + $0x710] sm:$0xf]  ;;  %v705_v35 = vld [vmem:[%s12938_s14 + $0x718] sm:$0xf] }
  0xad   : > { %702 = vst [vmem:[%s12943_s15 + $0x384] sm:$0xf] %v701_v33  ;;  %704 = vst [vmem:[%s12943_s15 + $0x388] sm:$0xf] %v703_v34  ;;  %v707_v36 = vld [vmem:[%s12938_s14 + $0x720] sm:$0xf] }
  0xae   : > { %706 = vst [vmem:[%s12943_s15 + $0x38c] sm:$0xf] %v705_v35  ;;  %v709_v37 = vld [vmem:[%s12938_s14 + $0x728] sm:$0xf]  ;;  %v711_v38 = vld [vmem:[%s12938_s14 + $0x730] sm:$0xf] }
  0xaf   : > { %708 = vst [vmem:[%s12943_s15 + $0x390] sm:$0xf] %v707_v36  ;;  %710 = vst [vmem:[%s12943_s15 + $0x394] sm:$0xf] %v709_v37  ;;  %v713_v39 = vld [vmem:[%s12938_s14 + $0x738] sm:$0xf] }
  0xb0   : > { %712 = vst [vmem:[%s12943_s15 + $0x398] sm:$0xf] %v711_v38  ;;  %v715_v40 = vld [vmem:[%s12938_s14 + $0x740] sm:$0xf]  ;;  %v717_v41 = vld [vmem:[%s12938_s14 + $0x748] sm:$0xf] }
  0xb1   : > { %714 = vst [vmem:[%s12943_s15 + $0x39c] sm:$0xf] %v713_v39  ;;  %716 = vst [vmem:[%s12943_s15 + $0x3a0] sm:$0xf] %v715_v40  ;;  %v719_v42 = vld [vmem:[%s12938_s14 + $0x750] sm:$0xf] }
  0xb2   : > { %718 = vst [vmem:[%s12943_s15 + $0x3a4] sm:$0xf] %v717_v41  ;;  %v721_v43 = vld [vmem:[%s12938_s14 + $0x758] sm:$0xf]  ;;  %v723_v44 = vld [vmem:[%s12938_s14 + $0x760] sm:$0xf] }
  0xb3   : > { %720 = vst [vmem:[%s12943_s15 + $0x3a8] sm:$0xf] %v719_v42  ;;  %722 = vst [vmem:[%s12943_s15 + $0x3ac] sm:$0xf] %v721_v43  ;;  %v725_v45 = vld [vmem:[%s12938_s14 + $0x768] sm:$0xf] }
  0xb4   : > { %724 = vst [vmem:[%s12943_s15 + $0x3b0] sm:$0xf] %v723_v44  ;;  %v727_v46 = vld [vmem:[%s12938_s14 + $0x770] sm:$0xf]  ;;  %v729_v47 = vld [vmem:[%s12938_s14 + $0x778] sm:$0xf] }
  0xb5   : > { %726 = vst [vmem:[%s12943_s15 + $0x3b4] sm:$0xf] %v725_v45  ;;  %728 = vst [vmem:[%s12943_s15 + $0x3b8] sm:$0xf] %v727_v46  ;;  %v731_v48 = vld [vmem:[%s12938_s14 + $0x780] sm:$0xf] }
  0xb6   : > { %730 = vst [vmem:[%s12943_s15 + $0x3bc] sm:$0xf] %v729_v47  ;;  %v733_v49 = vld [vmem:[%s12938_s14 + $0x788] sm:$0xf]  ;;  %v735_v50 = vld [vmem:[%s12938_s14 + $0x790] sm:$0xf] }
  0xb7   : > { %732 = vst [vmem:[%s12943_s15 + $0x3c0] sm:$0xf] %v731_v48  ;;  %734 = vst [vmem:[%s12943_s15 + $0x3c4] sm:$0xf] %v733_v49  ;;  %v737_v51 = vld [vmem:[%s12938_s14 + $0x798] sm:$0xf] }
  0xb8   : > { %736 = vst [vmem:[%s12943_s15 + $0x3c8] sm:$0xf] %v735_v50  ;;  %v739_v52 = vld [vmem:[%s12938_s14 + $0x7a0] sm:$0xf]  ;;  %v741_v53 = vld [vmem:[%s12938_s14 + $0x7a8] sm:$0xf] }
  0xb9   : > { %738 = vst [vmem:[%s12943_s15 + $0x3cc] sm:$0xf] %v737_v51  ;;  %740 = vst [vmem:[%s12943_s15 + $0x3d0] sm:$0xf] %v739_v52  ;;  %v743_v54 = vld [vmem:[%s12938_s14 + $0x7b0] sm:$0xf] }
  0xba   : > { %742 = vst [vmem:[%s12943_s15 + $0x3d4] sm:$0xf] %v741_v53  ;;  %v745_v55 = vld [vmem:[%s12938_s14 + $0x7b8] sm:$0xf]  ;;  %v747_v56 = vld [vmem:[%s12938_s14 + $0x7c0] sm:$0xf] }
  0xbb   : > { %744 = vst [vmem:[%s12943_s15 + $0x3d8] sm:$0xf] %v743_v54  ;;  %746 = vst [vmem:[%s12943_s15 + $0x3dc] sm:$0xf] %v745_v55  ;;  %v749_v57 = vld [vmem:[%s12938_s14 + $0x7c8] sm:$0xf] }
  0xbc   : > { %748 = vst [vmem:[%s12943_s15 + $0x3e0] sm:$0xf] %v747_v56  ;;  %v751_v58 = vld [vmem:[%s12938_s14 + $0x7d0] sm:$0xf]  ;;  %v753_v59 = vld [vmem:[%s12938_s14 + $0x7d8] sm:$0xf] }
  0xbd   : > { %750 = vst [vmem:[%s12943_s15 + $0x3e4] sm:$0xf] %v749_v57  ;;  %752 = vst [vmem:[%s12943_s15 + $0x3e8] sm:$0xf] %v751_v58  ;;  %v755_v60 = vld [vmem:[%s12938_s14 + $0x7e0] sm:$0xf] }
  0xbe   : > { %754 = vst [vmem:[%s12943_s15 + $0x3ec] sm:$0xf] %v753_v59  ;;  %v757_v61 = vld [vmem:[%s12938_s14 + $0x7e8] sm:$0xf]  ;;  %v759_v62 = vld [vmem:[%s12938_s14 + $0x7f0] sm:$0xf] }
  0xbf   : > { %756 = vst [vmem:[%s12943_s15 + $0x3f0] sm:$0xf] %v755_v60  ;;  %758 = vst [vmem:[%s12943_s15 + $0x3f4] sm:$0xf] %v757_v61  ;;  %v761_v63 = vld [vmem:[%s12938_s14 + $0x7f8] sm:$0xf] }
  0xc0   : > { %760 = vst [vmem:[%s12943_s15 + $0x3f8] sm:$0xf] %v759_v62  ;;  %v763_v0 = vld [vmem:[%s12938_s14 + $0x800] sm:$0xf]  ;;  %v765_v1 = vld [vmem:[%s12938_s14 + $0x808] sm:$0xf] }
  0xc1   : > { %762 = vst [vmem:[%s12943_s15 + $0x3fc] sm:$0xf] %v761_v63  ;;  %764 = vst [vmem:[%s12943_s15 + $0x400] sm:$0xf] %v763_v0  ;;  %v767_v2 = vld [vmem:[%s12938_s14 + $0x810] sm:$0xf] }
  0xc2   : > { %766 = vst [vmem:[%s12943_s15 + $0x404] sm:$0xf] %v765_v1  ;;  %v769_v3 = vld [vmem:[%s12938_s14 + $0x818] sm:$0xf]  ;;  %v771_v4 = vld [vmem:[%s12938_s14 + $0x820] sm:$0xf] }
  0xc3   : > { %768 = vst [vmem:[%s12943_s15 + $0x408] sm:$0xf] %v767_v2  ;;  %770 = vst [vmem:[%s12943_s15 + $0x40c] sm:$0xf] %v769_v3  ;;  %v773_v5 = vld [vmem:[%s12938_s14 + $0x828] sm:$0xf] }
  0xc4   : > { %772 = vst [vmem:[%s12943_s15 + $0x410] sm:$0xf] %v771_v4  ;;  %v775_v6 = vld [vmem:[%s12938_s14 + $0x830] sm:$0xf]  ;;  %v777_v7 = vld [vmem:[%s12938_s14 + $0x838] sm:$0xf] }
  0xc5   : > { %774 = vst [vmem:[%s12943_s15 + $0x414] sm:$0xf] %v773_v5  ;;  %776 = vst [vmem:[%s12943_s15 + $0x418] sm:$0xf] %v775_v6  ;;  %v779_v8 = vld [vmem:[%s12938_s14 + $0x840] sm:$0xf] }
  0xc6   : > { %778 = vst [vmem:[%s12943_s15 + $0x41c] sm:$0xf] %v777_v7  ;;  %v781_v9 = vld [vmem:[%s12938_s14 + $0x848] sm:$0xf]  ;;  %v783_v10 = vld [vmem:[%s12938_s14 + $0x850] sm:$0xf] }
  0xc7   : > { %780 = vst [vmem:[%s12943_s15 + $0x420] sm:$0xf] %v779_v8  ;;  %782 = vst [vmem:[%s12943_s15 + $0x424] sm:$0xf] %v781_v9  ;;  %v785_v11 = vld [vmem:[%s12938_s14 + $0x858] sm:$0xf] }
  0xc8   : > { %784 = vst [vmem:[%s12943_s15 + $0x428] sm:$0xf] %v783_v10  ;;  %v787_v12 = vld [vmem:[%s12938_s14 + $0x860] sm:$0xf]  ;;  %v789_v13 = vld [vmem:[%s12938_s14 + $0x868] sm:$0xf] }
  0xc9   : > { %786 = vst [vmem:[%s12943_s15 + $0x42c] sm:$0xf] %v785_v11  ;;  %788 = vst [vmem:[%s12943_s15 + $0x430] sm:$0xf] %v787_v12  ;;  %v791_v14 = vld [vmem:[%s12938_s14 + $0x870] sm:$0xf] }
  0xca   : > { %790 = vst [vmem:[%s12943_s15 + $0x434] sm:$0xf] %v789_v13  ;;  %v793_v15 = vld [vmem:[%s12938_s14 + $0x878] sm:$0xf]  ;;  %v795_v16 = vld [vmem:[%s12938_s14 + $0x880] sm:$0xf] }
  0xcb   : > { %792 = vst [vmem:[%s12943_s15 + $0x438] sm:$0xf] %v791_v14  ;;  %794 = vst [vmem:[%s12943_s15 + $0x43c] sm:$0xf] %v793_v15  ;;  %v797_v17 = vld [vmem:[%s12938_s14 + $0x888] sm:$0xf] }
  0xcc   : > { %796 = vst [vmem:[%s12943_s15 + $0x440] sm:$0xf] %v795_v16  ;;  %v799_v18 = vld [vmem:[%s12938_s14 + $0x890] sm:$0xf]  ;;  %v801_v19 = vld [vmem:[%s12938_s14 + $0x898] sm:$0xf] }
  0xcd   : > { %798 = vst [vmem:[%s12943_s15 + $0x444] sm:$0xf] %v797_v17  ;;  %800 = vst [vmem:[%s12943_s15 + $0x448] sm:$0xf] %v799_v18  ;;  %v803_v20 = vld [vmem:[%s12938_s14 + $0x8a0] sm:$0xf] }
  0xce   : > { %802 = vst [vmem:[%s12943_s15 + $0x44c] sm:$0xf] %v801_v19  ;;  %v805_v21 = vld [vmem:[%s12938_s14 + $0x8a8] sm:$0xf]  ;;  %v807_v22 = vld [vmem:[%s12938_s14 + $0x8b0] sm:$0xf] }
  0xcf   : > { %804 = vst [vmem:[%s12943_s15 + $0x450] sm:$0xf] %v803_v20  ;;  %806 = vst [vmem:[%s12943_s15 + $0x454] sm:$0xf] %v805_v21  ;;  %v809_v23 = vld [vmem:[%s12938_s14 + $0x8b8] sm:$0xf] }
  0xd0   : > { %808 = vst [vmem:[%s12943_s15 + $0x458] sm:$0xf] %v807_v22  ;;  %v811_v24 = vld [vmem:[%s12938_s14 + $0x8c0] sm:$0xf]  ;;  %v813_v25 = vld [vmem:[%s12938_s14 + $0x8c8] sm:$0xf] }
  0xd1   : > { %810 = vst [vmem:[%s12943_s15 + $0x45c] sm:$0xf] %v809_v23  ;;  %812 = vst [vmem:[%s12943_s15 + $0x460] sm:$0xf] %v811_v24  ;;  %v815_v26 = vld [vmem:[%s12938_s14 + $0x8d0] sm:$0xf] }
  0xd2   : > { %814 = vst [vmem:[%s12943_s15 + $0x464] sm:$0xf] %v813_v25  ;;  %v817_v27 = vld [vmem:[%s12938_s14 + $0x8d8] sm:$0xf]  ;;  %v819_v28 = vld [vmem:[%s12938_s14 + $0x8e0] sm:$0xf] }
  0xd3   : > { %816 = vst [vmem:[%s12943_s15 + $0x468] sm:$0xf] %v815_v26  ;;  %818 = vst [vmem:[%s12943_s15 + $0x46c] sm:$0xf] %v817_v27  ;;  %v821_v29 = vld [vmem:[%s12938_s14 + $0x8e8] sm:$0xf] }
  0xd4   : > { %820 = vst [vmem:[%s12943_s15 + $0x470] sm:$0xf] %v819_v28  ;;  %v823_v30 = vld [vmem:[%s12938_s14 + $0x8f0] sm:$0xf]  ;;  %v825_v31 = vld [vmem:[%s12938_s14 + $0x8f8] sm:$0xf] }
  0xd5   : > { %822 = vst [vmem:[%s12943_s15 + $0x474] sm:$0xf] %v821_v29  ;;  %824 = vst [vmem:[%s12943_s15 + $0x478] sm:$0xf] %v823_v30  ;;  %v827_v32 = vld [vmem:[%s12938_s14 + $0x900] sm:$0xf] }
  0xd6   : > { %826 = vst [vmem:[%s12943_s15 + $0x47c] sm:$0xf] %v825_v31  ;;  %v829_v33 = vld [vmem:[%s12938_s14 + $0x908] sm:$0xf]  ;;  %v831_v34 = vld [vmem:[%s12938_s14 + $0x910] sm:$0xf] }
  0xd7   : > { %828 = vst [vmem:[%s12943_s15 + $0x480] sm:$0xf] %v827_v32  ;;  %830 = vst [vmem:[%s12943_s15 + $0x484] sm:$0xf] %v829_v33  ;;  %v833_v35 = vld [vmem:[%s12938_s14 + $0x918] sm:$0xf] }
  0xd8   : > { %832 = vst [vmem:[%s12943_s15 + $0x488] sm:$0xf] %v831_v34  ;;  %v835_v36 = vld [vmem:[%s12938_s14 + $0x920] sm:$0xf]  ;;  %v837_v37 = vld [vmem:[%s12938_s14 + $0x928] sm:$0xf] }
  0xd9   : > { %834 = vst [vmem:[%s12943_s15 + $0x48c] sm:$0xf] %v833_v35  ;;  %836 = vst [vmem:[%s12943_s15 + $0x490] sm:$0xf] %v835_v36  ;;  %v839_v38 = vld [vmem:[%s12938_s14 + $0x930] sm:$0xf] }
  0xda   : > { %838 = vst [vmem:[%s12943_s15 + $0x494] sm:$0xf] %v837_v37  ;;  %v841_v39 = vld [vmem:[%s12938_s14 + $0x938] sm:$0xf]  ;;  %v843_v40 = vld [vmem:[%s12938_s14 + $0x940] sm:$0xf] }
  0xdb   : > { %840 = vst [vmem:[%s12943_s15 + $0x498] sm:$0xf] %v839_v38  ;;  %842 = vst [vmem:[%s12943_s15 + $0x49c] sm:$0xf] %v841_v39  ;;  %v845_v41 = vld [vmem:[%s12938_s14 + $0x948] sm:$0xf] }
  0xdc   : > { %844 = vst [vmem:[%s12943_s15 + $0x4a0] sm:$0xf] %v843_v40  ;;  %v847_v42 = vld [vmem:[%s12938_s14 + $0x950] sm:$0xf]  ;;  %v849_v43 = vld [vmem:[%s12938_s14 + $0x958] sm:$0xf] }
  0xdd   : > { %846 = vst [vmem:[%s12943_s15 + $0x4a4] sm:$0xf] %v845_v41  ;;  %848 = vst [vmem:[%s12943_s15 + $0x4a8] sm:$0xf] %v847_v42  ;;  %v851_v44 = vld [vmem:[%s12938_s14 + $0x960] sm:$0xf] }
  0xde   : > { %850 = vst [vmem:[%s12943_s15 + $0x4ac] sm:$0xf] %v849_v43  ;;  %v853_v45 = vld [vmem:[%s12938_s14 + $0x968] sm:$0xf]  ;;  %v855_v46 = vld [vmem:[%s12938_s14 + $0x970] sm:$0xf] }
  0xdf   : > { %852 = vst [vmem:[%s12943_s15 + $0x4b0] sm:$0xf] %v851_v44  ;;  %854 = vst [vmem:[%s12943_s15 + $0x4b4] sm:$0xf] %v853_v45  ;;  %v857_v47 = vld [vmem:[%s12938_s14 + $0x978] sm:$0xf] }
  0xe0   : > { %856 = vst [vmem:[%s12943_s15 + $0x4b8] sm:$0xf] %v855_v46  ;;  %v859_v48 = vld [vmem:[%s12938_s14 + $0x980] sm:$0xf]  ;;  %v861_v49 = vld [vmem:[%s12938_s14 + $0x988] sm:$0xf] }
  0xe1   : > { %858 = vst [vmem:[%s12943_s15 + $0x4bc] sm:$0xf] %v857_v47  ;;  %860 = vst [vmem:[%s12943_s15 + $0x4c0] sm:$0xf] %v859_v48  ;;  %v863_v50 = vld [vmem:[%s12938_s14 + $0x990] sm:$0xf] }
  0xe2   : > { %862 = vst [vmem:[%s12943_s15 + $0x4c4] sm:$0xf] %v861_v49  ;;  %v865_v51 = vld [vmem:[%s12938_s14 + $0x998] sm:$0xf]  ;;  %v867_v52 = vld [vmem:[%s12938_s14 + $0x9a0] sm:$0xf] }
  0xe3   : > { %864 = vst [vmem:[%s12943_s15 + $0x4c8] sm:$0xf] %v863_v50  ;;  %866 = vst [vmem:[%s12943_s15 + $0x4cc] sm:$0xf] %v865_v51  ;;  %v869_v53 = vld [vmem:[%s12938_s14 + $0x9a8] sm:$0xf] }
  0xe4   : > { %868 = vst [vmem:[%s12943_s15 + $0x4d0] sm:$0xf] %v867_v52  ;;  %v871_v54 = vld [vmem:[%s12938_s14 + $0x9b0] sm:$0xf]  ;;  %v873_v55 = vld [vmem:[%s12938_s14 + $0x9b8] sm:$0xf] }
  0xe5   : > { %870 = vst [vmem:[%s12943_s15 + $0x4d4] sm:$0xf] %v869_v53  ;;  %872 = vst [vmem:[%s12943_s15 + $0x4d8] sm:$0xf] %v871_v54  ;;  %v875_v56 = vld [vmem:[%s12938_s14 + $0x9c0] sm:$0xf] }
  0xe6   : > { %874 = vst [vmem:[%s12943_s15 + $0x4dc] sm:$0xf] %v873_v55  ;;  %v877_v57 = vld [vmem:[%s12938_s14 + $0x9c8] sm:$0xf]  ;;  %v879_v58 = vld [vmem:[%s12938_s14 + $0x9d0] sm:$0xf] }
  0xe7   : > { %876 = vst [vmem:[%s12943_s15 + $0x4e0] sm:$0xf] %v875_v56  ;;  %878 = vst [vmem:[%s12943_s15 + $0x4e4] sm:$0xf] %v877_v57  ;;  %v881_v59 = vld [vmem:[%s12938_s14 + $0x9d8] sm:$0xf] }
  0xe8   : > { %880 = vst [vmem:[%s12943_s15 + $0x4e8] sm:$0xf] %v879_v58  ;;  %v883_v60 = vld [vmem:[%s12938_s14 + $0x9e0] sm:$0xf]  ;;  %v885_v61 = vld [vmem:[%s12938_s14 + $0x9e8] sm:$0xf] }
  0xe9   : > { %882 = vst [vmem:[%s12943_s15 + $0x4ec] sm:$0xf] %v881_v59  ;;  %884 = vst [vmem:[%s12943_s15 + $0x4f0] sm:$0xf] %v883_v60  ;;  %v887_v62 = vld [vmem:[%s12938_s14 + $0x9f0] sm:$0xf] }
  0xea   : > { %886 = vst [vmem:[%s12943_s15 + $0x4f4] sm:$0xf] %v885_v61  ;;  %v889_v63 = vld [vmem:[%s12938_s14 + $0x9f8] sm:$0xf]  ;;  %v891_v0 = vld [vmem:[%s12938_s14 + $0xa00] sm:$0xf] }
  0xeb   : > { %888 = vst [vmem:[%s12943_s15 + $0x4f8] sm:$0xf] %v887_v62  ;;  %890 = vst [vmem:[%s12943_s15 + $0x4fc] sm:$0xf] %v889_v63  ;;  %v893_v1 = vld [vmem:[%s12938_s14 + $0xa08] sm:$0xf] }
  0xec   : > { %892 = vst [vmem:[%s12943_s15 + $0x500] sm:$0xf] %v891_v0  ;;  %v895_v2 = vld [vmem:[%s12938_s14 + $0xa10] sm:$0xf]  ;;  %v897_v3 = vld [vmem:[%s12938_s14 + $0xa18] sm:$0xf] }
  0xed   : > { %894 = vst [vmem:[%s12943_s15 + $0x504] sm:$0xf] %v893_v1  ;;  %896 = vst [vmem:[%s12943_s15 + $0x508] sm:$0xf] %v895_v2  ;;  %v899_v4 = vld [vmem:[%s12938_s14 + $0xa20] sm:$0xf] }
  0xee   : > { %898 = vst [vmem:[%s12943_s15 + $0x50c] sm:$0xf] %v897_v3  ;;  %v901_v5 = vld [vmem:[%s12938_s14 + $0xa28] sm:$0xf]  ;;  %v903_v6 = vld [vmem:[%s12938_s14 + $0xa30] sm:$0xf] }
  0xef   : > { %900 = vst [vmem:[%s12943_s15 + $0x510] sm:$0xf] %v899_v4  ;;  %902 = vst [vmem:[%s12943_s15 + $0x514] sm:$0xf] %v901_v5  ;;  %v905_v7 = vld [vmem:[%s12938_s14 + $0xa38] sm:$0xf] }
  0xf0   : > { %904 = vst [vmem:[%s12943_s15 + $0x518] sm:$0xf] %v903_v6  ;;  %v907_v8 = vld [vmem:[%s12938_s14 + $0xa40] sm:$0xf]  ;;  %v909_v9 = vld [vmem:[%s12938_s14 + $0xa48] sm:$0xf] }
  0xf1   : > { %906 = vst [vmem:[%s12943_s15 + $0x51c] sm:$0xf] %v905_v7  ;;  %908 = vst [vmem:[%s12943_s15 + $0x520] sm:$0xf] %v907_v8  ;;  %v911_v10 = vld [vmem:[%s12938_s14 + $0xa50] sm:$0xf] }
  0xf2   : > { %910 = vst [vmem:[%s12943_s15 + $0x524] sm:$0xf] %v909_v9  ;;  %v913_v11 = vld [vmem:[%s12938_s14 + $0xa58] sm:$0xf]  ;;  %v915_v12 = vld [vmem:[%s12938_s14 + $0xa60] sm:$0xf] }
  0xf3   : > { %912 = vst [vmem:[%s12943_s15 + $0x528] sm:$0xf] %v911_v10  ;;  %914 = vst [vmem:[%s12943_s15 + $0x52c] sm:$0xf] %v913_v11  ;;  %v917_v13 = vld [vmem:[%s12938_s14 + $0xa68] sm:$0xf] }
  0xf4   : > { %916 = vst [vmem:[%s12943_s15 + $0x530] sm:$0xf] %v915_v12  ;;  %v919_v14 = vld [vmem:[%s12938_s14 + $0xa70] sm:$0xf]  ;;  %v921_v15 = vld [vmem:[%s12938_s14 + $0xa78] sm:$0xf] }
  0xf5   : > { %918 = vst [vmem:[%s12943_s15 + $0x534] sm:$0xf] %v917_v13  ;;  %920 = vst [vmem:[%s12943_s15 + $0x538] sm:$0xf] %v919_v14  ;;  %v923_v16 = vld [vmem:[%s12938_s14 + $0xa80] sm:$0xf] }
  0xf6   : > { %922 = vst [vmem:[%s12943_s15 + $0x53c] sm:$0xf] %v921_v15  ;;  %v925_v17 = vld [vmem:[%s12938_s14 + $0xa88] sm:$0xf]  ;;  %v927_v18 = vld [vmem:[%s12938_s14 + $0xa90] sm:$0xf] }
  0xf7   : > { %924 = vst [vmem:[%s12943_s15 + $0x540] sm:$0xf] %v923_v16  ;;  %926 = vst [vmem:[%s12943_s15 + $0x544] sm:$0xf] %v925_v17  ;;  %v929_v19 = vld [vmem:[%s12938_s14 + $0xa98] sm:$0xf] }
  0xf8   : > { %928 = vst [vmem:[%s12943_s15 + $0x548] sm:$0xf] %v927_v18  ;;  %v931_v20 = vld [vmem:[%s12938_s14 + $0xaa0] sm:$0xf]  ;;  %v933_v21 = vld [vmem:[%s12938_s14 + $0xaa8] sm:$0xf] }
  0xf9   : > { %930 = vst [vmem:[%s12943_s15 + $0x54c] sm:$0xf] %v929_v19  ;;  %932 = vst [vmem:[%s12943_s15 + $0x550] sm:$0xf] %v931_v20  ;;  %v935_v22 = vld [vmem:[%s12938_s14 + $0xab0] sm:$0xf] }
  0xfa   : > { %934 = vst [vmem:[%s12943_s15 + $0x554] sm:$0xf] %v933_v21  ;;  %v937_v23 = vld [vmem:[%s12938_s14 + $0xab8] sm:$0xf]  ;;  %v939_v24 = vld [vmem:[%s12938_s14 + $0xac0] sm:$0xf] }
  0xfb   : > { %936 = vst [vmem:[%s12943_s15 + $0x558] sm:$0xf] %v935_v22  ;;  %938 = vst [vmem:[%s12943_s15 + $0x55c] sm:$0xf] %v937_v23  ;;  %v941_v25 = vld [vmem:[%s12938_s14 + $0xac8] sm:$0xf] }
  0xfc   : > { %940 = vst [vmem:[%s12943_s15 + $0x560] sm:$0xf] %v939_v24  ;;  %v943_v26 = vld [vmem:[%s12938_s14 + $0xad0] sm:$0xf]  ;;  %v945_v27 = vld [vmem:[%s12938_s14 + $0xad8] sm:$0xf] }
  0xfd   : > { %942 = vst [vmem:[%s12943_s15 + $0x564] sm:$0xf] %v941_v25  ;;  %944 = vst [vmem:[%s12943_s15 + $0x568] sm:$0xf] %v943_v26  ;;  %v947_v28 = vld [vmem:[%s12938_s14 + $0xae0] sm:$0xf] }
  0xfe   : > { %946 = vst [vmem:[%s12943_s15 + $0x56c] sm:$0xf] %v945_v27  ;;  %v949_v29 = vld [vmem:[%s12938_s14 + $0xae8] sm:$0xf]  ;;  %v951_v30 = vld [vmem:[%s12938_s14 + $0xaf0] sm:$0xf] }
  0xff   : > { %948 = vst [vmem:[%s12943_s15 + $0x570] sm:$0xf] %v947_v28  ;;  %950 = vst [vmem:[%s12943_s15 + $0x574] sm:$0xf] %v949_v29  ;;  %v953_v31 = vld [vmem:[%s12938_s14 + $0xaf8] sm:$0xf] }
 0x100   : > { %952 = vst [vmem:[%s12943_s15 + $0x578] sm:$0xf] %v951_v30  ;;  %v955_v32 = vld [vmem:[%s12938_s14 + $0xb00] sm:$0xf]  ;;  %v957_v33 = vld [vmem:[%s12938_s14 + $0xb08] sm:$0xf] }
 0x101   : > { %954 = vst [vmem:[%s12943_s15 + $0x57c] sm:$0xf] %v953_v31  ;;  %956 = vst [vmem:[%s12943_s15 + $0x580] sm:$0xf] %v955_v32  ;;  %v959_v34 = vld [vmem:[%s12938_s14 + $0xb10] sm:$0xf] }
 0x102   : > { %958 = vst [vmem:[%s12943_s15 + $0x584] sm:$0xf] %v957_v33  ;;  %v961_v35 = vld [vmem:[%s12938_s14 + $0xb18] sm:$0xf]  ;;  %v963_v36 = vld [vmem:[%s12938_s14 + $0xb20] sm:$0xf] }
 0x103   : > { %960 = vst [vmem:[%s12943_s15 + $0x588] sm:$0xf] %v959_v34  ;;  %962 = vst [vmem:[%s12943_s15 + $0x58c] sm:$0xf] %v961_v35  ;;  %v965_v37 = vld [vmem:[%s12938_s14 + $0xb28] sm:$0xf] }
 0x104   : > { %964 = vst [vmem:[%s12943_s15 + $0x590] sm:$0xf] %v963_v36  ;;  %v967_v38 = vld [vmem:[%s12938_s14 + $0xb30] sm:$0xf]  ;;  %v969_v39 = vld [vmem:[%s12938_s14 + $0xb38] sm:$0xf] }
 0x105   : > { %966 = vst [vmem:[%s12943_s15 + $0x594] sm:$0xf] %v965_v37  ;;  %968 = vst [vmem:[%s12943_s15 + $0x598] sm:$0xf] %v967_v38  ;;  %v971_v40 = vld [vmem:[%s12938_s14 + $0xb40] sm:$0xf] }
 0x106   : > { %970 = vst [vmem:[%s12943_s15 + $0x59c] sm:$0xf] %v969_v39  ;;  %v973_v41 = vld [vmem:[%s12938_s14 + $0xb48] sm:$0xf]  ;;  %v975_v42 = vld [vmem:[%s12938_s14 + $0xb50] sm:$0xf] }
 0x107   : > { %972 = vst [vmem:[%s12943_s15 + $0x5a0] sm:$0xf] %v971_v40  ;;  %974 = vst [vmem:[%s12943_s15 + $0x5a4] sm:$0xf] %v973_v41  ;;  %v977_v43 = vld [vmem:[%s12938_s14 + $0xb58] sm:$0xf] }
 0x108   : > { %976 = vst [vmem:[%s12943_s15 + $0x5a8] sm:$0xf] %v975_v42  ;;  %v979_v44 = vld [vmem:[%s12938_s14 + $0xb60] sm:$0xf]  ;;  %v981_v45 = vld [vmem:[%s12938_s14 + $0xb68] sm:$0xf] }
 0x109   : > { %978 = vst [vmem:[%s12943_s15 + $0x5ac] sm:$0xf] %v977_v43  ;;  %980 = vst [vmem:[%s12943_s15 + $0x5b0] sm:$0xf] %v979_v44  ;;  %v983_v46 = vld [vmem:[%s12938_s14 + $0xb70] sm:$0xf] }
 0x10a   : > { %982 = vst [vmem:[%s12943_s15 + $0x5b4] sm:$0xf] %v981_v45  ;;  %v985_v47 = vld [vmem:[%s12938_s14 + $0xb78] sm:$0xf]  ;;  %v987_v48 = vld [vmem:[%s12938_s14 + $0xb80] sm:$0xf] }
 0x10b   : > { %984 = vst [vmem:[%s12943_s15 + $0x5b8] sm:$0xf] %v983_v46  ;;  %986 = vst [vmem:[%s12943_s15 + $0x5bc] sm:$0xf] %v985_v47  ;;  %v989_v49 = vld [vmem:[%s12938_s14 + $0xb88] sm:$0xf] }
 0x10c   : > { %988 = vst [vmem:[%s12943_s15 + $0x5c0] sm:$0xf] %v987_v48  ;;  %v991_v50 = vld [vmem:[%s12938_s14 + $0xb90] sm:$0xf]  ;;  %v993_v51 = vld [vmem:[%s12938_s14 + $0xb98] sm:$0xf] }
 0x10d   : > { %990 = vst [vmem:[%s12943_s15 + $0x5c4] sm:$0xf] %v989_v49  ;;  %992 = vst [vmem:[%s12943_s15 + $0x5c8] sm:$0xf] %v991_v50  ;;  %v995_v52 = vld [vmem:[%s12938_s14 + $0xba0] sm:$0xf] }
 0x10e   : > { %994 = vst [vmem:[%s12943_s15 + $0x5cc] sm:$0xf] %v993_v51  ;;  %v997_v53 = vld [vmem:[%s12938_s14 + $0xba8] sm:$0xf]  ;;  %v999_v54 = vld [vmem:[%s12938_s14 + $0xbb0] sm:$0xf] }
 0x10f   : > { %996 = vst [vmem:[%s12943_s15 + $0x5d0] sm:$0xf] %v995_v52  ;;  %998 = vst [vmem:[%s12943_s15 + $0x5d4] sm:$0xf] %v997_v53  ;;  %v1001_v55 = vld [vmem:[%s12938_s14 + $0xbb8] sm:$0xf] }
 0x110   : > { %1000 = vst [vmem:[%s12943_s15 + $0x5d8] sm:$0xf] %v999_v54  ;;  %v1003_v56 = vld [vmem:[%s12938_s14 + $0xbc0] sm:$0xf]  ;;  %v1005_v57 = vld [vmem:[%s12938_s14 + $0xbc8] sm:$0xf] }
 0x111   : > { %1002 = vst [vmem:[%s12943_s15 + $0x5dc] sm:$0xf] %v1001_v55  ;;  %1004 = vst [vmem:[%s12943_s15 + $0x5e0] sm:$0xf] %v1003_v56  ;;  %v1007_v58 = vld [vmem:[%s12938_s14 + $0xbd0] sm:$0xf] }
 0x112   : > { %1006 = vst [vmem:[%s12943_s15 + $0x5e4] sm:$0xf] %v1005_v57  ;;  %v1009_v59 = vld [vmem:[%s12938_s14 + $0xbd8] sm:$0xf]  ;;  %v1011_v60 = vld [vmem:[%s12938_s14 + $0xbe0] sm:$0xf] }
 0x113   : > { %1008 = vst [vmem:[%s12943_s15 + $0x5e8] sm:$0xf] %v1007_v58  ;;  %1010 = vst [vmem:[%s12943_s15 + $0x5ec] sm:$0xf] %v1009_v59  ;;  %v1013_v61 = vld [vmem:[%s12938_s14 + $0xbe8] sm:$0xf] }
 0x114   : > { %1012 = vst [vmem:[%s12943_s15 + $0x5f0] sm:$0xf] %v1011_v60  ;;  %v1015_v62 = vld [vmem:[%s12938_s14 + $0xbf0] sm:$0xf]  ;;  %v1017_v63 = vld [vmem:[%s12938_s14 + $0xbf8] sm:$0xf] }
 0x115   : > { %1014 = vst [vmem:[%s12943_s15 + $0x5f4] sm:$0xf] %v1013_v61  ;;  %1016 = vst [vmem:[%s12943_s15 + $0x5f8] sm:$0xf] %v1015_v62  ;;  %v1019_v0 = vld [vmem:[%s12938_s14 + $0xc00] sm:$0xf] }
 0x116   : > { %1018 = vst [vmem:[%s12943_s15 + $0x5fc] sm:$0xf] %v1017_v63  ;;  %v1021_v1 = vld [vmem:[%s12938_s14 + $0xc08] sm:$0xf]  ;;  %v1023_v2 = vld [vmem:[%s12938_s14 + $0xc10] sm:$0xf] }
 0x117   : > { %1020 = vst [vmem:[%s12943_s15 + $0x600] sm:$0xf] %v1019_v0  ;;  %1022 = vst [vmem:[%s12943_s15 + $0x604] sm:$0xf] %v1021_v1  ;;  %v1025_v3 = vld [vmem:[%s12938_s14 + $0xc18] sm:$0xf] }
 0x118   : > { %1024 = vst [vmem:[%s12943_s15 + $0x608] sm:$0xf] %v1023_v2  ;;  %v1027_v4 = vld [vmem:[%s12938_s14 + $0xc20] sm:$0xf]  ;;  %v1029_v5 = vld [vmem:[%s12938_s14 + $0xc28] sm:$0xf] }
 0x119   : > { %1026 = vst [vmem:[%s12943_s15 + $0x60c] sm:$0xf] %v1025_v3  ;;  %1028 = vst [vmem:[%s12943_s15 + $0x610] sm:$0xf] %v1027_v4  ;;  %v1031_v6 = vld [vmem:[%s12938_s14 + $0xc30] sm:$0xf] }
 0x11a   : > { %1030 = vst [vmem:[%s12943_s15 + $0x614] sm:$0xf] %v1029_v5  ;;  %v1033_v7 = vld [vmem:[%s12938_s14 + $0xc38] sm:$0xf]  ;;  %v1035_v8 = vld [vmem:[%s12938_s14 + $0xc40] sm:$0xf] }
 0x11b   : > { %1032 = vst [vmem:[%s12943_s15 + $0x618] sm:$0xf] %v1031_v6  ;;  %1034 = vst [vmem:[%s12943_s15 + $0x61c] sm:$0xf] %v1033_v7  ;;  %v1037_v9 = vld [vmem:[%s12938_s14 + $0xc48] sm:$0xf] }
 0x11c   : > { %1036 = vst [vmem:[%s12943_s15 + $0x620] sm:$0xf] %v1035_v8  ;;  %v1039_v10 = vld [vmem:[%s12938_s14 + $0xc50] sm:$0xf]  ;;  %v1041_v11 = vld [vmem:[%s12938_s14 + $0xc58] sm:$0xf] }
 0x11d   : > { %1038 = vst [vmem:[%s12943_s15 + $0x624] sm:$0xf] %v1037_v9  ;;  %1040 = vst [vmem:[%s12943_s15 + $0x628] sm:$0xf] %v1039_v10  ;;  %v1043_v12 = vld [vmem:[%s12938_s14 + $0xc60] sm:$0xf] }
 0x11e   : > { %1042 = vst [vmem:[%s12943_s15 + $0x62c] sm:$0xf] %v1041_v11  ;;  %v1045_v13 = vld [vmem:[%s12938_s14 + $0xc68] sm:$0xf]  ;;  %v1047_v14 = vld [vmem:[%s12938_s14 + $0xc70] sm:$0xf] }
 0x11f   : > { %1044 = vst [vmem:[%s12943_s15 + $0x630] sm:$0xf] %v1043_v12  ;;  %1046 = vst [vmem:[%s12943_s15 + $0x634] sm:$0xf] %v1045_v13  ;;  %v1049_v15 = vld [vmem:[%s12938_s14 + $0xc78] sm:$0xf] }
 0x120   : > { %1048 = vst [vmem:[%s12943_s15 + $0x638] sm:$0xf] %v1047_v14  ;;  %v1051_v16 = vld [vmem:[%s12938_s14 + $0xc80] sm:$0xf]  ;;  %v1053_v17 = vld [vmem:[%s12938_s14 + $0xc88] sm:$0xf] }
 0x121   : > { %1050 = vst [vmem:[%s12943_s15 + $0x63c] sm:$0xf] %v1049_v15  ;;  %1052 = vst [vmem:[%s12943_s15 + $0x640] sm:$0xf] %v1051_v16  ;;  %v1055_v18 = vld [vmem:[%s12938_s14 + $0xc90] sm:$0xf] }
 0x122   : > { %1054 = vst [vmem:[%s12943_s15 + $0x644] sm:$0xf] %v1053_v17  ;;  %v1057_v19 = vld [vmem:[%s12938_s14 + $0xc98] sm:$0xf]  ;;  %v1059_v20 = vld [vmem:[%s12938_s14 + $0xca0] sm:$0xf] }
 0x123   : > { %1056 = vst [vmem:[%s12943_s15 + $0x648] sm:$0xf] %v1055_v18  ;;  %1058 = vst [vmem:[%s12943_s15 + $0x64c] sm:$0xf] %v1057_v19  ;;  %v1061_v21 = vld [vmem:[%s12938_s14 + $0xca8] sm:$0xf] }
 0x124   : > { %1060 = vst [vmem:[%s12943_s15 + $0x650] sm:$0xf] %v1059_v20  ;;  %v1063_v22 = vld [vmem:[%s12938_s14 + $0xcb0] sm:$0xf]  ;;  %v1065_v23 = vld [vmem:[%s12938_s14 + $0xcb8] sm:$0xf] }
 0x125   : > { %1062 = vst [vmem:[%s12943_s15 + $0x654] sm:$0xf] %v1061_v21  ;;  %1064 = vst [vmem:[%s12943_s15 + $0x658] sm:$0xf] %v1063_v22  ;;  %v1067_v24 = vld [vmem:[%s12938_s14 + $0xcc0] sm:$0xf] }
 0x126   : > { %1066 = vst [vmem:[%s12943_s15 + $0x65c] sm:$0xf] %v1065_v23  ;;  %v1069_v25 = vld [vmem:[%s12938_s14 + $0xcc8] sm:$0xf]  ;;  %v1071_v26 = vld [vmem:[%s12938_s14 + $0xcd0] sm:$0xf] }
 0x127   : > { %1068 = vst [vmem:[%s12943_s15 + $0x660] sm:$0xf] %v1067_v24  ;;  %1070 = vst [vmem:[%s12943_s15 + $0x664] sm:$0xf] %v1069_v25  ;;  %v1073_v27 = vld [vmem:[%s12938_s14 + $0xcd8] sm:$0xf] }
 0x128   : > { %1072 = vst [vmem:[%s12943_s15 + $0x668] sm:$0xf] %v1071_v26  ;;  %v1075_v28 = vld [vmem:[%s12938_s14 + $0xce0] sm:$0xf]  ;;  %v1077_v29 = vld [vmem:[%s12938_s14 + $0xce8] sm:$0xf] }
 0x129   : > { %1074 = vst [vmem:[%s12943_s15 + $0x66c] sm:$0xf] %v1073_v27  ;;  %1076 = vst [vmem:[%s12943_s15 + $0x670] sm:$0xf] %v1075_v28  ;;  %v1079_v30 = vld [vmem:[%s12938_s14 + $0xcf0] sm:$0xf] }
 0x12a   : > { %1078 = vst [vmem:[%s12943_s15 + $0x674] sm:$0xf] %v1077_v29  ;;  %v1081_v31 = vld [vmem:[%s12938_s14 + $0xcf8] sm:$0xf]  ;;  %v1083_v32 = vld [vmem:[%s12938_s14 + $0xd00] sm:$0xf] }
 0x12b   : > { %1080 = vst [vmem:[%s12943_s15 + $0x678] sm:$0xf] %v1079_v30  ;;  %1082 = vst [vmem:[%s12943_s15 + $0x67c] sm:$0xf] %v1081_v31  ;;  %v1085_v33 = vld [vmem:[%s12938_s14 + $0xd08] sm:$0xf] }
 0x12c   : > { %1084 = vst [vmem:[%s12943_s15 + $0x680] sm:$0xf] %v1083_v32  ;;  %v1087_v34 = vld [vmem:[%s12938_s14 + $0xd10] sm:$0xf]  ;;  %v1089_v35 = vld [vmem:[%s12938_s14 + $0xd18] sm:$0xf] }
 0x12d   : > { %1086 = vst [vmem:[%s12943_s15 + $0x684] sm:$0xf] %v1085_v33  ;;  %1088 = vst [vmem:[%s12943_s15 + $0x688] sm:$0xf] %v1087_v34  ;;  %v1091_v36 = vld [vmem:[%s12938_s14 + $0xd20] sm:$0xf] }
 0x12e   : > { %1090 = vst [vmem:[%s12943_s15 + $0x68c] sm:$0xf] %v1089_v35  ;;  %v1093_v37 = vld [vmem:[%s12938_s14 + $0xd28] sm:$0xf]  ;;  %v1095_v38 = vld [vmem:[%s12938_s14 + $0xd30] sm:$0xf] }
 0x12f   : > { %1092 = vst [vmem:[%s12943_s15 + $0x690] sm:$0xf] %v1091_v36  ;;  %1094 = vst [vmem:[%s12943_s15 + $0x694] sm:$0xf] %v1093_v37  ;;  %v1097_v39 = vld [vmem:[%s12938_s14 + $0xd38] sm:$0xf] }
 0x130   : > { %1096 = vst [vmem:[%s12943_s15 + $0x698] sm:$0xf] %v1095_v38  ;;  %v1099_v40 = vld [vmem:[%s12938_s14 + $0xd40] sm:$0xf]  ;;  %v1101_v41 = vld [vmem:[%s12938_s14 + $0xd48] sm:$0xf] }
 0x131   : > { %1098 = vst [vmem:[%s12943_s15 + $0x69c] sm:$0xf] %v1097_v39  ;;  %1100 = vst [vmem:[%s12943_s15 + $0x6a0] sm:$0xf] %v1099_v40  ;;  %v1103_v42 = vld [vmem:[%s12938_s14 + $0xd50] sm:$0xf] }
 0x132   : > { %1102 = vst [vmem:[%s12943_s15 + $0x6a4] sm:$0xf] %v1101_v41  ;;  %v1105_v43 = vld [vmem:[%s12938_s14 + $0xd58] sm:$0xf]  ;;  %v1107_v44 = vld [vmem:[%s12938_s14 + $0xd60] sm:$0xf] }
 0x133   : > { %1104 = vst [vmem:[%s12943_s15 + $0x6a8] sm:$0xf] %v1103_v42  ;;  %1106 = vst [vmem:[%s12943_s15 + $0x6ac] sm:$0xf] %v1105_v43  ;;  %v1109_v45 = vld [vmem:[%s12938_s14 + $0xd68] sm:$0xf] }
 0x134   : > { %1108 = vst [vmem:[%s12943_s15 + $0x6b0] sm:$0xf] %v1107_v44  ;;  %v1111_v46 = vld [vmem:[%s12938_s14 + $0xd70] sm:$0xf]  ;;  %v1113_v47 = vld [vmem:[%s12938_s14 + $0xd78] sm:$0xf] }
 0x135   : > { %1110 = vst [vmem:[%s12943_s15 + $0x6b4] sm:$0xf] %v1109_v45  ;;  %1112 = vst [vmem:[%s12943_s15 + $0x6b8] sm:$0xf] %v1111_v46  ;;  %v1115_v48 = vld [vmem:[%s12938_s14 + $0xd80] sm:$0xf] }
 0x136   : > { %1114 = vst [vmem:[%s12943_s15 + $0x6bc] sm:$0xf] %v1113_v47  ;;  %v1117_v49 = vld [vmem:[%s12938_s14 + $0xd88] sm:$0xf]  ;;  %v1119_v50 = vld [vmem:[%s12938_s14 + $0xd90] sm:$0xf] }
 0x137   : > { %1116 = vst [vmem:[%s12943_s15 + $0x6c0] sm:$0xf] %v1115_v48  ;;  %1118 = vst [vmem:[%s12943_s15 + $0x6c4] sm:$0xf] %v1117_v49  ;;  %v1121_v51 = vld [vmem:[%s12938_s14 + $0xd98] sm:$0xf] }
 0x138   : > { %1120 = vst [vmem:[%s12943_s15 + $0x6c8] sm:$0xf] %v1119_v50  ;;  %v1123_v52 = vld [vmem:[%s12938_s14 + $0xda0] sm:$0xf]  ;;  %v1125_v53 = vld [vmem:[%s12938_s14 + $0xda8] sm:$0xf] }
 0x139   : > { %1122 = vst [vmem:[%s12943_s15 + $0x6cc] sm:$0xf] %v1121_v51  ;;  %1124 = vst [vmem:[%s12943_s15 + $0x6d0] sm:$0xf] %v1123_v52  ;;  %v1127_v54 = vld [vmem:[%s12938_s14 + $0xdb0] sm:$0xf] }
 0x13a   : > { %1126 = vst [vmem:[%s12943_s15 + $0x6d4] sm:$0xf] %v1125_v53  ;;  %v1129_v55 = vld [vmem:[%s12938_s14 + $0xdb8] sm:$0xf]  ;;  %v1131_v56 = vld [vmem:[%s12938_s14 + $0xdc0] sm:$0xf] }
 0x13b   : > { %1128 = vst [vmem:[%s12943_s15 + $0x6d8] sm:$0xf] %v1127_v54  ;;  %1130 = vst [vmem:[%s12943_s15 + $0x6dc] sm:$0xf] %v1129_v55  ;;  %v1133_v57 = vld [vmem:[%s12938_s14 + $0xdc8] sm:$0xf] }
 0x13c   : > { %1132 = vst [vmem:[%s12943_s15 + $0x6e0] sm:$0xf] %v1131_v56  ;;  %v1135_v58 = vld [vmem:[%s12938_s14 + $0xdd0] sm:$0xf]  ;;  %v1137_v59 = vld [vmem:[%s12938_s14 + $0xdd8] sm:$0xf] }
 0x13d   : > { %1134 = vst [vmem:[%s12943_s15 + $0x6e4] sm:$0xf] %v1133_v57  ;;  %1136 = vst [vmem:[%s12943_s15 + $0x6e8] sm:$0xf] %v1135_v58  ;;  %v1139_v60 = vld [vmem:[%s12938_s14 + $0xde0] sm:$0xf] }
 0x13e   : > { %1138 = vst [vmem:[%s12943_s15 + $0x6ec] sm:$0xf] %v1137_v59  ;;  %v1141_v61 = vld [vmem:[%s12938_s14 + $0xde8] sm:$0xf]  ;;  %v1143_v62 = vld [vmem:[%s12938_s14 + $0xdf0] sm:$0xf] }
 0x13f   : > { %1140 = vst [vmem:[%s12943_s15 + $0x6f0] sm:$0xf] %v1139_v60  ;;  %1142 = vst [vmem:[%s12943_s15 + $0x6f4] sm:$0xf] %v1141_v61  ;;  %v1145_v63 = vld [vmem:[%s12938_s14 + $0xdf8] sm:$0xf] }
 0x140   : > { %1144 = vst [vmem:[%s12943_s15 + $0x6f8] sm:$0xf] %v1143_v62  ;;  %v1147_v0 = vld [vmem:[%s12938_s14 + $0xe00] sm:$0xf]  ;;  %v1149_v1 = vld [vmem:[%s12938_s14 + $0xe08] sm:$0xf] }
 0x141   : > { %1146 = vst [vmem:[%s12943_s15 + $0x6fc] sm:$0xf] %v1145_v63  ;;  %1148 = vst [vmem:[%s12943_s15 + $0x700] sm:$0xf] %v1147_v0  ;;  %v1151_v2 = vld [vmem:[%s12938_s14 + $0xe10] sm:$0xf] }
 0x142   : > { %1150 = vst [vmem:[%s12943_s15 + $0x704] sm:$0xf] %v1149_v1  ;;  %v1153_v3 = vld [vmem:[%s12938_s14 + $0xe18] sm:$0xf]  ;;  %v1155_v4 = vld [vmem:[%s12938_s14 + $0xe20] sm:$0xf] }
 0x143   : > { %1152 = vst [vmem:[%s12943_s15 + $0x708] sm:$0xf] %v1151_v2  ;;  %1154 = vst [vmem:[%s12943_s15 + $0x70c] sm:$0xf] %v1153_v3  ;;  %v1157_v5 = vld [vmem:[%s12938_s14 + $0xe28] sm:$0xf] }
 0x144   : > { %1156 = vst [vmem:[%s12943_s15 + $0x710] sm:$0xf] %v1155_v4  ;;  %v1159_v6 = vld [vmem:[%s12938_s14 + $0xe30] sm:$0xf]  ;;  %v1161_v7 = vld [vmem:[%s12938_s14 + $0xe38] sm:$0xf] }
 0x145   : > { %1158 = vst [vmem:[%s12943_s15 + $0x714] sm:$0xf] %v1157_v5  ;;  %1160 = vst [vmem:[%s12943_s15 + $0x718] sm:$0xf] %v1159_v6  ;;  %v1163_v8 = vld [vmem:[%s12938_s14 + $0xe40] sm:$0xf] }
 0x146   : > { %1162 = vst [vmem:[%s12943_s15 + $0x71c] sm:$0xf] %v1161_v7  ;;  %v1165_v9 = vld [vmem:[%s12938_s14 + $0xe48] sm:$0xf]  ;;  %v1167_v10 = vld [vmem:[%s12938_s14 + $0xe50] sm:$0xf] }
 0x147   : > { %1164 = vst [vmem:[%s12943_s15 + $0x720] sm:$0xf] %v1163_v8  ;;  %1166 = vst [vmem:[%s12943_s15 + $0x724] sm:$0xf] %v1165_v9  ;;  %v1169_v11 = vld [vmem:[%s12938_s14 + $0xe58] sm:$0xf] }
 0x148   : > { %1168 = vst [vmem:[%s12943_s15 + $0x728] sm:$0xf] %v1167_v10  ;;  %v1171_v12 = vld [vmem:[%s12938_s14 + $0xe60] sm:$0xf]  ;;  %v1173_v13 = vld [vmem:[%s12938_s14 + $0xe68] sm:$0xf] }
 0x149   : > { %1170 = vst [vmem:[%s12943_s15 + $0x72c] sm:$0xf] %v1169_v11  ;;  %1172 = vst [vmem:[%s12943_s15 + $0x730] sm:$0xf] %v1171_v12  ;;  %v1175_v14 = vld [vmem:[%s12938_s14 + $0xe70] sm:$0xf] }
 0x14a   : > { %1174 = vst [vmem:[%s12943_s15 + $0x734] sm:$0xf] %v1173_v13  ;;  %v1177_v15 = vld [vmem:[%s12938_s14 + $0xe78] sm:$0xf]  ;;  %v1179_v16 = vld [vmem:[%s12938_s14 + $0xe80] sm:$0xf] }
 0x14b   : > { %1176 = vst [vmem:[%s12943_s15 + $0x738] sm:$0xf] %v1175_v14  ;;  %1178 = vst [vmem:[%s12943_s15 + $0x73c] sm:$0xf] %v1177_v15  ;;  %v1181_v17 = vld [vmem:[%s12938_s14 + $0xe88] sm:$0xf] }
 0x14c   : > { %1180 = vst [vmem:[%s12943_s15 + $0x740] sm:$0xf] %v1179_v16  ;;  %v1183_v18 = vld [vmem:[%s12938_s14 + $0xe90] sm:$0xf]  ;;  %v1185_v19 = vld [vmem:[%s12938_s14 + $0xe98] sm:$0xf] }
 0x14d   : > { %1182 = vst [vmem:[%s12943_s15 + $0x744] sm:$0xf] %v1181_v17  ;;  %1184 = vst [vmem:[%s12943_s15 + $0x748] sm:$0xf] %v1183_v18  ;;  %v1187_v20 = vld [vmem:[%s12938_s14 + $0xea0] sm:$0xf] }
 0x14e   : > { %1186 = vst [vmem:[%s12943_s15 + $0x74c] sm:$0xf] %v1185_v19  ;;  %v1189_v21 = vld [vmem:[%s12938_s14 + $0xea8] sm:$0xf]  ;;  %v1191_v22 = vld [vmem:[%s12938_s14 + $0xeb0] sm:$0xf] }
 0x14f   : > { %1188 = vst [vmem:[%s12943_s15 + $0x750] sm:$0xf] %v1187_v20  ;;  %1190 = vst [vmem:[%s12943_s15 + $0x754] sm:$0xf] %v1189_v21  ;;  %v1193_v23 = vld [vmem:[%s12938_s14 + $0xeb8] sm:$0xf] }
 0x150   : > { %1192 = vst [vmem:[%s12943_s15 + $0x758] sm:$0xf] %v1191_v22  ;;  %v1195_v24 = vld [vmem:[%s12938_s14 + $0xec0] sm:$0xf]  ;;  %v1197_v25 = vld [vmem:[%s12938_s14 + $0xec8] sm:$0xf] }
 0x151   : > { %1194 = vst [vmem:[%s12943_s15 + $0x75c] sm:$0xf] %v1193_v23  ;;  %1196 = vst [vmem:[%s12943_s15 + $0x760] sm:$0xf] %v1195_v24  ;;  %v1199_v26 = vld [vmem:[%s12938_s14 + $0xed0] sm:$0xf] }
 0x152   : > { %1198 = vst [vmem:[%s12943_s15 + $0x764] sm:$0xf] %v1197_v25  ;;  %v1201_v27 = vld [vmem:[%s12938_s14 + $0xed8] sm:$0xf]  ;;  %v1203_v28 = vld [vmem:[%s12938_s14 + $0xee0] sm:$0xf] }
 0x153   : > { %1200 = vst [vmem:[%s12943_s15 + $0x768] sm:$0xf] %v1199_v26  ;;  %1202 = vst [vmem:[%s12943_s15 + $0x76c] sm:$0xf] %v1201_v27  ;;  %v1205_v29 = vld [vmem:[%s12938_s14 + $0xee8] sm:$0xf] }
 0x154   : > { %1204 = vst [vmem:[%s12943_s15 + $0x770] sm:$0xf] %v1203_v28  ;;  %v1207_v30 = vld [vmem:[%s12938_s14 + $0xef0] sm:$0xf]  ;;  %v1209_v31 = vld [vmem:[%s12938_s14 + $0xef8] sm:$0xf] }
 0x155   : > { %1206 = vst [vmem:[%s12943_s15 + $0x774] sm:$0xf] %v1205_v29  ;;  %1208 = vst [vmem:[%s12943_s15 + $0x778] sm:$0xf] %v1207_v30  ;;  %v1211_v32 = vld [vmem:[%s12938_s14 + $0xf00] sm:$0xf] }
 0x156   : > { %1210 = vst [vmem:[%s12943_s15 + $0x77c] sm:$0xf] %v1209_v31  ;;  %v1213_v33 = vld [vmem:[%s12938_s14 + $0xf08] sm:$0xf]  ;;  %v1215_v34 = vld [vmem:[%s12938_s14 + $0xf10] sm:$0xf] }
 0x157   : > { %1212 = vst [vmem:[%s12943_s15 + $0x780] sm:$0xf] %v1211_v32  ;;  %1214 = vst [vmem:[%s12943_s15 + $0x784] sm:$0xf] %v1213_v33  ;;  %v1217_v35 = vld [vmem:[%s12938_s14 + $0xf18] sm:$0xf] }
 0x158   : > { %1216 = vst [vmem:[%s12943_s15 + $0x788] sm:$0xf] %v1215_v34  ;;  %v1219_v36 = vld [vmem:[%s12938_s14 + $0xf20] sm:$0xf]  ;;  %v1221_v37 = vld [vmem:[%s12938_s14 + $0xf28] sm:$0xf] }
 0x159   : > { %1218 = vst [vmem:[%s12943_s15 + $0x78c] sm:$0xf] %v1217_v35  ;;  %1220 = vst [vmem:[%s12943_s15 + $0x790] sm:$0xf] %v1219_v36  ;;  %v1223_v38 = vld [vmem:[%s12938_s14 + $0xf30] sm:$0xf] }
 0x15a   : > { %1222 = vst [vmem:[%s12943_s15 + $0x794] sm:$0xf] %v1221_v37  ;;  %v1225_v39 = vld [vmem:[%s12938_s14 + $0xf38] sm:$0xf]  ;;  %v1227_v40 = vld [vmem:[%s12938_s14 + $0xf40] sm:$0xf] }
 0x15b   : > { %1224 = vst [vmem:[%s12943_s15 + $0x798] sm:$0xf] %v1223_v38  ;;  %1226 = vst [vmem:[%s12943_s15 + $0x79c] sm:$0xf] %v1225_v39  ;;  %v1229_v41 = vld [vmem:[%s12938_s14 + $0xf48] sm:$0xf] }
 0x15c   : > { %1228 = vst [vmem:[%s12943_s15 + $0x7a0] sm:$0xf] %v1227_v40  ;;  %v1231_v42 = vld [vmem:[%s12938_s14 + $0xf50] sm:$0xf]  ;;  %v1233_v43 = vld [vmem:[%s12938_s14 + $0xf58] sm:$0xf] }
 0x15d   : > { %1230 = vst [vmem:[%s12943_s15 + $0x7a4] sm:$0xf] %v1229_v41  ;;  %1232 = vst [vmem:[%s12943_s15 + $0x7a8] sm:$0xf] %v1231_v42  ;;  %v1235_v44 = vld [vmem:[%s12938_s14 + $0xf60] sm:$0xf] }
 0x15e   : > { %1234 = vst [vmem:[%s12943_s15 + $0x7ac] sm:$0xf] %v1233_v43  ;;  %v1237_v45 = vld [vmem:[%s12938_s14 + $0xf68] sm:$0xf]  ;;  %v1239_v46 = vld [vmem:[%s12938_s14 + $0xf70] sm:$0xf] }
 0x15f   : > { %1236 = vst [vmem:[%s12943_s15 + $0x7b0] sm:$0xf] %v1235_v44  ;;  %1238 = vst [vmem:[%s12943_s15 + $0x7b4] sm:$0xf] %v1237_v45  ;;  %v1241_v47 = vld [vmem:[%s12938_s14 + $0xf78] sm:$0xf] }
 0x160   : > { %1240 = vst [vmem:[%s12943_s15 + $0x7b8] sm:$0xf] %v1239_v46  ;;  %v1243_v48 = vld [vmem:[%s12938_s14 + $0xf80] sm:$0xf]  ;;  %v1245_v49 = vld [vmem:[%s12938_s14 + $0xf88] sm:$0xf] }
 0x161   : > { %1242 = vst [vmem:[%s12943_s15 + $0x7bc] sm:$0xf] %v1241_v47  ;;  %1244 = vst [vmem:[%s12943_s15 + $0x7c0] sm:$0xf] %v1243_v48  ;;  %v1247_v50 = vld [vmem:[%s12938_s14 + $0xf90] sm:$0xf] }
 0x162   : > { %1246 = vst [vmem:[%s12943_s15 + $0x7c4] sm:$0xf] %v1245_v49  ;;  %v1249_v51 = vld [vmem:[%s12938_s14 + $0xf98] sm:$0xf]  ;;  %v1251_v52 = vld [vmem:[%s12938_s14 + $0xfa0] sm:$0xf] }
 0x163   : > { %1248 = vst [vmem:[%s12943_s15 + $0x7c8] sm:$0xf] %v1247_v50  ;;  %1250 = vst [vmem:[%s12943_s15 + $0x7cc] sm:$0xf] %v1249_v51  ;;  %v1253_v53 = vld [vmem:[%s12938_s14 + $0xfa8] sm:$0xf] }
 0x164   : > { %1252 = vst [vmem:[%s12943_s15 + $0x7d0] sm:$0xf] %v1251_v52  ;;  %v1255_v54 = vld [vmem:[%s12938_s14 + $0xfb0] sm:$0xf]  ;;  %v1257_v55 = vld [vmem:[%s12938_s14 + $0xfb8] sm:$0xf] }
 0x165   : > { %1254 = vst [vmem:[%s12943_s15 + $0x7d4] sm:$0xf] %v1253_v53  ;;  %1256 = vst [vmem:[%s12943_s15 + $0x7d8] sm:$0xf] %v1255_v54  ;;  %v1259_v56 = vld [vmem:[%s12938_s14 + $0xfc0] sm:$0xf] }
 0x166   : > { %1258 = vst [vmem:[%s12943_s15 + $0x7dc] sm:$0xf] %v1257_v55  ;;  %v1261_v57 = vld [vmem:[%s12938_s14 + $0xfc8] sm:$0xf]  ;;  %v1263_v58 = vld [vmem:[%s12938_s14 + $0xfd0] sm:$0xf] }
 0x167   : > { %1260 = vst [vmem:[%s12943_s15 + $0x7e0] sm:$0xf] %v1259_v56  ;;  %1262 = vst [vmem:[%s12943_s15 + $0x7e4] sm:$0xf] %v1261_v57  ;;  %v1265_v59 = vld [vmem:[%s12938_s14 + $0xfd8] sm:$0xf] }
 0x168   : > { %1264 = vst [vmem:[%s12943_s15 + $0x7e8] sm:$0xf] %v1263_v58  ;;  %v1267_v60 = vld [vmem:[%s12938_s14 + $0xfe0] sm:$0xf]  ;;  %v1269_v61 = vld [vmem:[%s12938_s14 + $0xfe8] sm:$0xf] }
 0x169   : > { %1266 = vst [vmem:[%s12943_s15 + $0x7ec] sm:$0xf] %v1265_v59  ;;  %1268 = vst [vmem:[%s12943_s15 + $0x7f0] sm:$0xf] %v1267_v60  ;;  %v1271_v62 = vld [vmem:[%s12938_s14 + $0xff0] sm:$0xf] }
 0x16a   : > { %1270 = vst [vmem:[%s12943_s15 + $0x7f4] sm:$0xf] %v1269_v61  ;;  %v1273_v63 = vld [vmem:[%s12938_s14 + $0xff8] sm:$0xf]  ;;  %v1275_v0 = vld [vmem:[%s12938_s14 + $0x1000] sm:$0xf] }
 0x16b   : > { %1272 = vst [vmem:[%s12943_s15 + $0x7f8] sm:$0xf] %v1271_v62  ;;  %1274 = vst [vmem:[%s12943_s15 + $0x7fc] sm:$0xf] %v1273_v63  ;;  %v1277_v1 = vld [vmem:[%s12938_s14 + $0x1008] sm:$0xf] }
 0x16c   : > { %1276 = vst [vmem:[%s12943_s15 + $0x800] sm:$0xf] %v1275_v0  ;;  %v1279_v2 = vld [vmem:[%s12938_s14 + $0x1010] sm:$0xf]  ;;  %v1281_v3 = vld [vmem:[%s12938_s14 + $0x1018] sm:$0xf] }
 0x16d   : > { %1278 = vst [vmem:[%s12943_s15 + $0x804] sm:$0xf] %v1277_v1  ;;  %1280 = vst [vmem:[%s12943_s15 + $0x808] sm:$0xf] %v1279_v2  ;;  %v1283_v4 = vld [vmem:[%s12938_s14 + $0x1020] sm:$0xf] }
 0x16e   : > { %1282 = vst [vmem:[%s12943_s15 + $0x80c] sm:$0xf] %v1281_v3  ;;  %v1285_v5 = vld [vmem:[%s12938_s14 + $0x1028] sm:$0xf]  ;;  %v1287_v6 = vld [vmem:[%s12938_s14 + $0x1030] sm:$0xf] }
 0x16f   : > { %1284 = vst [vmem:[%s12943_s15 + $0x810] sm:$0xf] %v1283_v4  ;;  %1286 = vst [vmem:[%s12943_s15 + $0x814] sm:$0xf] %v1285_v5  ;;  %v1289_v7 = vld [vmem:[%s12938_s14 + $0x1038] sm:$0xf] }
 0x170   : > { %1288 = vst [vmem:[%s12943_s15 + $0x818] sm:$0xf] %v1287_v6  ;;  %v1291_v8 = vld [vmem:[%s12938_s14 + $0x1040] sm:$0xf]  ;;  %v1293_v9 = vld [vmem:[%s12938_s14 + $0x1048] sm:$0xf] }
 0x171   : > { %1290 = vst [vmem:[%s12943_s15 + $0x81c] sm:$0xf] %v1289_v7  ;;  %1292 = vst [vmem:[%s12943_s15 + $0x820] sm:$0xf] %v1291_v8  ;;  %v1295_v10 = vld [vmem:[%s12938_s14 + $0x1050] sm:$0xf] }
 0x172   : > { %1294 = vst [vmem:[%s12943_s15 + $0x824] sm:$0xf] %v1293_v9  ;;  %v1297_v11 = vld [vmem:[%s12938_s14 + $0x1058] sm:$0xf]  ;;  %v1299_v12 = vld [vmem:[%s12938_s14 + $0x1060] sm:$0xf] }
 0x173   : > { %1296 = vst [vmem:[%s12943_s15 + $0x828] sm:$0xf] %v1295_v10  ;;  %1298 = vst [vmem:[%s12943_s15 + $0x82c] sm:$0xf] %v1297_v11  ;;  %v1301_v13 = vld [vmem:[%s12938_s14 + $0x1068] sm:$0xf] }
 0x174   : > { %1300 = vst [vmem:[%s12943_s15 + $0x830] sm:$0xf] %v1299_v12  ;;  %v1303_v14 = vld [vmem:[%s12938_s14 + $0x1070] sm:$0xf]  ;;  %v1305_v15 = vld [vmem:[%s12938_s14 + $0x1078] sm:$0xf] }
 0x175   : > { %1302 = vst [vmem:[%s12943_s15 + $0x834] sm:$0xf] %v1301_v13  ;;  %1304 = vst [vmem:[%s12943_s15 + $0x838] sm:$0xf] %v1303_v14  ;;  %v1307_v16 = vld [vmem:[%s12938_s14 + $0x1080] sm:$0xf] }
 0x176   : > { %1306 = vst [vmem:[%s12943_s15 + $0x83c] sm:$0xf] %v1305_v15  ;;  %v1309_v17 = vld [vmem:[%s12938_s14 + $0x1088] sm:$0xf]  ;;  %v1311_v18 = vld [vmem:[%s12938_s14 + $0x1090] sm:$0xf] }
 0x177   : > { %1308 = vst [vmem:[%s12943_s15 + $0x840] sm:$0xf] %v1307_v16  ;;  %1310 = vst [vmem:[%s12943_s15 + $0x844] sm:$0xf] %v1309_v17  ;;  %v1313_v19 = vld [vmem:[%s12938_s14 + $0x1098] sm:$0xf] }
 0x178   : > { %1312 = vst [vmem:[%s12943_s15 + $0x848] sm:$0xf] %v1311_v18  ;;  %v1315_v20 = vld [vmem:[%s12938_s14 + $0x10a0] sm:$0xf]  ;;  %v1317_v21 = vld [vmem:[%s12938_s14 + $0x10a8] sm:$0xf] }
 0x179   : > { %1314 = vst [vmem:[%s12943_s15 + $0x84c] sm:$0xf] %v1313_v19  ;;  %1316 = vst [vmem:[%s12943_s15 + $0x850] sm:$0xf] %v1315_v20  ;;  %v1319_v22 = vld [vmem:[%s12938_s14 + $0x10b0] sm:$0xf] }
 0x17a   : > { %1318 = vst [vmem:[%s12943_s15 + $0x854] sm:$0xf] %v1317_v21  ;;  %v1321_v23 = vld [vmem:[%s12938_s14 + $0x10b8] sm:$0xf]  ;;  %v1323_v24 = vld [vmem:[%s12938_s14 + $0x10c0] sm:$0xf] }
 0x17b   : > { %1320 = vst [vmem:[%s12943_s15 + $0x858] sm:$0xf] %v1319_v22  ;;  %1322 = vst [vmem:[%s12943_s15 + $0x85c] sm:$0xf] %v1321_v23  ;;  %v1325_v25 = vld [vmem:[%s12938_s14 + $0x10c8] sm:$0xf] }
 0x17c   : > { %1324 = vst [vmem:[%s12943_s15 + $0x860] sm:$0xf] %v1323_v24  ;;  %v1327_v26 = vld [vmem:[%s12938_s14 + $0x10d0] sm:$0xf]  ;;  %v1329_v27 = vld [vmem:[%s12938_s14 + $0x10d8] sm:$0xf] }
 0x17d   : > { %1326 = vst [vmem:[%s12943_s15 + $0x864] sm:$0xf] %v1325_v25  ;;  %1328 = vst [vmem:[%s12943_s15 + $0x868] sm:$0xf] %v1327_v26  ;;  %v1331_v28 = vld [vmem:[%s12938_s14 + $0x10e0] sm:$0xf] }
 0x17e   : > { %1330 = vst [vmem:[%s12943_s15 + $0x86c] sm:$0xf] %v1329_v27  ;;  %v1333_v29 = vld [vmem:[%s12938_s14 + $0x10e8] sm:$0xf]  ;;  %v1335_v30 = vld [vmem:[%s12938_s14 + $0x10f0] sm:$0xf] }
 0x17f   : > { %1332 = vst [vmem:[%s12943_s15 + $0x870] sm:$0xf] %v1331_v28  ;;  %1334 = vst [vmem:[%s12943_s15 + $0x874] sm:$0xf] %v1333_v29  ;;  %v1337_v31 = vld [vmem:[%s12938_s14 + $0x10f8] sm:$0xf] }
 0x180   : > { %1336 = vst [vmem:[%s12943_s15 + $0x878] sm:$0xf] %v1335_v30  ;;  %v1339_v32 = vld [vmem:[%s12938_s14 + $0x1100] sm:$0xf]  ;;  %v1341_v33 = vld [vmem:[%s12938_s14 + $0x1108] sm:$0xf] }
 0x181   : > { %1338 = vst [vmem:[%s12943_s15 + $0x87c] sm:$0xf] %v1337_v31  ;;  %1340 = vst [vmem:[%s12943_s15 + $0x880] sm:$0xf] %v1339_v32  ;;  %v1343_v34 = vld [vmem:[%s12938_s14 + $0x1110] sm:$0xf] }
 0x182   : > { %1342 = vst [vmem:[%s12943_s15 + $0x884] sm:$0xf] %v1341_v33  ;;  %v1345_v35 = vld [vmem:[%s12938_s14 + $0x1118] sm:$0xf]  ;;  %v1347_v36 = vld [vmem:[%s12938_s14 + $0x1120] sm:$0xf] }
 0x183   : > { %1344 = vst [vmem:[%s12943_s15 + $0x888] sm:$0xf] %v1343_v34  ;;  %1346 = vst [vmem:[%s12943_s15 + $0x88c] sm:$0xf] %v1345_v35  ;;  %v1349_v37 = vld [vmem:[%s12938_s14 + $0x1128] sm:$0xf] }
 0x184   : > { %1348 = vst [vmem:[%s12943_s15 + $0x890] sm:$0xf] %v1347_v36  ;;  %v1351_v38 = vld [vmem:[%s12938_s14 + $0x1130] sm:$0xf]  ;;  %v1353_v39 = vld [vmem:[%s12938_s14 + $0x1138] sm:$0xf] }
 0x185   : > { %1350 = vst [vmem:[%s12943_s15 + $0x894] sm:$0xf] %v1349_v37  ;;  %1352 = vst [vmem:[%s12943_s15 + $0x898] sm:$0xf] %v1351_v38  ;;  %v1355_v40 = vld [vmem:[%s12938_s14 + $0x1140] sm:$0xf] }
 0x186   : > { %1354 = vst [vmem:[%s12943_s15 + $0x89c] sm:$0xf] %v1353_v39  ;;  %v1357_v41 = vld [vmem:[%s12938_s14 + $0x1148] sm:$0xf]  ;;  %v1359_v42 = vld [vmem:[%s12938_s14 + $0x1150] sm:$0xf] }
 0x187   : > { %1356 = vst [vmem:[%s12943_s15 + $0x8a0] sm:$0xf] %v1355_v40  ;;  %1358 = vst [vmem:[%s12943_s15 + $0x8a4] sm:$0xf] %v1357_v41  ;;  %v1361_v43 = vld [vmem:[%s12938_s14 + $0x1158] sm:$0xf] }
 0x188   : > { %1360 = vst [vmem:[%s12943_s15 + $0x8a8] sm:$0xf] %v1359_v42  ;;  %v1363_v44 = vld [vmem:[%s12938_s14 + $0x1160] sm:$0xf]  ;;  %v1365_v45 = vld [vmem:[%s12938_s14 + $0x1168] sm:$0xf] }
 0x189   : > { %1362 = vst [vmem:[%s12943_s15 + $0x8ac] sm:$0xf] %v1361_v43  ;;  %1364 = vst [vmem:[%s12943_s15 + $0x8b0] sm:$0xf] %v1363_v44  ;;  %v1367_v46 = vld [vmem:[%s12938_s14 + $0x1170] sm:$0xf] }
 0x18a   : > { %1366 = vst [vmem:[%s12943_s15 + $0x8b4] sm:$0xf] %v1365_v45  ;;  %v1369_v47 = vld [vmem:[%s12938_s14 + $0x1178] sm:$0xf]  ;;  %v1371_v48 = vld [vmem:[%s12938_s14 + $0x1180] sm:$0xf] }
 0x18b   : > { %1368 = vst [vmem:[%s12943_s15 + $0x8b8] sm:$0xf] %v1367_v46  ;;  %1370 = vst [vmem:[%s12943_s15 + $0x8bc] sm:$0xf] %v1369_v47  ;;  %v1373_v49 = vld [vmem:[%s12938_s14 + $0x1188] sm:$0xf] }
 0x18c   : > { %1372 = vst [vmem:[%s12943_s15 + $0x8c0] sm:$0xf] %v1371_v48  ;;  %v1375_v50 = vld [vmem:[%s12938_s14 + $0x1190] sm:$0xf]  ;;  %v1377_v51 = vld [vmem:[%s12938_s14 + $0x1198] sm:$0xf] }
 0x18d   : > { %1374 = vst [vmem:[%s12943_s15 + $0x8c4] sm:$0xf] %v1373_v49  ;;  %1376 = vst [vmem:[%s12943_s15 + $0x8c8] sm:$0xf] %v1375_v50  ;;  %v1379_v52 = vld [vmem:[%s12938_s14 + $0x11a0] sm:$0xf] }
 0x18e   : > { %1378 = vst [vmem:[%s12943_s15 + $0x8cc] sm:$0xf] %v1377_v51  ;;  %v1381_v53 = vld [vmem:[%s12938_s14 + $0x11a8] sm:$0xf]  ;;  %v1383_v54 = vld [vmem:[%s12938_s14 + $0x11b0] sm:$0xf] }
 0x18f   : > { %1380 = vst [vmem:[%s12943_s15 + $0x8d0] sm:$0xf] %v1379_v52  ;;  %1382 = vst [vmem:[%s12943_s15 + $0x8d4] sm:$0xf] %v1381_v53  ;;  %v1385_v55 = vld [vmem:[%s12938_s14 + $0x11b8] sm:$0xf] }
 0x190   : > { %1384 = vst [vmem:[%s12943_s15 + $0x8d8] sm:$0xf] %v1383_v54  ;;  %v1387_v56 = vld [vmem:[%s12938_s14 + $0x11c0] sm:$0xf]  ;;  %v1389_v57 = vld [vmem:[%s12938_s14 + $0x11c8] sm:$0xf] }
 0x191   : > { %1386 = vst [vmem:[%s12943_s15 + $0x8dc] sm:$0xf] %v1385_v55  ;;  %1388 = vst [vmem:[%s12943_s15 + $0x8e0] sm:$0xf] %v1387_v56  ;;  %v1391_v58 = vld [vmem:[%s12938_s14 + $0x11d0] sm:$0xf] }
 0x192   : > { %1390 = vst [vmem:[%s12943_s15 + $0x8e4] sm:$0xf] %v1389_v57  ;;  %v1393_v59 = vld [vmem:[%s12938_s14 + $0x11d8] sm:$0xf]  ;;  %v1395_v60 = vld [vmem:[%s12938_s14 + $0x11e0] sm:$0xf] }
 0x193   : > { %1392 = vst [vmem:[%s12943_s15 + $0x8e8] sm:$0xf] %v1391_v58  ;;  %1394 = vst [vmem:[%s12943_s15 + $0x8ec] sm:$0xf] %v1393_v59  ;;  %v1397_v61 = vld [vmem:[%s12938_s14 + $0x11e8] sm:$0xf] }
 0x194   : > { %1396 = vst [vmem:[%s12943_s15 + $0x8f0] sm:$0xf] %v1395_v60  ;;  %v1399_v62 = vld [vmem:[%s12938_s14 + $0x11f0] sm:$0xf]  ;;  %v1401_v63 = vld [vmem:[%s12938_s14 + $0x11f8] sm:$0xf] }
 0x195   : > { %1398 = vst [vmem:[%s12943_s15 + $0x8f4] sm:$0xf] %v1397_v61  ;;  %1400 = vst [vmem:[%s12943_s15 + $0x8f8] sm:$0xf] %v1399_v62  ;;  %v1403_v0 = vld [vmem:[%s12938_s14 + $0x1200] sm:$0xf] }
 0x196   : > { %1402 = vst [vmem:[%s12943_s15 + $0x8fc] sm:$0xf] %v1401_v63  ;;  %v1405_v1 = vld [vmem:[%s12938_s14 + $0x1208] sm:$0xf]  ;;  %v1407_v2 = vld [vmem:[%s12938_s14 + $0x1210] sm:$0xf] }
 0x197   : > { %1404 = vst [vmem:[%s12943_s15 + $0x900] sm:$0xf] %v1403_v0  ;;  %1406 = vst [vmem:[%s12943_s15 + $0x904] sm:$0xf] %v1405_v1  ;;  %v1409_v3 = vld [vmem:[%s12938_s14 + $0x1218] sm:$0xf] }
 0x198   : > { %1408 = vst [vmem:[%s12943_s15 + $0x908] sm:$0xf] %v1407_v2  ;;  %v1411_v4 = vld [vmem:[%s12938_s14 + $0x1220] sm:$0xf]  ;;  %v1413_v5 = vld [vmem:[%s12938_s14 + $0x1228] sm:$0xf] }
 0x199   : > { %1410 = vst [vmem:[%s12943_s15 + $0x90c] sm:$0xf] %v1409_v3  ;;  %1412 = vst [vmem:[%s12943_s15 + $0x910] sm:$0xf] %v1411_v4  ;;  %v1415_v6 = vld [vmem:[%s12938_s14 + $0x1230] sm:$0xf] }
 0x19a   : > { %1414 = vst [vmem:[%s12943_s15 + $0x914] sm:$0xf] %v1413_v5  ;;  %v1417_v7 = vld [vmem:[%s12938_s14 + $0x1238] sm:$0xf]  ;;  %v1419_v8 = vld [vmem:[%s12938_s14 + $0x1240] sm:$0xf] }
 0x19b   : > { %1416 = vst [vmem:[%s12943_s15 + $0x918] sm:$0xf] %v1415_v6  ;;  %1418 = vst [vmem:[%s12943_s15 + $0x91c] sm:$0xf] %v1417_v7  ;;  %v1421_v9 = vld [vmem:[%s12938_s14 + $0x1248] sm:$0xf] }
 0x19c   : > { %1420 = vst [vmem:[%s12943_s15 + $0x920] sm:$0xf] %v1419_v8  ;;  %v1423_v10 = vld [vmem:[%s12938_s14 + $0x1250] sm:$0xf]  ;;  %v1425_v11 = vld [vmem:[%s12938_s14 + $0x1258] sm:$0xf] }
 0x19d   : > { %1422 = vst [vmem:[%s12943_s15 + $0x924] sm:$0xf] %v1421_v9  ;;  %1424 = vst [vmem:[%s12943_s15 + $0x928] sm:$0xf] %v1423_v10  ;;  %v1427_v12 = vld [vmem:[%s12938_s14 + $0x1260] sm:$0xf] }
 0x19e   : > { %1426 = vst [vmem:[%s12943_s15 + $0x92c] sm:$0xf] %v1425_v11  ;;  %v1429_v13 = vld [vmem:[%s12938_s14 + $0x1268] sm:$0xf]  ;;  %v1431_v14 = vld [vmem:[%s12938_s14 + $0x1270] sm:$0xf] }
 0x19f   : > { %1428 = vst [vmem:[%s12943_s15 + $0x930] sm:$0xf] %v1427_v12  ;;  %1430 = vst [vmem:[%s12943_s15 + $0x934] sm:$0xf] %v1429_v13  ;;  %v1433_v15 = vld [vmem:[%s12938_s14 + $0x1278] sm:$0xf] }
 0x1a0   : > { %1432 = vst [vmem:[%s12943_s15 + $0x938] sm:$0xf] %v1431_v14  ;;  %v1435_v16 = vld [vmem:[%s12938_s14 + $0x1280] sm:$0xf]  ;;  %v1437_v17 = vld [vmem:[%s12938_s14 + $0x1288] sm:$0xf] }
 0x1a1   : > { %1434 = vst [vmem:[%s12943_s15 + $0x93c] sm:$0xf] %v1433_v15  ;;  %1436 = vst [vmem:[%s12943_s15 + $0x940] sm:$0xf] %v1435_v16  ;;  %v1439_v18 = vld [vmem:[%s12938_s14 + $0x1290] sm:$0xf] }
 0x1a2   : > { %1438 = vst [vmem:[%s12943_s15 + $0x944] sm:$0xf] %v1437_v17  ;;  %v1441_v19 = vld [vmem:[%s12938_s14 + $0x1298] sm:$0xf]  ;;  %v1443_v20 = vld [vmem:[%s12938_s14 + $0x12a0] sm:$0xf] }
 0x1a3   : > { %1440 = vst [vmem:[%s12943_s15 + $0x948] sm:$0xf] %v1439_v18  ;;  %1442 = vst [vmem:[%s12943_s15 + $0x94c] sm:$0xf] %v1441_v19  ;;  %v1445_v21 = vld [vmem:[%s12938_s14 + $0x12a8] sm:$0xf] }
 0x1a4   : > { %1444 = vst [vmem:[%s12943_s15 + $0x950] sm:$0xf] %v1443_v20  ;;  %v1447_v22 = vld [vmem:[%s12938_s14 + $0x12b0] sm:$0xf]  ;;  %v1449_v23 = vld [vmem:[%s12938_s14 + $0x12b8] sm:$0xf] }
 0x1a5   : > { %1446 = vst [vmem:[%s12943_s15 + $0x954] sm:$0xf] %v1445_v21  ;;  %1448 = vst [vmem:[%s12943_s15 + $0x958] sm:$0xf] %v1447_v22  ;;  %v1451_v24 = vld [vmem:[%s12938_s14 + $0x12c0] sm:$0xf] }
 0x1a6   : > { %1450 = vst [vmem:[%s12943_s15 + $0x95c] sm:$0xf] %v1449_v23  ;;  %v1453_v25 = vld [vmem:[%s12938_s14 + $0x12c8] sm:$0xf]  ;;  %v1455_v26 = vld [vmem:[%s12938_s14 + $0x12d0] sm:$0xf] }
 0x1a7   : > { %1452 = vst [vmem:[%s12943_s15 + $0x960] sm:$0xf] %v1451_v24  ;;  %1454 = vst [vmem:[%s12943_s15 + $0x964] sm:$0xf] %v1453_v25  ;;  %v1457_v27 = vld [vmem:[%s12938_s14 + $0x12d8] sm:$0xf] }
 0x1a8   : > { %1456 = vst [vmem:[%s12943_s15 + $0x968] sm:$0xf] %v1455_v26  ;;  %v1459_v28 = vld [vmem:[%s12938_s14 + $0x12e0] sm:$0xf]  ;;  %v1461_v29 = vld [vmem:[%s12938_s14 + $0x12e8] sm:$0xf] }
 0x1a9   : > { %1458 = vst [vmem:[%s12943_s15 + $0x96c] sm:$0xf] %v1457_v27  ;;  %1460 = vst [vmem:[%s12943_s15 + $0x970] sm:$0xf] %v1459_v28  ;;  %v1463_v30 = vld [vmem:[%s12938_s14 + $0x12f0] sm:$0xf] }
 0x1aa   : > { %1462 = vst [vmem:[%s12943_s15 + $0x974] sm:$0xf] %v1461_v29  ;;  %v1465_v31 = vld [vmem:[%s12938_s14 + $0x12f8] sm:$0xf]  ;;  %v1467_v32 = vld [vmem:[%s12938_s14 + $0x1300] sm:$0xf] }
 0x1ab   : > { %1464 = vst [vmem:[%s12943_s15 + $0x978] sm:$0xf] %v1463_v30  ;;  %1466 = vst [vmem:[%s12943_s15 + $0x97c] sm:$0xf] %v1465_v31  ;;  %v1469_v33 = vld [vmem:[%s12938_s14 + $0x1308] sm:$0xf] }
 0x1ac   : > { %1468 = vst [vmem:[%s12943_s15 + $0x980] sm:$0xf] %v1467_v32  ;;  %v1471_v34 = vld [vmem:[%s12938_s14 + $0x1310] sm:$0xf]  ;;  %v1473_v35 = vld [vmem:[%s12938_s14 + $0x1318] sm:$0xf] }
 0x1ad   : > { %1470 = vst [vmem:[%s12943_s15 + $0x984] sm:$0xf] %v1469_v33  ;;  %1472 = vst [vmem:[%s12943_s15 + $0x988] sm:$0xf] %v1471_v34  ;;  %v1475_v36 = vld [vmem:[%s12938_s14 + $0x1320] sm:$0xf] }
 0x1ae   : > { %1474 = vst [vmem:[%s12943_s15 + $0x98c] sm:$0xf] %v1473_v35  ;;  %v1477_v37 = vld [vmem:[%s12938_s14 + $0x1328] sm:$0xf]  ;;  %v1479_v38 = vld [vmem:[%s12938_s14 + $0x1330] sm:$0xf] }
 0x1af   : > { %1476 = vst [vmem:[%s12943_s15 + $0x990] sm:$0xf] %v1475_v36  ;;  %1478 = vst [vmem:[%s12943_s15 + $0x994] sm:$0xf] %v1477_v37  ;;  %v1481_v39 = vld [vmem:[%s12938_s14 + $0x1338] sm:$0xf] }
 0x1b0   : > { %1480 = vst [vmem:[%s12943_s15 + $0x998] sm:$0xf] %v1479_v38  ;;  %v1483_v40 = vld [vmem:[%s12938_s14 + $0x1340] sm:$0xf]  ;;  %v1485_v41 = vld [vmem:[%s12938_s14 + $0x1348] sm:$0xf] }
 0x1b1   : > { %1482 = vst [vmem:[%s12943_s15 + $0x99c] sm:$0xf] %v1481_v39  ;;  %1484 = vst [vmem:[%s12943_s15 + $0x9a0] sm:$0xf] %v1483_v40  ;;  %v1487_v42 = vld [vmem:[%s12938_s14 + $0x1350] sm:$0xf] }
 0x1b2   : > { %1486 = vst [vmem:[%s12943_s15 + $0x9a4] sm:$0xf] %v1485_v41  ;;  %v1489_v43 = vld [vmem:[%s12938_s14 + $0x1358] sm:$0xf]  ;;  %v1491_v44 = vld [vmem:[%s12938_s14 + $0x1360] sm:$0xf] }
 0x1b3   : > { %1488 = vst [vmem:[%s12943_s15 + $0x9a8] sm:$0xf] %v1487_v42  ;;  %1490 = vst [vmem:[%s12943_s15 + $0x9ac] sm:$0xf] %v1489_v43  ;;  %v1493_v45 = vld [vmem:[%s12938_s14 + $0x1368] sm:$0xf] }
 0x1b4   : > { %1492 = vst [vmem:[%s12943_s15 + $0x9b0] sm:$0xf] %v1491_v44  ;;  %v1495_v46 = vld [vmem:[%s12938_s14 + $0x1370] sm:$0xf]  ;;  %v1497_v47 = vld [vmem:[%s12938_s14 + $0x1378] sm:$0xf] }
 0x1b5   : > { %1494 = vst [vmem:[%s12943_s15 + $0x9b4] sm:$0xf] %v1493_v45  ;;  %1496 = vst [vmem:[%s12943_s15 + $0x9b8] sm:$0xf] %v1495_v46  ;;  %v1499_v48 = vld [vmem:[%s12938_s14 + $0x1380] sm:$0xf] }
 0x1b6   : > { %1498 = vst [vmem:[%s12943_s15 + $0x9bc] sm:$0xf] %v1497_v47  ;;  %v1501_v49 = vld [vmem:[%s12938_s14 + $0x1388] sm:$0xf]  ;;  %v1503_v50 = vld [vmem:[%s12938_s14 + $0x1390] sm:$0xf] }
 0x1b7   : > { %1500 = vst [vmem:[%s12943_s15 + $0x9c0] sm:$0xf] %v1499_v48  ;;  %1502 = vst [vmem:[%s12943_s15 + $0x9c4] sm:$0xf] %v1501_v49  ;;  %v1505_v51 = vld [vmem:[%s12938_s14 + $0x1398] sm:$0xf] }
 0x1b8   : > { %1504 = vst [vmem:[%s12943_s15 + $0x9c8] sm:$0xf] %v1503_v50  ;;  %v1507_v52 = vld [vmem:[%s12938_s14 + $0x13a0] sm:$0xf]  ;;  %v1509_v53 = vld [vmem:[%s12938_s14 + $0x13a8] sm:$0xf] }
 0x1b9   : > { %1506 = vst [vmem:[%s12943_s15 + $0x9cc] sm:$0xf] %v1505_v51  ;;  %1508 = vst [vmem:[%s12943_s15 + $0x9d0] sm:$0xf] %v1507_v52  ;;  %v1511_v54 = vld [vmem:[%s12938_s14 + $0x13b0] sm:$0xf] }
 0x1ba   : > { %1510 = vst [vmem:[%s12943_s15 + $0x9d4] sm:$0xf] %v1509_v53  ;;  %v1513_v55 = vld [vmem:[%s12938_s14 + $0x13b8] sm:$0xf]  ;;  %v1515_v56 = vld [vmem:[%s12938_s14 + $0x13c0] sm:$0xf] }
 0x1bb   : > { %1512 = vst [vmem:[%s12943_s15 + $0x9d8] sm:$0xf] %v1511_v54  ;;  %1514 = vst [vmem:[%s12943_s15 + $0x9dc] sm:$0xf] %v1513_v55  ;;  %v1517_v57 = vld [vmem:[%s12938_s14 + $0x13c8] sm:$0xf] }
 0x1bc   : > { %1516 = vst [vmem:[%s12943_s15 + $0x9e0] sm:$0xf] %v1515_v56  ;;  %v1519_v58 = vld [vmem:[%s12938_s14 + $0x13d0] sm:$0xf]  ;;  %v1521_v59 = vld [vmem:[%s12938_s14 + $0x13d8] sm:$0xf] }
 0x1bd   : > { %1518 = vst [vmem:[%s12943_s15 + $0x9e4] sm:$0xf] %v1517_v57  ;;  %1520 = vst [vmem:[%s12943_s15 + $0x9e8] sm:$0xf] %v1519_v58  ;;  %v1523_v60 = vld [vmem:[%s12938_s14 + $0x13e0] sm:$0xf] }
 0x1be   : > { %1522 = vst [vmem:[%s12943_s15 + $0x9ec] sm:$0xf] %v1521_v59  ;;  %v1525_v61 = vld [vmem:[%s12938_s14 + $0x13e8] sm:$0xf]  ;;  %v1527_v62 = vld [vmem:[%s12938_s14 + $0x13f0] sm:$0xf] }
 0x1bf   : > { %1524 = vst [vmem:[%s12943_s15 + $0x9f0] sm:$0xf] %v1523_v60  ;;  %1526 = vst [vmem:[%s12943_s15 + $0x9f4] sm:$0xf] %v1525_v61  ;;  %v1529_v63 = vld [vmem:[%s12938_s14 + $0x13f8] sm:$0xf] }
 0x1c0   : > { %1528 = vst [vmem:[%s12943_s15 + $0x9f8] sm:$0xf] %v1527_v62  ;;  %v1531_v0 = vld [vmem:[%s12938_s14 + $0x1400] sm:$0xf]  ;;  %v1533_v1 = vld [vmem:[%s12938_s14 + $0x1408] sm:$0xf] }
 0x1c1   : > { %1530 = vst [vmem:[%s12943_s15 + $0x9fc] sm:$0xf] %v1529_v63  ;;  %1532 = vst [vmem:[%s12943_s15 + $0xa00] sm:$0xf] %v1531_v0  ;;  %v1535_v2 = vld [vmem:[%s12938_s14 + $0x1410] sm:$0xf] }
 0x1c2   : > { %1534 = vst [vmem:[%s12943_s15 + $0xa04] sm:$0xf] %v1533_v1  ;;  %v1537_v3 = vld [vmem:[%s12938_s14 + $0x1418] sm:$0xf]  ;;  %v1539_v4 = vld [vmem:[%s12938_s14 + $0x1420] sm:$0xf] }
 0x1c3   : > { %1536 = vst [vmem:[%s12943_s15 + $0xa08] sm:$0xf] %v1535_v2  ;;  %1538 = vst [vmem:[%s12943_s15 + $0xa0c] sm:$0xf] %v1537_v3  ;;  %v1541_v5 = vld [vmem:[%s12938_s14 + $0x1428] sm:$0xf] }
 0x1c4   : > { %1540 = vst [vmem:[%s12943_s15 + $0xa10] sm:$0xf] %v1539_v4  ;;  %v1543_v6 = vld [vmem:[%s12938_s14 + $0x1430] sm:$0xf]  ;;  %v1545_v7 = vld [vmem:[%s12938_s14 + $0x1438] sm:$0xf] }
 0x1c5   : > { %1542 = vst [vmem:[%s12943_s15 + $0xa14] sm:$0xf] %v1541_v5  ;;  %1544 = vst [vmem:[%s12943_s15 + $0xa18] sm:$0xf] %v1543_v6  ;;  %v1547_v8 = vld [vmem:[%s12938_s14 + $0x1440] sm:$0xf] }
 0x1c6   : > { %1546 = vst [vmem:[%s12943_s15 + $0xa1c] sm:$0xf] %v1545_v7  ;;  %v1549_v9 = vld [vmem:[%s12938_s14 + $0x1448] sm:$0xf]  ;;  %v1551_v10 = vld [vmem:[%s12938_s14 + $0x1450] sm:$0xf] }
 0x1c7   : > { %1548 = vst [vmem:[%s12943_s15 + $0xa20] sm:$0xf] %v1547_v8  ;;  %1550 = vst [vmem:[%s12943_s15 + $0xa24] sm:$0xf] %v1549_v9  ;;  %v1553_v11 = vld [vmem:[%s12938_s14 + $0x1458] sm:$0xf] }
 0x1c8   : > { %1552 = vst [vmem:[%s12943_s15 + $0xa28] sm:$0xf] %v1551_v10  ;;  %v1555_v12 = vld [vmem:[%s12938_s14 + $0x1460] sm:$0xf]  ;;  %v1557_v13 = vld [vmem:[%s12938_s14 + $0x1468] sm:$0xf] }
 0x1c9   : > { %1554 = vst [vmem:[%s12943_s15 + $0xa2c] sm:$0xf] %v1553_v11  ;;  %1556 = vst [vmem:[%s12943_s15 + $0xa30] sm:$0xf] %v1555_v12  ;;  %v1559_v14 = vld [vmem:[%s12938_s14 + $0x1470] sm:$0xf] }
 0x1ca   : > { %1558 = vst [vmem:[%s12943_s15 + $0xa34] sm:$0xf] %v1557_v13  ;;  %v1561_v15 = vld [vmem:[%s12938_s14 + $0x1478] sm:$0xf]  ;;  %v1563_v16 = vld [vmem:[%s12938_s14 + $0x1480] sm:$0xf] }
 0x1cb   : > { %1560 = vst [vmem:[%s12943_s15 + $0xa38] sm:$0xf] %v1559_v14  ;;  %1562 = vst [vmem:[%s12943_s15 + $0xa3c] sm:$0xf] %v1561_v15  ;;  %v1565_v17 = vld [vmem:[%s12938_s14 + $0x1488] sm:$0xf] }
 0x1cc   : > { %1564 = vst [vmem:[%s12943_s15 + $0xa40] sm:$0xf] %v1563_v16  ;;  %v1567_v18 = vld [vmem:[%s12938_s14 + $0x1490] sm:$0xf]  ;;  %v1569_v19 = vld [vmem:[%s12938_s14 + $0x1498] sm:$0xf] }
 0x1cd   : > { %1566 = vst [vmem:[%s12943_s15 + $0xa44] sm:$0xf] %v1565_v17  ;;  %1568 = vst [vmem:[%s12943_s15 + $0xa48] sm:$0xf] %v1567_v18  ;;  %v1571_v20 = vld [vmem:[%s12938_s14 + $0x14a0] sm:$0xf] }
 0x1ce   : > { %1570 = vst [vmem:[%s12943_s15 + $0xa4c] sm:$0xf] %v1569_v19  ;;  %v1573_v21 = vld [vmem:[%s12938_s14 + $0x14a8] sm:$0xf]  ;;  %v1575_v22 = vld [vmem:[%s12938_s14 + $0x14b0] sm:$0xf] }
 0x1cf   : > { %1572 = vst [vmem:[%s12943_s15 + $0xa50] sm:$0xf] %v1571_v20  ;;  %1574 = vst [vmem:[%s12943_s15 + $0xa54] sm:$0xf] %v1573_v21  ;;  %v1577_v23 = vld [vmem:[%s12938_s14 + $0x14b8] sm:$0xf] }
 0x1d0   : > { %1576 = vst [vmem:[%s12943_s15 + $0xa58] sm:$0xf] %v1575_v22  ;;  %v1579_v24 = vld [vmem:[%s12938_s14 + $0x14c0] sm:$0xf]  ;;  %v1581_v25 = vld [vmem:[%s12938_s14 + $0x14c8] sm:$0xf] }
 0x1d1   : > { %1578 = vst [vmem:[%s12943_s15 + $0xa5c] sm:$0xf] %v1577_v23  ;;  %1580 = vst [vmem:[%s12943_s15 + $0xa60] sm:$0xf] %v1579_v24  ;;  %v1583_v26 = vld [vmem:[%s12938_s14 + $0x14d0] sm:$0xf] }
 0x1d2   : > { %1582 = vst [vmem:[%s12943_s15 + $0xa64] sm:$0xf] %v1581_v25  ;;  %v1585_v27 = vld [vmem:[%s12938_s14 + $0x14d8] sm:$0xf]  ;;  %v1587_v28 = vld [vmem:[%s12938_s14 + $0x14e0] sm:$0xf] }
 0x1d3   : > { %1584 = vst [vmem:[%s12943_s15 + $0xa68] sm:$0xf] %v1583_v26  ;;  %1586 = vst [vmem:[%s12943_s15 + $0xa6c] sm:$0xf] %v1585_v27  ;;  %v1589_v29 = vld [vmem:[%s12938_s14 + $0x14e8] sm:$0xf] }
 0x1d4   : > { %1588 = vst [vmem:[%s12943_s15 + $0xa70] sm:$0xf] %v1587_v28  ;;  %v1591_v30 = vld [vmem:[%s12938_s14 + $0x14f0] sm:$0xf]  ;;  %v1593_v31 = vld [vmem:[%s12938_s14 + $0x14f8] sm:$0xf] }
 0x1d5   : > { %1590 = vst [vmem:[%s12943_s15 + $0xa74] sm:$0xf] %v1589_v29  ;;  %1592 = vst [vmem:[%s12943_s15 + $0xa78] sm:$0xf] %v1591_v30  ;;  %v1595_v32 = vld [vmem:[%s12938_s14 + $0x1500] sm:$0xf] }
 0x1d6   : > { %1594 = vst [vmem:[%s12943_s15 + $0xa7c] sm:$0xf] %v1593_v31  ;;  %v1597_v33 = vld [vmem:[%s12938_s14 + $0x1508] sm:$0xf]  ;;  %v1599_v34 = vld [vmem:[%s12938_s14 + $0x1510] sm:$0xf] }
 0x1d7   : > { %1596 = vst [vmem:[%s12943_s15 + $0xa80] sm:$0xf] %v1595_v32  ;;  %1598 = vst [vmem:[%s12943_s15 + $0xa84] sm:$0xf] %v1597_v33  ;;  %v1601_v35 = vld [vmem:[%s12938_s14 + $0x1518] sm:$0xf] }
 0x1d8   : > { %1600 = vst [vmem:[%s12943_s15 + $0xa88] sm:$0xf] %v1599_v34  ;;  %v1603_v36 = vld [vmem:[%s12938_s14 + $0x1520] sm:$0xf]  ;;  %v1605_v37 = vld [vmem:[%s12938_s14 + $0x1528] sm:$0xf] }
 0x1d9   : > { %1602 = vst [vmem:[%s12943_s15 + $0xa8c] sm:$0xf] %v1601_v35  ;;  %1604 = vst [vmem:[%s12943_s15 + $0xa90] sm:$0xf] %v1603_v36  ;;  %v1607_v38 = vld [vmem:[%s12938_s14 + $0x1530] sm:$0xf] }
 0x1da   : > { %1606 = vst [vmem:[%s12943_s15 + $0xa94] sm:$0xf] %v1605_v37  ;;  %v1609_v39 = vld [vmem:[%s12938_s14 + $0x1538] sm:$0xf]  ;;  %v1611_v40 = vld [vmem:[%s12938_s14 + $0x1540] sm:$0xf] }
 0x1db   : > { %1608 = vst [vmem:[%s12943_s15 + $0xa98] sm:$0xf] %v1607_v38  ;;  %1610 = vst [vmem:[%s12943_s15 + $0xa9c] sm:$0xf] %v1609_v39  ;;  %v1613_v41 = vld [vmem:[%s12938_s14 + $0x1548] sm:$0xf] }
 0x1dc   : > { %1612 = vst [vmem:[%s12943_s15 + $0xaa0] sm:$0xf] %v1611_v40  ;;  %v1615_v42 = vld [vmem:[%s12938_s14 + $0x1550] sm:$0xf]  ;;  %v1617_v43 = vld [vmem:[%s12938_s14 + $0x1558] sm:$0xf] }
 0x1dd   : > { %1614 = vst [vmem:[%s12943_s15 + $0xaa4] sm:$0xf] %v1613_v41  ;;  %1616 = vst [vmem:[%s12943_s15 + $0xaa8] sm:$0xf] %v1615_v42  ;;  %v1619_v44 = vld [vmem:[%s12938_s14 + $0x1560] sm:$0xf] }
 0x1de   : > { %1618 = vst [vmem:[%s12943_s15 + $0xaac] sm:$0xf] %v1617_v43  ;;  %v1621_v45 = vld [vmem:[%s12938_s14 + $0x1568] sm:$0xf]  ;;  %v1623_v46 = vld [vmem:[%s12938_s14 + $0x1570] sm:$0xf] }
 0x1df   : > { %1620 = vst [vmem:[%s12943_s15 + $0xab0] sm:$0xf] %v1619_v44  ;;  %1622 = vst [vmem:[%s12943_s15 + $0xab4] sm:$0xf] %v1621_v45  ;;  %v1625_v47 = vld [vmem:[%s12938_s14 + $0x1578] sm:$0xf] }
 0x1e0   : > { %1624 = vst [vmem:[%s12943_s15 + $0xab8] sm:$0xf] %v1623_v46  ;;  %v1627_v48 = vld [vmem:[%s12938_s14 + $0x1580] sm:$0xf]  ;;  %v1629_v49 = vld [vmem:[%s12938_s14 + $0x1588] sm:$0xf] }
 0x1e1   : > { %1626 = vst [vmem:[%s12943_s15 + $0xabc] sm:$0xf] %v1625_v47  ;;  %1628 = vst [vmem:[%s12943_s15 + $0xac0] sm:$0xf] %v1627_v48  ;;  %v1631_v50 = vld [vmem:[%s12938_s14 + $0x1590] sm:$0xf] }
 0x1e2   : > { %1630 = vst [vmem:[%s12943_s15 + $0xac4] sm:$0xf] %v1629_v49  ;;  %v1633_v51 = vld [vmem:[%s12938_s14 + $0x1598] sm:$0xf]  ;;  %v1635_v52 = vld [vmem:[%s12938_s14 + $0x15a0] sm:$0xf] }
 0x1e3   : > { %1632 = vst [vmem:[%s12943_s15 + $0xac8] sm:$0xf] %v1631_v50  ;;  %1634 = vst [vmem:[%s12943_s15 + $0xacc] sm:$0xf] %v1633_v51  ;;  %v1637_v53 = vld [vmem:[%s12938_s14 + $0x15a8] sm:$0xf] }
 0x1e4   : > { %1636 = vst [vmem:[%s12943_s15 + $0xad0] sm:$0xf] %v1635_v52  ;;  %v1639_v54 = vld [vmem:[%s12938_s14 + $0x15b0] sm:$0xf]  ;;  %v1641_v55 = vld [vmem:[%s12938_s14 + $0x15b8] sm:$0xf] }
 0x1e5   : > { %1638 = vst [vmem:[%s12943_s15 + $0xad4] sm:$0xf] %v1637_v53  ;;  %1640 = vst [vmem:[%s12943_s15 + $0xad8] sm:$0xf] %v1639_v54  ;;  %v1643_v56 = vld [vmem:[%s12938_s14 + $0x15c0] sm:$0xf] }
 0x1e6   : > { %1642 = vst [vmem:[%s12943_s15 + $0xadc] sm:$0xf] %v1641_v55  ;;  %v1645_v57 = vld [vmem:[%s12938_s14 + $0x15c8] sm:$0xf]  ;;  %v1647_v58 = vld [vmem:[%s12938_s14 + $0x15d0] sm:$0xf] }
 0x1e7   : > { %1644 = vst [vmem:[%s12943_s15 + $0xae0] sm:$0xf] %v1643_v56  ;;  %1646 = vst [vmem:[%s12943_s15 + $0xae4] sm:$0xf] %v1645_v57  ;;  %v1649_v59 = vld [vmem:[%s12938_s14 + $0x15d8] sm:$0xf] }
 0x1e8   : > { %1648 = vst [vmem:[%s12943_s15 + $0xae8] sm:$0xf] %v1647_v58  ;;  %v1651_v60 = vld [vmem:[%s12938_s14 + $0x15e0] sm:$0xf]  ;;  %v1653_v61 = vld [vmem:[%s12938_s14 + $0x15e8] sm:$0xf] }
 0x1e9   : > { %1650 = vst [vmem:[%s12943_s15 + $0xaec] sm:$0xf] %v1649_v59  ;;  %1652 = vst [vmem:[%s12943_s15 + $0xaf0] sm:$0xf] %v1651_v60  ;;  %v1655_v62 = vld [vmem:[%s12938_s14 + $0x15f0] sm:$0xf] }
 0x1ea   : > { %1654 = vst [vmem:[%s12943_s15 + $0xaf4] sm:$0xf] %v1653_v61  ;;  %v1657_v63 = vld [vmem:[%s12938_s14 + $0x15f8] sm:$0xf]  ;;  %v1659_v0 = vld [vmem:[%s12938_s14 + $0x1600] sm:$0xf] }
 0x1eb   : > { %1656 = vst [vmem:[%s12943_s15 + $0xaf8] sm:$0xf] %v1655_v62  ;;  %1658 = vst [vmem:[%s12943_s15 + $0xafc] sm:$0xf] %v1657_v63  ;;  %v1661_v1 = vld [vmem:[%s12938_s14 + $0x1608] sm:$0xf] }
 0x1ec   : > { %1660 = vst [vmem:[%s12943_s15 + $0xb00] sm:$0xf] %v1659_v0  ;;  %v1663_v2 = vld [vmem:[%s12938_s14 + $0x1610] sm:$0xf]  ;;  %v1665_v3 = vld [vmem:[%s12938_s14 + $0x1618] sm:$0xf] }
 0x1ed   : > { %1662 = vst [vmem:[%s12943_s15 + $0xb04] sm:$0xf] %v1661_v1  ;;  %1664 = vst [vmem:[%s12943_s15 + $0xb08] sm:$0xf] %v1663_v2  ;;  %v1667_v4 = vld [vmem:[%s12938_s14 + $0x1620] sm:$0xf] }
 0x1ee   : > { %1666 = vst [vmem:[%s12943_s15 + $0xb0c] sm:$0xf] %v1665_v3  ;;  %v1669_v5 = vld [vmem:[%s12938_s14 + $0x1628] sm:$0xf]  ;;  %v1671_v6 = vld [vmem:[%s12938_s14 + $0x1630] sm:$0xf] }
 0x1ef   : > { %1668 = vst [vmem:[%s12943_s15 + $0xb10] sm:$0xf] %v1667_v4  ;;  %1670 = vst [vmem:[%s12943_s15 + $0xb14] sm:$0xf] %v1669_v5  ;;  %v1673_v7 = vld [vmem:[%s12938_s14 + $0x1638] sm:$0xf] }
 0x1f0   : > { %1672 = vst [vmem:[%s12943_s15 + $0xb18] sm:$0xf] %v1671_v6  ;;  %v1675_v8 = vld [vmem:[%s12938_s14 + $0x1640] sm:$0xf]  ;;  %v1677_v9 = vld [vmem:[%s12938_s14 + $0x1648] sm:$0xf] }
 0x1f1   : > { %1674 = vst [vmem:[%s12943_s15 + $0xb1c] sm:$0xf] %v1673_v7  ;;  %1676 = vst [vmem:[%s12943_s15 + $0xb20] sm:$0xf] %v1675_v8  ;;  %v1679_v10 = vld [vmem:[%s12938_s14 + $0x1650] sm:$0xf] }
 0x1f2   : > { %1678 = vst [vmem:[%s12943_s15 + $0xb24] sm:$0xf] %v1677_v9  ;;  %v1681_v11 = vld [vmem:[%s12938_s14 + $0x1658] sm:$0xf]  ;;  %v1683_v12 = vld [vmem:[%s12938_s14 + $0x1660] sm:$0xf] }
 0x1f3   : > { %1680 = vst [vmem:[%s12943_s15 + $0xb28] sm:$0xf] %v1679_v10  ;;  %1682 = vst [vmem:[%s12943_s15 + $0xb2c] sm:$0xf] %v1681_v11  ;;  %v1685_v13 = vld [vmem:[%s12938_s14 + $0x1668] sm:$0xf] }
 0x1f4   : > { %1684 = vst [vmem:[%s12943_s15 + $0xb30] sm:$0xf] %v1683_v12  ;;  %v1687_v14 = vld [vmem:[%s12938_s14 + $0x1670] sm:$0xf]  ;;  %v1689_v15 = vld [vmem:[%s12938_s14 + $0x1678] sm:$0xf] }
 0x1f5   : > { %1686 = vst [vmem:[%s12943_s15 + $0xb34] sm:$0xf] %v1685_v13  ;;  %1688 = vst [vmem:[%s12943_s15 + $0xb38] sm:$0xf] %v1687_v14  ;;  %v1691_v16 = vld [vmem:[%s12938_s14 + $0x1680] sm:$0xf] }
 0x1f6   : > { %1690 = vst [vmem:[%s12943_s15 + $0xb3c] sm:$0xf] %v1689_v15  ;;  %v1693_v17 = vld [vmem:[%s12938_s14 + $0x1688] sm:$0xf]  ;;  %v1695_v18 = vld [vmem:[%s12938_s14 + $0x1690] sm:$0xf] }
 0x1f7   : > { %1692 = vst [vmem:[%s12943_s15 + $0xb40] sm:$0xf] %v1691_v16  ;;  %1694 = vst [vmem:[%s12943_s15 + $0xb44] sm:$0xf] %v1693_v17  ;;  %v1697_v19 = vld [vmem:[%s12938_s14 + $0x1698] sm:$0xf] }
 0x1f8   : > { %1696 = vst [vmem:[%s12943_s15 + $0xb48] sm:$0xf] %v1695_v18  ;;  %v1699_v20 = vld [vmem:[%s12938_s14 + $0x16a0] sm:$0xf]  ;;  %v1701_v21 = vld [vmem:[%s12938_s14 + $0x16a8] sm:$0xf] }
 0x1f9   : > { %1698 = vst [vmem:[%s12943_s15 + $0xb4c] sm:$0xf] %v1697_v19  ;;  %1700 = vst [vmem:[%s12943_s15 + $0xb50] sm:$0xf] %v1699_v20  ;;  %v1703_v22 = vld [vmem:[%s12938_s14 + $0x16b0] sm:$0xf] }
 0x1fa   : > { %1702 = vst [vmem:[%s12943_s15 + $0xb54] sm:$0xf] %v1701_v21  ;;  %v1705_v23 = vld [vmem:[%s12938_s14 + $0x16b8] sm:$0xf]  ;;  %v1707_v24 = vld [vmem:[%s12938_s14 + $0x16c0] sm:$0xf] }
 0x1fb   : > { %1704 = vst [vmem:[%s12943_s15 + $0xb58] sm:$0xf] %v1703_v22  ;;  %1706 = vst [vmem:[%s12943_s15 + $0xb5c] sm:$0xf] %v1705_v23  ;;  %v1709_v25 = vld [vmem:[%s12938_s14 + $0x16c8] sm:$0xf] }
 0x1fc   : > { %1708 = vst [vmem:[%s12943_s15 + $0xb60] sm:$0xf] %v1707_v24  ;;  %v1711_v26 = vld [vmem:[%s12938_s14 + $0x16d0] sm:$0xf]  ;;  %v1713_v27 = vld [vmem:[%s12938_s14 + $0x16d8] sm:$0xf] }
 0x1fd   : > { %1710 = vst [vmem:[%s12943_s15 + $0xb64] sm:$0xf] %v1709_v25  ;;  %1712 = vst [vmem:[%s12943_s15 + $0xb68] sm:$0xf] %v1711_v26  ;;  %v1715_v28 = vld [vmem:[%s12938_s14 + $0x16e0] sm:$0xf] }
 0x1fe   : > { %1714 = vst [vmem:[%s12943_s15 + $0xb6c] sm:$0xf] %v1713_v27  ;;  %v1717_v29 = vld [vmem:[%s12938_s14 + $0x16e8] sm:$0xf]  ;;  %v1719_v30 = vld [vmem:[%s12938_s14 + $0x16f0] sm:$0xf] }
 0x1ff   : > { %1716 = vst [vmem:[%s12943_s15 + $0xb70] sm:$0xf] %v1715_v28  ;;  %1718 = vst [vmem:[%s12943_s15 + $0xb74] sm:$0xf] %v1717_v29  ;;  %v1721_v31 = vld [vmem:[%s12938_s14 + $0x16f8] sm:$0xf] }
 0x200   : > { %1720 = vst [vmem:[%s12943_s15 + $0xb78] sm:$0xf] %v1719_v30  ;;  %v1723_v32 = vld [vmem:[%s12938_s14 + $0x1700] sm:$0xf]  ;;  %v1725_v33 = vld [vmem:[%s12938_s14 + $0x1708] sm:$0xf] }
 0x201   : > { %1722 = vst [vmem:[%s12943_s15 + $0xb7c] sm:$0xf] %v1721_v31  ;;  %1724 = vst [vmem:[%s12943_s15 + $0xb80] sm:$0xf] %v1723_v32  ;;  %v1727_v34 = vld [vmem:[%s12938_s14 + $0x1710] sm:$0xf] }
 0x202   : > { %1726 = vst [vmem:[%s12943_s15 + $0xb84] sm:$0xf] %v1725_v33  ;;  %v1729_v35 = vld [vmem:[%s12938_s14 + $0x1718] sm:$0xf]  ;;  %v1731_v36 = vld [vmem:[%s12938_s14 + $0x1720] sm:$0xf] }
 0x203   : > { %1728 = vst [vmem:[%s12943_s15 + $0xb88] sm:$0xf] %v1727_v34  ;;  %1730 = vst [vmem:[%s12943_s15 + $0xb8c] sm:$0xf] %v1729_v35  ;;  %v1733_v37 = vld [vmem:[%s12938_s14 + $0x1728] sm:$0xf] }
 0x204   : > { %1732 = vst [vmem:[%s12943_s15 + $0xb90] sm:$0xf] %v1731_v36  ;;  %v1735_v38 = vld [vmem:[%s12938_s14 + $0x1730] sm:$0xf]  ;;  %v1737_v39 = vld [vmem:[%s12938_s14 + $0x1738] sm:$0xf] }
 0x205   : > { %1734 = vst [vmem:[%s12943_s15 + $0xb94] sm:$0xf] %v1733_v37  ;;  %1736 = vst [vmem:[%s12943_s15 + $0xb98] sm:$0xf] %v1735_v38  ;;  %v1739_v40 = vld [vmem:[%s12938_s14 + $0x1740] sm:$0xf] }
 0x206   : > { %1738 = vst [vmem:[%s12943_s15 + $0xb9c] sm:$0xf] %v1737_v39  ;;  %v1741_v41 = vld [vmem:[%s12938_s14 + $0x1748] sm:$0xf]  ;;  %v1743_v42 = vld [vmem:[%s12938_s14 + $0x1750] sm:$0xf] }
 0x207   : > { %1740 = vst [vmem:[%s12943_s15 + $0xba0] sm:$0xf] %v1739_v40  ;;  %1742 = vst [vmem:[%s12943_s15 + $0xba4] sm:$0xf] %v1741_v41  ;;  %v1745_v43 = vld [vmem:[%s12938_s14 + $0x1758] sm:$0xf] }
 0x208   : > { %1744 = vst [vmem:[%s12943_s15 + $0xba8] sm:$0xf] %v1743_v42  ;;  %v1747_v44 = vld [vmem:[%s12938_s14 + $0x1760] sm:$0xf]  ;;  %v1749_v45 = vld [vmem:[%s12938_s14 + $0x1768] sm:$0xf] }
 0x209   : > { %1746 = vst [vmem:[%s12943_s15 + $0xbac] sm:$0xf] %v1745_v43  ;;  %1748 = vst [vmem:[%s12943_s15 + $0xbb0] sm:$0xf] %v1747_v44  ;;  %v1751_v46 = vld [vmem:[%s12938_s14 + $0x1770] sm:$0xf] }
 0x20a   : > { %1750 = vst [vmem:[%s12943_s15 + $0xbb4] sm:$0xf] %v1749_v45  ;;  %v1753_v47 = vld [vmem:[%s12938_s14 + $0x1778] sm:$0xf]  ;;  %v1755_v48 = vld [vmem:[%s12938_s14 + $0x1780] sm:$0xf] }
 0x20b   : > { %1752 = vst [vmem:[%s12943_s15 + $0xbb8] sm:$0xf] %v1751_v46  ;;  %1754 = vst [vmem:[%s12943_s15 + $0xbbc] sm:$0xf] %v1753_v47  ;;  %v1757_v49 = vld [vmem:[%s12938_s14 + $0x1788] sm:$0xf] }
 0x20c   : > { %1756 = vst [vmem:[%s12943_s15 + $0xbc0] sm:$0xf] %v1755_v48  ;;  %v1759_v50 = vld [vmem:[%s12938_s14 + $0x1790] sm:$0xf]  ;;  %v1761_v51 = vld [vmem:[%s12938_s14 + $0x1798] sm:$0xf] }
 0x20d   : > { %1758 = vst [vmem:[%s12943_s15 + $0xbc4] sm:$0xf] %v1757_v49  ;;  %1760 = vst [vmem:[%s12943_s15 + $0xbc8] sm:$0xf] %v1759_v50  ;;  %v1763_v52 = vld [vmem:[%s12938_s14 + $0x17a0] sm:$0xf] }
 0x20e   : > { %1762 = vst [vmem:[%s12943_s15 + $0xbcc] sm:$0xf] %v1761_v51  ;;  %v1765_v53 = vld [vmem:[%s12938_s14 + $0x17a8] sm:$0xf]  ;;  %v1767_v54 = vld [vmem:[%s12938_s14 + $0x17b0] sm:$0xf] }
 0x20f   : > { %1764 = vst [vmem:[%s12943_s15 + $0xbd0] sm:$0xf] %v1763_v52  ;;  %1766 = vst [vmem:[%s12943_s15 + $0xbd4] sm:$0xf] %v1765_v53  ;;  %v1769_v55 = vld [vmem:[%s12938_s14 + $0x17b8] sm:$0xf] }
 0x210   : > { %1768 = vst [vmem:[%s12943_s15 + $0xbd8] sm:$0xf] %v1767_v54  ;;  %v1771_v56 = vld [vmem:[%s12938_s14 + $0x17c0] sm:$0xf]  ;;  %v1773_v57 = vld [vmem:[%s12938_s14 + $0x17c8] sm:$0xf] }
 0x211   : > { %1770 = vst [vmem:[%s12943_s15 + $0xbdc] sm:$0xf] %v1769_v55  ;;  %1772 = vst [vmem:[%s12943_s15 + $0xbe0] sm:$0xf] %v1771_v56  ;;  %v1775_v58 = vld [vmem:[%s12938_s14 + $0x17d0] sm:$0xf] }
 0x212   : > { %1774 = vst [vmem:[%s12943_s15 + $0xbe4] sm:$0xf] %v1773_v57  ;;  %v1777_v59 = vld [vmem:[%s12938_s14 + $0x17d8] sm:$0xf]  ;;  %v1779_v60 = vld [vmem:[%s12938_s14 + $0x17e0] sm:$0xf] }
 0x213   : > { %1776 = vst [vmem:[%s12943_s15 + $0xbe8] sm:$0xf] %v1775_v58  ;;  %1778 = vst [vmem:[%s12943_s15 + $0xbec] sm:$0xf] %v1777_v59  ;;  %v1781_v61 = vld [vmem:[%s12938_s14 + $0x17e8] sm:$0xf] }
 0x214   : > { %1780 = vst [vmem:[%s12943_s15 + $0xbf0] sm:$0xf] %v1779_v60  ;;  %v1783_v62 = vld [vmem:[%s12938_s14 + $0x17f0] sm:$0xf]  ;;  %v1785_v63 = vld [vmem:[%s12938_s14 + $0x17f8] sm:$0xf] }
 0x215   : > { %1782 = vst [vmem:[%s12943_s15 + $0xbf4] sm:$0xf] %v1781_v61  ;;  %1784 = vst [vmem:[%s12943_s15 + $0xbf8] sm:$0xf] %v1783_v62  ;;  %v1787_v0 = vld [vmem:[%s12938_s14 + $0x1800] sm:$0xf] }
 0x216   : > { %1786 = vst [vmem:[%s12943_s15 + $0xbfc] sm:$0xf] %v1785_v63  ;;  %v1789_v1 = vld [vmem:[%s12938_s14 + $0x1808] sm:$0xf]  ;;  %v1791_v2 = vld [vmem:[%s12938_s14 + $0x1810] sm:$0xf] }
 0x217   : > { %1788 = vst [vmem:[%s12943_s15 + $0xc00] sm:$0xf] %v1787_v0  ;;  %1790 = vst [vmem:[%s12943_s15 + $0xc04] sm:$0xf] %v1789_v1  ;;  %v1793_v3 = vld [vmem:[%s12938_s14 + $0x1818] sm:$0xf] }
 0x218   : > { %1792 = vst [vmem:[%s12943_s15 + $0xc08] sm:$0xf] %v1791_v2  ;;  %v1795_v4 = vld [vmem:[%s12938_s14 + $0x1820] sm:$0xf]  ;;  %v1797_v5 = vld [vmem:[%s12938_s14 + $0x1828] sm:$0xf] }
 0x219   : > { %1794 = vst [vmem:[%s12943_s15 + $0xc0c] sm:$0xf] %v1793_v3  ;;  %1796 = vst [vmem:[%s12943_s15 + $0xc10] sm:$0xf] %v1795_v4  ;;  %v1799_v6 = vld [vmem:[%s12938_s14 + $0x1830] sm:$0xf] }
 0x21a   : > { %1798 = vst [vmem:[%s12943_s15 + $0xc14] sm:$0xf] %v1797_v5  ;;  %v1801_v7 = vld [vmem:[%s12938_s14 + $0x1838] sm:$0xf]  ;;  %v1803_v8 = vld [vmem:[%s12938_s14 + $0x1840] sm:$0xf] }
 0x21b   : > { %1800 = vst [vmem:[%s12943_s15 + $0xc18] sm:$0xf] %v1799_v6  ;;  %1802 = vst [vmem:[%s12943_s15 + $0xc1c] sm:$0xf] %v1801_v7  ;;  %v1805_v9 = vld [vmem:[%s12938_s14 + $0x1848] sm:$0xf] }
 0x21c   : > { %1804 = vst [vmem:[%s12943_s15 + $0xc20] sm:$0xf] %v1803_v8  ;;  %v1807_v10 = vld [vmem:[%s12938_s14 + $0x1850] sm:$0xf]  ;;  %v1809_v11 = vld [vmem:[%s12938_s14 + $0x1858] sm:$0xf] }
 0x21d   : > { %1806 = vst [vmem:[%s12943_s15 + $0xc24] sm:$0xf] %v1805_v9  ;;  %1808 = vst [vmem:[%s12943_s15 + $0xc28] sm:$0xf] %v1807_v10  ;;  %v1811_v12 = vld [vmem:[%s12938_s14 + $0x1860] sm:$0xf] }
 0x21e   : > { %1810 = vst [vmem:[%s12943_s15 + $0xc2c] sm:$0xf] %v1809_v11  ;;  %v1813_v13 = vld [vmem:[%s12938_s14 + $0x1868] sm:$0xf]  ;;  %v1815_v14 = vld [vmem:[%s12938_s14 + $0x1870] sm:$0xf] }
 0x21f   : > { %1812 = vst [vmem:[%s12943_s15 + $0xc30] sm:$0xf] %v1811_v12  ;;  %1814 = vst [vmem:[%s12943_s15 + $0xc34] sm:$0xf] %v1813_v13  ;;  %v1817_v15 = vld [vmem:[%s12938_s14 + $0x1878] sm:$0xf] }
 0x220   : > { %1816 = vst [vmem:[%s12943_s15 + $0xc38] sm:$0xf] %v1815_v14  ;;  %1818 = vst [vmem:[%s12943_s15 + $0xc3c] sm:$0xf] %v1817_v15 }
 0x221 PF: > { %p11368_p7 = scmp.ge.s32.totalorder %s12842_s24, 1  ;;  %p6593_p8 = scmp.lt.s32.totalorder %s12842_s24, 5 }
 0x223   : > { %p6594_p9 = pnand %p11368_p7, %p6593_p8 }
 0x224   : > { %s6600_s16 = sand.u32 (!%p6594_p9), 1, %s12818_s18   ;;  %s6647_s17 = smul.u32 (!%p6594_p9), 49, %s12826_s20 }
 0x225   : > { %6597 = sbr.rel (%p6594_p9) target bundleno = 1197 (0x4ad), region = 88  ;;  %p6657_p10 = scmp.lt.s32.totalorder (!%p6594_p9), %s12830_s21, 1 }
 0x226   : > { %s12329_s27 = smul.u32 (!%p6594_p9), 3136, %s6600_s16  ;;  %p6650_p11 = scmp.lt.s32.totalorder (!%p6594_p9), %s6647_s17, 97 }
 0x227   : > { %p11370_p12 = scmp.ne.s32.totalorder (!%p6594_p9), %s12826_s20, 0 }
 0x22a   : > { %s15088_s17 = smov (!%p6650_p11, %s6647_s17), 97  ;;  %s15090_s21 = smov (!%p6657_p10, %s12830_s21), 1 }
 0x22b   : > { %s14521_s30 = scalar_lea.vmem %s15069_s0, %s15088_s17  ;;  %s6659_s18 = scalar_lea.vmem %s15071_s2, %s15090_s21 }
 0x22c   : > { %s6662_s11 = scalar_lea.vmem %s15072_s3, %s15090_s21  ;;  %s6665_s14 = scalar_lea.vmem %s15073_s4, %s15090_s21 }
 0x22d   : > { %s11369_s15 = sshll.u32 %s15090_s21, 1  ;;  %s14541_s17 = scalar_lea.vmem [#allocation2], %s12329_s27 }
 0x22e   : > { %s14539_s29 = scalar_lea.vmem %s15074_s5, %s11369_s15  ;;  %6678 = sbr.rel (%p11370_p12) target bundleno = 565 (0x235), region = 96 }
 0x233   : > { %v12844_v16 = vmov 0.0  }
 0x234   : > { %6679 = vst [vmem:[%s14539_s29] sm:$0x3] %v12844_v16 }
 0x235 PF: > { %v12390_v17 = vld [vmem:[%s14541_s17 + $0x78] sm:$0xff]   ;;  %v12394_v21 = vld [vmem:[%s14541_s17 + $0x70] sm:$0xff]   ;;  %v12398_v25 = vld [vmem:[%s14541_s17 + $0x68] sm:$0xff]   ;;  %v7483_v46 = vlaneseq  ;;  %v12845_v52 = vmov 1966171168   ;;  %vm12847_vm0 = vmmov 0  }
 0x236   : > { %v12391_v18 = vld [vmem:[%s14541_s17 + $0xf8] sm:$0xff]   ;;  %11771 = vmatprep.subr.bf16.mxu0 %v12390_v17  ;;  %v12395_v22 = vld [vmem:[%s14541_s17 + $0xf0] sm:$0xff]   ;;  %v12399_v26 = vld [vmem:[%s14541_s17 + $0xe8] sm:$0xff]   ;;  %v7481_v53 = vunpack.c.l.s4 %v12845_v52  ;;  %p11764_p13 = scmp.ne.s32.totalorder %s12826_s20, 1 }
 0x237   : > { %v12392_v19 = vld [vmem:[%s14541_s17 + $0x38] sm:$0xff]   ;;  %11793 = vmatprep.subr.bf16.mxu1 %v12391_v18  ;;  %v12396_v23 = vld [vmem:[%s14541_s17 + $0x30] sm:$0xff]   ;;  %v12400_v27 = vld [vmem:[%s14541_s17 + $0x28] sm:$0xff]   ;;  %v7484_v50 = vshrl.u32 %v7483_v46, 7 }
 0x238   : > { %v12393_v20 = vld [vmem:[%s14541_s17 + $0xb8] sm:$0xff]   ;;  %11772 = vmatpush3.bf16.msra.mxu0 %v12392_v19  ;;  %v12397_v24 = vld [vmem:[%s14541_s17 + $0xb0] sm:$0xff]   ;;  %v12401_v28 = vld [vmem:[%s14541_s17 + $0xa8] sm:$0xff]   ;;  %v7482_v56 = vunpack.c.0.s8 %v7481_v53 }
 0x239   : > { %11794 = vmatpush3.bf16.msra.mxu1 %v12393_v20  ;;  %11773 = vmatprep.subr.bf16.mxu0 %v12394_v21  ;;  %v12402_v29 = vld [vmem:[%s14541_s17 + $0x60] sm:$0xff]   ;;  %v12406_v33 = vld [vmem:[%s14541_s17 + $0x58] sm:$0xff]   ;;  %v12410_v37 = vld [vmem:[%s14541_s17 + $0x50] sm:$0xff]  }
 0x23a   : > { %11795 = vmatprep.subr.bf16.mxu1 %v12395_v22  ;;  %v12403_v30 = vld [vmem:[%s14541_s17 + $0xe0] sm:$0xff]   ;;  %v12407_v34 = vld [vmem:[%s14541_s17 + $0xd8] sm:$0xff]   ;;  %v12411_v38 = vld [vmem:[%s14541_s17 + $0xd0] sm:$0xff]   ;;  %v14580_v58 = vsub.s32 %v7482_v56, %v7484_v50 }
 0x23b   : > { %v12404_v31 = vld [vmem:[%s14541_s17 + $0x20] sm:$0xff]   ;;  %v12408_v35 = vld [vmem:[%s14541_s17 + $0x18] sm:$0xff]   ;;  %v12412_v39 = vld [vmem:[%s14541_s17 + $0x10] sm:$0xff]  }
 0x23c   : > { %11774 = vmatpush3.bf16.msra.mxu0 %v12396_v23  ;;  %v12405_v32 = vld [vmem:[%s14541_s17 + $0xa0] sm:$0xff]   ;;  %v12409_v36 = vld [vmem:[%s14541_s17 + $0x98] sm:$0xff]   ;;  %v12413_v40 = vld [vmem:[%s14541_s17 + $0x90] sm:$0xff]  }
 0x23d   : > { %11796 = vmatpush3.bf16.msra.mxu1 %v12397_v24  ;;  %11775 = vmatprep.subr.bf16.mxu0 %v12398_v25  ;;  %v12414_v41 = vld [vmem:[%s14541_s17 + $0x48] sm:$0xff]   ;;  %v12418_v45 = vld [vmem:[%s14541_s17 + $0x40] sm:$0xff]   ;;  %v12423_v51 = vld [vmem:[%s14541_s17 + $0x178] sm:$0xff]  }
 0x23e   : > { %11797 = vmatprep.subr.bf16.mxu1 %v12399_v26  ;;  %v12415_v42 = vld [vmem:[%s14541_s17 + $0xc8] sm:$0xff]   ;;  %v12419_v47 = vld [vmem:[%s14541_s17 + $0xc0] sm:$0xff]   ;;  %v12425_v57 = vld [vmem:[%s14541_s17 + $0x1f8] sm:$0xff]  }
 0x23f   : > { %v12416_v43 = vld [vmem:[%s14541_s17 + $0x8] sm:$0xff]   ;;  %v12420_v48 = vld [vmem:[%s14541_s17] sm:$0xff]   ;;  %v12424_v0 = vld [vmem:[%s14541_s17 + $0x138] sm:$0xff]  }
 0x240   : > { %11776 = vmatpush3.bf16.msra.mxu0 %v12400_v27  ;;  %v12417_v44 = vld [vmem:[%s14541_s17 + $0x88] sm:$0xff]   ;;  %v12421_v49 = vld [vmem:[%s14541_s17 + $0x80] sm:$0xff]   ;;  %v12426_v2 = vld [vmem:[%s14541_s17 + $0x1b8] sm:$0xff]  }
 0x241   : > { %11798 = vmatpush3.bf16.msra.mxu1 %v12401_v28  ;;  %11777 = vmatprep.subr.bf16.mxu0 %v12402_v29  ;;  %v6681_v54 = vld [vmem:[%s14521_s30] sm:$0xff]  ;;  %v12427_v5 = vld [vmem:[%s14541_s17 + $0x170] sm:$0xff]   ;;  %v12431_v11 = vld [vmem:[%s14541_s17 + $0x168] sm:$0xff]  }
 0x242   : > { %11799 = vmatprep.subr.bf16.mxu1 %v12403_v30  ;;  %v7479_v55 = vcombine.high %v6681_v54, %v6681_v54  ;;  %v7486_v59 = vrot.slane %v6681_v54, %v14580_v58  ;;  %v12428_v7 = vld [vmem:[%s14541_s17 + $0x130] sm:$0xff]   ;;  %v12432_v12 = vld [vmem:[%s14541_s17 + $0x128] sm:$0xff]   ;;  %v12435_v15 = vld [vmem:[%s14541_s17 + $0x160] sm:$0xff]  }
 0x243   : > { %v12429_v8 = vld [vmem:[%s14541_s17 + $0x1f0] sm:$0xff]   ;;  %v12433_v13 = vld [vmem:[%s14541_s17 + $0x1e8] sm:$0xff]   ;;  %v12436_v16 = vld [vmem:[%s14541_s17 + $0x120] sm:$0xff]  }
 0x244   : > { %11778 = vmatpush3.bf16.msra.mxu0 %v12404_v31  ;;  %v14584_v60 = vrot.slane %v7479_v55, %v14580_v58  ;;  %v7494_v61 = vcombine.high %v7486_v59, %v7486_v59  ;;  %v7502_v62 = vrot.slane %v7486_v59, %v14580_v58  ;;  %v12430_v10 = vld [vmem:[%s14541_s17 + $0x1b0] sm:$0xff]   ;;  %v12434_v14 = vld [vmem:[%s14541_s17 + $0x1a8] sm:$0xff]   ;;  %v12437_v17 = vld [vmem:[%s14541_s17 + $0x1e0] sm:$0xff]  }
 0x245   : > { %11800 = vmatpush3.bf16.msra.mxu1 %v12405_v32  ;;  %11779 = vmatprep.subr.bf16.mxu0 %v12406_v33  ;;  %v12438_v18 = vld [vmem:[%s14541_s17 + $0x1a0] sm:$0xff]   ;;  %v12439_v19 = vld [vmem:[%s14541_s17 + $0x158] sm:$0xff]   ;;  %v12443_v23 = vld [vmem:[%s14541_s17 + $0x150] sm:$0xff]  }
 0x246   : > { %11801 = vmatprep.subr.bf16.mxu1 %v12407_v34  ;;  %v7495_v63 = vcombine.high %v14584_v60, %v14584_v60  ;;  %v7516_v1 = vrot.slane %v7494_v61, %v14580_v58  ;;  %v7524_v4 = vcombine.high %v7502_v62, %v7502_v62  ;;  %v12440_v20 = vld [vmem:[%s14541_s17 + $0x118] sm:$0xff]   ;;  %v12444_v24 = vld [vmem:[%s14541_s17 + $0x110] sm:$0xff]   ;;  %v12447_v27 = vld [vmem:[%s14541_s17 + $0x148] sm:$0xff]  }
 0x247   : > { %v12441_v21 = vld [vmem:[%s14541_s17 + $0x1d8] sm:$0xff]   ;;  %v12445_v25 = vld [vmem:[%s14541_s17 + $0x1d0] sm:$0xff]   ;;  %v12448_v28 = vld [vmem:[%s14541_s17 + $0x108] sm:$0xff]  }
 0x248   : > { %11780 = vmatpush3.bf16.msra.mxu0 %v12408_v35  ;;  %v7523_v3 = vrot.slane %v7495_v63, %v14580_v58  ;;  %10220 = vmatprep.mubr.bf16.mxu0 %v7516_v1  ;;  %v7526_v6 = vcombine.high %v7516_v1, %v7516_v1  ;;  %v12442_v22 = vld [vmem:[%s14541_s17 + $0x198] sm:$0xff]   ;;  %v12446_v26 = vld [vmem:[%s14541_s17 + $0x190] sm:$0xff]   ;;  %v12449_v29 = vld [vmem:[%s14541_s17 + $0x1c8] sm:$0xff]   ;;  %v7509_v35 = vrot.slane %v14584_v60, %v14580_v58 }
 0x249   : > { %11802 = vmatpush3.bf16.msra.mxu1 %v12409_v36  ;;  %11781 = vmatprep.subr.bf16.mxu0 %v12410_v37  ;;  %v12450_v30 = vld [vmem:[%s14541_s17 + $0x188] sm:$0xff]   ;;  %v12451_v31 = vld [vmem:[%s14541_s17 + $0x140] sm:$0xff]   ;;  %v12455_v36 = vld [vmem:[%s14541_s17 + $0x278] sm:$0xff]  }
 0x24a   : > { %11803 = vmatprep.subr.bf16.mxu1 %v12411_v38  ;;  %v7527_v9 = vcombine.high %v7523_v3, %v7523_v3  ;;  %10260 = vmatprep.mubr.bf16.mxu1 %v7526_v6  ;;  %v12452_v32 = vld [vmem:[%s14541_s17 + $0x100] sm:$0xff]   ;;  %v12456_v37 = vld [vmem:[%s14541_s17 + $0x238] sm:$0xff]   ;;  %v12464_v46 = vld [vmem:[%s14541_s17 + $0x228] sm:$0xff]  }
 0x24b   : > { %v12453_v33 = vld [vmem:[%s14541_s17 + $0x1c0] sm:$0xff]   ;;  %v12457_v38 = vld [vmem:[%s14541_s17 + $0x2f8] sm:$0xff]   ;;  %v12476_v59 = vld [vmem:[%s14541_s17 + $0x210] sm:$0xff]  }
 0x24c   : > { %11782 = vmatpush3.bf16.msra.mxu0 %v12412_v39  ;;  %v12454_v34 = vld [vmem:[%s14541_s17 + $0x180] sm:$0xff]   ;;  %v12458_v39 = vld [vmem:[%s14541_s17 + $0x2b8] sm:$0xff]   ;;  %v12477_v60 = vld [vmem:[%s14541_s17 + $0x2d0] sm:$0xff]  }
 0x24d   : > { %11804 = vmatpush3.bf16.msra.mxu1 %v12413_v40  ;;  %11783 = vmatprep.subr.bf16.mxu0 %v12414_v41  ;;  %v7525_v40 = vcombine.high %v7509_v35, %v7509_v35  ;;  %v12459_v41 = vld [vmem:[%s14541_s17 + $0x270] sm:$0xff]   ;;  %v12468_v50 = vld [vmem:[%s14541_s17 + $0x220] sm:$0xff]   ;;  %v12471_v53 = vld [vmem:[%s14541_s17 + $0x258] sm:$0xff]  }
 0x24e   : > { %11805 = vmatprep.subr.bf16.mxu1 %v12415_v42  ;;  %v12460_v42 = vld [vmem:[%s14541_s17 + $0x230] sm:$0xff]   ;;  %v12470_v52 = vld [vmem:[%s14541_s17 + $0x2a0] sm:$0xff]   ;;  %v12472_v54 = vld [vmem:[%s14541_s17 + $0x218] sm:$0xff]  }
 0x24f   : > { %v12473_v55 = vld [vmem:[%s14541_s17 + $0x2d8] sm:$0xff]   ;;  %v12478_v61 = vld [vmem:[%s14541_s17 + $0x290] sm:$0xff]   ;;  %v12479_v63 = vld [vmem:[%s14541_s17 + $0x248] sm:$0xff]  }
 0x250   : > { %11784 = vmatpush3.bf16.msra.mxu0 %v12416_v43  ;;  %v12461_v43 = vld [vmem:[%s14541_s17 + $0x2f0] sm:$0xff]   ;;  %v12474_v56 = vld [vmem:[%s14541_s17 + $0x298] sm:$0xff]   ;;  %v12482_v6 = vld [vmem:[%s14541_s17 + $0x288] sm:$0xff]  }
 0x251   : > { %11806 = vmatpush3.bf16.msra.mxu1 %v12417_v44  ;;  %11785 = vmatprep.subr.bf16.mxu0 %v12418_v45  ;;  %v12462_v44 = vld [vmem:[%s14541_s17 + $0x2b0] sm:$0xff]   ;;  %v12463_v45 = vld [vmem:[%s14541_s17 + $0x268] sm:$0xff]  }
 0x252   : > { %11807 = vmatprep.subr.bf16.mxu1 %v12419_v47  ;;  %v12465_v47 = vld [vmem:[%s14541_s17 + $0x2e8] sm:$0xff]  }
 0x254   : > { %11786 = vmatpush3.bf16.msra.mxu0 %v12420_v48  ;;  %v12466_v48 = vld [vmem:[%s14541_s17 + $0x2a8] sm:$0xff]  }
 0x255   : > { %11808 = vmatpush3.bf16.msra.mxu1 %v12421_v49  ;;  %11815 = vmatprep.subr.bf16.mxu0 %v12423_v51  ;;  %v12467_v49 = vld [vmem:[%s14541_s17 + $0x260] sm:$0xff]  }
 0x256   : > { %11837 = vmatprep.subr.bf16.mxu1 %v12425_v57  ;;  %v12469_v51 = vld [vmem:[%s14541_s17 + $0x2e0] sm:$0xff]   ;;  %v12475_v57 = vld [vmem:[%s14541_s17 + $0x250] sm:$0xff]  }
 0x257   : > { %10221 = vmatmul.mubr.bf16.vlgmr.msra.gmra.mxu0 %v7502_v62  ;;  %v6682_v62 = vld [vmem:[%s14521_s30 + $0x8] sm:$0xff] }
 0x258   : > { %11816 = vmatpush3.bf16.msra.mxu0 %v12424_v0  ;;  %10261 = vmatmul.mubr.bf16.vlgmr.msra.gmra.mxu1 %v7524_v4  ;;  %v7535_v0 = vrot.slane %v6682_v62, %v14580_v58  ;;  %v7528_v1 = vcombine.high %v6682_v62, %v6682_v62  ;;  %v12529_v62 = vld [vmem:[%s14541_s17 + $0x428] sm:$0xff]  }
 0x259   : > { %11817 = vmatprep.subr.bf16.mxu0 %v12427_v5  ;;  %11838 = vmatpush3.bf16.msra.mxu1 %v12426_v2  ;;  %v12480_v2 = vld [vmem:[%s14541_s17 + $0x208] sm:$0xff]  }
 0x25a   : > { %10300 = vmatprep.mubr.bf16.mxu0 %v7523_v3  ;;  %11839 = vmatprep.subr.bf16.mxu1 %v12429_v8  ;;  %v12481_v3 = vld [vmem:[%s14541_s17 + $0x2c8] sm:$0xff]   ;;  %v7543_v4 = vcombine.high %v7535_v0, %v7535_v0  ;;  %v14653_v5 = vrot.slane %v7528_v1, %v14580_v58  ;;  %v12532_v1 = vld [vmem:[%s14541_s17 + $0x460] sm:$0xff]  }
 0x25b   : > { %10340 = vmatprep.mubr.bf16.mxu1 %v7527_v9  ;;  %v12484_v9 = vld [vmem:[%s14541_s17 + $0x200] sm:$0xff]  }
 0x25c   : > { %11818 = vmatpush3.bf16.msra.mxu0 %v12428_v7  ;;  %v12483_v7 = vld [vmem:[%s14541_s17 + $0x240] sm:$0xff]   ;;  %v7565_v8 = vrot.slane %v7543_v4, %v14580_v58 }
 0x25d   : > { %11819 = vmatprep.subr.bf16.mxu0 %v12431_v11  ;;  %11840 = vmatpush3.bf16.msra.mxu1 %v12430_v10  ;;  %v7544_v10 = vcombine.high %v14653_v5, %v14653_v5  ;;  %v12485_v11 = vld [vmem:[%s14541_s17 + $0x2c0] sm:$0xff]  }
 0x25e   : > { %11841 = vmatprep.subr.bf16.mxu1 %v12433_v13  ;;  %v12486_v13 = vld [vmem:[%s14541_s17 + $0x280] sm:$0xff]  }
 0x25f   : > { %v12535_v4 = vld [vmem:[%s14541_s17 + $0x4a0] sm:$0xff]  }
 0x260   : > { %11820 = vmatpush3.bf16.msra.mxu0 %v12432_v12  ;;  %v7575_v12 = vcombine.high %v7565_v8, %v7565_v8 }
 0x261   : > { %11821 = vmatprep.subr.bf16.mxu0 %v12435_v15  ;;  %11842 = vmatpush3.bf16.msra.mxu1 %v12434_v14  ;;  %v7551_v14 = vrot.slane %v7535_v0, %v14580_v58  ;;  %v12487_v15 = vld [vmem:[%s14541_s17 + $0x378] sm:$0xff]   ;;  %v12531_v0 = vld [vmem:[%s14541_s17 + $0x4a8] sm:$0xff]  }
 0x262   : > { %11843 = vmatprep.subr.bf16.mxu1 %v12437_v17  ;;  %v7572_v17 = vrot.slane %v7544_v10, %v14580_v58  ;;  %v12541_v10 = vld [vmem:[%s14541_s17 + $0x410] sm:$0xff]  }
 0x264   : > { %11822 = vmatpush3.bf16.msra.mxu0 %v12436_v16  ;;  %v12488_v16 = vld [vmem:[%s14541_s17 + $0x338] sm:$0xff]  }
 0x265   : > { %11823 = vmatprep.subr.bf16.mxu0 %v12439_v19  ;;  %11844 = vmatpush3.bf16.msra.mxu1 %v12438_v18  ;;  %v12489_v18 = vld [vmem:[%s14541_s17 + $0x3f8] sm:$0xff]  }
 0x266   : > { %11845 = vmatprep.subr.bf16.mxu1 %v12441_v21  ;;  %v12490_v19 = vld [vmem:[%s14541_s17 + $0x3b8] sm:$0xff]   ;;  %v12491_v21 = vld [vmem:[%s14541_s17 + $0x370] sm:$0xff]  }
 0x268   : > { %11824 = vmatpush3.bf16.msra.mxu0 %v12440_v20  ;;  %v7573_v20 = vcombine.high %v7551_v14, %v7551_v14 }
 0x269   : > { %11825 = vmatprep.subr.bf16.mxu0 %v12443_v23  ;;  %11846 = vmatpush3.bf16.msra.mxu1 %v12442_v22  ;;  %v12492_v22 = vld [vmem:[%s14541_s17 + $0x330] sm:$0xff]   ;;  %v7576_v23 = vcombine.high %v7572_v17, %v7572_v17 }
 0x26a   : > { %11847 = vmatprep.subr.bf16.mxu1 %v12445_v25  ;;  %v12494_v25 = vld [vmem:[%s14541_s17 + $0x3b0] sm:$0xff]  }
 0x26c   : > { %11826 = vmatpush3.bf16.msra.mxu0 %v12444_v24  ;;  %v12493_v24 = vld [vmem:[%s14541_s17 + $0x3f0] sm:$0xff]  }
 0x26d   : > { %11827 = vmatprep.subr.bf16.mxu0 %v12447_v27  ;;  %11848 = vmatpush3.bf16.msra.mxu1 %v12446_v26  ;;  %v12495_v26 = vld [vmem:[%s14541_s17 + $0x368] sm:$0xff]  }
 0x26e   : > { %11849 = vmatprep.subr.bf16.mxu1 %v12449_v29  ;;  %v12496_v27 = vld [vmem:[%s14541_s17 + $0x328] sm:$0xff]  }
 0x26f   : > { %v12498_v29 = vld [vmem:[%s14541_s17 + $0x3a8] sm:$0xff]  }
 0x270   : > { %11828 = vmatpush3.bf16.msra.mxu0 %v12448_v28  ;;  %v12497_v28 = vld [vmem:[%s14541_s17 + $0x3e8] sm:$0xff]  }
 0x271   : > { %11829 = vmatprep.subr.bf16.mxu0 %v12451_v31  ;;  %11850 = vmatpush3.bf16.msra.mxu1 %v12450_v30  ;;  %v12499_v30 = vld [vmem:[%s14541_s17 + $0x360] sm:$0xff]  }
 0x272   : > { %11851 = vmatprep.subr.bf16.mxu1 %v12453_v33  ;;  %v12500_v31 = vld [vmem:[%s14541_s17 + $0x320] sm:$0xff]  }
 0x273   : > { %v12502_v33 = vld [vmem:[%s14541_s17 + $0x3a0] sm:$0xff]  }
 0x274   : > { %11830 = vmatpush3.bf16.msra.mxu0 %v12452_v32  ;;  %v12501_v32 = vld [vmem:[%s14541_s17 + $0x3e0] sm:$0xff]  }
 0x275   : > { %11859 = vmatprep.subr.bf16.mxu0 %v12455_v36  ;;  %11852 = vmatpush3.bf16.msra.mxu1 %v12454_v34  ;;  %v12503_v34 = vld [vmem:[%s14541_s17 + $0x358] sm:$0xff]  }
 0x276   : > { %11881 = vmatprep.subr.bf16.mxu1 %v12457_v38  ;;  %v12505_v36 = vld [vmem:[%s14541_s17 + $0x3d8] sm:$0xff]   ;;  %v12507_v38 = vld [vmem:[%s14541_s17 + $0x350] sm:$0xff]  }
 0x277   : > { %10301 = vmatmul.mubr.bf16.vlgmr.msra.gmra.mxu0 %v7509_v35  ;;  %v12504_v35 = vld [vmem:[%s14541_s17 + $0x318] sm:$0xff]  }
 0x278   : > { %11860 = vmatpush3.bf16.msra.mxu0 %v12456_v37  ;;  %10341 = vmatmul.mubr.bf16.vlgmr.msra.gmra.mxu1 %v7525_v40  ;;  %v12506_v37 = vld [vmem:[%s14541_s17 + $0x398] sm:$0xff]   ;;  %v12509_v40 = vld [vmem:[%s14541_s17 + $0x3d0] sm:$0xff]  }
 0x279   : > { %11861 = vmatprep.subr.bf16.mxu0 %v12459_v41  ;;  %11882 = vmatpush3.bf16.msra.mxu1 %v12458_v39  ;;  %v12508_v39 = vld [vmem:[%s14541_s17 + $0x310] sm:$0xff]  }
 0x27a   : > { %11883 = vmatprep.subr.bf16.mxu1 %v12461_v43  ;;  %10380 = vmatprep.mubr.bf16.mxu0 %v7565_v8  ;;  %v12510_v41 = vld [vmem:[%s14541_s17 + $0x390] sm:$0xff]   ;;  %v12512_v43 = vld [vmem:[%s14541_s17 + $0x308] sm:$0xff]   ;;  %v12539_v8 = vld [vmem:[%s14541_s17 + $0x498] sm:$0xff]  }
 0x27b   : > { %10420 = vmatprep.mubr.bf16.mxu1 %v7575_v12  ;;  %v12543_v12 = vld [vmem:[%s14541_s17 + $0x490] sm:$0xff]  }
 0x27c   : > { %11862 = vmatpush3.bf16.msra.mxu0 %v12460_v42  ;;  %v12511_v42 = vld [vmem:[%s14541_s17 + $0x348] sm:$0xff]  }
 0x27d   : > { %11863 = vmatprep.subr.bf16.mxu0 %v12463_v45  ;;  %11884 = vmatpush3.bf16.msra.mxu1 %v12462_v44  ;;  %v12513_v44 = vld [vmem:[%s14541_s17 + $0x3c8] sm:$0xff]  }
 0x27e   : > { %11885 = vmatprep.subr.bf16.mxu1 %v12465_v47  ;;  %v12514_v45 = vld [vmem:[%s14541_s17 + $0x388] sm:$0xff]   ;;  %v12516_v47 = vld [vmem:[%s14541_s17 + $0x300] sm:$0xff]  }
 0x280   : > { %11864 = vmatpush3.bf16.msra.mxu0 %v12464_v46  ;;  %v12515_v46 = vld [vmem:[%s14541_s17 + $0x340] sm:$0xff]  }
 0x281   : > { %11865 = vmatprep.subr.bf16.mxu0 %v12467_v49  ;;  %11886 = vmatpush3.bf16.msra.mxu1 %v12466_v48  ;;  %v12517_v48 = vld [vmem:[%s14541_s17 + $0x3c0] sm:$0xff]  }
 0x282   : > { %11887 = vmatprep.subr.bf16.mxu1 %v12469_v51  ;;  %v12519_v49 = vld [vmem:[%s14541_s17 + $0x380] sm:$0xff]   ;;  %v12520_v51 = vld [vmem:[%s14541_s17 + $0x478] sm:$0xff]  }
 0x284   : > { %11866 = vmatpush3.bf16.msra.mxu0 %v12468_v50  ;;  %v7558_v50 = vrot.slane %v14653_v5, %v14580_v58  ;;  %v12536_v5 = vld [vmem:[%s14541_s17 + $0x458] sm:$0xff]  }
 0x285   : > { %11867 = vmatprep.subr.bf16.mxu0 %v12471_v53  ;;  %11888 = vmatpush3.bf16.msra.mxu1 %v12470_v52  ;;  %v12521_v52 = vld [vmem:[%s14541_s17 + $0x438] sm:$0xff]  }
 0x286   : > { %11889 = vmatprep.subr.bf16.mxu1 %v12473_v55  ;;  %v12522_v53 = vld [vmem:[%s14541_s17 + $0x4f8] sm:$0xff]   ;;  %v7574_v55 = vcombine.high %v7558_v50, %v7558_v50 }
 0x288   : > { %11868 = vmatpush3.bf16.msra.mxu0 %v12472_v54  ;;  %v12523_v54 = vld [vmem:[%s14541_s17 + $0x4b8] sm:$0xff]  }
 0x289   : > { %11869 = vmatprep.subr.bf16.mxu0 %v12475_v57  ;;  %11890 = vmatpush3.bf16.msra.mxu1 %v12474_v56  ;;  %v12524_v56 = vld [vmem:[%s14541_s17 + $0x470] sm:$0xff]  }
 0x28a   : > { %11891 = vmatprep.subr.bf16.mxu1 %v12477_v60  ;;  %v12525_v57 = vld [vmem:[%s14541_s17 + $0x430] sm:$0xff]  }
 0x28b   : > { %v12527_v60 = vld [vmem:[%s14541_s17 + $0x4b0] sm:$0xff]  }
 0x28c   : > { %11870 = vmatpush3.bf16.msra.mxu0 %v12476_v59  ;;  %v12526_v59 = vld [vmem:[%s14541_s17 + $0x4f0] sm:$0xff]  }
 0x28d   : > { %11871 = vmatprep.subr.bf16.mxu0 %v12479_v63  ;;  %11892 = vmatpush3.bf16.msra.mxu1 %v12478_v61  ;;  %v12528_v61 = vld [vmem:[%s14541_s17 + $0x468] sm:$0xff]  }
 0x28e   : > { %11893 = vmatprep.subr.bf16.mxu1 %v12481_v3  ;;  %v12530_v63 = vld [vmem:[%s14541_s17 + $0x4e8] sm:$0xff]   ;;  %v12534_v3 = vld [vmem:[%s14541_s17 + $0x4e0] sm:$0xff]  }
 0x290   : > { %11872 = vmatpush3.bf16.msra.mxu0 %v12480_v2  ;;  %v12533_v2 = vld [vmem:[%s14541_s17 + $0x420] sm:$0xff]  }
 0x291   : > { %11873 = vmatprep.subr.bf16.mxu0 %v12483_v7  ;;  %11894 = vmatpush3.bf16.msra.mxu1 %v12482_v6  ;;  %v12537_v6 = vld [vmem:[%s14541_s17 + $0x418] sm:$0xff]  }
 0x292   : > { %11895 = vmatprep.subr.bf16.mxu1 %v12485_v11  ;;  %v12538_v7 = vld [vmem:[%s14541_s17 + $0x4d8] sm:$0xff]   ;;  %v12542_v11 = vld [vmem:[%s14541_s17 + $0x4d0] sm:$0xff]  }
 0x294   : > { %11874 = vmatpush3.bf16.msra.mxu0 %v12484_v9  ;;  %v12540_v9 = vld [vmem:[%s14541_s17 + $0x450] sm:$0xff]  }
 0x295   : > { %11903 = vmatprep.subr.bf16.mxu0 %v12487_v15  ;;  %11896 = vmatpush3.bf16.msra.mxu1 %v12486_v13  ;;  %v6683_v13 = vld [vmem:[%s14521_s30 + $0x10] sm:$0xff] }
 0x296   : > { %11925 = vmatprep.subr.bf16.mxu1 %v12489_v18  ;;  %v7584_v15 = vrot.slane %v6683_v13, %v14580_v58  ;;  %v12546_v18 = vld [vmem:[%s14541_s17 + $0x4c8] sm:$0xff]  }
 0x297   : > { %10381 = vmatmul.mubr.bf16.vlgmr.msra.gmra.mxu0 %v7551_v14  ;;  %v12544_v14 = vld [vmem:[%s14541_s17 + $0x448] sm:$0xff]  }
 0x298   : > { %11904 = vmatpush3.bf16.msra.mxu0 %v12488_v16  ;;  %10460 = vmatprep.mubr.bf16.mxu0 %v7572_v17  ;;  %v7577_v16 = vcombine.high %v6683_v13, %v6683_v13  ;;  %v12545_v17 = vld [vmem:[%s14541_s17 + $0x408] sm:$0xff]  }
 0x299   : > { %10421 = vmatmul.mubr.bf16.vlgmr.msra.gmra.mxu1 %v7573_v20  ;;  %11905 = vmatprep.subr.bf16.mxu0 %v12491_v21  ;;  %v12547_v21 = vld [vmem:[%s14541_s17 + $0x488] sm:$0xff]  }
 0x29a   : > { %11926 = vmatpush3.bf16.msra.mxu1 %v12490_v19  ;;  %10500 = vmatprep.mubr.bf16.mxu1 %v7576_v23  ;;  %v7592_v19 = vcombine.high %v7584_v15, %v7584_v15  ;;  %v14729_v20 = vrot.slane %v7577_v16, %v14580_v58  ;;  %v12594_v13 = vld [vmem:[%s14541_s17 + $0x628] sm:$0xff]   ;;  %v12597_v16 = vld [vmem:[%s14541_s17 + $0x660] sm:$0xff]  }
 0x29b   : > { %11927 = vmatprep.subr.bf16.mxu1 %v12493_v24  ;;  %v12549_v24 = vld [vmem:[%s14541_s17 + $0x400] sm:$0xff]  }
 0x29c   : > { %11906 = vmatpush3.bf16.msra.mxu0 %v12492_v22  ;;  %v12548_v22 = vld [vmem:[%s14541_s17 + $0x440] sm:$0xff]   ;;  %v7614_v23 = vrot.slane %v7592_v19, %v14580_v58 }
 0x29d   : > { %11907 = vmatprep.subr.bf16.mxu0 %v12495_v26  ;;  %v12550_v26 = vld [vmem:[%s14541_s17 + $0x4c0] sm:$0xff]  }
 0x29e   : > { %11928 = vmatpush3.bf16.msra.mxu1 %v12494_v25  ;;  %v7593_v25 = vcombine.high %v14729_v20, %v14729_v20  ;;  %v12600_v19 = vld [vmem:[%s14541_s17 + $0x6a0] sm:$0xff]  }
 0x29f   : > { %11929 = vmatprep.subr.bf16.mxu1 %v12497_v28  ;;  %v12551_v28 = vld [vmem:[%s14541_s17 + $0x480] sm:$0xff]  }
 0x2a0   : > { %11908 = vmatpush3.bf16.msra.mxu0 %v12496_v27  ;;  %v7624_v27 = vcombine.high %v7614_v23, %v7614_v23 }
 0x2a1   : > { %11909 = vmatprep.subr.bf16.mxu0 %v12499_v30  ;;  %v12552_v30 = vld [vmem:[%s14541_s17 + $0x578] sm:$0xff]  }
 0x2a2   : > { %11930 = vmatpush3.bf16.msra.mxu1 %v12498_v29  ;;  %v7600_v29 = vrot.slane %v7584_v15, %v14580_v58  ;;  %v12596_v15 = vld [vmem:[%s14541_s17 + $0x6a8] sm:$0xff]  }
 0x2a3   : > { %11931 = vmatprep.subr.bf16.mxu1 %v12501_v32  ;;  %v7621_v32 = vrot.slane %v7593_v25, %v14580_v58  ;;  %v12606_v25 = vld [vmem:[%s14541_s17 + $0x610] sm:$0xff]  }
 0x2a4   : > { %11910 = vmatpush3.bf16.msra.mxu0 %v12500_v31  ;;  %v12553_v31 = vld [vmem:[%s14541_s17 + $0x538] sm:$0xff]  }
 0x2a5   : > { %11911 = vmatprep.subr.bf16.mxu0 %v12503_v34  ;;  %v12555_v34 = vld [vmem:[%s14541_s17 + $0x5b8] sm:$0xff]  }
 0x2a6   : > { %11932 = vmatpush3.bf16.msra.mxu1 %v12502_v33  ;;  %v12554_v33 = vld [vmem:[%s14541_s17 + $0x5f8] sm:$0xff]  }
 0x2a7   : > { %11933 = vmatprep.subr.bf16.mxu1 %v12505_v36  ;;  %v12556_v36 = vld [vmem:[%s14541_s17 + $0x570] sm:$0xff]  }
 0x2a8   : > { %11912 = vmatpush3.bf16.msra.mxu0 %v12504_v35  ;;  %v7622_v35 = vcombine.high %v7600_v29, %v7600_v29 }
 0x2a9   : > { %11913 = vmatprep.subr.bf16.mxu0 %v12507_v38  ;;  %v7625_v38 = vcombine.high %v7621_v32, %v7621_v32 }
 0x2aa   : > { %11934 = vmatpush3.bf16.msra.mxu1 %v12506_v37  ;;  %v12557_v37 = vld [vmem:[%s14541_s17 + $0x530] sm:$0xff]  }
 0x2ab   : > { %11935 = vmatprep.subr.bf16.mxu1 %v12509_v40  ;;  %v12559_v40 = vld [vmem:[%s14541_s17 + $0x5b0] sm:$0xff]  }
 0x2ac   : > { %11914 = vmatpush3.bf16.msra.mxu0 %v12508_v39  ;;  %v12558_v39 = vld [vmem:[%s14541_s17 + $0x5f0] sm:$0xff]  }
 0x2ad   : > { %11915 = vmatprep.subr.bf16.mxu0 %v12511_v42  ;;  %v12561_v42 = vld [vmem:[%s14541_s17 + $0x528] sm:$0xff]  }
 0x2ae   : > { %11936 = vmatpush3.bf16.msra.mxu1 %v12510_v41  ;;  %v12560_v41 = vld [vmem:[%s14541_s17 + $0x568] sm:$0xff]  }
 0x2af   : > { %11937 = vmatprep.subr.bf16.mxu1 %v12513_v44  ;;  %v12563_v44 = vld [vmem:[%s14541_s17 + $0x5a8] sm:$0xff]  }
 0x2b0   : > { %11916 = vmatpush3.bf16.msra.mxu0 %v12512_v43  ;;  %v12562_v43 = vld [vmem:[%s14541_s17 + $0x5e8] sm:$0xff]  }
 0x2b1   : > { %11917 = vmatprep.subr.bf16.mxu0 %v12515_v46  ;;  %v12565_v46 = vld [vmem:[%s14541_s17 + $0x520] sm:$0xff]  }
 0x2b2   : > { %11938 = vmatpush3.bf16.msra.mxu1 %v12514_v45  ;;  %v12564_v45 = vld [vmem:[%s14541_s17 + $0x560] sm:$0xff]  }
 0x2b3   : > { %11939 = vmatprep.subr.bf16.mxu1 %v12517_v48  ;;  %v12567_v48 = vld [vmem:[%s14541_s17 + $0x5a0] sm:$0xff]  }
 0x2b4   : > { %11918 = vmatpush3.bf16.msra.mxu0 %v12516_v47  ;;  %v12566_v47 = vld [vmem:[%s14541_s17 + $0x5e0] sm:$0xff]  }
 0x2b5   : > { %11947 = vmatprep.subr.bf16.mxu0 %v12520_v51  ;;  %v12570_v51 = vld [vmem:[%s14541_s17 + $0x5d8] sm:$0xff]  }
 0x2b6   : > { %11940 = vmatpush3.bf16.msra.mxu1 %v12519_v49  ;;  %v12568_v49 = vld [vmem:[%s14541_s17 + $0x558] sm:$0xff]  }
 0x2b7   : > { %10461 = vmatmul.mubr.bf16.vlgmr.msra.gmra.mxu0 %v7558_v50  ;;  %11969 = vmatprep.subr.bf16.mxu1 %v12522_v53  ;;  %v12569_v50 = vld [vmem:[%s14541_s17 + $0x518] sm:$0xff]   ;;  %v12572_v53 = vld [vmem:[%s14541_s17 + $0x550] sm:$0xff]  }
 0x2b8   : > { %11948 = vmatpush3.bf16.msra.mxu0 %v12521_v52  ;;  %10540 = vmatprep.mubr.bf16.mxu0 %v7614_v23  ;;  %v12571_v52 = vld [vmem:[%s14541_s17 + $0x598] sm:$0xff]  }
 0x2b9   : > { %10501 = vmatmul.mubr.bf16.vlgmr.msra.gmra.mxu1 %v7574_v55  ;;  %11949 = vmatprep.subr.bf16.mxu0 %v12524_v56  ;;  %v12574_v55 = vld [vmem:[%s14541_s17 + $0x5d0] sm:$0xff]   ;;  %v12604_v23 = vld [vmem:[%s14541_s17 + $0x698] sm:$0xff]  }
 0x2ba   : > { %11970 = vmatpush3.bf16.msra.mxu1 %v12523_v54  ;;  %10580 = vmatprep.mubr.bf16.mxu1 %v7624_v27  ;;  %v12573_v54 = vld [vmem:[%s14541_s17 + $0x510] sm:$0xff]   ;;  %v12609_v27 = vld [vmem:[%s14541_s17 + $0x648] sm:$0xff]  }
 0x2bb   : > { %11971 = vmatprep.subr.bf16.mxu1 %v12526_v59  ;;  %v12575_v56 = vld [vmem:[%s14541_s17 + $0x590] sm:$0xff]   ;;  %v12577_v59 = vld [vmem:[%s14541_s17 + $0x508] sm:$0xff]  }
 0x2bc   : > { %11950 = vmatpush3.bf16.msra.mxu0 %v12525_v57  ;;  %v12576_v57 = vld [vmem:[%s14541_s17 + $0x548] sm:$0xff]  }
 0x2bd   : > { %11951 = vmatprep.subr.bf16.mxu0 %v12528_v61  ;;  %v12579_v61 = vld [vmem:[%s14541_s17 + $0x588] sm:$0xff]  }
 0x2be   : > { %11972 = vmatpush3.bf16.msra.mxu1 %v12527_v60  ;;  %v12578_v60 = vld [vmem:[%s14541_s17 + $0x5c8] sm:$0xff]  }
 0x2bf   : > { %11973 = vmatprep.subr.bf16.mxu1 %v12530_v63  ;;  %v12581_v63 = vld [vmem:[%s14541_s17 + $0x500] sm:$0xff]  }
 0x2c0   : > { %11952 = vmatpush3.bf16.msra.mxu0 %v12529_v62  ;;  %v12580_v62 = vld [vmem:[%s14541_s17 + $0x540] sm:$0xff]  }
 0x2c1   : > { %11953 = vmatprep.subr.bf16.mxu0 %v12532_v1  ;;  %v12584_v1 = vld [vmem:[%s14541_s17 + $0x580] sm:$0xff]  }
 0x2c2   : > { %11974 = vmatpush3.bf16.msra.mxu1 %v12531_v0  ;;  %v12582_v0 = vld [vmem:[%s14541_s17 + $0x5c0] sm:$0xff]  }
 0x2c3   : > { %11975 = vmatprep.subr.bf16.mxu1 %v12534_v3  ;;  %v12585_v3 = vld [vmem:[%s14541_s17 + $0x678] sm:$0xff]  }
 0x2c4   : > { %11954 = vmatpush3.bf16.msra.mxu0 %v12533_v2  ;;  %v7607_v2 = vrot.slane %v14729_v20, %v14580_v58  ;;  %v12601_v20 = vld [vmem:[%s14541_s17 + $0x658] sm:$0xff]  }
 0x2c5   : > { %11955 = vmatprep.subr.bf16.mxu0 %v12536_v5  ;;  %v12587_v5 = vld [vmem:[%s14541_s17 + $0x6f8] sm:$0xff]  }
 0x2c6   : > { %11976 = vmatpush3.bf16.msra.mxu1 %v12535_v4  ;;  %v12586_v4 = vld [vmem:[%s14541_s17 + $0x638] sm:$0xff]  }
 0x2c7   : > { %11977 = vmatprep.subr.bf16.mxu1 %v12538_v7  ;;  %v7623_v7 = vcombine.high %v7607_v2, %v7607_v2 }
 0x2c8   : > { %11956 = vmatpush3.bf16.msra.mxu0 %v12537_v6  ;;  %v12588_v6 = vld [vmem:[%s14541_s17 + $0x6b8] sm:$0xff]  }
 0x2c9   : > { %11957 = vmatprep.subr.bf16.mxu0 %v12540_v9  ;;  %v12590_v9 = vld [vmem:[%s14541_s17 + $0x630] sm:$0xff]  }
 0x2ca   : > { %11978 = vmatpush3.bf16.msra.mxu1 %v12539_v8  ;;  %v12589_v8 = vld [vmem:[%s14541_s17 + $0x670] sm:$0xff]  }
 0x2cb   : > { %11979 = vmatprep.subr.bf16.mxu1 %v12542_v11  ;;  %v12592_v11 = vld [vmem:[%s14541_s17 + $0x6b0] sm:$0xff]  }
 0x2cc   : > { %11958 = vmatpush3.bf16.msra.mxu0 %v12541_v10  ;;  %v12591_v10 = vld [vmem:[%s14541_s17 + $0x6f0] sm:$0xff]  }
 0x2cd   : > { %11959 = vmatprep.subr.bf16.mxu0 %v12544_v14  ;;  %v12595_v14 = vld [vmem:[%s14541_s17 + $0x6e8] sm:$0xff]  }
 0x2ce   : > { %11980 = vmatpush3.bf16.msra.mxu1 %v12543_v12  ;;  %v12593_v12 = vld [vmem:[%s14541_s17 + $0x668] sm:$0xff]  }
 0x2cf   : > { %11981 = vmatprep.subr.bf16.mxu1 %v12546_v18  ;;  %v12599_v18 = vld [vmem:[%s14541_s17 + $0x6e0] sm:$0xff]  }
 0x2d0   : > { %11960 = vmatpush3.bf16.msra.mxu0 %v12545_v17  ;;  %v12598_v17 = vld [vmem:[%s14541_s17 + $0x620] sm:$0xff]  }
 0x2d1   : > { %11961 = vmatprep.subr.bf16.mxu0 %v12548_v22  ;;  %v12603_v22 = vld [vmem:[%s14541_s17 + $0x6d8] sm:$0xff]  }
 0x2d2   : > { %11982 = vmatpush3.bf16.msra.mxu1 %v12547_v21  ;;  %v12602_v21 = vld [vmem:[%s14541_s17 + $0x618] sm:$0xff]  }
 0x2d3   : > { %11983 = vmatprep.subr.bf16.mxu1 %v12550_v26  ;;  %v12607_v26 = vld [vmem:[%s14541_s17 + $0x6d0] sm:$0xff]  }
 0x2d4   : > { %11962 = vmatpush3.bf16.msra.mxu0 %v12549_v24  ;;  %v12605_v24 = vld [vmem:[%s14541_s17 + $0x650] sm:$0xff]  }
 0x2d5   : > { %11991 = vmatprep.subr.bf16.mxu0 %v12552_v30 }
 0x2d6   : > { %11984 = vmatpush3.bf16.msra.mxu1 %v12551_v28  ;;  %v6684_v28 = vld [vmem:[%s14521_s30 + $0x18] sm:$0xff] }
 0x2d7   : > { %10541 = vmatmul.mubr.bf16.vlgmr.msra.gmra.mxu0 %v7600_v29  ;;  %12013 = vmatprep.subr.bf16.mxu1 %v12554_v33  ;;  %v12608_v29 = vld [vmem:[%s14541_s17 + $0x690] sm:$0xff]   ;;  %v7633_v30 = vrot.slane %v6684_v28, %v14580_v58  ;;  %v12610_v33 = vld [vmem:[%s14541_s17 + $0x608] sm:$0xff]  }
 0x2d8   : > { %11992 = vmatpush3.bf16.msra.mxu0 %v12553_v31  ;;  %10620 = vmatprep.mubr.bf16.mxu0 %v7621_v32  ;;  %v7626_v31 = vcombine.high %v6684_v28, %v6684_v28  ;;  %v12611_v32 = vld [vmem:[%s14541_s17 + $0x6c8] sm:$0xff]   ;;  %v12650_v28 = vld [vmem:[%s14541_s17 + $0x878] sm:$0xff]  }
 0x2d9   : > { %10581 = vmatmul.mubr.bf16.vlgmr.msra.gmra.mxu1 %v7622_v35  ;;  %11993 = vmatprep.subr.bf16.mxu0 %v12556_v36  ;;  %v12613_v36 = vld [vmem:[%s14541_s17 + $0x640] sm:$0xff]  }
 0x2da   : > { %12014 = vmatpush3.bf16.msra.mxu1 %v12555_v34  ;;  %10660 = vmatprep.mubr.bf16.mxu1 %v7625_v38  ;;  %v7641_v34 = vcombine.high %v7633_v30, %v7633_v30  ;;  %v14805_v35 = vrot.slane %v7626_v31, %v14580_v58  ;;  %v12651_v31 = vld [vmem:[%s14541_s17 + $0x838] sm:$0xff]  }
 0x2db   : > { %12015 = vmatprep.subr.bf16.mxu1 %v12558_v39 }
 0x2dc   : > { %11994 = vmatpush3.bf16.msra.mxu0 %v12557_v37  ;;  %v12612_v37 = vld [vmem:[%s14541_s17 + $0x688] sm:$0xff]   ;;  %v7663_v38 = vrot.slane %v7641_v34, %v14580_v58  ;;  %v7642_v39 = vcombine.high %v14805_v35, %v14805_v35  ;;  %v12653_v34 = vld [vmem:[%s14541_s17 + $0x8b8] sm:$0xff]  }
 0x2dd   : > { %11995 = vmatprep.subr.bf16.mxu0 %v12560_v41  ;;  %v12614_v41 = vld [vmem:[%s14541_s17 + $0x600] sm:$0xff]  }
 0x2de   : > { %12016 = vmatpush3.bf16.msra.mxu1 %v12559_v40  ;;  %v12615_v40 = vld [vmem:[%s14541_s17 + $0x6c0] sm:$0xff]  }
 0x2df   : > { %12017 = vmatprep.subr.bf16.mxu1 %v12562_v43  ;;  %v7649_v43 = vrot.slane %v7633_v30, %v14580_v58  ;;  %v12652_v30 = vld [vmem:[%s14541_s17 + $0x8f8] sm:$0xff]  }
 0x2e0   : > { %11996 = vmatpush3.bf16.msra.mxu0 %v12561_v42  ;;  %v7673_v42 = vcombine.high %v7663_v38, %v7663_v38 }
 0x2e1   : > { %11997 = vmatprep.subr.bf16.mxu0 %v12564_v45  ;;  %v12616_v45 = vld [vmem:[%s14541_s17 + $0x680] sm:$0xff]  }
 0x2e2   : > { %12018 = vmatpush3.bf16.msra.mxu1 %v12563_v44  ;;  %v12617_v44 = vld [vmem:[%s14541_s17 + $0x778] sm:$0xff]  }
 0x2e3   : > { %12019 = vmatprep.subr.bf16.mxu1 %v12566_v47  ;;  %v12619_v47 = vld [vmem:[%s14541_s17 + $0x7f8] sm:$0xff]  }
 0x2e4   : > { %11998 = vmatpush3.bf16.msra.mxu0 %v12565_v46  ;;  %v7670_v46 = vrot.slane %v7642_v39, %v14580_v58 }
 0x2e5   : > { %11999 = vmatprep.subr.bf16.mxu0 %v12568_v49  ;;  %v7671_v49 = vcombine.high %v7649_v43, %v7649_v43 }
 0x2e6   : > { %12020 = vmatpush3.bf16.msra.mxu1 %v12567_v48  ;;  %v12618_v48 = vld [vmem:[%s14541_s17 + $0x738] sm:$0xff]  }
 0x2e7   : > { %12021 = vmatprep.subr.bf16.mxu1 %v12570_v51  ;;  %v12620_v51 = vld [vmem:[%s14541_s17 + $0x7b8] sm:$0xff]  }
 0x2e8   : > { %12000 = vmatpush3.bf16.msra.mxu0 %v12569_v50  ;;  %v12621_v50 = vld [vmem:[%s14541_s17 + $0x770] sm:$0xff]  }
 0x2e9   : > { %12001 = vmatprep.subr.bf16.mxu0 %v12572_v53 }
 0x2ea   : > { %12022 = vmatpush3.bf16.msra.mxu1 %v12571_v52  ;;  %v7674_v52 = vcombine.high %v7670_v46, %v7670_v46 }
 0x2eb   : > { %12023 = vmatprep.subr.bf16.mxu1 %v12574_v55  ;;  %v12622_v55 = vld [vmem:[%s14541_s17 + $0x730] sm:$0xff]  }
 0x2ec   : > { %12002 = vmatpush3.bf16.msra.mxu0 %v12573_v54  ;;  %v12623_v54 = vld [vmem:[%s14541_s17 + $0x7f0] sm:$0xff]  }
 0x2ed   : > { %12003 = vmatprep.subr.bf16.mxu0 %v12576_v57 }
 0x2ee   : > { %12024 = vmatpush3.bf16.msra.mxu1 %v12575_v56 }
 0x2ef   : > { %12025 = vmatprep.subr.bf16.mxu1 %v12578_v60 }
 0x2f0   : > { %12004 = vmatpush3.bf16.msra.mxu0 %v12577_v59  ;;  %v12625_v59 = vld [vmem:[%s14541_s17 + $0x768] sm:$0xff]  }
 0x2f1   : > { %12005 = vmatprep.subr.bf16.mxu0 %v12580_v62 }
 0x2f2   : > { %12026 = vmatpush3.bf16.msra.mxu1 %v12579_v61  ;;  %v12624_v61 = vld [vmem:[%s14541_s17 + $0x7b0] sm:$0xff]  }
 0x2f3   : > { %12027 = vmatprep.subr.bf16.mxu1 %v12582_v0  ;;  %v12627_v0 = vld [vmem:[%s14541_s17 + $0x7e8] sm:$0xff]  }
 0x2f4   : > { %12006 = vmatpush3.bf16.msra.mxu0 %v12581_v63 }
 0x2f5   : > { %12035 = vmatprep.subr.bf16.mxu0 %v12585_v3 }
 0x2f6   : > { %12028 = vmatpush3.bf16.msra.mxu1 %v12584_v1 }
 0x2f7   : > { %10621 = vmatmul.mubr.bf16.vlgmr.msra.gmra.mxu0 %v7607_v2  ;;  %12057 = vmatprep.subr.bf16.mxu1 %v12587_v5  ;;  %v12626_v2 = vld [vmem:[%s14541_s17 + $0x728] sm:$0xff]  }
 0x2f8   : > { %12036 = vmatpush3.bf16.msra.mxu0 %v12586_v4  ;;  %10700 = vmatprep.mubr.bf16.mxu0 %v7663_v38  ;;  %v12629_v4 = vld [vmem:[%s14541_s17 + $0x760] sm:$0xff]  }
 0x2f9   : > { %10661 = vmatmul.mubr.bf16.vlgmr.msra.gmra.mxu1 %v7623_v7  ;;  %12037 = vmatprep.subr.bf16.mxu0 %v12589_v8  ;;  %v12628_v7 = vld [vmem:[%s14541_s17 + $0x7a8] sm:$0xff]   ;;  %v12631_v8 = vld [vmem:[%s14541_s17 + $0x7e0] sm:$0xff]  }
 0x2fa   : > { %12058 = vmatpush3.bf16.msra.mxu1 %v12588_v6  ;;  %10740 = vmatprep.mubr.bf16.mxu1 %v7673_v42  ;;  %v12657_v42 = vld [vmem:[%s14541_s17 + $0x8b0] sm:$0xff]  }
 0x2fb   : > { %12059 = vmatprep.subr.bf16.mxu1 %v12591_v10  ;;  %v12630_v10 = vld [vmem:[%s14541_s17 + $0x720] sm:$0xff]  }
 0x2fc   : > { %12038 = vmatpush3.bf16.msra.mxu0 %v12590_v9 }
 0x2fd   : > { %12039 = vmatprep.subr.bf16.mxu0 %v12593_v12  ;;  %v12632_v12 = vld [vmem:[%s14541_s17 + $0x7a0] sm:$0xff]  }
 0x2fe   : > { %12060 = vmatpush3.bf16.msra.mxu1 %v12592_v11  ;;  %v12633_v11 = vld [vmem:[%s14541_s17 + $0x758] sm:$0xff]  }
 0x2ff   : > { %12061 = vmatprep.subr.bf16.mxu1 %v12595_v14  ;;  %v12634_v14 = vld [vmem:[%s14541_s17 + $0x718] sm:$0xff]  }
 0x300   : > { %12040 = vmatpush3.bf16.msra.mxu0 %v12594_v13  ;;  %v12635_v13 = vld [vmem:[%s14541_s17 + $0x7d8] sm:$0xff]  }
 0x301   : > { %12041 = vmatprep.subr.bf16.mxu0 %v12597_v16  ;;  %v12636_v16 = vld [vmem:[%s14541_s17 + $0x798] sm:$0xff]  }
 0x302   : > { %12062 = vmatpush3.bf16.msra.mxu1 %v12596_v15  ;;  %v12637_v15 = vld [vmem:[%s14541_s17 + $0x750] sm:$0xff]  }
 0x303   : > { %12063 = vmatprep.subr.bf16.mxu1 %v12599_v18  ;;  %v12638_v18 = vld [vmem:[%s14541_s17 + $0x710] sm:$0xff]  }
 0x304   : > { %12042 = vmatpush3.bf16.msra.mxu0 %v12598_v17  ;;  %v12639_v17 = vld [vmem:[%s14541_s17 + $0x7d0] sm:$0xff]  }
 0x305   : > { %12043 = vmatprep.subr.bf16.mxu0 %v12601_v20  ;;  %v12640_v20 = vld [vmem:[%s14541_s17 + $0x790] sm:$0xff]  }
 0x306   : > { %12064 = vmatpush3.bf16.msra.mxu1 %v12600_v19  ;;  %v12641_v19 = vld [vmem:[%s14541_s17 + $0x748] sm:$0xff]  }
 0x307   : > { %12065 = vmatprep.subr.bf16.mxu1 %v12603_v22  ;;  %v12642_v22 = vld [vmem:[%s14541_s17 + $0x708] sm:$0xff]  }
 0x308   : > { %12044 = vmatpush3.bf16.msra.mxu0 %v12602_v21  ;;  %v12643_v21 = vld [vmem:[%s14541_s17 + $0x7c8] sm:$0xff]  }
 0x309   : > { %12045 = vmatprep.subr.bf16.mxu0 %v12605_v24  ;;  %v12644_v24 = vld [vmem:[%s14541_s17 + $0x788] sm:$0xff]  }
 0x30a   : > { %12066 = vmatpush3.bf16.msra.mxu1 %v12604_v23  ;;  %v12645_v23 = vld [vmem:[%s14541_s17 + $0x740] sm:$0xff]  }
 0x30b   : > { %12067 = vmatprep.subr.bf16.mxu1 %v12607_v26  ;;  %v12646_v26 = vld [vmem:[%s14541_s17 + $0x700] sm:$0xff]  }
 0x30c   : > { %12046 = vmatpush3.bf16.msra.mxu0 %v12606_v25  ;;  %v12647_v25 = vld [vmem:[%s14541_s17 + $0x7c0] sm:$0xff]  }
 0x30d   : > { %12047 = vmatprep.subr.bf16.mxu0 %v12609_v27  ;;  %v7656_v27 = vrot.slane %v14805_v35, %v14580_v58  ;;  %v12656_v35 = vld [vmem:[%s14541_s17 + $0x8f0] sm:$0xff]  }
 0x30e   : > { %12068 = vmatpush3.bf16.msra.mxu1 %v12608_v29  ;;  %v12649_v29 = vld [vmem:[%s14541_s17 + $0x780] sm:$0xff]  }
 0x30f   : > { %12069 = vmatprep.subr.bf16.mxu1 %v12611_v32  ;;  %v7672_v32 = vcombine.high %v7656_v27, %v7656_v27 }
 0x310   : > { %12048 = vmatpush3.bf16.msra.mxu0 %v12610_v33  ;;  %v12654_v33 = vld [vmem:[%s14541_s17 + $0x870] sm:$0xff]  }
 0x311   : > { %12049 = vmatprep.subr.bf16.mxu0 %v12613_v36 }
 0x312   : > { %12070 = vmatpush3.bf16.msra.mxu1 %v12612_v37  ;;  %v12655_v37 = vld [vmem:[%s14541_s17 + $0x830] sm:$0xff]  }
 0x313   : > { %12071 = vmatprep.subr.bf16.mxu1 %v12615_v40  ;;  %v12658_v40 = vld [vmem:[%s14541_s17 + $0x868] sm:$0xff]  }
 0x314   : > { %12050 = vmatpush3.bf16.msra.mxu0 %v12614_v41 }
 0x315   : > { %12079 = vmatprep.subr.bf16.mxu0 %v12617_v44 }
 0x316   : > { %12072 = vmatpush3.bf16.msra.mxu1 %v12616_v45  ;;  %v12660_v45 = vld [vmem:[%s14541_s17 + $0x8e8] sm:$0xff]  }
 0x317   : > { %v11787_v53 = vpop.f32.mrf.mxu0  ;;  %10701 = vmatmul.mubr.bf16.vlgmr.msra.gmra.mxu0 %v7649_v43  ;;  %12101 = vmatprep.subr.bf16.mxu1 %v12619_v47 }
 0x318   : > { %12080 = vmatpush3.bf16.msra.mxu0 %v12618_v48  ;;  %10780 = vmatprep.mubr.bf16.mxu0 %v7670_v46  ;;  %v11809_v56 = vpop.f32.mrf.mxu1  ;;  %v12659_v48 = vld [vmem:[%s14541_s17 + $0x828] sm:$0xff]  }
 0x319   : > { %v11788_v57 = vpop.f32.mrf.mxu0  ;;  %10741 = vmatmul.mubr.bf16.vlgmr.msra.gmra.mxu1 %v7671_v49  ;;  %12081 = vmatprep.subr.bf16.mxu0 %v12621_v50  ;;  %v12662_v50 = vld [vmem:[%s14541_s17 + $0x860] sm:$0xff]  }
 0x31a   : > { %v11789_v60 = vadd.f32 %v11788_v57, %v11787_v53  ;;  %12102 = vmatpush3.bf16.msra.mxu1 %v12620_v51  ;;  %10820 = vmatprep.mubr.bf16.mxu1 %v7674_v52  ;;  %v11810_v62 = vpop.f32.mrf.mxu1  ;;  %v12661_v53 = vld [vmem:[%s14541_s17 + $0x8a8] sm:$0xff]   ;;  %v12666_v57 = vld [vmem:[%s14541_s17 + $0x858] sm:$0xff]  }
 0x31b   : > { %v11790_v63 = vpop.f32.mrf.mxu0  ;;  %12103 = vmatprep.subr.bf16.mxu1 %v12623_v54  ;;  %v11811_v1 = vadd.f32 %v11810_v62, %v11809_v56  ;;  %v12664_v54 = vld [vmem:[%s14541_s17 + $0x8e0] sm:$0xff]   ;;  %v12670_v62 = vld [vmem:[%s14541_s17 + $0x850] sm:$0xff]  }
 0x31c   : > { %12082 = vmatpush3.bf16.msra.mxu0 %v12622_v55  ;;  %v11812_v5 = vpop.f32.mrf.mxu1  ;;  %v12663_v56 = vld [vmem:[%s14541_s17 + $0x820] sm:$0xff]   ;;  %v12669_v63 = vld [vmem:[%s14541_s17 + $0x898] sm:$0xff]  }
 0x31d   : > { %v11791_v3 = vpop.f32.mrf.mxu0  ;;  %12083 = vmatprep.subr.bf16.mxu0 %v12625_v59  ;;  %v14829_v6 = vadd.f32 %v11811_v1, %v11789_v60  ;;  %v12665_v59 = vld [vmem:[%s14541_s17 + $0x8a0] sm:$0xff]   ;;  %v12668_v60 = vld [vmem:[%s14541_s17 + $0x8d8] sm:$0xff]   ;;  %v12671_v1 = vld [vmem:[%s14541_s17 + $0x810] sm:$0xff]  }
 0x31e   : > { %12104 = vmatpush3.bf16.msra.mxu1 %v12624_v61  ;;  %v11813_v9 = vpop.f32.mrf.mxu1  ;;  %v12667_v61 = vld [vmem:[%s14541_s17 + $0x818] sm:$0xff]   ;;  %v6685_v3 = vld [vmem:[%s14521_s30 + $0x20] sm:$0xff] }
 0x31f   : > { %12105 = vmatprep.subr.bf16.mxu1 %v12627_v0  ;;  %v12672_v0 = vld [vmem:[%s14541_s17 + $0x8d0] sm:$0xff]   ;;  %v7682_v5 = vrot.slane %v6685_v3, %v14580_v58 }
 0x320   : > { %12084 = vmatpush3.bf16.msra.mxu0 %v12626_v2  ;;  %v12674_v2 = vld [vmem:[%s14541_s17 + $0x848] sm:$0xff]  }
 0x321   : > { %12085 = vmatprep.subr.bf16.mxu0 %v12629_v4  ;;  %v12673_v4 = vld [vmem:[%s14541_s17 + $0x890] sm:$0xff]   ;;  %v7690_v9 = vcombine.high %v7682_v5, %v7682_v5 }
 0x322   : > { %12106 = vmatpush3.bf16.msra.mxu1 %v12628_v7  ;;  %v12676_v7 = vld [vmem:[%s14541_s17 + $0x8c8] sm:$0xff]  }
 0x323   : > { %12107 = vmatprep.subr.bf16.mxu1 %v12631_v8  ;;  %v12675_v8 = vld [vmem:[%s14541_s17 + $0x808] sm:$0xff]  }
 0x324   : > { %12086 = vmatpush3.bf16.msra.mxu0 %v12630_v10 }
 0x325   : > { %12087 = vmatprep.subr.bf16.mxu0 %v12633_v11  ;;  %v12678_v11 = vld [vmem:[%s14541_s17 + $0x840] sm:$0xff]  }
 0x326   : > { %12108 = vmatpush3.bf16.msra.mxu1 %v12632_v12  ;;  %v12677_v12 = vld [vmem:[%s14541_s17 + $0x888] sm:$0xff]  }
 0x327   : > { %12109 = vmatprep.subr.bf16.mxu1 %v12635_v13  ;;  %v7712_v13 = vrot.slane %v7690_v9, %v14580_v58  ;;  %v12719_v9 = vld [vmem:[%s14541_s17 + $0xa70] sm:$0xff]  }
 0x328   : > { %12088 = vmatpush3.bf16.msra.mxu0 %v12634_v14 }
 0x329   : > { %12089 = vmatprep.subr.bf16.mxu0 %v12637_v15  ;;  %v12680_v15 = vld [vmem:[%s14541_s17 + $0x8c0] sm:$0xff]  }
 0x32a   : > { %12110 = vmatpush3.bf16.msra.mxu1 %v12636_v16  ;;  %v12679_v16 = vld [vmem:[%s14541_s17 + $0x800] sm:$0xff]  }
 0x32b   : > { %12111 = vmatprep.subr.bf16.mxu1 %v12639_v17  ;;  %v7722_v17 = vcombine.high %v7712_v13, %v7712_v13 }
 0x32c   : > { %12090 = vmatpush3.bf16.msra.mxu0 %v12638_v18  ;;  %v7698_v18 = vrot.slane %v7682_v5, %v14580_v58  ;;  %v12714_v5 = vld [vmem:[%s14541_s17 + $0x980] sm:$0xff]  }
 0x32d   : > { %12091 = vmatprep.subr.bf16.mxu0 %v12641_v19  ;;  %v12682_v19 = vld [vmem:[%s14541_s17 + $0x978] sm:$0xff]  }
 0x32e   : > { %12112 = vmatpush3.bf16.msra.mxu1 %v12640_v20  ;;  %v12681_v20 = vld [vmem:[%s14541_s17 + $0x880] sm:$0xff]  }
 0x32f   : > { %12113 = vmatprep.subr.bf16.mxu1 %v12643_v21 }
 0x330   : > { %12092 = vmatpush3.bf16.msra.mxu0 %v12642_v22  ;;  %v12684_v22 = vld [vmem:[%s14541_s17 + $0x9f8] sm:$0xff]  }
 0x331   : > { %12093 = vmatprep.subr.bf16.mxu0 %v12645_v23  ;;  %v12683_v23 = vld [vmem:[%s14541_s17 + $0x938] sm:$0xff]  }
 0x332   : > { %12114 = vmatpush3.bf16.msra.mxu1 %v12644_v24  ;;  %v7720_v24 = vcombine.high %v7698_v18, %v7698_v18 }
 0x333   : > { %12115 = vmatprep.subr.bf16.mxu1 %v12647_v25  ;;  %v12686_v25 = vld [vmem:[%s14541_s17 + $0x970] sm:$0xff]  }
 0x334   : > { %12094 = vmatpush3.bf16.msra.mxu0 %v12646_v26  ;;  %v12685_v26 = vld [vmem:[%s14541_s17 + $0x9b8] sm:$0xff]  }
 0x335   : > { %12123 = vmatprep.subr.bf16.mxu0 %v12650_v28 }
 0x336   : > { %12116 = vmatpush3.bf16.msra.mxu1 %v12649_v29  ;;  %v12688_v29 = vld [vmem:[%s14541_s17 + $0x9f0] sm:$0xff]  }
 0x337   : > { %v11831_v36 = vpop.f32.mrf.mxu0  ;;  %10781 = vmatmul.mubr.bf16.vlgmr.msra.gmra.mxu0 %v7656_v27  ;;  %12145 = vmatprep.subr.bf16.mxu1 %v12652_v30  ;;  %v12687_v30 = vld [vmem:[%s14541_s17 + $0x930] sm:$0xff]  }
 0x338   : > { %12124 = vmatpush3.bf16.msra.mxu0 %v12651_v31  ;;  %v11853_v39 = vpop.f32.mrf.mxu1  ;;  %10860 = vmatprep.mubr.bf16.mxu0 %v7712_v13  ;;  %v12720_v13 = vld [vmem:[%s14541_s17 + $0xa30] sm:$0xff]  }
 0x339   : > { %v11832_v38 = vpop.f32.mrf.mxu0  ;;  %10821 = vmatmul.mubr.bf16.vlgmr.msra.gmra.mxu1 %v7672_v32  ;;  %12125 = vmatprep.subr.bf16.mxu0 %v12654_v33  ;;  %v12690_v33 = vld [vmem:[%s14541_s17 + $0x968] sm:$0xff]  }
 0x33a   : > { %v11833_v41 = vadd.f32 %v11832_v38, %v11831_v36  ;;  %12146 = vmatpush3.bf16.msra.mxu1 %v12653_v34  ;;  %v11854_v44 = vpop.f32.mrf.mxu1  ;;  %10900 = vmatprep.mubr.bf16.mxu1 %v7722_v17  ;;  %v12689_v36 = vld [vmem:[%s14541_s17 + $0x9b0] sm:$0xff]   ;;  %v12692_v38 = vld [vmem:[%s14541_s17 + $0x9e8] sm:$0xff]  }
 0x33b   : > { %v11834_v43 = vpop.f32.mrf.mxu0  ;;  %12147 = vmatprep.subr.bf16.mxu1 %v12656_v35  ;;  %v11855_v47 = vadd.f32 %v11854_v44, %v11853_v39 }
 0x33c   : > { %v10303_v46 = vadd.f32 %v11833_v41, %v14829_v6  ;;  %12126 = vmatpush3.bf16.msra.mxu0 %v12655_v37  ;;  %v11856_v51 = vpop.f32.mrf.mxu1  ;;  %v7675_v6 = vcombine.high %v6685_v3, %v6685_v3  ;;  %v12691_v41 = vld [vmem:[%s14541_s17 + $0x928] sm:$0xff]   ;;  %v12694_v43 = vld [vmem:[%s14541_s17 + $0x960] sm:$0xff]  }
 0x33d   : > { %v11835_v49 = vpop.f32.mrf.mxu0  ;;  %12127 = vmatprep.subr.bf16.mxu0 %v12658_v40  ;;  %v12697_v51 = vld [vmem:[%s14541_s17 + $0x9a0] sm:$0xff]  }
 0x33e   : > { %v14866_v52 = vadd.f32 %v11855_v47, %v10303_v46  ;;  %12148 = vmatpush3.bf16.msra.mxu1 %v12657_v42  ;;  %v11857_v55 = vpop.f32.mrf.mxu1  ;;  %v14886_v10 = vrot.slane %v7675_v6, %v14580_v58  ;;  %v12693_v46 = vld [vmem:[%s14541_s17 + $0x9a8] sm:$0xff]   ;;  %v12696_v47 = vld [vmem:[%s14541_s17 + $0x9e0] sm:$0xff]   ;;  %v12717_v6 = vld [vmem:[%s14541_s17 + $0xaf8] sm:$0xff]  }
 0x33f   : > { %12149 = vmatprep.subr.bf16.mxu1 %v12660_v45  ;;  %v12695_v49 = vld [vmem:[%s14541_s17 + $0x920] sm:$0xff]   ;;  %v12701_v55 = vld [vmem:[%s14541_s17 + $0x998] sm:$0xff]  }
 0x340   : > { %12128 = vmatpush3.bf16.msra.mxu0 %v12659_v48  ;;  %v7691_v14 = vcombine.high %v14886_v10, %v14886_v10  ;;  %v7705_v3 = vrot.slane %v14886_v10, %v14580_v58  ;;  %v12721_v10 = vld [vmem:[%s14541_s17 + $0xaf0] sm:$0xff]  }
 0x341   : > { %12129 = vmatprep.subr.bf16.mxu0 %v12662_v50  ;;  %v12698_v50 = vld [vmem:[%s14541_s17 + $0x958] sm:$0xff]  }
 0x342   : > { %12150 = vmatpush3.bf16.msra.mxu1 %v12661_v53  ;;  %v7719_v21 = vrot.slane %v7691_v14, %v14580_v58  ;;  %v12699_v53 = vld [vmem:[%s14541_s17 + $0x918] sm:$0xff]  }
 0x343   : > { %12151 = vmatprep.subr.bf16.mxu1 %v12664_v54  ;;  %v12702_v54 = vld [vmem:[%s14541_s17 + $0x950] sm:$0xff]  }
 0x344   : > { %12130 = vmatpush3.bf16.msra.mxu0 %v12663_v56  ;;  %v7723_v27 = vcombine.high %v7719_v21, %v7719_v21  ;;  %v12704_v56 = vld [vmem:[%s14541_s17 + $0x9d0] sm:$0xff]  }
 0x345   : > { %12131 = vmatprep.subr.bf16.mxu0 %v12666_v57  ;;  %v12703_v57 = vld [vmem:[%s14541_s17 + $0x910] sm:$0xff]  }
 0x346   : > { %12152 = vmatpush3.bf16.msra.mxu1 %v12665_v59  ;;  %v12706_v59 = vld [vmem:[%s14541_s17 + $0x948] sm:$0xff]  }
 0x347   : > { %12153 = vmatprep.subr.bf16.mxu1 %v12668_v60  ;;  %v12705_v60 = vld [vmem:[%s14541_s17 + $0x990] sm:$0xff]  }
 0x348   : > { %12132 = vmatpush3.bf16.msra.mxu0 %v12667_v61  ;;  %v12708_v61 = vld [vmem:[%s14541_s17 + $0x9c8] sm:$0xff]  }
 0x349   : > { %12133 = vmatprep.subr.bf16.mxu0 %v12670_v62  ;;  %v12707_v62 = vld [vmem:[%s14541_s17 + $0x908] sm:$0xff]  }
 0x34a   : > { %12154 = vmatpush3.bf16.msra.mxu1 %v12669_v63  ;;  %v12710_v63 = vld [vmem:[%s14541_s17 + $0x940] sm:$0xff]  }
 0x34b   : > { %12155 = vmatprep.subr.bf16.mxu1 %v12672_v0  ;;  %v12709_v0 = vld [vmem:[%s14541_s17 + $0x988] sm:$0xff]  }
 0x34c   : > { %12134 = vmatpush3.bf16.msra.mxu0 %v12671_v1  ;;  %v12712_v1 = vld [vmem:[%s14541_s17 + $0x9c0] sm:$0xff]  }
 0x34d   : > { %12135 = vmatprep.subr.bf16.mxu0 %v12674_v2  ;;  %v12711_v2 = vld [vmem:[%s14541_s17 + $0x900] sm:$0xff]  }
 0x34e   : > { %12156 = vmatpush3.bf16.msra.mxu1 %v12673_v4  ;;  %v12715_v4 = vld [vmem:[%s14541_s17 + $0xa78] sm:$0xff]  }
 0x34f   : > { %12157 = vmatprep.subr.bf16.mxu1 %v12676_v7  ;;  %v12716_v7 = vld [vmem:[%s14541_s17 + $0xa38] sm:$0xff]  }
 0x350   : > { %12136 = vmatpush3.bf16.msra.mxu0 %v12675_v8  ;;  %v7721_v8 = vcombine.high %v7705_v3, %v7705_v3 }
 0x351   : > { %12137 = vmatprep.subr.bf16.mxu0 %v12678_v11  ;;  %v12718_v11 = vld [vmem:[%s14541_s17 + $0xab8] sm:$0xff]  }
 0x352   : > { %12158 = vmatpush3.bf16.msra.mxu1 %v12677_v12 }
 0x353   : > { %12159 = vmatprep.subr.bf16.mxu1 %v12680_v15 }
 0x354   : > { %12138 = vmatpush3.bf16.msra.mxu0 %v12679_v16  ;;  %v12723_v16 = vld [vmem:[%s14541_s17 + $0xa68] sm:$0xff]  }
 0x355   : > { %12167 = vmatprep.subr.bf16.mxu0 %v12682_v19 }
 0x356   : > { %12160 = vmatpush3.bf16.msra.mxu1 %v12681_v20 }
 0x357   : > { %v11875_v28 = vpop.f32.mrf.mxu0  ;;  %10861 = vmatmul.mubr.bf16.vlgmr.msra.gmra.mxu0 %v7698_v18  ;;  %12189 = vmatprep.subr.bf16.mxu1 %v12684_v22  ;;  %v12722_v18 = vld [vmem:[%s14541_s17 + $0xab0] sm:$0xff]  }
 0x358   : > { %12168 = vmatpush3.bf16.msra.mxu0 %v12683_v23  ;;  %10940 = vmatprep.mubr.bf16.mxu0 %v7719_v21  ;;  %v12725_v21 = vld [vmem:[%s14541_s17 + $0xae8] sm:$0xff]  }
 0x359   : > { %v11876_v31 = vpop.f32.mrf.mxu0  ;;  %v11897_v32 = vpop.f32.mrf.mxu1  ;;  %10901 = vmatmul.mubr.bf16.vlgmr.msra.gmra.mxu1 %v7720_v24  ;;  %12169 = vmatprep.subr.bf16.mxu0 %v12686_v25  ;;  %v12724_v24 = vld [vmem:[%s14541_s17 + $0xa28] sm:$0xff]  }
 0x35a   : > { %v11877_v34 = vadd.f32 %v11876_v31, %v11875_v28  ;;  %12190 = vmatpush3.bf16.msra.mxu1 %v12685_v26  ;;  %10980 = vmatprep.mubr.bf16.mxu1 %v7723_v27  ;;  %v12727_v26 = vld [vmem:[%s14541_s17 + $0xa60] sm:$0xff]  }
 0x35b   : > { %v11878_v35 = vpop.f32.mrf.mxu0  ;;  %v11898_v37 = vpop.f32.mrf.mxu1  ;;  %12191 = vmatprep.subr.bf16.mxu1 %v12688_v29  ;;  %v12726_v29 = vld [vmem:[%s14541_s17 + $0xaa8] sm:$0xff]  }
 0x35c   : > { %v10383_v39 = vadd.f32 %v11877_v34, %v14866_v52  ;;  %v11899_v40 = vadd.f32 %v11898_v37, %v11897_v32  ;;  %12170 = vmatpush3.bf16.msra.mxu0 %v12687_v30  ;;  %v12700_v52 = vld [vmem:[%s14541_s17 + $0x9d8] sm:$0xff]   ;;  %v12729_v30 = vld [vmem:[%s14541_s17 + $0xae0] sm:$0xff]   ;;  %v12735_v37 = vld [vmem:[%s14541_s17 + $0xa50] sm:$0xff]  }
 0x35d   : > { %v11879_v42 = vpop.f32.mrf.mxu0  ;;  %12171 = vmatprep.subr.bf16.mxu0 %v12690_v33  ;;  %v11900_v44 = vpop.f32.mrf.mxu1  ;;  %v12728_v32 = vld [vmem:[%s14541_s17 + $0xa20] sm:$0xff]   ;;  %v12731_v33 = vld [vmem:[%s14541_s17 + $0xa58] sm:$0xff]  }
 0x35e   : > { %v14911_v45 = vadd.f32 %v11899_v40, %v10383_v39  ;;  %12192 = vmatpush3.bf16.msra.mxu1 %v12689_v36  ;;  %v12730_v34 = vld [vmem:[%s14541_s17 + $0xaa0] sm:$0xff]   ;;  %v12733_v36 = vld [vmem:[%s14541_s17 + $0xad8] sm:$0xff]   ;;  %v12737_v39 = vld [vmem:[%s14541_s17 + $0xad0] sm:$0xff]  }
 0x35f   : > { %12193 = vmatprep.subr.bf16.mxu1 %v12692_v38  ;;  %v11901_v48 = vpop.f32.mrf.mxu1  ;;  %v12732_v35 = vld [vmem:[%s14541_s17 + $0xa18] sm:$0xff]   ;;  %v12736_v40 = vld [vmem:[%s14541_s17 + $0xa10] sm:$0xff]   ;;  %v6686_v42 = vld [vmem:[%s14521_s30 + $0x28] sm:$0xff] }
 0x360   : > { %12172 = vmatpush3.bf16.msra.mxu0 %v12691_v41  ;;  %v12734_v38 = vld [vmem:[%s14541_s17 + $0xa98] sm:$0xff]   ;;  %v12739_v41 = vld [vmem:[%s14541_s17 + $0xa48] sm:$0xff]   ;;  %v7731_v44 = vrot.slane %v6686_v42, %v14580_v58 }
 0x361   : > { %12173 = vmatprep.subr.bf16.mxu0 %v12694_v43  ;;  %v12738_v43 = vld [vmem:[%s14541_s17 + $0xa90] sm:$0xff]  }
 0x362   : > { %12194 = vmatpush3.bf16.msra.mxu1 %v12693_v46  ;;  %v12741_v46 = vld [vmem:[%s14541_s17 + $0xac8] sm:$0xff]   ;;  %v7739_v48 = vcombine.high %v7731_v44, %v7731_v44 }
 0x363   : > { %12195 = vmatprep.subr.bf16.mxu1 %v12696_v47  ;;  %v12740_v47 = vld [vmem:[%s14541_s17 + $0xa08] sm:$0xff]  }
 0x364   : > { %12174 = vmatpush3.bf16.msra.mxu0 %v12695_v49 }
 0x365   : > { %12175 = vmatprep.subr.bf16.mxu0 %v12698_v50  ;;  %v12743_v50 = vld [vmem:[%s14541_s17 + $0xa40] sm:$0xff]  }
 0x366   : > { %12196 = vmatpush3.bf16.msra.mxu1 %v12697_v51  ;;  %v12742_v51 = vld [vmem:[%s14541_s17 + $0xa88] sm:$0xff]  }
 0x367   : > { %12197 = vmatprep.subr.bf16.mxu1 %v12700_v52  ;;  %v7761_v52 = vrot.slane %v7739_v48, %v14580_v58  ;;  %v12781_v48 = vld [vmem:[%s14541_s17 + $0xc30] sm:$0xff]  }
 0x368   : > { %12176 = vmatpush3.bf16.msra.mxu0 %v12699_v53 }
 0x369   : > { %12177 = vmatprep.subr.bf16.mxu0 %v12702_v54  ;;  %v12745_v54 = vld [vmem:[%s14541_s17 + $0xac0] sm:$0xff]  }
 0x36a   : > { %12198 = vmatpush3.bf16.msra.mxu1 %v12701_v55  ;;  %v12744_v55 = vld [vmem:[%s14541_s17 + $0xa00] sm:$0xff]  }
 0x36b   : > { %12199 = vmatprep.subr.bf16.mxu1 %v12704_v56  ;;  %v7771_v56 = vcombine.high %v7761_v52, %v7761_v52 }
 0x36c   : > { %12178 = vmatpush3.bf16.msra.mxu0 %v12703_v57  ;;  %v7747_v57 = vrot.slane %v7731_v44, %v14580_v58  ;;  %v12780_v44 = vld [vmem:[%s14541_s17 + $0xc38] sm:$0xff]  }
 0x36d   : > { %12179 = vmatprep.subr.bf16.mxu0 %v12706_v59  ;;  %v12747_v59 = vld [vmem:[%s14541_s17 + $0xb78] sm:$0xff]  }
 0x36e   : > { %12200 = vmatpush3.bf16.msra.mxu1 %v12705_v60  ;;  %v12746_v60 = vld [vmem:[%s14541_s17 + $0xa80] sm:$0xff]  }
 0x36f   : > { %12201 = vmatprep.subr.bf16.mxu1 %v12708_v61 }
 0x370   : > { %12180 = vmatpush3.bf16.msra.mxu0 %v12707_v62  ;;  %v12749_v62 = vld [vmem:[%s14541_s17 + $0xbf8] sm:$0xff]  }
 0x371   : > { %12181 = vmatprep.subr.bf16.mxu0 %v12710_v63  ;;  %v12748_v63 = vld [vmem:[%s14541_s17 + $0xb38] sm:$0xff]  }
 0x372   : > { %12202 = vmatpush3.bf16.msra.mxu1 %v12709_v0  ;;  %v7769_v0 = vcombine.high %v7747_v57, %v7747_v57 }
 0x373   : > { %12203 = vmatprep.subr.bf16.mxu1 %v12712_v1  ;;  %v12751_v1 = vld [vmem:[%s14541_s17 + $0xb70] sm:$0xff]  }
 0x374   : > { %12182 = vmatpush3.bf16.msra.mxu0 %v12711_v2  ;;  %v12750_v2 = vld [vmem:[%s14541_s17 + $0xbb8] sm:$0xff]  }
 0x375   : > { %12211 = vmatprep.subr.bf16.mxu0 %v12715_v4 }
 0x376   : > { %12204 = vmatpush3.bf16.msra.mxu1 %v12714_v5  ;;  %v12753_v5 = vld [vmem:[%s14541_s17 + $0xbf0] sm:$0xff]  }
 0x377   : > { %v11919_v12 = vpop.f32.mrf.mxu0  ;;  %10941 = vmatmul.mubr.bf16.vlgmr.msra.gmra.mxu0 %v7705_v3  ;;  %12233 = vmatprep.subr.bf16.mxu1 %v12717_v6  ;;  %v12752_v6 = vld [vmem:[%s14541_s17 + $0xb30] sm:$0xff]  }
 0x378   : > { %12212 = vmatpush3.bf16.msra.mxu0 %v12716_v7  ;;  %11020 = vmatprep.mubr.bf16.mxu0 %v7761_v52 }
 0x379   : > { %v11920_v14 = vpop.f32.mrf.mxu0  ;;  %v11941_v15 = vpop.f32.mrf.mxu1  ;;  %10981 = vmatmul.mubr.bf16.vlgmr.msra.gmra.mxu1 %v7721_v8  ;;  %12213 = vmatprep.subr.bf16.mxu0 %v12719_v9  ;;  %v12755_v9 = vld [vmem:[%s14541_s17 + $0xb68] sm:$0xff]  }
 0x37a   : > { %v11921_v17 = vadd.f32 %v11920_v14, %v11919_v12  ;;  %12234 = vmatpush3.bf16.msra.mxu1 %v12718_v11  ;;  %11060 = vmatprep.mubr.bf16.mxu1 %v7771_v56  ;;  %v12754_v12 = vld [vmem:[%s14541_s17 + $0xbb0] sm:$0xff]   ;;  %v12757_v14 = vld [vmem:[%s14541_s17 + $0xbe8] sm:$0xff]  }
 0x37b   : > { %v11922_v19 = vpop.f32.mrf.mxu0  ;;  %v11942_v20 = vpop.f32.mrf.mxu1  ;;  %12235 = vmatprep.subr.bf16.mxu1 %v12721_v10  ;;  %v12782_v56 = vld [vmem:[%s14541_s17 + $0xc28] sm:$0xff]  }
 0x37c   : > { %v10463_v22 = vadd.f32 %v11921_v17, %v14911_v45  ;;  %v11943_v23 = vadd.f32 %v11942_v20, %v11941_v15  ;;  %12214 = vmatpush3.bf16.msra.mxu0 %v12720_v13  ;;  %v7724_v45 = vcombine.high %v6686_v42, %v6686_v42  ;;  %v12756_v17 = vld [vmem:[%s14541_s17 + $0xb28] sm:$0xff]   ;;  %v12759_v19 = vld [vmem:[%s14541_s17 + $0xb60] sm:$0xff]  }
 0x37d   : > { %v11923_v25 = vpop.f32.mrf.mxu0  ;;  %12215 = vmatprep.subr.bf16.mxu0 %v12723_v16  ;;  %v11944_v27 = vpop.f32.mrf.mxu1 }
 0x37e   : > { %v14948_v28 = vadd.f32 %v11943_v23, %v10463_v22  ;;  %12236 = vmatpush3.bf16.msra.mxu1 %v12722_v18  ;;  %v14968_v49 = vrot.slane %v7724_v45, %v14580_v58  ;;  %v12758_v22 = vld [vmem:[%s14541_s17 + $0xba8] sm:$0xff]   ;;  %v12761_v23 = vld [vmem:[%s14541_s17 + $0xbe0] sm:$0xff]   ;;  %v12846_v45 = vmov 0.0  }
 0x37f   : > { %12237 = vmatprep.subr.bf16.mxu1 %v12725_v21  ;;  %v11945_v31 = vpop.f32.mrf.mxu1  ;;  %v12760_v25 = vld [vmem:[%s14541_s17 + $0xb20] sm:$0xff]  }
 0x380   : > { %12216 = vmatpush3.bf16.msra.mxu0 %v12724_v24  ;;  %v7740_v53 = vcombine.high %v14968_v49, %v14968_v49  ;;  %v12762_v27 = vld [vmem:[%s14541_s17 + $0xba0] sm:$0xff]   ;;  %v12766_v31 = vld [vmem:[%s14541_s17 + $0xb98] sm:$0xff]   ;;  %v7754_v42 = vrot.slane %v14968_v49, %v14580_v58 }
 0x381   : > { %12217 = vmatprep.subr.bf16.mxu0 %v12727_v26  ;;  %v12763_v26 = vld [vmem:[%s14541_s17 + $0xb58] sm:$0xff]  }
 0x382   : > { %12238 = vmatpush3.bf16.msra.mxu1 %v12726_v29  ;;  %v7768_v61 = vrot.slane %v7740_v53, %v14580_v58  ;;  %v12764_v29 = vld [vmem:[%s14541_s17 + $0xb18] sm:$0xff]  }
 0x383   : > { %12239 = vmatprep.subr.bf16.mxu1 %v12729_v30  ;;  %v12767_v30 = vld [vmem:[%s14541_s17 + $0xb50] sm:$0xff]  }
 0x384   : > { %12218 = vmatpush3.bf16.msra.mxu0 %v12728_v32  ;;  %v7772_v3 = vcombine.high %v7768_v61, %v7768_v61  ;;  %v12769_v32 = vld [vmem:[%s14541_s17 + $0xbd0] sm:$0xff]  }
 0x385   : > { %12219 = vmatprep.subr.bf16.mxu0 %v12731_v33  ;;  %v12768_v33 = vld [vmem:[%s14541_s17 + $0xb10] sm:$0xff]  }
 0x386   : > { %12240 = vmatpush3.bf16.msra.mxu1 %v12730_v34  ;;  %v12771_v34 = vld [vmem:[%s14541_s17 + $0xb48] sm:$0xff]  }
 0x387   : > { %12241 = vmatprep.subr.bf16.mxu1 %v12733_v36  ;;  %v12770_v36 = vld [vmem:[%s14541_s17 + $0xb90] sm:$0xff]  }
 0x388   : > { %12220 = vmatpush3.bf16.msra.mxu0 %v12732_v35  ;;  %v12773_v35 = vld [vmem:[%s14541_s17 + $0xbc8] sm:$0xff]  }
 0x389   : > { %12221 = vmatprep.subr.bf16.mxu0 %v12735_v37  ;;  %v12772_v37 = vld [vmem:[%s14541_s17 + $0xb08] sm:$0xff]  }
 0x38a   : > { %12242 = vmatpush3.bf16.msra.mxu1 %v12734_v38  ;;  %v12775_v38 = vld [vmem:[%s14541_s17 + $0xb40] sm:$0xff]  }
 0x38b   : > { %12243 = vmatprep.subr.bf16.mxu1 %v12737_v39  ;;  %v12774_v39 = vld [vmem:[%s14541_s17 + $0xb88] sm:$0xff]  }
 0x38c   : > { %12222 = vmatpush3.bf16.msra.mxu0 %v12736_v40  ;;  %v12777_v40 = vld [vmem:[%s14541_s17 + $0xbc0] sm:$0xff]  }
 0x38d   : > { %12223 = vmatprep.subr.bf16.mxu0 %v12739_v41  ;;  %v12776_v41 = vld [vmem:[%s14541_s17 + $0xb00] sm:$0xff]  }
 0x38e   : > { %12244 = vmatpush3.bf16.msra.mxu1 %v12738_v43  ;;  %v12779_v43 = vld [vmem:[%s14541_s17 + $0xb80] sm:$0xff]  }
 0x38f   : > { %12245 = vmatprep.subr.bf16.mxu1 %v12741_v46  ;;  %v7770_v46 = vcombine.high %v7754_v42, %v7754_v42 }
 0x390   : > { %12224 = vmatpush3.bf16.msra.mxu0 %v12740_v47 }
 0x391   : > { %12225 = vmatprep.subr.bf16.mxu0 %v12743_v50 }
 0x392   : > { %12246 = vmatpush3.bf16.msra.mxu1 %v12742_v51 }
 0x393   : > { %12247 = vmatprep.subr.bf16.mxu1 %v12745_v54 }
 0x394   : > { %12226 = vmatpush3.bf16.msra.mxu0 %v12744_v55 }
 0x395   : > { %12255 = vmatprep.subr.bf16.mxu0 %v12747_v59 }
 0x396   : > { %12248 = vmatpush3.bf16.msra.mxu1 %v12746_v60 }
 0x397   : > { %v11963_v4 = vpop.f32.mrf.mxu0  ;;  %11021 = vmatmul.mubr.bf16.vlgmr.msra.gmra.mxu0 %v7747_v57  ;;  %12277 = vmatprep.subr.bf16.mxu1 %v12749_v62  ;;  %v12783_v62 = vld [vmem:[%s14541_s17 + $0xc20] sm:$0xff]  }
 0x398   : > { %12256 = vmatpush3.bf16.msra.mxu0 %v12748_v63  ;;  %11100 = vmatprep.mubr.bf16.mxu0 %v7768_v61  ;;  %v12784_v63 = vld [vmem:[%s14541_s17 + $0xc18] sm:$0xff]  }
 0x399   : > { %v11964_v7 = vpop.f32.mrf.mxu0  ;;  %v11985_v8 = vpop.f32.mrf.mxu1  ;;  %11061 = vmatmul.mubr.bf16.vlgmr.msra.gmra.mxu1 %v7769_v0  ;;  %12257 = vmatprep.subr.bf16.mxu0 %v12751_v1  ;;  %v12785_v0 = vld [vmem:[%s14541_s17 + $0xc10] sm:$0xff]   ;;  %v12786_v1 = vld [vmem:[%s14541_s17 + $0xc08] sm:$0xff]  }
 0x39a   : > { %v11965_v11 = vadd.f32 %v11964_v7, %v11963_v4  ;;  %12278 = vmatpush3.bf16.msra.mxu1 %v12750_v2  ;;  %11140 = vmatprep.mubr.bf16.mxu1 %v7772_v3  ;;  %v12787_v2 = vld [vmem:[%s14541_s17 + $0xc00] sm:$0xff]   ;;  %v11371_v3 = vld.sshfl [vmem:[%s14521_s30 + $0x30] sm:$0x1 pattern:$0x75316420] }
 0x39b   : > { %v11966_v10 = vpop.f32.mrf.mxu0  ;;  %v11986_v13 = vpop.f32.mrf.mxu1  ;;  %12279 = vmatprep.subr.bf16.mxu1 %v12753_v5  ;;  %v7786_v4 = vrot.slane %v11371_v3, %v14580_v58 }
 0x39c   : > { %v10543_v15 = vadd.f32 %v11965_v11, %v14948_v28  ;;  %v11987_v16 = vadd.f32 %v11986_v13, %v11985_v8  ;;  %12258 = vmatpush3.bf16.msra.mxu0 %v12752_v6  ;;  %v12765_v28 = vld [vmem:[%s14541_s17 + $0xbd8] sm:$0xff]  }
 0x39d   : > { %v11967_v18 = vpop.f32.mrf.mxu0  ;;  %12259 = vmatprep.subr.bf16.mxu0 %v12755_v9  ;;  %v11988_v20 = vpop.f32.mrf.mxu1 }
 0x39e   : > { %v14993_v21 = vadd.f32 %v11987_v16, %v10543_v15  ;;  %12280 = vmatpush3.bf16.msra.mxu1 %v12754_v12 }
 0x39f   : > { %12281 = vmatprep.subr.bf16.mxu1 %v12757_v14  ;;  %v11989_v24 = vpop.f32.mrf.mxu1 }
 0x3a0   : > { %12260 = vmatpush3.bf16.msra.mxu0 %v12756_v17 }
 0x3a1   : > { %12261 = vmatprep.subr.bf16.mxu0 %v12759_v19 }
 0x3a2   : > { %12282 = vmatpush3.bf16.msra.mxu1 %v12758_v22 }
 0x3a3   : > { %12283 = vmatprep.subr.bf16.mxu1 %v12761_v23 }
 0x3a4   : > { %12262 = vmatpush3.bf16.msra.mxu0 %v12760_v25 }
 0x3a5   : > { %12263 = vmatprep.subr.bf16.mxu0 %v12763_v26 }
 0x3a6   : > { %12284 = vmatpush3.bf16.msra.mxu1 %v12762_v27 }
 0x3a7   : > { %12285 = vmatprep.subr.bf16.mxu1 %v12765_v28 }
 0x3a8   : > { %12264 = vmatpush3.bf16.msra.mxu0 %v12764_v29 }
 0x3a9   : > { %12265 = vmatprep.subr.bf16.mxu0 %v12767_v30 }
 0x3aa   : > { %12286 = vmatpush3.bf16.msra.mxu1 %v12766_v31 }
 0x3ab   : > { %12287 = vmatprep.subr.bf16.mxu1 %v12769_v32 }
 0x3ac   : > { %12266 = vmatpush3.bf16.msra.mxu0 %v12768_v33 }
 0x3ad   : > { %12267 = vmatprep.subr.bf16.mxu0 %v12771_v34 }
 0x3ae   : > { %12288 = vmatpush3.bf16.msra.mxu1 %v12770_v36 }
 0x3af   : > { %12289 = vmatprep.subr.bf16.mxu1 %v12773_v35 }
 0x3b0   : > { %12268 = vmatpush3.bf16.msra.mxu0 %v12772_v37 }
 0x3b1   : > { %12269 = vmatprep.subr.bf16.mxu0 %v12775_v38 }
 0x3b2   : > { %12290 = vmatpush3.bf16.msra.mxu1 %v12774_v39 }
 0x3b3   : > { %12291 = vmatprep.subr.bf16.mxu1 %v12777_v40 }
 0x3b4   : > { %12270 = vmatpush3.bf16.msra.mxu0 %v12776_v41 }
 0x3b5   : > { %12308 = vmatprep.subr.bf16.mxu0 %v12846_v45 }
 0x3b6   : > { %12292 = vmatpush3.bf16.msra.mxu1 %v12779_v43 }
 0x3b7   : > { %v12007_v47 = vpop.f32.mrf.mxu0  ;;  %11101 = vmatmul.mubr.bf16.vlgmr.msra.gmra.mxu0 %v7754_v42 }
 0x3b8   : > { %12309 = vmatpush3.bf16.msra.mxu0 %v12780_v44  ;;  %12324 = vmatprep.mubr.msk.bf16.mxu0 %vm12847_vm0, %v12846_v45 }
 0x3b9   : > { %v12008_v50 = vpop.f32.mrf.mxu0  ;;  %v12029_v51 = vpop.f32.mrf.mxu1  ;;  %11141 = vmatmul.mubr.bf16.vlgmr.msra.gmra.mxu1 %v7770_v46  ;;  %12310 = vmatprep.subr.bf16.mxu0 %v12846_v45 }
 0x3ba   : > { %v12009_v49 = vadd.f32 %v12008_v50, %v12007_v47 }
 0x3bb   : > { %v12010_v52 = vpop.f32.mrf.mxu0  ;;  %v12030_v53 = vpop.f32.mrf.mxu1 }
 0x3bc   : > { %v10623_v54 = vadd.f32 %v12009_v49, %v14993_v21  ;;  %v12031_v55 = vadd.f32 %v12030_v53, %v12029_v51  ;;  %12311 = vmatpush3.bf16.msra.mxu0 %v12781_v48 }
 0x3bd   : > { %v12011_v57 = vpop.f32.mrf.mxu0  ;;  %12312 = vmatprep.subr.bf16.mxu0 %v12846_v45  ;;  %v12032_v59 = vpop.f32.mrf.mxu1 }
 0x3be   : > { %v10663_v60 = vadd.f32 %v12031_v55, %v10623_v54 }
 0x3bf   : > { %v12033_v61 = vpop.f32.mrf.mxu1 }
 0x3c0   : > { %12313 = vmatpush3.bf16.msra.mxu0 %v12782_v56 }
 0x3c1   : > { %12314 = vmatprep.subr.bf16.mxu0 %v12846_v45 }
 0x3c4   : > { %12315 = vmatpush3.bf16.msra.mxu0 %v12783_v62 }
 0x3c5   : > { %12316 = vmatprep.subr.bf16.mxu0 %v12846_v45 }
 0x3c8   : > { %12317 = vmatpush3.bf16.msra.mxu0 %v12784_v63 }
 0x3c9   : > { %12318 = vmatprep.subr.bf16.mxu0 %v12846_v45 }
 0x3cc   : > { %12319 = vmatpush3.bf16.msra.mxu0 %v12785_v0 }
 0x3cd   : > { %12320 = vmatprep.subr.bf16.mxu0 %v12846_v45 }
 0x3d0   : > { %12321 = vmatpush3.bf16.msra.mxu0 %v12786_v1 }
 0x3d1   : > { %12322 = vmatprep.subr.bf16.mxu0 %v12846_v45 }
 0x3d4   : > { %12323 = vmatpush3.bf16.msra.mxu0 %v12787_v2 }
 0x3d7   : > { %v12051_v5 = vpop.f32.mrf.mxu0  ;;  %12325 = vmatmul.mubr.bf16.vlgmr.msra.gmra.mxu0 %v7786_v4 }
 0x3d9   : > { %v12052_v6 = vpop.f32.mrf.mxu0  ;;  %v12073_v7 = vpop.f32.mrf.mxu1 }
 0x3da   : > { %v12053_v8 = vadd.f32 %v12052_v6, %v12051_v5 }
 0x3db   : > { %v12054_v9 = vpop.f32.mrf.mxu0  ;;  %v12074_v11 = vpop.f32.mrf.mxu1 }
 0x3dc   : > { %v10703_v12 = vadd.f32 %v12053_v8, %v10663_v60  ;;  %v12075_v10 = vadd.f32 %v12074_v11, %v12073_v7 }
 0x3dd   : > { %v12055_v13 = vpop.f32.mrf.mxu0  ;;  %v12076_v14 = vpop.f32.mrf.mxu1 }
 0x3de   : > { %v10743_v15 = vadd.f32 %v12075_v10, %v10703_v12  ;;  %v6680_v13 = vld [vmem:[%s14539_s29] sm:$0x3] }
 0x3df   : > { %v12077_v16 = vpop.f32.mrf.mxu1 }
 0x3f7   : > { %v12095_v17 = vpop.f32.mrf.mxu0 }
 0x3f9   : > { %v12096_v18 = vpop.f32.mrf.mxu0  ;;  %v12117_v19 = vpop.f32.mrf.mxu1 }
 0x3fa   : > { %v12097_v20 = vadd.f32 %v12096_v18, %v12095_v17 }
 0x3fb   : > { %v12098_v21 = vpop.f32.mrf.mxu0  ;;  %v12118_v58 = vpop.f32.mrf.mxu1 }
 0x3fc   : > { %v10783_v22 = vadd.f32 %v12097_v20, %v10743_v15  ;;  %v12119_v23 = vadd.f32 %v12118_v58, %v12117_v19 }
 0x3fd   : > { %v12099_v24 = vpop.f32.mrf.mxu0  ;;  %v12120_v25 = vpop.f32.mrf.mxu1 }
 0x3fe   : > { %v10823_v26 = vadd.f32 %v12119_v23, %v10783_v22 }
 0x3ff   : > { %v12121_v27 = vpop.f32.mrf.mxu1 }
 0x417   : > { %v12139_v28 = vpop.f32.mrf.mxu0 }
 0x419   : > { %v12140_v29 = vpop.f32.mrf.mxu0  ;;  %v12161_v30 = vpop.f32.mrf.mxu1 }
 0x41a   : > { %v12141_v31 = vadd.f32 %v12140_v29, %v12139_v28 }
 0x41b   : > { %v12142_v32 = vpop.f32.mrf.mxu0  ;;  %v12162_v33 = vpop.f32.mrf.mxu1 }
 0x41c   : > { %v10863_v34 = vadd.f32 %v12141_v31, %v10823_v26  ;;  %v12163_v36 = vadd.f32 %v12162_v33, %v12161_v30 }
 0x41d   : > { %v12143_v35 = vpop.f32.mrf.mxu0  ;;  %v12164_v37 = vpop.f32.mrf.mxu1 }
 0x41e   : > { %v10903_v38 = vadd.f32 %v12163_v36, %v10863_v34 }
 0x41f   : > { %v12165_v39 = vpop.f32.mrf.mxu1 }
 0x437   : > { %v12183_v40 = vpop.f32.mrf.mxu0 }
 0x439   : > { %v12184_v41 = vpop.f32.mrf.mxu0  ;;  %v12205_v42 = vpop.f32.mrf.mxu1 }
 0x43a   : > { %v12185_v43 = vadd.f32 %v12184_v41, %v12183_v40 }
 0x43b   : > { %v12186_v44 = vpop.f32.mrf.mxu0  ;;  %v12206_v45 = vpop.f32.mrf.mxu1 }
 0x43c   : > { %v10943_v46 = vadd.f32 %v12185_v43, %v10903_v38  ;;  %v12207_v47 = vadd.f32 %v12206_v45, %v12205_v42 }
 0x43d   : > { %v12187_v48 = vpop.f32.mrf.mxu0  ;;  %v12208_v50 = vpop.f32.mrf.mxu1 }
 0x43e   : > { %v10983_v51 = vadd.f32 %v12207_v47, %v10943_v46 }
 0x43f   : > { %v12209_v49 = vpop.f32.mrf.mxu1 }
 0x457   : > { %v12227_v52 = vpop.f32.mrf.mxu0 }
 0x459   : > { %v12228_v53 = vpop.f32.mrf.mxu0  ;;  %v12249_v54 = vpop.f32.mrf.mxu1 }
 0x45a   : > { %v12229_v5 = vadd.f32 %v12228_v53, %v12227_v52 }
 0x45b   : > { %v12230_v55 = vpop.f32.mrf.mxu0  ;;  %v12250_v56 = vpop.f32.mrf.mxu1 }
 0x45c   : > { %v11023_v6 = vadd.f32 %v12229_v5, %v10983_v51  ;;  %v12251_v7 = vadd.f32 %v12250_v56, %v12249_v54 }
 0x45d   : > { %v12231_v57 = vpop.f32.mrf.mxu0  ;;  %v12252_v59 = vpop.f32.mrf.mxu1 }
 0x45e   : > { %v11063_v9 = vadd.f32 %v12251_v7, %v11023_v6 }
 0x45f   : > { %v12253_v60 = vpop.f32.mrf.mxu1 }
 0x477   : > { %v12271_v61 = vpop.f32.mrf.mxu0 }
 0x479   : > { %v12272_v62 = vpop.f32.mrf.mxu0  ;;  %v12293_v63 = vpop.f32.mrf.mxu1 }
 0x47a   : > { %v12273_v8 = vadd.f32 %v12272_v62, %v12271_v61 }
 0x47b   : > { %v12274_v0 = vpop.f32.mrf.mxu0  ;;  %v12294_v1 = vpop.f32.mrf.mxu1 }
 0x47c   : > { %v11103_v11 = vadd.f32 %v12273_v8, %v11063_v9  ;;  %v12295_v12 = vadd.f32 %v12294_v1, %v12293_v63 }
 0x47d   : > { %v12275_v2 = vpop.f32.mrf.mxu0  ;;  %v12296_v3 = vpop.f32.mrf.mxu1 }
 0x47e   : > { %v11143_v10 = vadd.f32 %v12295_v12, %v11103_v11 }
 0x47f   : > { %v12297_v4 = vpop.f32.mrf.mxu1 }
 0x497   : > { %v11182_v14 = vpop.f32.mrf.mxu0 }
 0x498   : > { %v11183_v15 = vadd.f32 %v11182_v14, %v11143_v10 }
 0x499   : > { %v12326_v16 = vpop.f32.mrf.mxu0  ;;  %11193 = sbr.rel (%p11764_p13) target bundleno = 1197 (0x4ad), region = 100 }
 0x49a   : > { %v11188_v17 = vadd.f32 %v11183_v15, %v6680_v13 }
 0x49b   : > { %v11185_v18 = vpop.f32.mrf.mxu0 }
 0x49c   : > { %11189 = vst [vmem:[%s14539_s29] sm:$0x3] %v11188_v17 }
 0x49d   : > { %v12327_v19 = vpop.f32.mrf.mxu0 }
 0x49e   : > { %v11765_v21 = vld [vmem:[%s6659_s18] ss:$0 sm:$0xff] }
 0x49f   : > { %v11766_v22 = vld [vmem:[%s6662_s11] ss:$0 sm:$0xff] }
 0x4a0   : > { %v11767_v24 = vld [vmem:[%s6665_s14] ss:$0 sm:$0xff] }
 0x4a3   : > { %v11194_v20 = vld [vmem:[%s14539_s29] sm:$0x3] }
 0x4a4   : > { %v11202_v58 = vadd.f32 %v11765_v21, %v11194_v20 }
 0x4a6   : > { %v11203_v23 = vmax.f32 %v11202_v58, 0.0 }
 0x4a8   : > { %v11211_v25 = vmul.f32 %v11766_v22, %v11203_v23 }
 0x4aa   : > { %v11219_v26 = vadd.f32 %v11767_v24, %v11211_v25 }
 0x4ac   : > { %11220 = vst [vmem:[%s14539_s29] sm:$0x3] %v11219_v26 }
 0x4ad PF: > { %s15_s24 = sadd.s32 1, %s12842_s24   ;;  %s15075_s18 = smov %s12822_s19 }
 0x4ae   : > { %p12_p0 = scmp.ge.s32.totalorder %s15_s24, 6   ;;  %s15076_s19 = smov %s12929_s6 }
 0x4af   : > { %s15077_s20 = smov %s12834_s22  ;;  %s15078_s21 = smov %s12838_s23 }
 0x4b0   : > { %s15079_s22 = smov %s15082_s25  ;;  %s15080_s23 = smov %s15086_s26 }
 0x4b1   :  { %14 = sbr.rel (!%p12_p0) target bundleno = 4 (0x4), region = 151 }

</bundles_post_ra>
